<compile_context>
chip_gen: v5e
topology: v5e:2x2
jax: 0.10.0
libtpu: 0.0.40
codegen_flags: <defaults>
</compile_context>

<pallas_src>
import functools
from typing import NamedTuple

import jax
import jax.numpy as jnp
from jax.experimental import pallas as pl
from jax.experimental.pallas import tpu as pltpu


def _round_up(x, m):
    return (x + m - 1) // m * m


def _device_kind():
    try:
        return jax.devices()[0].device_kind.lower()
    except Exception:
        return ""


def _is_pre_v6():
    # Chips without bf16 VPU/EUP: keep the activation chain in f32 there.
    k = _device_kind()
    return any(t in k for t in ("v2", "v3", "v4", "v5"))


def _is_multi_tc():
    # Only multi-TensorCore chips benefit from an even, "parallel" batch grid.
    k = _device_kind()
    return ("v7" in k) or ("tpu7" in k)


class LSTMFCMeta(NamedTuple):
    d_in: int
    hidden: int
    hp: int
    d_out: int
    dop: int
    dp: int
    use_vpu_gates: bool


def pack_lstm_fc_params(w_ih, w_hh, b_ih, b_hh, w_fc, b_fc, *,
                        matmul_dtype=jnp.bfloat16):
    """One-time parameter repack (call at module-init, NOT per forward call).

    PyTorch layouts in:  w_ih (4H, D_in), w_hh (4H, H) [dead], b_ih/b_hh (4H,),
                         w_fc (D_out, H), b_fc (D_out,).
    """
    del w_hh  # dead: seq_len == 1 and h0 == 0 -> the recurrent term vanishes.
    H = w_ih.shape[0] // 4
    D_in = w_ih.shape[1]
    D_out = w_fc.shape[0]

    Hp = _round_up(H, 128)           # lane-aligned i/g/o gate blocks
    Dop = _round_up(D_out, 128)      # lane-dense output stores
    use_vpu_gates = (D_in == 1)      # module default: gate "matmul" on the VPU
    Dp = 1 if use_vpu_gates else _round_up(D_in, 16)   # bf16 sublane pack

    b_sum = (b_ih + b_hh).astype(jnp.float32)

    def gate_rows(arr, k):           # rows [kH:(k+1)H] of a (4H, ...) tensor, padded to Hp
        blk = arr[k * H:(k + 1) * H]
        pad = [(0, Hp - H)] + [(0, 0)] * (blk.ndim - 1)
        return jnp.pad(blk, pad)

    # Keep only the live gates (i, g, o) -- the f-gate only multiplies c0 == 0.
    w_i, w_g, w_o = (gate_rows(w_ih, k) for k in (0, 2, 3))     # each (Hp, D_in)
    w_gates = jnp.concatenate([w_i, w_g, w_o], axis=0).T        # (D_in, 3*Hp)
    if use_vpu_gates:
        # Tiny single row: keep f32 for accuracy; it feeds a VPU broadcast-mul.
        w_gates = w_gates.astype(jnp.float32)                   # (1, 3*Hp)
    else:
        w_gates = jnp.pad(w_gates, ((0, Dp - D_in), (0, 0))).astype(matmul_dtype)

    b_i, b_g, b_o = (gate_rows(b_sum, k) for k in (0, 2, 3))
    b_gates = jnp.concatenate([b_i, b_g, b_o])[None, :]         # (1, 3*Hp) f32

    w_fc_p = jnp.pad(w_fc.T, ((0, Hp - H), (0, Dop - D_out))).astype(matmul_dtype)
    b_fc_p = jnp.pad(b_fc, (0, Dop - D_out))[None, :].astype(jnp.float32)

    params = (w_gates, b_gates, w_fc_p, b_fc_p)
    meta = LSTMFCMeta(d_in=D_in, hidden=H, hp=Hp, d_out=D_out, dop=Dop, dp=Dp,
                      use_vpu_gates=use_vpu_gates)
    return params, meta


def _make_kernel(Hp, act_dtype, use_vpu_gates):
    def kernel(x_ref, w_g_ref, b_g_ref, w_fc_ref, b_fc_ref, out_ref):
        if use_vpu_gates:
            # D_in == 1: rank-1 gate pre-activation on the VPU (no MXU K=1 pass).
            gates = (x_ref[...].astype(jnp.float32) * w_g_ref[...]
                     + b_g_ref[...])                              # (tb, 3*Hp) f32
        else:
            gates = (jnp.dot(x_ref[...], w_g_ref[...],
                             preferred_element_type=jnp.float32)
                     + b_g_ref[...])                              # f32 accumulation

        # Activation chain: bf16 on v6e/v7x (bf16 VPU/EUP), f32 on v5e.
        gates = gates.astype(act_dtype)
        i = jax.nn.sigmoid(gates[:, 0:Hp])        # lane-aligned full-vreg slices
        g = jnp.tanh(gates[:, Hp:2 * Hp])
        o = jax.nn.sigmoid(gates[:, 2 * Hp:3 * Hp])
        h = o * jnp.tanh(i * g)                   # c = i*g since c0 == 0 (f-gate dead)

        # Fused fully-connected layer; lane-dense (Dop) bf16 store.
        out = (jnp.dot(h.astype(w_fc_ref.dtype), w_fc_ref[...],
                       preferred_element_type=jnp.float32)
               + b_fc_ref[...])
        out_ref[...] = out.astype(out_ref.dtype)
    return kernel


@functools.partial(jax.jit, static_argnames=("meta", "tb"))
def lstm_fc_forward(x, params, meta, *, tb=None):
    """Fused forward of the PyTorch `LSTM` module (1-step LSTM from zeros + Linear)."""
    w_gates, b_gates, w_fc_p, b_fc_p = params
    B = x.shape[0]
    Hp, Dop, Dp = meta.hp, meta.dop, meta.dp

    multi_tc = _is_multi_tc()
    act_dtype = jnp.float32 if _is_pre_v6() else jnp.bfloat16

    # Batch tiling:
    #   * single-TC chips (v5e/v6e): one grid step for small B (per-step cost
    #     ~0.35us dominates at these sizes), 256-row tiles for large B,
    #   * multi-TC chips (v7x): even grid + "parallel" so both cores get work.
    if tb is None:
        if multi_tc and B > 128:
            tb = 128 if B <= 512 else 256
            Bp = _round_up(B, 2 * tb)
        elif B <= 256:
            tb = _round_up(B, 16)
            Bp = tb
        else:
            tb = 256
            Bp = _round_up(B, tb)
    else:
        Bp = _round_up(B, tb)

    x_p = jnp.pad(x, ((0, Bp - B), (0, Dp - meta.d_in)))
    x_p = x_p.astype(jnp.float32 if meta.use_vpu_gates else w_gates.dtype)

    kernel = _make_kernel(Hp, act_dtype, meta.use_vpu_gates)

    def invariant_spec(shape):
        # Fetched once (constant block index), never re-DMA'd across batch tiles.
        return pl.BlockSpec(shape, lambda i: (0, 0))

    out = pl.pallas_call(
        kernel,
        out_shape=jax.ShapeDtypeStruct((Bp, Dop), jnp.bfloat16),  # half the writeback
        grid_spec=pltpu.PrefetchScalarGridSpec(
            num_scalar_prefetch=0,
            grid=(Bp // tb,),
            in_specs=[
                pl.BlockSpec((tb, Dp), lambda i: (i, 0)),         # x: batch-tiled
                invariant_spec(w_gates.shape),                    # W_[i|g|o]
                invariant_spec(b_gates.shape),                    # b_ih + b_hh (i|g|o)
                invariant_spec(w_fc_p.shape),                     # W_fc
                invariant_spec(b_fc_p.shape),                     # b_fc
            ],
            out_specs=pl.BlockSpec((tb, Dop), lambda i: (i, 0)),  # lane-dense output
        ),
        compiler_params=pltpu.CompilerParams(
            dimension_semantics=("parallel",),
            vmem_limit_bytes=32 * 1024 * 1024),
    )(x_p, w_gates, b_gates, w_fc_p, b_fc_p)

    return out[:B, :meta.d_out].astype(jnp.float32)   # strip padding, back to f32


def reference_forward(x, w_ih, w_hh, b_ih, b_hh, w_fc, b_fc):
    """Pure-JAX f32 reference mirroring the torch module (seq_len=1, zero init state)."""
    H = w_hh.shape[1]
    gates = x @ w_ih.T + b_ih + b_hh             # h0 == 0 -> recurrent term is 0
    i = jax.nn.sigmoid(gates[:, 0:H])
    g = jnp.tanh(gates[:, 2 * H:3 * H])
    o = jax.nn.sigmoid(gates[:, 3 * H:4 * H])
    c = i * g                                    # c0 == 0 (f-gate has no effect)
    h = o * jnp.tanh(c)
    return h @ w_fc.T + b_fc


if __name__ == "__main__":
    # Module defaults: input_dim=1, hidden_dim=350, output_dim=1; modest batch.
    # B deliberately not a multiple of the tile / 16 to exercise the padding path.
    B, D_IN, H, D_OUT = 200, 1, 350, 1

    key = jax.random.PRNGKey(0)
    kx, k1, k2, k3, k4, k5, k6 = jax.random.split(key, 7)

    x = jax.random.normal(kx, (B, D_IN), jnp.float32)

    # PyTorch-style init: U(-1/sqrt(H), 1/sqrt(H)) for LSTM and the Linear (fan_in=H).
    k_u = 1.0 / jnp.sqrt(jnp.float32(H))
    w_ih = jax.random.uniform(k1, (4 * H, D_IN), jnp.float32, -k_u, k_u)
    w_hh = jax.random.uniform(k2, (4 * H, H), jnp.float32, -k_u, k_u)
    b_ih = jax.random.uniform(k3, (4 * H,), jnp.float32, -k_u, k_u)
    b_hh = jax.random.uniform(k4, (4 * H,), jnp.float32, -k_u, k_u)
    w_fc = jax.random.uniform(k5, (D_OUT, H), jnp.float32, -k_u, k_u)
    b_fc = jax.random.uniform(k6, (D_OUT,), jnp.float32, -k_u, k_u)

    # One-time packing (module init), then the lean per-call forward.
    params, meta = pack_lstm_fc_params(w_ih, w_hh, b_ih, b_hh, w_fc, b_fc)
    params = jax.block_until_ready(params)

    out = lstm_fc_forward(x, params, meta)
    out = jax.block_until_ready(out)

    ref = reference_forward(x, w_ih, w_hh, b_ih, b_hh, w_fc, b_fc)
    assert out.shape == (B, D_OUT), out.shape
    # bf16 matmul operands / activations / output with f32 accumulation
    # -> loose-but-safe tolerance vs the f32 reference.
    assert jnp.allclose(out, ref, atol=2e-2, rtol=2e-2), \
        float(jnp.max(jnp.abs(out - ref)))

    print("KERNEL_OK")
</pallas_src>

<mosaic_0001>
module attributes {stable_mosaic.version = 11 : i64} {
  func.func @kernel(%arg0: i32, %arg1: memref<208x1xf32, #tpu.memory_space<vmem>>, %arg2: memref<1x1152xf32, #tpu.memory_space<vmem>>, %arg3: memref<1x1152xf32, #tpu.memory_space<vmem>>, %arg4: memref<384x128xbf16, #tpu.memory_space<vmem>>, %arg5: memref<1x128xf32, #tpu.memory_space<vmem>>, %arg6: memref<208x128xbf16, #tpu.memory_space<vmem>>) attributes {dimension_semantics = [#tpu.dimension_semantics<parallel>], iteration_bounds = array<i64: 1>, scalar_prefetch = 0 : i64, scratch_operands = 0 : i64, tpu.core_type = #tpu.core_type<tc>, window_params = [{transform_indices = @transform_0, window_bounds = array<i64: 208, 1>}, {pipeline_mode = #tpu.pipeline_mode<synchronous>, transform_indices = @transform_1, window_bounds = array<i64: 1, 1152>}, {pipeline_mode = #tpu.pipeline_mode<synchronous>, transform_indices = @transform_2, window_bounds = array<i64: 1, 1152>}, {pipeline_mode = #tpu.pipeline_mode<synchronous>, transform_indices = @transform_3, window_bounds = array<i64: 384, 128>}, {pipeline_mode = #tpu.pipeline_mode<synchronous>, transform_indices = @transform_4, window_bounds = array<i64: 1, 128>}, {transform_indices = @transform_5, window_bounds = array<i64: 208, 128>}]} {
    %c0 = arith.constant 0 : index
    %c0_0 = arith.constant 0 : index
    %0 = vector.load %arg1[%c0, %c0_0] : memref<208x1xf32, #tpu.memory_space<vmem>>, vector<208x1xf32>
    %c0_1 = arith.constant 0 : index
    %c0_2 = arith.constant 0 : index
    %1 = vector.load %arg2[%c0_1, %c0_2] : memref<1x1152xf32, #tpu.memory_space<vmem>>, vector<1x1152xf32>
    %2 = vector.broadcast %0 : vector<208x1xf32> to vector<208x1152xf32>
    %3 = vector.broadcast %1 : vector<1x1152xf32> to vector<208x1152xf32>
    %4 = arith.mulf %2, %3 : vector<208x1152xf32>
    %c0_3 = arith.constant 0 : index
    %c0_4 = arith.constant 0 : index
    %5 = vector.load %arg3[%c0_3, %c0_4] : memref<1x1152xf32, #tpu.memory_space<vmem>>, vector<1x1152xf32>
    %6 = vector.broadcast %5 : vector<1x1152xf32> to vector<208x1152xf32>
    %7 = arith.addf %4, %6 : vector<208x1152xf32>
    %8 = arith.truncf %7 : vector<208x1152xf32> to vector<208x1152xbf16>
    %9 = vector.extract_strided_slice %8 {offsets = [0, 0], sizes = [208, 384], strides = [1, 1]} : vector<208x1152xbf16> to vector<208x384xbf16>
    %10 = arith.negf %9 : vector<208x384xbf16>
    %11 = math.exp %10 : vector<208x384xbf16>
    %cst = arith.constant 1.000000e+00 : bf16
    %12 = vector.broadcast %cst : bf16 to vector<208x384xbf16>
    %13 = arith.addf %12, %11 : vector<208x384xbf16>
    %14 = arith.divf %12, %13 : vector<208x384xbf16>
    %15 = vector.extract_strided_slice %8 {offsets = [0, 384], sizes = [208, 384], strides = [1, 1]} : vector<208x1152xbf16> to vector<208x384xbf16>
    %16 = math.tanh %15 : vector<208x384xbf16>
    %17 = vector.extract_strided_slice %8 {offsets = [0, 768], sizes = [208, 384], strides = [1, 1]} : vector<208x1152xbf16> to vector<208x384xbf16>
    %18 = arith.negf %17 : vector<208x384xbf16>
    %19 = math.exp %18 : vector<208x384xbf16>
    %cst_5 = arith.constant 1.000000e+00 : bf16
    %20 = vector.broadcast %cst_5 : bf16 to vector<208x384xbf16>
    %21 = arith.addf %20, %19 : vector<208x384xbf16>
    %22 = arith.divf %20, %21 : vector<208x384xbf16>
    %23 = arith.mulf %14, %16 : vector<208x384xbf16>
    %24 = math.tanh %23 : vector<208x384xbf16>
    %25 = arith.mulf %22, %24 : vector<208x384xbf16>
    %c0_6 = arith.constant 0 : index
    %c0_7 = arith.constant 0 : index
    %26 = vector.load %arg4[%c0_6, %c0_7] : memref<384x128xbf16, #tpu.memory_space<vmem>>, vector<384x128xbf16>
    %cst_8 = arith.constant dense<0.000000e+00> : vector<208x128xf32>
    %27 = tpu.matmul %25, %26, %cst_8 {dimension_numbers = #tpu.dot_dimension_numbers<[1], [0], [0], [1], [0, 0, 1, 1], [], []>} : vector<208x384xbf16>, vector<384x128xbf16>, vector<208x128xf32> -> vector<208x128xf32>
    %c0_9 = arith.constant 0 : index
    %c0_10 = arith.constant 0 : index
    %28 = vector.load %arg5[%c0_9, %c0_10] : memref<1x128xf32, #tpu.memory_space<vmem>>, vector<1x128xf32>
    %29 = vector.broadcast %28 : vector<1x128xf32> to vector<208x128xf32>
    %30 = arith.addf %27, %29 : vector<208x128xf32>
    %31 = arith.truncf %30 : vector<208x128xf32> to vector<208x128xbf16>
    %c0_11 = arith.constant 0 : index
    %c0_12 = arith.constant 0 : index
    %32 = vector.load %arg6[%c0_11, %c0_12] : memref<208x128xbf16, #tpu.memory_space<vmem>>, vector<208x128xbf16>
    tpu.vector_store %arg6[%c0_11, %c0_12], %31 {strides = array<i32>} : memref<208x128xbf16, #tpu.memory_space<vmem>>, vector<208x128xbf16>,
    return
  }
  func.func @transform_0(%arg0: i32) -> (i32, i32) {
    %c0_i32 = arith.constant 0 : i32
    %c0_i32_0 = arith.constant 0 : i32
    return %arg0, %c0_i32 : i32, i32
  }
  func.func @transform_1(%arg0: i32) -> (i32, i32) {
    %c0_i32 = arith.constant 0 : i32
    %c0_i32_0 = arith.constant 0 : i32
    %c0_i32_1 = arith.constant 0 : i32
    return %c0_i32, %c0_i32_0 : i32, i32
  }
  func.func @transform_2(%arg0: i32) -> (i32, i32) {
    %c0_i32 = arith.constant 0 : i32
    %c0_i32_0 = arith.constant 0 : i32
    %c0_i32_1 = arith.constant 0 : i32
    return %c0_i32, %c0_i32_0 : i32, i32
  }
  func.func @transform_3(%arg0: i32) -> (i32, i32) {
    %c0_i32 = arith.constant 0 : i32
    %c0_i32_0 = arith.constant 0 : i32
    %c0_i32_1 = arith.constant 0 : i32
    return %c0_i32, %c0_i32_0 : i32, i32
  }
  func.func @transform_4(%arg0: i32) -> (i32, i32) {
    %c0_i32 = arith.constant 0 : i32
    %c0_i32_0 = arith.constant 0 : i32
    %c0_i32_1 = arith.constant 0 : i32
    return %c0_i32, %c0_i32_0 : i32, i32
  }
  func.func @transform_5(%arg0: i32) -> (i32, i32) {
    %c0_i32 = arith.constant 0 : i32
    %c0_i32_0 = arith.constant 0 : i32
    return %arg0, %c0_i32 : i32, i32
  }
}

</mosaic_0001>

<bundles_post_ra>
// kernel: lstm_fc_forward.1
= control target key start
LH: loop header
LB: loop body
LE: loop exit
PB: predicated region body
PF: predicated region fallthrough
CT: control target
= control target key end

     0   :  { %v5551_v0 = vmov 0   ;;  %vm1835_vm0 = vcmask 1043456   ;;  %s8069_s0 = inlined_call_operand.vmem [shape: f32[208,1], index: 0, kind: input, shape index: {}]   ;;  %s8070_s1 = inlined_call_operand.vmem [shape: f32[1,1152], index: 1, kind: input, shape index: {}]   ;;  %s8071_s2 = inlined_call_operand.vmem [shape: f32[1,1152], index: 2, kind: input, shape index: {}]   ;;  %s8072_s3 = inlined_call_operand.vmem [shape: bf16[384,128], index: 3, kind: input, shape index: {}]   ;;  %s8073_s4 = inlined_call_operand.vmem [shape: f32[1,128], index: 4, kind: input, shape index: {}]   ;;  %s8074_s5 = inlined_call_operand.vmem [shape: bf16[208,128], index: 5, kind: output, shape index: {}]  }
   0x1   :  { %4498 = vset.pattern.permute.xlu2 %v5551_v0  ;;  %4497 = vset.pattern.permute.xlu1 %v5551_v0  ;;  %v41_v1 = vld [vmem:[%s8069_s0 + $0xa0] sm:$0xff]  ;;  %v23_v2 = vld [vmem:[%s8069_s0 + $0x10] sm:$0xff]  ;;  %v42_v4 = vld [vmem:[%s8069_s0 + $0xa8] sm:$0xff] }
   0x2   :  { %v21_v3 = vld [vmem:[%s8069_s0] sm:$0xff]  ;;  %4496 = vset.pattern.permute.xlu0 %v5551_v0  ;;  %151 = vperm.xlu2 %4498, %v41_v1   ;;  %v24_v5 = vld [vmem:[%s8069_s0 + $0x18] sm:$0xff]  ;;  %v22_v6 = vld [vmem:[%s8069_s0 + $0x8] sm:$0xff] }
   0x3   :  { %61 = vperm.xlu1 %4497, %v23_v2   ;;  %51 = vperm.xlu0 %4496, %v21_v3   ;;  %v43_v7 = vld [vmem:[%s8069_s0 + $0xb0] sm:$0xff]  ;;  %v26_v8 = vld [vmem:[%s8069_s0 + $0x28] sm:$0xff]  ;;  %v25_v9 = vld [vmem:[%s8069_s0 + $0x20] sm:$0xff] }
   0x4   :  { %v28_v10 = vld [vmem:[%s8069_s0 + $0x38] sm:$0xff]  ;;  %v27_v11 = vld [vmem:[%s8069_s0 + $0x30] sm:$0xff]  ;;  %v29_v13 = vld [vmem:[%s8069_s0 + $0x40] sm:$0xff] }
   0x5   :  { %v44_v12 = vld [vmem:[%s8069_s0 + $0xb8] sm:$0xff]  ;;  %v46_v14 = vld [vmem:[%s8069_s0 + $0xc8] sm:$0xff]  ;;  %v45_v15 = vld [vmem:[%s8069_s0 + $0xc0] sm:$0xff] }
   0x6   :  { %v32_v16 = vld [vmem:[%s8069_s0 + $0x58] sm:$0xff]  ;;  %v31_v17 = vld [vmem:[%s8069_s0 + $0x50] sm:$0xff]  ;;  %v30_v18 = vld [vmem:[%s8069_s0 + $0x48] sm:$0xff] }
   0x7   :  { %v35_v19 = vld [vmem:[%s8069_s0 + $0x70] sm:$0xff]  ;;  %v34_v20 = vld [vmem:[%s8069_s0 + $0x68] sm:$0xff]  ;;  %v33_v21 = vld [vmem:[%s8069_s0 + $0x60] sm:$0xff] }
   0x8   :  { %v38_v22 = vld [vmem:[%s8069_s0 + $0x88] sm:$0xff]  ;;  %v37_v23 = vld [vmem:[%s8069_s0 + $0x80] sm:$0xff]  ;;  %v36_v24 = vld [vmem:[%s8069_s0 + $0x78] sm:$0xff] }
   0x9   :  { %v40_v25 = vld [vmem:[%s8069_s0 + $0x98] sm:$0xff]  ;;  %v39_v26 = vld [vmem:[%s8069_s0 + $0x90] sm:$0xff]  ;;  %v47_v27 = vld [vmem:[%s8070_s1] sm:$0xff] }
   0xa   :  { %156 = vperm.xlu2 %4498, %v42_v4   ;;  %v5664_v28 = vperm.slane %v47_v27, 0  ;;  %v5666_v29 = vperm.slane %v47_v27, 1  ;;  %v433_v30 = vld [vmem:[%s8071_s2] sm:$0xff]  ;;  %v5671_v32 = vperm.slane %v47_v27, 2  ;;  %v5673_v33 = vperm.slane %v47_v27, 3 }
   0xb   :  { %66 = vperm.xlu1 %4497, %v24_v5   ;;  %56 = vperm.xlu0 %4496, %v22_v6   ;;  %v5675_v34 = vperm.slane %v433_v30, 0  ;;  %v5677_v35 = vperm.slane %v433_v30, 1  ;;  %v5681_v38 = vperm.slane %v433_v30, 2  ;;  %v5683_v39 = vperm.slane %v433_v30, 3  ;;  %v5702_v52 = vld [vmem:[%s8070_s1 + $0x8] ss:$0 sm:$0xff] }
   0xc   :  { %v5691_v47 = vperm.slane %v47_v27, 6  ;;  %v5693_v48 = vperm.slane %v47_v27, 7  ;;  %v5695_v50 = vperm.slane %v47_v27, 4  ;;  %v5697_v51 = vperm.slane %v47_v27, 5  ;;  %v4500_v2 = vld [vmem:[%s8071_s2 + $0x8] ss:$0 sm:$0xff] }
   0xd   :  { %v5710_v58 = vperm.slane %v433_v30, 6  ;;  %v5715_v62 = vperm.slane %v433_v30, 4  ;;  %v5717_v63 = vperm.slane %v433_v30, 7  ;;  %v5719_v1 = vperm.slane %v433_v30, 5 }
  0x12   :  { %161 = vperm.xlu2 %4498, %v43_v7  }
  0x13   :  { %76 = vperm.xlu1 %4497, %v26_v8   ;;  %71 = vperm.xlu0 %4496, %v25_v9  }
  0x1a   :  { %86 = vperm.xlu2 %4498, %v28_v10  }
  0x1b   :  { %81 = vperm.xlu1 %4497, %v27_v11   ;;  %166 = vperm.xlu0 %4496, %v44_v12  }
  0x22   :  { %91 = vperm.xlu2 %4498, %v29_v13  }
  0x23   :  { %176 = vperm.xlu1 %4497, %v46_v14   ;;  %171 = vperm.xlu0 %4496, %v45_v15  }
  0x2a   :  { %106 = vperm.xlu2 %4498, %v32_v16  }
  0x2b   :  { %101 = vperm.xlu1 %4497, %v31_v17   ;;  %96 = vperm.xlu0 %4496, %v30_v18  }
  0x32   :  { %121 = vperm.xlu2 %4498, %v35_v19  }
  0x33   :  { %116 = vperm.xlu1 %4497, %v34_v20   ;;  %111 = vperm.xlu0 %4496, %v33_v21  }
  0x3a   :  { %136 = vperm.xlu2 %4498, %v38_v22  }
  0x3b   :  { %131 = vperm.xlu1 %4497, %v37_v23   ;;  %126 = vperm.xlu0 %4496, %v36_v24  }
  0x43   :  { %146 = vperm.xlu1 %4497, %v40_v25   ;;  %141 = vperm.xlu0 %4496, %v39_v26  }
  0x5c   :  { %v152_v31 = vpop.permute.xlu2 %151 }
  0x5d   :  { %v379_v36 = vmul.f32 %v5664_v28, %v152_v31  ;;  %v380_v37 = vmul.f32 %v5666_v29, %v152_v31  ;;  %v381_v40 = vmul.f32 %v5671_v32, %v152_v31  ;;  %v382_v41 = vmul.f32 %v5673_v33, %v152_v31 }
  0x5e   :  { %v385_v53 = vmul.f32 %v5691_v47, %v152_v31  ;;  %v386_v54 = vmul.f32 %v5693_v48, %v152_v31  ;;  %v383_v59 = vmul.f32 %v5695_v50, %v152_v31  ;;  %v384_v60 = vmul.f32 %v5697_v51, %v152_v31 }
  0x5f   :  { %v635_v42 = vadd.f32 %v5675_v34, %v379_v36  ;;  %v636_v43 = vadd.f32 %v5677_v35, %v380_v37  ;;  %v637_v45 = vadd.f32 %v5681_v38, %v381_v40  ;;  %v638_v46 = vadd.f32 %v5683_v39, %v382_v41 }
  0x60   :  { %v387_v61 = vmul.f32 %v5702_v52, %v152_v31  ;;  %v641_v3 = vadd.f32 %v5710_v58, %v385_v53  ;;  %v642_v6 = vadd.f32 %v5717_v63, %v386_v54  ;;  %v639_v10 = vadd.f32 %v5715_v62, %v383_v59 }
  0x61   :  { %v789_v49 = vpack.c.bf16 %v636_v43, %v635_v42  ;;  %v5706_v55 = vpack.c.bf16 %v638_v46, %v637_v45  ;;  %v640_v11 = vadd.f32 %v5719_v1, %v384_v60 }
  0x62   :  { %v643_v12 = vadd.f32 %v4500_v2, %v387_v61  ;;  %v792_v22 = vpack.c.bf16 %v642_v6, %v641_v3 }
  0x63   :  { %v859_v0 = vxor.u32 2147516416, %v789_v49  ;;  %v860_v7 = vxor.u32 2147516416, %v5706_v55  ;;  %v791_v25 = vpack.c.bf16 %v640_v11, %v639_v10 }
  0x64   :  { %v157_v44 = vpop.permute.xlu2 %156  ;;  %v793_v31 = vpack.c.bf16 %v643_v12, %v643_v12  ;;  %v5752_v46 = vxor.u32 2147516416, %v792_v22 }
  0x65   :  { %v388_v56 = vmul.f32 %v5664_v28, %v157_v44  ;;  %v389_v57 = vmul.f32 %v5666_v29, %v157_v44  ;;  %v390_v4 = vmul.f32 %v5671_v32, %v157_v44  ;;  %v391_v5 = vmul.f32 %v5673_v33, %v157_v44 }
  0x66   :  { %v931_v14 = vunpack.c.l.bf16 %v859_v0  ;;  %v932_v15 = vunpack.c.h.bf16 %v859_v0  ;;  %v394_v16 = vmul.f32 %v5691_v47, %v157_v44  ;;  %v395_v17 = vmul.f32 %v5693_v48, %v157_v44 }
  0x67   :  { %v644_v8 = vadd.f32 %v5675_v34, %v388_v56  ;;  %v645_v9 = vadd.f32 %v5677_v35, %v389_v57  ;;  %v392_v18 = vmul.f32 %v5695_v50, %v157_v44  ;;  %v393_v19 = vmul.f32 %v5697_v51, %v157_v44 }
  0x68   :  { %v646_v20 = vadd.f32 %v5681_v38, %v390_v4  ;;  %v647_v21 = vadd.f32 %v5683_v39, %v391_v5  ;;  %v933_v23 = vunpack.c.l.bf16 %v860_v7  ;;  %v396_v26 = vmul.f32 %v5702_v52, %v157_v44 }
  0x69   :  { %v794_v24 = vpack.c.bf16 %v645_v9, %v644_v8  ;;  %v1069_v36 = vmul.f32 1.442695, %v931_v14  ;;  %v650_v37 = vadd.f32 %v5710_v58, %v394_v16  ;;  %v651_v40 = vadd.f32 %v5717_v63, %v395_v17 }
  0x6a   :  { %v1071_v41 = vmul.f32 1.442695, %v932_v15  ;;  %v648_v42 = vadd.f32 %v5715_v62, %v392_v18  ;;  %v649_v43 = vadd.f32 %v5719_v1, %v393_v19  ;;  %v5750_v45 = vpack.c.bf16 %v647_v21, %v646_v20 }
  0x6b   :  { %v1073_v44 = vmul.f32 1.442695, %v933_v23  ;;  %v861_v49 = vxor.u32 2147516416, %v794_v24  ;;  %v652_v53 = vadd.f32 %v4500_v2, %v396_v26  ;;  %4502 = vpow2.f32 %v1069_v36 }
  0x6c   :  { %v5733_v13 = vpop.permute.xlu2 %161  ;;  %v5757_v59 = vrot.slane %v791_v25, 4  ;;  %v797_v60 = vpack.c.bf16 %v651_v40, %v650_v37  ;;  %4504 = vpow2.f32 %v1071_v41  ;;  %v5759_v61 = vxor.u32 2147516416, %v793_v31 }
  0x6d   :  { %v397_v27 = vmul.f32 %v5664_v28, %v5733_v13  ;;  %v398_v30 = vmul.f32 %v5666_v29, %v5733_v13  ;;  %v796_v0 = vpack.c.bf16 %v649_v43, %v648_v42  ;;  %v862_v3 = vxor.u32 2147516416, %v5750_v45 }
  0x6e   :  { %8198 = vst [vmem:[#allocation2_spill] sm:$0xff] %v5757_v59  ;;  %4506 = vpow2.f32 %v1073_v44  ;;  %v934_v6 = vunpack.c.l.bf16 %v861_v49  ;;  %v798_v7 = vpack.c.bf16 %v652_v53, %v652_v53  ;;  %v403_v8 = vmul.f32 %v5691_v47, %v5733_v13 }
  0x6f   :  { %v653_v54 = vadd.f32 %v5675_v34, %v397_v27  ;;  %v654_v56 = vadd.f32 %v5677_v35, %v398_v30  ;;  %8199 = vst [vmem:[#allocation3_spill] sm:$0xff] %v5759_v61  ;;  %v404_v9 = vmul.f32 %v5693_v48, %v5733_v13  ;;  %v935_v11 = vunpack.c.h.bf16 %v861_v49 }
  0x70   :  { %v5770_v12 = vxor.u32 2147516416, %v797_v60  ;;  %v936_v16 = vunpack.c.l.bf16 %v862_v3  ;;  %v5777_v18 = vrot.slane %v796_v0, 4  ;;  %v399_v19 = vmul.f32 %v5671_v32, %v5733_v13 }
  0x71   :  { %v799_v10 = vpack.c.bf16 %v654_v56, %v653_v54  ;;  %v5781_v20 = vpop.eup %4502  ;;  %v1075_v21 = vmul.f32 1.442695, %v934_v6  ;;  %v400_v22 = vmul.f32 %v5673_v33, %v5733_v13  ;;  %v401_v23 = vmul.f32 %v5695_v50, %v5733_v13 }
  0x72   :  { %8200 = vst [vmem:[#allocation4_spill] sm:$0xff] %v5777_v18  ;;  %v402_v24 = vmul.f32 %v5697_v51, %v5733_v13  ;;  %v5789_v25 = vpop.eup %4504  ;;  %v5791_v26 = vxor.u32 2147516416, %v798_v7  ;;  %v659_v27 = vadd.f32 %v5710_v58, %v403_v8  ;;  %v660_v30 = vadd.f32 %v5717_v63, %v404_v9 }
  0x73   :  { %v863_v31 = vxor.u32 2147516416, %v799_v10  ;;  %v1077_v37 = vmul.f32 1.442695, %v935_v11  ;;  %v1079_v43 = vmul.f32 1.442695, %v936_v16  ;;  %4508 = vpow2.f32 %v1075_v21 }
  0x74   :  { %v5762_v4 = vpop.permute.xlu2 %86  ;;  %8201 = vst [vmem:[#allocation5_spill] sm:$0xff] %v5791_v26  ;;  %v5795_v36 = vpop.eup %4506  ;;  %v5807_v54 = vmul.f32 %v5702_v52, %v5733_v13  ;;  %v657_v56 = vadd.f32 %v5715_v62, %v401_v23  ;;  %v658_v60 = vadd.f32 %v5719_v1, %v402_v24  ;;  %v655_v3 = vadd.f32 %v5681_v38, %v399_v19 }
  0x75   :  { %v262_v14 = vmul.f32 %v5664_v28, %v5762_v4  ;;  %v263_v15 = vmul.f32 %v5666_v29, %v5762_v4  ;;  %8202 = vst [vmem:[#allocation6_spill] sm:$0xff] %v5795_v36  ;;  %v268_v49 = vmul.f32 %v5691_v47, %v5762_v4  ;;  %v269_v53 = vmul.f32 %v5693_v48, %v5762_v4  ;;  %v62_v0 = vpop.permute.xlu1 %61 }
  0x76   :  { %8203 = vst [vmem:[#allocation7_spill] sm:$0xff] %v5807_v54  ;;  %v656_v6 = vadd.f32 %v5683_v39, %v400_v22  ;;  %v802_v7 = vpack.c.bf16 %v660_v30, %v659_v27  ;;  %v937_v8 = vunpack.c.l.bf16 %v863_v31  ;;  %v938_v9 = vunpack.c.h.bf16 %v863_v31 }
  0x77   :  { %v518_v41 = vadd.f32 %v5675_v34, %v262_v14  ;;  %v519_v42 = vadd.f32 %v5677_v35, %v263_v15  ;;  %v266_v10 = vmul.f32 %v5695_v50, %v5762_v4  ;;  %v267_v11 = vmul.f32 %v5697_v51, %v5762_v4 }
  0x78   :  { %v524_v14 = vadd.f32 %v5710_v58, %v268_v49  ;;  %v525_v15 = vadd.f32 %v5717_v63, %v269_v53  ;;  %v217_v16 = vmul.f32 %v5664_v28, %v62_v0  ;;  %v218_v19 = vmul.f32 %v5666_v29, %v62_v0 }
  0x79   :  { %v724_v13 = vpack.c.bf16 %v519_v42, %v518_v41  ;;  %4510 = vpow2.f32 %v1077_v37  ;;  %v801_v21 = vpack.c.bf16 %v658_v60, %v657_v56  ;;  %v264_v22 = vmul.f32 %v5671_v32, %v5762_v4  ;;  %v5829_v31 = vpop.eup %4508 }
  0x7a   :  { %v265_v23 = vmul.f32 %v5673_v33, %v5762_v4  ;;  %4512 = vpow2.f32 %v1079_v43  ;;  %v5825_v24 = vpack.c.bf16 %v656_v6, %v655_v3  ;;  %v1081_v27 = vmul.f32 1.442695, %v937_v8 }
  0x7b   :  { %v5827_v30 = vxor.u32 2147516416, %v802_v7  ;;  %v1083_v41 = vmul.f32 1.442695, %v938_v9  ;;  %v522_v42 = vadd.f32 %v5715_v62, %v266_v10  ;;  %v523_v37 = vadd.f32 %v5719_v1, %v267_v11 }
  0x7c   :  { %8204 = vst [vmem:[#allocation8_spill] sm:$0xff] %v5825_v24  ;;  %v833_v49 = vxor.u32 2147516416, %v724_v13  ;;  %v727_v56 = vpack.c.bf16 %v525_v15, %v524_v14  ;;  %v473_v60 = vadd.f32 %v5675_v34, %v217_v16  ;;  %v474_v43 = vadd.f32 %v5677_v35, %v218_v19 }
  0x7d   :  { %8205 = vst [vmem:[#allocation9_spill] sm:$0xff] %v5827_v30  ;;  %v5836_v3 = vrot.slane %v801_v21, 4  ;;  %v5840_v6 = vmul.f32 %v5702_v52, %v5762_v4  ;;  %v520_v7 = vadd.f32 %v5681_v38, %v264_v22  ;;  %v521_v8 = vadd.f32 %v5683_v39, %v265_v23  ;;  %v5850_v4 = vpop.permute.xlu0 %51 }
  0x7e   :  { %4514 = vpow2.f32 %v1081_v27  ;;  %v223_v10 = vmul.f32 %v5691_v47, %v62_v0  ;;  %v224_v11 = vmul.f32 %v5693_v48, %v62_v0  ;;  %v726_v15 = vpack.c.bf16 %v523_v37, %v522_v42 }
  0x7f   :  { %8206 = vst [vmem:[#allocation10_spill] sm:$0xff] %v5836_v3  ;;  %v5847_v13 = vpop.eup %4510  ;;  %4516 = vpow2.f32 %v1083_v41  ;;  %v892_v16 = vunpack.c.l.bf16 %v833_v49  ;;  %v893_v21 = vunpack.c.h.bf16 %v833_v49  ;;  %v5854_v22 = vxor.u32 2147516416, %v727_v56 }
  0x80   :  { %8207 = vst [vmem:[#allocation11_spill] sm:$0xff] %v5840_v6  ;;  %v5852_v19 = vpop.eup %4512  ;;  %v221_v23 = vmul.f32 %v5695_v50, %v62_v0  ;;  %v699_v27 = vpack.c.bf16 %v474_v43, %v473_v60  ;;  %v5857_v9 = vpack.c.bf16 %v521_v8, %v520_v7  ;;  %v219_v53 = vmul.f32 %v5671_v32, %v62_v0 }
  0x81   :  { %8208 = vst [vmem:[#allocation12_spill] sm:$0xff] %v5852_v19  ;;  %v220_v41 = vmul.f32 %v5673_v33, %v62_v0  ;;  %v222_v14 = vmul.f32 %v5697_v51, %v62_v0  ;;  %v479_v42 = vadd.f32 %v5710_v58, %v223_v10  ;;  %v480_v37 = vadd.f32 %v5717_v63, %v224_v11 }
  0x82   :  { %8209 = vst [vmem:[#allocation13_spill] sm:$0xff] %v5854_v22  ;;  %v199_v49 = vmul.f32 %v5664_v28, %v5850_v4  ;;  %v200_v56 = vmul.f32 %v5666_v29, %v5850_v4  ;;  %v991_v44 = vmul.f32 1.442695, %v892_v16  ;;  %v5869_v43 = vrot.slane %v726_v15, 4 }
  0x83   :  { %8210 = vst [vmem:[#allocation14_spill] sm:$0xff] %v5857_v9  ;;  %v5872_v7 = vmul.f32 %v5702_v52, %v62_v0  ;;  %v993_v40 = vmul.f32 1.442695, %v893_v21  ;;  %v477_v11 = vadd.f32 %v5715_v62, %v221_v23  ;;  %v823_v5 = vxor.u32 2147516416, %v699_v27  ;;  %v92_v21 = vpop.permute.xlu2 %91 }
  0x84   :  { %8211 = vst [vmem:[#allocation15_spill] sm:$0xff] %v5869_v43  ;;  %v5874_v8 = vpop.eup %4514  ;;  %v201_v16 = vmul.f32 %v5671_v32, %v5850_v4  ;;  %v202_v15 = vmul.f32 %v5673_v33, %v5850_v4  ;;  %v205_v0 = vmul.f32 %v5691_v47, %v5850_v4  ;;  %v206_v60 = vmul.f32 %v5693_v48, %v5850_v4 }
  0x85   :  { %8212 = vst [vmem:[#allocation16_spill] sm:$0xff] %v5872_v7  ;;  %v5878_v2 = vpop.eup %4516  ;;  %v478_v10 = vadd.f32 %v5719_v1, %v222_v14  ;;  %v702_v17 = vpack.c.bf16 %v480_v37, %v479_v42  ;;  %v455_v23 = vadd.f32 %v5675_v34, %v199_v49  ;;  %v456_v27 = vadd.f32 %v5677_v35, %v200_v56  ;;  %v4376_v49 = vld [vmem:[%s8072_s3 + $0x38] sm:$0xff] }
  0x86   :  { %8213 = vst [vmem:[#allocation17_spill] sm:$0xff] %v5874_v8  ;;  %v475_v57 = vadd.f32 %v5681_v38, %v219_v53  ;;  %v476_v54 = vadd.f32 %v5683_v39, %v220_v41  ;;  %v203_v26 = vmul.f32 %v5695_v50, %v5850_v4  ;;  %v204_v61 = vmul.f32 %v5697_v51, %v5850_v4 }
  0x87   :  { %8214 = vst [vmem:[#allocation18_spill] sm:$0xff] %v5878_v2  ;;  %v877_v19 = vunpack.c.l.bf16 %v823_v5  ;;  %v878_v36 = vunpack.c.h.bf16 %v823_v5  ;;  %v271_v6 = vmul.f32 %v5664_v28, %v92_v21  ;;  %v272_v14 = vmul.f32 %v5666_v29, %v92_v21  ;;  %4470 = vmatpush.bf16.msra.mxu3 %v4376_v49  ;;  %3995 = vmatpush.bf16.msra.mxu0 %v4376_v49 }
  0x88   :  { %v457_v42 = vadd.f32 %v5681_v38, %v201_v16  ;;  %v458_v37 = vadd.f32 %v5683_v39, %v202_v15  ;;  %v461_v53 = vadd.f32 %v5710_v58, %v205_v0  ;;  %v462_v41 = vadd.f32 %v5717_v63, %v206_v60 }
  0x89   :  { %v701_v56 = vpack.c.bf16 %v478_v10, %v477_v11  ;;  %v5904_v9 = vxor.u32 2147516416, %v702_v17  ;;  %v689_v43 = vpack.c.bf16 %v456_v27, %v455_v23  ;;  %4518 = vpow2.f32 %v991_v44  ;;  %v5915_v11 = vpop.permute.xlu1 %66 }
  0x8a   :  { %v5906_v5 = vpack.c.bf16 %v476_v54, %v475_v57  ;;  %v459_v7 = vadd.f32 %v5715_v62, %v203_v26  ;;  %v460_v30 = vadd.f32 %v5719_v1, %v204_v61  ;;  %4520 = vpow2.f32 %v993_v40 }
  0x8b   :  { %8215 = vst [vmem:[#allocation19_spill] sm:$0xff] %v5904_v9  ;;  %v961_v16 = vmul.f32 1.442695, %v877_v19  ;;  %v527_v15 = vadd.f32 %v5675_v34, %v271_v6  ;;  %v528_v0 = vadd.f32 %v5677_v35, %v272_v14  ;;  %v963_v60 = vmul.f32 1.442695, %v878_v36 }
  0x8c   :  { %8216 = vst [vmem:[#allocation20_spill] sm:$0xff] %v5906_v5  ;;  %v5913_v10 = vpack.c.bf16 %v458_v37, %v457_v42  ;;  %v692_v17 = vpack.c.bf16 %v462_v41, %v461_v53  ;;  %v5917_v57 = vrot.slane %v701_v56, 4  ;;  %v5922_v61 = vmul.f32 %v5702_v52, %v5850_v4 }
  0x8d   :  { %v819_v40 = vxor.u32 2147516416, %v689_v43  ;;  %v691_v54 = vpack.c.bf16 %v460_v30, %v459_v7  ;;  %v277_v36 = vmul.f32 %v5691_v47, %v92_v21  ;;  %v278_v6 = vmul.f32 %v5693_v48, %v92_v21 }
  0x8e   :  { %8217 = vst [vmem:[#allocation21_spill] sm:$0xff] %v5913_v10  ;;  %4522 = vpow2.f32 %v961_v16  ;;  %v729_v19 = vpack.c.bf16 %v528_v0, %v527_v15  ;;  %v226_v23 = vmul.f32 %v5664_v28, %v5915_v11  ;;  %v227_v27 = vmul.f32 %v5666_v29, %v5915_v11 }
  0x8f   :  { %8218 = vst [vmem:[#allocation22_spill] sm:$0xff] %v5917_v57  ;;  %v5931_v14 = vpop.eup %4518  ;;  %4524 = vpow2.f32 %v963_v60  ;;  %v5934_v43 = vxor.u32 2147516416, %v692_v17  ;;  %v273_v30 = vmul.f32 %v5671_v32, %v92_v21  ;;  %v871_v42 = vunpack.c.l.bf16 %v819_v40 }
  0x90   :  { %8219 = vst [vmem:[#allocation23_spill] sm:$0xff] %v5922_v61  ;;  %v5937_v7 = vpop.eup %4520  ;;  %v274_v37 = vmul.f32 %v5673_v33, %v92_v21  ;;  %v275_v53 = vmul.f32 %v5695_v50, %v92_v21  ;;  %v276_v41 = vmul.f32 %v5697_v51, %v92_v21  ;;  %v872_v56 = vunpack.c.h.bf16 %v819_v40 }
  0x91   :  { %8220 = vst [vmem:[#allocation24_spill] sm:$0xff] %v5931_v14  ;;  %v5942_v16 = vrot.slane %v691_v54, 4  ;;  %v533_v15 = vadd.f32 %v5710_v58, %v277_v36  ;;  %v534_v0 = vadd.f32 %v5717_v63, %v278_v6  ;;  %v5947_v60 = vmul.f32 %v5702_v52, %v92_v21 }
  0x92   :  { %8221 = vst [vmem:[#allocation25_spill] sm:$0xff] %v5934_v43  ;;  %v835_v17 = vxor.u32 2147516416, %v729_v19  ;;  %v482_v44 = vadd.f32 %v5675_v34, %v226_v23  ;;  %v483_v26 = vadd.f32 %v5677_v35, %v227_v27  ;;  %v529_v54 = vadd.f32 %v5681_v38, %v273_v30 }
  0x93   :  { %8222 = vst [vmem:[#allocation26_spill] sm:$0xff] %v5937_v7  ;;  %v232_v36 = vmul.f32 %v5691_v47, %v5915_v11  ;;  %v233_v21 = vmul.f32 %v5693_v48, %v5915_v11  ;;  %v949_v19 = vmul.f32 1.442695, %v871_v42  ;;  %v530_v23 = vadd.f32 %v5683_v39, %v274_v37 }
  0x94   :  { %8223 = vst [vmem:[#allocation27_spill] sm:$0xff] %v5942_v16  ;;  %v5960_v6 = vpop.eup %4522  ;;  %v531_v27 = vadd.f32 %v5715_v62, %v275_v53  ;;  %v532_v4 = vadd.f32 %v5719_v1, %v276_v41  ;;  %v951_v30 = vmul.f32 1.442695, %v872_v56  ;;  %v732_v22 = vpack.c.bf16 %v534_v0, %v533_v15 }
  0x95   :  { %8224 = vst [vmem:[#allocation28_spill] sm:$0xff] %v5947_v60  ;;  %v57_v60 = vpop.permute.xlu0 %56  ;;  %v5965_v40 = vpop.eup %4524  ;;  %v230_v7 = vmul.f32 %v5695_v50, %v5915_v11  ;;  %v231_v14 = vmul.f32 %v5697_v51, %v5915_v11  ;;  %v895_v42 = vunpack.c.l.bf16 %v835_v17  ;;  %v228_v37 = vmul.f32 %v5671_v32, %v5915_v11 }
  0x96   :  { %8225 = vst [vmem:[#allocation29_spill] sm:$0xff] %v5960_v6  ;;  %v229_v53 = vmul.f32 %v5673_v33, %v5915_v11  ;;  %v704_v41 = vpack.c.bf16 %v483_v26, %v482_v44  ;;  %v488_v49 = vadd.f32 %v5710_v58, %v232_v36  ;;  %v489_v24 = vadd.f32 %v5717_v63, %v233_v21 }
  0x97   :  { %8226 = vst [vmem:[#allocation30_spill] sm:$0xff] %v5965_v40  ;;  %v208_v56 = vmul.f32 %v5664_v28, %v57_v60  ;;  %v209_v15 = vmul.f32 %v5666_v29, %v57_v60  ;;  %4526 = vpow2.f32 %v949_v19  ;;  %v5980_v3 = vpack.c.bf16 %v530_v23, %v529_v54 }
  0x98   :  { %v731_v2 = vpack.c.bf16 %v532_v4, %v531_v27  ;;  %v896_v8 = vunpack.c.h.bf16 %v835_v17  ;;  %v5982_v9 = vxor.u32 2147516416, %v732_v22  ;;  %v486_v5 = vadd.f32 %v5715_v62, %v230_v7 }
  0x99   :  { %8227 = vst [vmem:[#allocation31_spill] sm:$0xff] %v5980_v3  ;;  %v487_v26 = vadd.f32 %v5719_v1, %v231_v14  ;;  %v997_v44 = vmul.f32 1.442695, %v895_v42  ;;  %v484_v36 = vadd.f32 %v5681_v38, %v228_v37  ;;  %v485_v21 = vadd.f32 %v5683_v39, %v229_v53 }
  0x9a   :  { %8228 = vst [vmem:[#allocation32_spill] sm:$0xff] %v5982_v9  ;;  %v825_v57 = vxor.u32 2147516416, %v704_v41  ;;  %4528 = vpow2.f32 %v951_v30  ;;  %v707_v19 = vpack.c.bf16 %v489_v24, %v488_v49  ;;  %v464_v0 = vadd.f32 %v5675_v34, %v208_v56  ;;  %v6030_v9 = vpop.permute.xlu1 %76 }
  0x9b   :  { %v465_v54 = vadd.f32 %v5677_v35, %v209_v15  ;;  %v5991_v22 = vrot.slane %v731_v2, 4  ;;  %v214_v7 = vmul.f32 %v5691_v47, %v57_v60  ;;  %v215_v14 = vmul.f32 %v5693_v48, %v57_v60 }
  0x9c   :  { %v999_v17 = vmul.f32 1.442695, %v896_v8  ;;  %v706_v42 = vpack.c.bf16 %v487_v26, %v486_v5  ;;  %4530 = vpow2.f32 %v997_v44  ;;  %v5999_v24 = vpack.c.bf16 %v485_v21, %v484_v36  ;;  %v107_v8 = vpop.permute.xlu2 %106 }
  0x9d   :  { %8229 = vst [vmem:[#allocation33_spill] sm:$0xff] %v5991_v22  ;;  %v5997_v30 = vpop.eup %4526  ;;  %v880_v37 = vunpack.c.l.bf16 %v825_v57  ;;  %v210_v53 = vmul.f32 %v5671_v32, %v57_v60  ;;  %v881_v2 = vunpack.c.h.bf16 %v825_v57  ;;  %v6002_v41 = vxor.u32 2147516416, %v707_v19 }
  0x9e   :  { %8230 = vst [vmem:[#allocation34_spill] sm:$0xff] %v5997_v30  ;;  %v211_v49 = vmul.f32 %v5673_v33, %v57_v60  ;;  %v694_v56 = vpack.c.bf16 %v465_v54, %v464_v0  ;;  %v212_v15 = vmul.f32 %v5695_v50, %v57_v60  ;;  %v213_v27 = vmul.f32 %v5697_v51, %v57_v60 }
  0x9f   :  { %8231 = vst [vmem:[#allocation35_spill] sm:$0xff] %v5999_v24  ;;  %v470_v5 = vadd.f32 %v5710_v58, %v214_v7  ;;  %v471_v26 = vadd.f32 %v5717_v63, %v215_v14  ;;  %4532 = vpow2.f32 %v999_v17  ;;  %v6013_v57 = vmul.f32 %v5702_v52, %v5915_v11 }
  0xa0   :  { %8232 = vst [vmem:[#allocation36_spill] sm:$0xff] %v6002_v41  ;;  %v6009_v44 = vpop.eup %4528  ;;  %v6016_v21 = vrot.slane %v706_v42, 4  ;;  %v967_v0 = vmul.f32 1.442695, %v880_v37  ;;  %v6019_v19 = vmul.f32 %v5702_v52, %v57_v60  ;;  %v298_v54 = vmul.f32 %v5664_v28, %v107_v8 }
  0xa1   :  { %8233 = vst [vmem:[#allocation37_spill] sm:$0xff] %v6009_v44  ;;  %v299_v7 = vmul.f32 %v5666_v29, %v107_v8  ;;  %v969_v14 = vmul.f32 1.442695, %v881_v2  ;;  %v466_v17 = vadd.f32 %v5681_v38, %v210_v53  ;;  %v821_v4 = vxor.u32 2147516416, %v694_v56 }
  0xa2   :  { %8234 = vst [vmem:[#allocation38_spill] sm:$0xff] %v6013_v57  ;;  %v6025_v11 = vpop.eup %4530  ;;  %v467_v36 = vadd.f32 %v5683_v39, %v211_v49  ;;  %v468_v42 = vadd.f32 %v5715_v62, %v212_v15  ;;  %v469_v37 = vadd.f32 %v5719_v1, %v213_v27  ;;  %v697_v60 = vpack.c.bf16 %v471_v26, %v470_v5  ;;  %v4375_v27 = vld [vmem:[%s8072_s3 + $0x30] sm:$0xff] }
  0xa3   :  { %8235 = vst [vmem:[#allocation39_spill] sm:$0xff] %v6016_v21  ;;  %v300_v3 = vmul.f32 %v5671_v32, %v107_v8  ;;  %v301_v2 = vmul.f32 %v5673_v33, %v107_v8  ;;  %v304_v23 = vmul.f32 %v5691_v47, %v107_v8  ;;  %v305_v53 = vmul.f32 %v5693_v48, %v107_v8 }
  0xa4   :  { %8236 = vst [vmem:[#allocation40_spill] sm:$0xff] %v6019_v19  ;;  %v302_v56 = vmul.f32 %v5695_v50, %v107_v8  ;;  %v303_v22 = vmul.f32 %v5697_v51, %v107_v8  ;;  %v554_v49 = vadd.f32 %v5675_v34, %v298_v54  ;;  %v555_v15 = vadd.f32 %v5677_v35, %v299_v7 }
  0xa5   :  { %8237 = vst [vmem:[#allocation41_spill] sm:$0xff] %v6025_v11  ;;  %v6043_v5 = vpop.eup %4532  ;;  %v874_v11 = vunpack.c.l.bf16 %v821_v4  ;;  %v244_v57 = vmul.f32 %v5664_v28, %v6030_v9  ;;  %v245_v24 = vmul.f32 %v5666_v29, %v6030_v9  ;;  %4534 = vpow2.f32 %v967_v0  ;;  %4471 = vmatpush.bf16.msra.mxu3 %v4375_v27  ;;  %3996 = vmatpush.bf16.msra.mxu0 %v4375_v27 }
  0xa6   :  { %8238 = vst [vmem:[#allocation42_spill] sm:$0xff] %v6043_v5  ;;  %v6050_v21 = vpack.c.bf16 %v467_v36, %v466_v17  ;;  %v696_v54 = vpack.c.bf16 %v469_v37, %v468_v42  ;;  %v875_v7 = vunpack.c.h.bf16 %v821_v4  ;;  %v6052_v40 = vxor.u32 2147516416, %v697_v60  ;;  %v4374_v4 = vld [vmem:[%s8072_s3 + $0x28] sm:$0xff] }
  0xa7   :  { %v556_v5 = vadd.f32 %v5681_v38, %v300_v3  ;;  %v560_v26 = vadd.f32 %v5710_v58, %v304_v23  ;;  %v561_v41 = vadd.f32 %v5717_v63, %v305_v53  ;;  %v557_v6 = vadd.f32 %v5683_v39, %v301_v2 }
  0xa8   :  { %8239 = vst [vmem:[#allocation43_spill] sm:$0xff] %v6050_v21  ;;  %v558_v19 = vadd.f32 %v5715_v62, %v302_v56  ;;  %v559_v0 = vadd.f32 %v5719_v1, %v303_v22  ;;  %v744_v36 = vpack.c.bf16 %v555_v15, %v554_v49  ;;  %4536 = vpow2.f32 %v969_v14 }
  0xa9   :  { %8240 = vst [vmem:[#allocation44_spill] sm:$0xff] %v6052_v40  ;;  %v955_v17 = vmul.f32 1.442695, %v874_v11  ;;  %v500_v42 = vadd.f32 %v5675_v34, %v244_v57  ;;  %v501_v3 = vadd.f32 %v5677_v35, %v245_v24  ;;  %v957_v23 = vmul.f32 1.442695, %v875_v7  ;;  %4472 = vmatpush.bf16.msra.mxu3 %v4374_v4  ;;  %3997 = vmatpush.bf16.msra.mxu0 %v4374_v4  ;;  %v6076_v24 = vpop.permute.xlu0 %71 }
  0xaa   :  { %v6066_v60 = vrot.slane %v696_v54, 4  ;;  %v6069_v2 = vmul.f32 %v5702_v52, %v107_v8  ;;  %v747_v53 = vpack.c.bf16 %v561_v41, %v560_v26  ;;  %v250_v14 = vmul.f32 %v5691_v47, %v6030_v9 }
  0xab   :  { %v251_v57 = vmul.f32 %v5693_v48, %v6030_v9  ;;  %v6078_v11 = vpop.eup %4534  ;;  %v6081_v49 = vpack.c.bf16 %v557_v6, %v556_v5  ;;  %v746_v8 = vpack.c.bf16 %v559_v0, %v558_v19  ;;  %v841_v15 = vxor.u32 2147516416, %v744_v36 }
  0xac   :  { %8241 = vst [vmem:[#allocation45_spill] sm:$0xff] %v6066_v60  ;;  %4538 = vpow2.f32 %v955_v17  ;;  %v246_v41 = vmul.f32 %v5671_v32, %v6030_v9  ;;  %v247_v27 = vmul.f32 %v5673_v33, %v6030_v9  ;;  %v714_v26 = vpack.c.bf16 %v501_v3, %v500_v42  ;;  %v122_v3 = vpop.permute.xlu2 %121 }
  0xad   :  { %8242 = vst [vmem:[#allocation46_spill] sm:$0xff] %v6069_v2  ;;  %v248_v54 = vmul.f32 %v5695_v50, %v6030_v9  ;;  %v249_v7 = vmul.f32 %v5697_v51, %v6030_v9  ;;  %v235_v6 = vmul.f32 %v5664_v28, %v6076_v24  ;;  %v236_v19 = vmul.f32 %v5666_v29, %v6076_v24 }
  0xae   :  { %8243 = vst [vmem:[#allocation47_spill] sm:$0xff] %v6078_v11  ;;  %v6095_v5 = vpop.eup %4536  ;;  %4540 = vpow2.f32 %v957_v23  ;;  %v6097_v0 = vxor.u32 2147516416, %v747_v53  ;;  %v506_v36 = vadd.f32 %v5710_v58, %v250_v14  ;;  %v507_v4 = vadd.f32 %v5717_v63, %v251_v57 }
  0xaf   :  { %8244 = vst [vmem:[#allocation48_spill] sm:$0xff] %v6081_v49  ;;  %v904_v17 = vunpack.c.l.bf16 %v841_v15  ;;  %v905_v42 = vunpack.c.h.bf16 %v841_v15  ;;  %v6102_v56 = vrot.slane %v746_v8, 4  ;;  %v6106_v22 = vmul.f32 %v5702_v52, %v6030_v9 }
  0xb0   :  { %8245 = vst [vmem:[#allocation49_spill] sm:$0xff] %v6095_v5  ;;  %v502_v37 = vadd.f32 %v5681_v38, %v246_v41  ;;  %v503_v23 = vadd.f32 %v5683_v39, %v247_v27  ;;  %v829_v53 = vxor.u32 2147516416, %v714_v26  ;;  %v504_v2 = vadd.f32 %v5715_v62, %v248_v54 }
  0xb1   :  { %8246 = vst [vmem:[#allocation50_spill] sm:$0xff] %v6097_v0  ;;  %v505_v14 = vadd.f32 %v5719_v1, %v249_v7  ;;  %v491_v57 = vadd.f32 %v5675_v34, %v235_v6  ;;  %v492_v15 = vadd.f32 %v5677_v35, %v236_v19  ;;  %v717_v9 = vpack.c.bf16 %v507_v4, %v506_v36 }
  0xb2   :  { %8247 = vst [vmem:[#allocation51_spill] sm:$0xff] %v6102_v56  ;;  %v6114_v8 = vpop.eup %4538  ;;  %v241_v41 = vmul.f32 %v5691_v47, %v6076_v24  ;;  %v242_v27 = vmul.f32 %v5693_v48, %v6076_v24  ;;  %v237_v26 = vmul.f32 %v5671_v32, %v6076_v24  ;;  %v238_v54 = vmul.f32 %v5673_v33, %v6076_v24 }
  0xb3   :  { %8248 = vst [vmem:[#allocation52_spill] sm:$0xff] %v6106_v22  ;;  %v239_v7 = vmul.f32 %v5695_v50, %v6076_v24  ;;  %v240_v6 = vmul.f32 %v5697_v51, %v6076_v24  ;;  %v1015_v36 = vmul.f32 1.442695, %v904_v17  ;;  %v886_v4 = vunpack.c.l.bf16 %v829_v53 }
  0xb4   :  { %8249 = vst [vmem:[#allocation53_spill] sm:$0xff] %v6114_v8  ;;  %v6129_v19 = vpop.eup %4540  ;;  %v325_v49 = vmul.f32 %v5664_v28, %v122_v3  ;;  %v326_v56 = vmul.f32 %v5666_v29, %v122_v3  ;;  %v1017_v22 = vmul.f32 1.442695, %v905_v42  ;;  %v6133_v5 = vpack.c.bf16 %v503_v23, %v502_v37 }
  0xb5   :  { %8250 = vst [vmem:[#allocation54_spill] sm:$0xff] %v6129_v19  ;;  %v716_v11 = vpack.c.bf16 %v505_v14, %v504_v2  ;;  %v709_v40 = vpack.c.bf16 %v492_v15, %v491_v57  ;;  %v887_v61 = vunpack.c.h.bf16 %v829_v53  ;;  %v6135_v43 = vxor.u32 2147516416, %v717_v9 }
  0xb6   :  { %8251 = vst [vmem:[#allocation55_spill] sm:$0xff] %v6133_v5  ;;  %v497_v21 = vadd.f32 %v5710_v58, %v241_v41  ;;  %v498_v60 = vadd.f32 %v5717_v63, %v242_v27  ;;  %v493_v10 = vadd.f32 %v5681_v38, %v237_v26  ;;  %v494_v17 = vadd.f32 %v5683_v39, %v238_v54 }
  0xb7   :  { %8252 = vst [vmem:[#allocation56_spill] sm:$0xff] %v6135_v43  ;;  %v495_v16 = vadd.f32 %v5715_v62, %v239_v7  ;;  %v496_v19 = vadd.f32 %v5719_v1, %v240_v6  ;;  %4542 = vpow2.f32 %v1015_v36  ;;  %v979_v37 = vmul.f32 1.442695, %v886_v4  ;;  %v4372_v36 = vld [vmem:[%s8072_s3 + $0x18] sm:$0xff] }
  0xb8   :  { %v581_v2 = vadd.f32 %v5675_v34, %v325_v49  ;;  %v582_v42 = vadd.f32 %v5677_v35, %v326_v56  ;;  %4544 = vpow2.f32 %v1017_v22  ;;  %v827_v14 = vxor.u32 2147516416, %v709_v40 }
  0xb9   :  { %v981_v57 = vmul.f32 1.442695, %v887_v61  ;;  %v6147_v15 = vrot.slane %v716_v11, 4  ;;  %v712_v41 = vpack.c.bf16 %v498_v60, %v497_v21  ;;  %v6151_v26 = vpack.c.bf16 %v494_v17, %v493_v10  ;;  %v6161_v60 = vpop.permute.xlu1 %81 }
  0xba   :  { %v711_v54 = vpack.c.bf16 %v496_v19, %v495_v16  ;;  %v331_v49 = vmul.f32 %v5691_v47, %v122_v3  ;;  %4546 = vpow2.f32 %v979_v37  ;;  %v6156_v22 = vmul.f32 %v5702_v52, %v6076_v24 }
  0xbb   :  { %8253 = vst [vmem:[#allocation57_spill] sm:$0xff] %v6147_v15  ;;  %v332_v40 = vmul.f32 %v5693_v48, %v122_v3  ;;  %v759_v61 = vpack.c.bf16 %v582_v42, %v581_v2  ;;  %v883_v11 = vunpack.c.l.bf16 %v827_v14  ;;  %v884_v56 = vunpack.c.h.bf16 %v827_v14 }
  0xbc   :  { %8254 = vst [vmem:[#allocation58_spill] sm:$0xff] %v6151_v26  ;;  %v327_v7 = vmul.f32 %v5671_v32, %v122_v3  ;;  %v328_v21 = vmul.f32 %v5673_v33, %v122_v3  ;;  %4548 = vpow2.f32 %v981_v57  ;;  %v6165_v16 = vxor.u32 2147516416, %v712_v41  ;;  %v4373_v41 = vld [vmem:[%s8072_s3 + $0x20] sm:$0xff] }
  0xbd   :  { %8255 = vst [vmem:[#allocation59_spill] sm:$0xff] %v6156_v22  ;;  %v6163_v10 = vpop.eup %4542  ;;  %v329_v6 = vmul.f32 %v5695_v50, %v122_v3  ;;  %v330_v24 = vmul.f32 %v5697_v51, %v122_v3  ;;  %v6172_v4 = vrot.slane %v711_v54, 4  ;;  %v6175_v17 = vmul.f32 %v5702_v52, %v122_v3  ;;  %4473 = vmatpush.bf16.msra.mxu3 %v4373_v41  ;;  %v6225_v22 = vpop.permute.xlu2 %136 }
  0xbe   :  { %8256 = vst [vmem:[#allocation60_spill] sm:$0xff] %v6163_v10  ;;  %v6169_v19 = vpop.eup %4544  ;;  %v587_v37 = vadd.f32 %v5710_v58, %v331_v49  ;;  %v588_v2 = vadd.f32 %v5717_v63, %v332_v40  ;;  %v847_v42 = vxor.u32 2147516416, %v759_v61  ;;  %v253_v14 = vmul.f32 %v5664_v28, %v6161_v60  ;;  %3998 = vmatpush.bf16.msra.mxu0 %v4373_v41  ;;  %v6202_v40 = vpop.permute.xlu0 %166 }
  0xbf   :  { %8257 = vst [vmem:[#allocation61_spill] sm:$0xff] %v6165_v16  ;;  %v254_v57 = vmul.f32 %v5666_v29, %v6161_v60  ;;  %v973_v54 = vmul.f32 1.442695, %v883_v11  ;;  %v975_v23 = vmul.f32 1.442695, %v884_v56  ;;  %v583_v52 = vadd.f32 %v5681_v38, %v327_v7 }
  0xc0   :  { %8258 = vst [vmem:[#allocation62_spill] sm:$0xff] %v6169_v19  ;;  %v584_v3 = vadd.f32 %v5683_v39, %v328_v21  ;;  %v6188_v49 = vpop.eup %4546  ;;  %v585_v27 = vadd.f32 %v5715_v62, %v329_v6  ;;  %v586_v9 = vadd.f32 %v5719_v1, %v330_v24  ;;  %v255_v11 = vmul.f32 %v5671_v32, %v6161_v60 }
  0xc1   :  { %8259 = vst [vmem:[#allocation63_spill] sm:$0xff] %v6172_v4  ;;  %v256_v56 = vmul.f32 %v5673_v33, %v6161_v60  ;;  %v257_v7 = vmul.f32 %v5695_v50, %v6161_v60  ;;  %v258_v21 = vmul.f32 %v5697_v51, %v6161_v60  ;;  %v762_v6 = vpack.c.bf16 %v588_v2, %v587_v37 }
  0xc2   :  { %8260 = vst [vmem:[#allocation64_spill] sm:$0xff] %v6175_v17  ;;  %v6204_v61 = vpop.eup %4548  ;;  %v913_v24 = vunpack.c.l.bf16 %v847_v42  ;;  %v509_v41 = vadd.f32 %v5675_v34, %v253_v14  ;;  %v510_v53 = vadd.f32 %v5677_v35, %v254_v57  ;;  %v6211_v17 = vpack.c.bf16 %v584_v3, %v583_v52  ;;  %4474 = vmatpush.bf16.msra.mxu3 %v4372_v36 }
  0xc3   :  { %8261 = vst [vmem:[#allocation65_spill] sm:$0xff] %v6188_v49  ;;  %v914_v0 = vunpack.c.h.bf16 %v847_v42  ;;  %v259_v19 = vmul.f32 %v5691_v47, %v6161_v60  ;;  %v260_v10 = vmul.f32 %v5693_v48, %v6161_v60  ;;  %4550 = vpow2.f32 %v973_v54  ;;  %3999 = vmatpush.bf16.msra.mxu0 %v4372_v36 }
  0xc4   :  { %8262 = vst [vmem:[#allocation66_spill] sm:$0xff] %v6204_v61  ;;  %v761_v37 = vpack.c.bf16 %v586_v9, %v585_v27  ;;  %v406_v2 = vmul.f32 %v5664_v28, %v6202_v40  ;;  %v407_v14 = vmul.f32 %v5666_v29, %v6202_v40  ;;  %v511_v57 = vadd.f32 %v5681_v38, %v255_v11 }
  0xc5   :  { %8263 = vst [vmem:[#allocation67_spill] sm:$0xff] %v6211_v17  ;;  %v512_v42 = vadd.f32 %v5683_v39, %v256_v56  ;;  %v513_v52 = vadd.f32 %v5715_v62, %v257_v7  ;;  %v514_v3 = vadd.f32 %v5719_v1, %v258_v21  ;;  %4552 = vpow2.f32 %v975_v23 }
  0xc6   :  { %v1033_v9 = vmul.f32 1.442695, %v913_v24  ;;  %v6227_v27 = vxor.u32 2147516416, %v762_v6  ;;  %v719_v54 = vpack.c.bf16 %v510_v53, %v509_v41  ;;  %v1035_v43 = vmul.f32 1.442695, %v914_v0 }
  0xc7   :  { %v515_v36 = vadd.f32 %v5710_v58, %v259_v19  ;;  %v516_v11 = vadd.f32 %v5717_v63, %v260_v10  ;;  %v662_v56 = vadd.f32 %v5675_v34, %v406_v2  ;;  %v663_v7 = vadd.f32 %v5677_v35, %v407_v14  ;;  %v6243_v0 = vld [vmem:[%s8070_s1 + $0x8] ss:$0 sm:$0xff] }
  0xc8   :  { %8264 = vst [vmem:[#allocation68_spill] sm:$0xff] %v6227_v27  ;;  %v352_v21 = vmul.f32 %v5664_v28, %v6225_v22  ;;  %v353_v23 = vmul.f32 %v5666_v29, %v6225_v22  ;;  %v6238_v6 = vrot.slane %v761_v37, 4  ;;  %v6247_v53 = vmul.f32 %v6243_v0, %v6161_v60  ;;  %v6292_v27 = vld [vmem:[%s8072_s3 + $0x78] sm:$0xff] }
  0xc9   :  { %v6249_v10 = vpack.c.bf16 %v512_v42, %v511_v57  ;;  %v721_v19 = vpack.c.bf16 %v514_v3, %v513_v52  ;;  %v6251_v24 = vpop.eup %4550  ;;  %4554 = vpow2.f32 %v1033_v9  ;;  %v831_v2 = vxor.u32 2147516416, %v719_v54  ;;  %v4371_v9 = vld [vmem:[%s8072_s3 + $0x10] sm:$0xff]  ;;  %4069 = vmatpush.bf16.msra.mxu1 %v6292_v27 }
  0xca   :  { %8265 = vst [vmem:[#allocation69_spill] sm:$0xff] %v6238_v6  ;;  %4556 = vpow2.f32 %v1035_v43  ;;  %v722_v14 = vpack.c.bf16 %v516_v11, %v515_v36  ;;  %v408_v16 = vmul.f32 %v5671_v32, %v6202_v40  ;;  %v412_v60 = vmul.f32 %v5691_v47, %v6202_v40  ;;  %v4392_v6 = vld [vmem:[%s8072_s3 + $0xb8] sm:$0xff]  ;;  %4475 = vmatpush.bf16.msra.mxu3 %v4371_v9 }
  0xcb   :  { %8266 = vst [vmem:[#allocation70_spill] sm:$0xff] %v6247_v53  ;;  %v6259_v17 = vpop.eup %4552  ;;  %v413_v57 = vmul.f32 %v5693_v48, %v6202_v40  ;;  %v804_v42 = vpack.c.bf16 %v663_v7, %v662_v56  ;;  %v608_v52 = vadd.f32 %v5675_v34, %v352_v21  ;;  %v609_v3 = vadd.f32 %v5677_v35, %v353_v23 }
  0xcc   :  { %8267 = vst [vmem:[#allocation71_spill] sm:$0xff] %v6249_v10  ;;  %v6266_v43 = vrot.slane %v721_v19, 4  ;;  %v409_v54 = vmul.f32 %v5673_v33, %v6202_v40  ;;  %v410_v36 = vmul.f32 %v5695_v50, %v6202_v40  ;;  %v889_v11 = vunpack.c.l.bf16 %v831_v2  ;;  %4143 = vmatpush.bf16.msra.mxu2 %v4392_v6  ;;  %4000 = vmatpush.bf16.msra.mxu0 %v4371_v9  ;;  %v4391_v6 = vld [vmem:[%s8072_s3 + $0xb0] sm:$0xff] }
  0xcd   :  { %8268 = vst [vmem:[#allocation72_spill] sm:$0xff] %v6251_v24  ;;  %v411_v37 = vmul.f32 %v5697_v51, %v6202_v40  ;;  %v354_v56 = vmul.f32 %v5671_v32, %v6225_v22  ;;  %v355_v7 = vmul.f32 %v5673_v33, %v6225_v22  ;;  %v356_v21 = vmul.f32 %v5695_v50, %v6225_v22 }
  0xce   :  { %8269 = vst [vmem:[#allocation73_spill] sm:$0xff] %v6259_v17  ;;  %v357_v23 = vmul.f32 %v5697_v51, %v6225_v22  ;;  %v358_v19 = vmul.f32 %v5691_v47, %v6225_v22  ;;  %v359_v41 = vmul.f32 %v5693_v48, %v6225_v22  ;;  %v668_v10 = vadd.f32 %v5710_v58, %v412_v60 }
  0xcf   :  { %8270 = vst [vmem:[#allocation74_spill] sm:$0xff] %v6266_v43  ;;  %v6297_v53 = vpop.eup %4554  ;;  %v669_v43 = vadd.f32 %v5717_v63, %v413_v57  ;;  %v865_v5 = vxor.u32 2147516416, %v804_v42  ;;  %v774_v15 = vpack.c.bf16 %v609_v3, %v608_v52  ;;  %v890_v4 = vunpack.c.h.bf16 %v831_v2  ;;  %v4370_v52 = vld [vmem:[%s8072_s3 + $0x8] sm:$0xff]  ;;  %v6321_v3 = vld [vmem:[%s8072_s3 + $0x70] sm:$0xff] }
  0xd0   :  { %8271 = vst [vmem:[#allocation75_spill] sm:$0xff] %v6297_v53  ;;  %v6301_v26 = vpop.eup %4556  ;;  %v6303_v61 = vxor.u32 2147516416, %v722_v14  ;;  %v664_v49 = vadd.f32 %v5681_v38, %v408_v16  ;;  %v665_v17 = vadd.f32 %v5683_v39, %v409_v54  ;;  %v985_v24 = vmul.f32 1.442695, %v889_v11  ;;  %4476 = vmatpush.bf16.msra.mxu3 %v4370_v52  ;;  %4070 = vmatpush.bf16.msra.mxu1 %v6321_v3 }
  0xd1   :  { %8272 = vst [vmem:[#allocation76_spill] sm:$0xff] %v6301_v26  ;;  %v666_v53 = vadd.f32 %v5715_v62, %v410_v36  ;;  %v610_v60 = vadd.f32 %v5681_v38, %v354_v56  ;;  %v611_v57 = vadd.f32 %v5683_v39, %v355_v7  ;;  %v612_v2 = vadd.f32 %v5715_v62, %v356_v21  ;;  %v6327_v56 = vpop.permute.xlu1 %176 }
  0xd2   :  { %8273 = vst [vmem:[#allocation77_spill] sm:$0xff] %v6303_v61  ;;  %v613_v14 = vadd.f32 %v5719_v1, %v357_v23  ;;  %v614_v16 = vadd.f32 %v5710_v58, %v358_v19  ;;  %v615_v42 = vadd.f32 %v5717_v63, %v359_v41  ;;  %v667_v9 = vadd.f32 %v5719_v1, %v411_v37 }
  0xd3   :  { %v807_v54 = vpack.c.bf16 %v669_v43, %v668_v10  ;;  %v940_v36 = vunpack.c.l.bf16 %v865_v5  ;;  %v853_v11 = vxor.u32 2147516416, %v774_v15  ;;  %v6333_v21 = vmul.f32 %v6243_v0, %v6202_v40  ;;  %4144 = vmatpush.bf16.msra.mxu2 %v4391_v6  ;;  %4001 = vmatpush.bf16.msra.mxu0 %v4370_v52 }
  0xd4   :  { %v941_v23 = vunpack.c.h.bf16 %v865_v5  ;;  %4558 = vpow2.f32 %v985_v24  ;;  %v987_v19 = vmul.f32 1.442695, %v890_v4  ;;  %v6336_v37 = vpack.c.bf16 %v665_v17, %v664_v49 }
  0xd5   :  { %8274 = vst [vmem:[#allocation78_spill] sm:$0xff] %v6333_v21  ;;  %v775_v10 = vpack.c.bf16 %v611_v57, %v610_v60  ;;  %v776_v15 = vpack.c.bf16 %v613_v14, %v612_v2  ;;  %v777_v43 = vpack.c.bf16 %v615_v42, %v614_v16  ;;  %v424_v7 = vmul.f32 %v5664_v28, %v6327_v56 }
  0xd6   :  { %8275 = vst [vmem:[#allocation79_spill] sm:$0xff] %v6336_v37  ;;  %v425_v40 = vmul.f32 %v5666_v29, %v6327_v56  ;;  %v806_v41 = vpack.c.bf16 %v667_v9, %v666_v53  ;;  %v1087_v5 = vmul.f32 1.442695, %v940_v36  ;;  %v6342_v21 = vxor.u32 2147516416, %v807_v54  ;;  %v5543_v54 = vld [vmem:[%s8071_s2 + $0x8] ss:$0 sm:$0xff] }
  0xd7   :  { %v922_v26 = vunpack.c.l.bf16 %v853_v11  ;;  %v1089_v24 = vmul.f32 1.442695, %v941_v23  ;;  %v360_v4 = vmul.f32 %v6243_v0, %v6225_v22  ;;  %v923_v17 = vunpack.c.h.bf16 %v853_v11 }
  0xd8   :  { %8276 = vst [vmem:[#allocation80_spill] sm:$0xff] %v6342_v21  ;;  %4560 = vpow2.f32 %v987_v19  ;;  %v854_v60 = vxor.u32 2147516416, %v775_v10  ;;  %v1817_v57 = vrot.slane %v775_v10, 4  ;;  %v6347_v2 = vrot.slane %v776_v15, 4  ;;  %v6368_v19 = vpop.permute.xlu0 %171 }
  0xd9   :  { %v2156_v14 = vxor.u32 2147516416, %v777_v43  ;;  %v680_v53 = vadd.f32 %v5675_v34, %v424_v7  ;;  %v681_v16 = vadd.f32 %v5677_v35, %v425_v40  ;;  %4562 = vpow2.f32 %v1087_v5  ;;  %v4369_v5 = vld [vmem:[%s8072_s3] sm:$0xff] }
  0xda   :  { %8277 = vst [vmem:[#allocation81_spill] sm:$0xff] %v6347_v2  ;;  %v6351_v42 = vpop.eup %4558  ;;  %v6353_v52 = vrot.slane %v806_v41, 4  ;;  %v1051_v6 = vmul.f32 1.442695, %v922_v26  ;;  %4564 = vpow2.f32 %v1089_v24  ;;  %v6360_v36 = vadd.f32 %v5543_v54, %v360_v4  ;;  %v4382_v24 = vld [vmem:[%s8072_s3 + $0x68] sm:$0xff]  ;;  %4477 = vmatpush.bf16.msra.mxu3 %v4369_v5  ;;  %4002 = vmatpush.bf16.msra.mxu0 %v4369_v5 }
  0xdb   :  { %8278 = vst [vmem:[#allocation82_spill] sm:$0xff] %v6351_v42  ;;  %v1053_v11 = vmul.f32 1.442695, %v923_v17  ;;  %v924_v7 = vunpack.c.l.bf16 %v854_v60  ;;  %v426_v23 = vmul.f32 %v5671_v32, %v6327_v56  ;;  %v430_v41 = vmul.f32 %v5691_v47, %v6327_v56  ;;  %v6383_v4 = vld [vmem:[%s8072_s3 + $0xa8] sm:$0xff]  ;;  %4071 = vmatpush.bf16.msra.mxu1 %v4382_v24 }
  0xdc   :  { %8279 = vst [vmem:[#allocation83_spill] sm:$0xff] %v6353_v52  ;;  %v431_v26 = vmul.f32 %v5693_v48, %v6327_v56  ;;  %v6372_v10 = vsel %vm1835_vm0, %v1817_v57, %v6347_v2  ;;  %v2225_v15 = vunpack.c.l.bf16 %v2156_v14  ;;  %v2226_v43 = vunpack.c.h.bf16 %v2156_v14  ;;  %4145 = vmatpush.bf16.msra.mxu2 %v6383_v4 }
  0xdd   :  { %8280 = vst [vmem:[#allocation84_spill] sm:$0xff] %v6360_v36  ;;  %v814_v40 = vpack.c.bf16 %v681_v16, %v680_v53  ;;  %4566 = vpow2.f32 %v1051_v6  ;;  %v427_v60 = vmul.f32 %v5673_v33, %v6327_v56  ;;  %v428_v57 = vmul.f32 %v5695_v50, %v6327_v56 }
  0xde   :  { %8281 = vst [vmem:[#allocation85_spill] sm:$0xff] %v6372_v10  ;;  %v6385_v17 = vpop.eup %4560  ;;  %v429_v14 = vmul.f32 %v5697_v51, %v6327_v56  ;;  %4568 = vpow2.f32 %v1053_v11  ;;  %v415_v16 = vmul.f32 %v5664_v28, %v6368_v19  ;;  %v416_v54 = vmul.f32 %v5666_v29, %v6368_v19  ;;  %4478 = vmatpush.bf16.msrb.mxu3 %v6292_v27 }
  0xdf   :  { %8282 = vst [vmem:[#allocation86_spill] sm:$0xff] %v6383_v4  ;;  %v6399_v6 = vpop.eup %4562  ;;  %v6401_v9 = vmul.f32 1.442695, %v924_v7  ;;  %v686_v49 = vadd.f32 %v5710_v58, %v430_v41  ;;  %v687_v2 = vadd.f32 %v5717_v63, %v431_v26  ;;  %v2354_v36 = vmul.f32 1.442695, %v2225_v15 }
  0xe0   :  { %8283 = vst [vmem:[#allocation87_spill] sm:$0xff] %v6385_v17  ;;  %v6407_v11 = vpop.eup %4564  ;;  %v2356_v61 = vmul.f32 1.442695, %v2226_v43  ;;  %v869_v17 = vxor.u32 2147516416, %v814_v40  ;;  %v682_v7 = vadd.f32 %v5681_v38, %v426_v23  ;;  %v683_v22 = vadd.f32 %v5683_v39, %v427_v60 }
  0xe1   :  { %8284 = vst [vmem:[#allocation88_spill] sm:$0xff] %v6399_v6  ;;  %v684_v41 = vadd.f32 %v5715_v62, %v428_v57  ;;  %v685_v26 = vadd.f32 %v5719_v1, %v429_v14  ;;  %v417_v5 = vmul.f32 %v5671_v32, %v6368_v19  ;;  %v418_v15 = vmul.f32 %v5673_v33, %v6368_v19 }
  0xe2   :  { %8285 = vst [vmem:[#allocation89_spill] sm:$0xff] %v6401_v9  ;;  %v6415_v9 = vpop.permute.xlu1 %101  ;;  %v671_v43 = vadd.f32 %v5675_v34, %v415_v16  ;;  %v672_v27 = vadd.f32 %v5677_v35, %v416_v54  ;;  %v6425_v23 = vmul.f32 %v6243_v0, %v6327_v56  ;;  %v817_v60 = vpack.c.bf16 %v687_v2, %v686_v49 }
  0xe3   :  { %8286 = vst [vmem:[#allocation90_spill] sm:$0xff] %v6407_v11  ;;  %v4567_v40 = vpop.eup %4566  ;;  %v421_v57 = vmul.f32 %v5691_v47, %v6368_v19  ;;  %v422_v14 = vmul.f32 %v5693_v48, %v6368_v19  ;;  %4570 = vpow2.f32 %v2354_v36  ;;  %v946_v10 = vunpack.c.l.bf16 %v869_v17  ;;  %4479 = vmatpush.bf16.msrb.mxu3 %v6321_v3 }
  0xe4   :  { %8287 = vst [vmem:[#allocation91_spill] sm:$0xff] %v6425_v23  ;;  %v4569_v53 = vpop.eup %4568  ;;  %v289_v16 = vmul.f32 %v5664_v28, %v6415_v9  ;;  %v290_v54 = vmul.f32 %v5666_v29, %v6415_v9  ;;  %v6436_v56 = vpack.c.bf16 %v683_v22, %v682_v7  ;;  %v816_v49 = vpack.c.bf16 %v685_v26, %v684_v41 }
  0xe5   :  { %v947_v2 = vunpack.c.h.bf16 %v869_v17  ;;  %v419_v23 = vmul.f32 %v5695_v50, %v6368_v19  ;;  %v420_v42 = vmul.f32 %v5697_v51, %v6368_v19  ;;  %v673_v36 = vadd.f32 %v5681_v38, %v417_v5 }
  0xe6   :  { %8288 = vst [vmem:[#allocation92_spill] sm:$0xff] %v6436_v56  ;;  %v674_v21 = vadd.f32 %v5683_v39, %v418_v15  ;;  %v809_v37 = vpack.c.bf16 %v672_v27, %v671_v43  ;;  %v6444_v52 = vpack.c.bf16 %v4569_v53, %v4567_v40  ;;  %v6446_v11 = vxor.u32 2147516416, %v817_v60  ;;  %v6465_v60 = vpop.permute.xlu0 %96 }
  0xe7   :  { %v677_v3 = vadd.f32 %v5710_v58, %v421_v57  ;;  %v678_v22 = vadd.f32 %v5717_v63, %v422_v14  ;;  %4572 = vpow2.f32 %v2356_v61  ;;  %v1099_v17 = vmul.f32 1.442695, %v946_v10  ;;  %4480 = vmatpush.bf16.msrb.mxu3 %v4382_v24 }
  0xe8   :  { %8289 = vst [vmem:[#allocation93_spill] sm:$0xff] %v6444_v52  ;;  %v545_v7 = vadd.f32 %v5675_v34, %v289_v16  ;;  %v546_v41 = vadd.f32 %v5677_v35, %v290_v54  ;;  %v1101_v26 = vmul.f32 1.442695, %v947_v2  ;;  %v6453_v15 = vrot.slane %v816_v49, 4 }
  0xe9   :  { %8290 = vst [vmem:[#allocation94_spill] sm:$0xff] %v6446_v11  ;;  %v6457_v53 = vmul.f32 %v6243_v0, %v6368_v19  ;;  %v6459_v43 = vpop.eup %4570  ;;  %v675_v27 = vadd.f32 %v5715_v62, %v419_v23  ;;  %v676_v61 = vadd.f32 %v5719_v1, %v420_v42  ;;  %v6463_v10 = vpack.c.bf16 %v674_v21, %v673_v36 }
  0xea   :  { %8291 = vst [vmem:[#allocation95_spill] sm:$0xff] %v6453_v15  ;;  %v867_v40 = vxor.u32 2147516416, %v809_v37  ;;  %v812_v16 = vpack.c.bf16 %v678_v22, %v677_v3  ;;  %4574 = vpow2.f32 %v1099_v17  ;;  %v295_v19 = vmul.f32 %v5691_v47, %v6415_v9  ;;  %v6484_v17 = vpop.permute.xlu1 %116 }
  0xeb   :  { %8292 = vst [vmem:[#allocation96_spill] sm:$0xff] %v6457_v53  ;;  %v296_v23 = vmul.f32 %v5693_v48, %v6415_v9  ;;  %v739_v42 = vpack.c.bf16 %v546_v41, %v545_v7  ;;  %4576 = vpow2.f32 %v1101_v26  ;;  %v280_v37 = vmul.f32 %v5664_v28, %v6465_v60 }
  0xec   :  { %8293 = vst [vmem:[#allocation97_spill] sm:$0xff] %v6459_v43  ;;  %v281_v54 = vmul.f32 %v5666_v29, %v6465_v60  ;;  %v811_v2 = vpack.c.bf16 %v676_v61, %v675_v27  ;;  %v943_v36 = vunpack.c.l.bf16 %v867_v40  ;;  %v291_v22 = vmul.f32 %v5671_v32, %v6415_v9 }
  0xed   :  { %8294 = vst [vmem:[#allocation98_spill] sm:$0xff] %v6463_v10  ;;  %v6479_v49 = vpop.eup %4572  ;;  %v6486_v7 = vxor.u32 2147516416, %v812_v16  ;;  %v292_v41 = vmul.f32 %v5673_v33, %v6415_v9  ;;  %v293_v26 = vmul.f32 %v5695_v50, %v6415_v9  ;;  %v294_v21 = vmul.f32 %v5697_v51, %v6415_v9 }
  0xee   :  { %8295 = vst [vmem:[#allocation99_spill] sm:$0xff] %v6479_v49  ;;  %v944_v27 = vunpack.c.h.bf16 %v867_v40  ;;  %v551_v61 = vadd.f32 %v5710_v58, %v295_v19  ;;  %v552_v24 = vadd.f32 %v5717_v63, %v296_v23  ;;  %v839_v14 = vxor.u32 2147516416, %v739_v42 }
  0xef   :  { %8296 = vst [vmem:[#allocation100_spill] sm:$0xff] %v6486_v7  ;;  %v536_v57 = vadd.f32 %v5675_v34, %v280_v37  ;;  %v537_v16 = vadd.f32 %v5677_v35, %v281_v54  ;;  %v316_v5 = vmul.f32 %v5664_v28, %v6484_v17  ;;  %v317_v3 = vmul.f32 %v5666_v29, %v6484_v17 }
  0xf0   :  { %v6502_v53 = vpop.eup %4574  ;;  %v1093_v52 = vmul.f32 1.442695, %v943_v36  ;;  %v547_v40 = vadd.f32 %v5681_v38, %v291_v22  ;;  %v286_v19 = vmul.f32 %v5691_v47, %v6465_v60  ;;  %v287_v23 = vmul.f32 %v5693_v48, %v6465_v60 }
  0xf1   :  { %8297 = vst [vmem:[#allocation101_spill] sm:$0xff] %v6502_v53  ;;  %v6509_v42 = vpop.eup %4576  ;;  %v282_v37 = vmul.f32 %v5671_v32, %v6465_v60  ;;  %v283_v54 = vmul.f32 %v5673_v33, %v6465_v60  ;;  %v284_v49 = vmul.f32 %v5695_v50, %v6465_v60  ;;  %v285_v36 = vmul.f32 %v5697_v51, %v6465_v60 }
  0xf2   :  { %8298 = vst [vmem:[#allocation102_spill] sm:$0xff] %v6509_v42  ;;  %v548_v22 = vadd.f32 %v5683_v39, %v292_v41  ;;  %v549_v43 = vadd.f32 %v5715_v62, %v293_v26  ;;  %v550_v11 = vadd.f32 %v5719_v1, %v294_v21  ;;  %v742_v56 = vpack.c.bf16 %v552_v24, %v551_v61 }
  0xf3   :  { %v901_v15 = vunpack.c.l.bf16 %v839_v14  ;;  %v734_v10 = vpack.c.bf16 %v537_v16, %v536_v57  ;;  %v572_v42 = vadd.f32 %v5675_v34, %v316_v5  ;;  %v573_v53 = vadd.f32 %v5677_v35, %v317_v3 }
  0xf4   :  { %v1095_v6 = vmul.f32 1.442695, %v944_v27  ;;  %v902_v4 = vunpack.c.h.bf16 %v839_v14  ;;  %v542_v8 = vadd.f32 %v5710_v58, %v286_v19  ;;  %v543_v44 = vadd.f32 %v5717_v63, %v287_v23 }
  0xf5   :  { %v538_v30 = vadd.f32 %v5681_v38, %v282_v37  ;;  %v539_v41 = vadd.f32 %v5683_v39, %v283_v54  ;;  %v540_v26 = vadd.f32 %v5715_v62, %v284_v49  ;;  %v541_v24 = vadd.f32 %v5719_v1, %v285_v36  ;;  %v6566_v54 = vpop.permute.xlu0 %111 }
  0xf6   :  { %v6530_v21 = vrot.slane %v811_v2, 4  ;;  %v6532_v57 = vpack.c.bf16 %v548_v22, %v547_v40  ;;  %v741_v5 = vpack.c.bf16 %v550_v11, %v549_v43  ;;  %v6534_v3 = vxor.u32 2147516416, %v742_v56 }
  0xf7   :  { %v6538_v14 = vmul.f32 %v6243_v0, %v6415_v9  ;;  %v1009_v27 = vmul.f32 1.442695, %v901_v15  ;;  %v837_v61 = vxor.u32 2147516416, %v734_v10  ;;  %v754_v16 = vpack.c.bf16 %v573_v53, %v572_v42 }
  0xf8   :  { %8299 = vst [vmem:[#allocation103_spill] sm:$0xff] %v6530_v21  ;;  %4578 = vpow2.f32 %v1093_v52  ;;  %v1011_v49 = vmul.f32 1.442695, %v902_v4  ;;  %v737_v23 = vpack.c.bf16 %v543_v44, %v542_v8  ;;  %v6542_v40 = vpack.c.bf16 %v539_v41, %v538_v30 }
  0xf9   :  { %8300 = vst [vmem:[#allocation104_spill] sm:$0xff] %v6532_v57  ;;  %4580 = vpow2.f32 %v1095_v6  ;;  %v736_v11 = vpack.c.bf16 %v541_v24, %v540_v26  ;;  %v6545_v43 = vrot.slane %v741_v5, 4  ;;  %v898_v52 = vunpack.c.l.bf16 %v837_v61 }
  0xfa   :  { %8301 = vst [vmem:[#allocation105_spill] sm:$0xff] %v6534_v3  ;;  %4582 = vpow2.f32 %v1009_v27  ;;  %v899_v53 = vunpack.c.h.bf16 %v837_v61  ;;  %v6549_v10 = vxor.u32 2147516416, %v754_v16  ;;  %v6553_v44 = vmul.f32 %v6243_v0, %v6465_v60 }
  0xfb   :  { %8302 = vst [vmem:[#allocation106_spill] sm:$0xff] %v6538_v14  ;;  %4584 = vpow2.f32 %v1011_v49  ;;  %v6555_v30 = vxor.u32 2147516416, %v737_v23  ;;  %v318_v8 = vmul.f32 %v5671_v32, %v6484_v17  ;;  %v6560_v6 = vrot.slane %v736_v11, 4 }
  0xfc   :  { %8303 = vst [vmem:[#allocation107_spill] sm:$0xff] %v6542_v40  ;;  %v319_v42 = vmul.f32 %v5673_v33, %v6484_v17  ;;  %v320_v37 = vmul.f32 %v5695_v50, %v6484_v17  ;;  %v321_v60 = vmul.f32 %v5697_v51, %v6484_v17  ;;  %v322_v22 = vmul.f32 %v5691_v47, %v6484_v17 }
  0xfd   :  { %8304 = vst [vmem:[#allocation108_spill] sm:$0xff] %v6545_v43  ;;  %v323_v41 = vmul.f32 %v5693_v48, %v6484_v17  ;;  %v6578_v26 = vmul.f32 %v6243_v0, %v6484_v17  ;;  %v1003_v5 = vmul.f32 1.442695, %v898_v52  ;;  %v1005_v27 = vmul.f32 1.442695, %v899_v53 }
  0xfe   :  { %8305 = vst [vmem:[#allocation109_spill] sm:$0xff] %v6553_v44  ;;  %v6568_v36 = vpop.eup %4578  ;;  %v910_v61 = vunpack.c.l.bf16 %v6549_v10  ;;  %v1145_v16 = vpack.c.bf16 %v5789_v25, %v5781_v20  ;;  %v307_v23 = vmul.f32 %v5664_v28, %v6566_v54  ;;  %v308_v11 = vmul.f32 %v5666_v29, %v6566_v54 }
  0xff   :  { %8306 = vst [vmem:[#allocation110_spill] sm:$0xff] %v6555_v30  ;;  %v6580_v24 = vpop.eup %4580  ;;  %v1147_v17 = vpack.c.bf16 %v5847_v13, %v5829_v31  ;;  %v574_v53 = vadd.f32 %v5681_v38, %v318_v8  ;;  %v575_v25 = vadd.f32 %v5683_v39, %v319_v42  ;;  %v576_v49 = vadd.f32 %v5715_v62, %v320_v37 }
 0x100   :  { %8307 = vst [vmem:[#allocation111_spill] sm:$0xff] %v6560_v6  ;;  %v6592_v15 = vpop.eup %4582  ;;  %v1217_v9 = vunpack.c.l.bf16 %v1145_v16  ;;  %v1218_v56 = vunpack.c.h.bf16 %v1145_v16  ;;  %v577_v19 = vadd.f32 %v5719_v1, %v321_v60  ;;  %v563_v14 = vadd.f32 %v5675_v34, %v307_v23 }
 0x101   :  { %8308 = vst [vmem:[#allocation112_spill] sm:$0xff] %v6568_v36  ;;  %v6596_v20 = vpop.eup %4584  ;;  %v1220_v4 = vunpack.c.l.bf16 %v1147_v17  ;;  %v1221_v2 = vunpack.c.h.bf16 %v1147_v17  ;;  %v564_v52 = vadd.f32 %v5677_v35, %v308_v11  ;;  %4586 = vpow2.f32 %v1003_v5 }
 0x102   :  { %8309 = vst [vmem:[#allocation113_spill] sm:$0xff] %v6578_v26  ;;  %v1027_v26 = vmul.f32 1.442695, %v910_v61  ;;  %v1295_v31 = vadd.f32 1.0, %v1217_v9  ;;  %v1296_v13 = vadd.f32 1.0, %v1218_v56  ;;  %v578_v16 = vadd.f32 %v5710_v58, %v322_v22 }
 0x103   :  { %8310 = vst [vmem:[#allocation114_spill] sm:$0xff] %v6580_v24  ;;  %v1298_v8 = vadd.f32 1.0, %v1220_v4  ;;  %v1299_v3 = vadd.f32 1.0, %v1221_v2  ;;  %v579_v42 = vadd.f32 %v5717_v63, %v323_v41  ;;  %4588 = vpow2.f32 %v1005_v27 }
 0x104   :  { %8311 = vst [vmem:[#allocation115_spill] sm:$0xff] %v6592_v15  ;;  %v6605_v37 = vpack.c.bf16 %v575_v25, %v574_v53  ;;  %v8314_v9 = vrot.slane %v5706_v55, 4  ;;  %v756_v60 = vpack.c.bf16 %v577_v19, %v576_v49  ;;  %4590 = vpow2.f32 %v1027_v26 }
 0x105   :  { %8312 = vst [vmem:[#allocation116_spill] sm:$0xff] %v6596_v20  ;;  %v1353_v20 = vpack.c.bf16 %v1296_v13, %v1295_v31  ;;  %v1355_v17 = vpack.c.bf16 %v1299_v3, %v1298_v8  ;;  %v749_v2 = vpack.c.bf16 %v564_v52, %v563_v14  ;;  %v8315_v22 = vrot.slane %v5750_v45, 4 }
 0x106   :  { %8313 = vst [vmem:[#allocation117_spill] sm:$0xff] %v6605_v37  ;;  %v1856_v56 = vsel %vm1835_vm0, %v8314_v9, %v5757_v59  ;;  %v757_v27 = vpack.c.bf16 %v579_v42, %v578_v16  ;;  %v309_v55 = vmul.f32 %v5671_v32, %v6566_v54  ;;  %v6620_v14 = vrot.slane %v756_v60, 4 }
 0x107   :  { %v1647_v61 = vunpack.c.h.bf16 %v1353_v20  ;;  %v1648_v4 = vunpack.c.l.bf16 %v1353_v20  ;;  %v1661_v5 = vunpack.c.h.bf16 %v1355_v17  ;;  %v1662_v23 = vunpack.c.l.bf16 %v1355_v17  ;;  %v6618_v26 = vpop.eup %4586 }
 0x108   :  { %v1857_v41 = vsel %vm1835_vm0, %v8315_v22, %v5777_v18  ;;  %v1974_v3 = vunpack.c.l.bf16 %v1856_v56  ;;  %v1975_v19 = vunpack.c.h.bf16 %v1856_v56  ;;  %8316 = vst [vmem:[#allocation118_spill] sm:$0xff] %v6618_v26  ;;  %v310_v49 = vmul.f32 %v5673_v33, %v6566_v54 }
 0x109   :  { %4592 = vrcp.f32 %v1647_v61  ;;  %8317 = vst [vmem:[#allocation119_spill] sm:$0xff] %v6620_v14  ;;  %v1977_v45 = vunpack.c.l.bf16 %v1857_v41  ;;  %v6624_v52 = vpop.eup %4588  ;;  %v843_v53 = vxor.u32 2147516416, %v749_v2  ;;  %v5552_v20 = vmov 1065369472  }
 0x10a   :  { %4594 = vrcp.f32 %v1648_v4  ;;  %8318 = vst [vmem:[#allocation120_spill] sm:$0xff] %v6624_v52  ;;  %v6626_v25 = vunpack.c.h.bf16 %v5552_v20  ;;  %v1978_v31 = vunpack.c.h.bf16 %v1857_v41  ;;  %v6628_v13 = vpop.eup %4590  ;;  %v311_v8 = vmul.f32 %v5695_v50, %v6566_v54  ;;  %v8340_v52 = vld [vmem:[#allocation27_spill] sm:$0xff] }
 0x10b   :  { %4596 = vrcp.f32 %v1661_v5  ;;  %8319 = vst [vmem:[#allocation121_spill] sm:$0xff] %v6628_v13  ;;  %v6632_v16 = vunpack.c.l.bf16 %v5552_v20  ;;  %v8320_v42 = vunpack.c.l.bf16 %v5752_v46  ;;  %v911_v9 = vunpack.c.h.bf16 %v6549_v10 }
 0x10c   :  { %4598 = vrcp.f32 %v1662_v23  ;;  %v6637_v56 = vxor.u32 2147516416, %v757_v27  ;;  %v8322_v60 = vunpack.c.h.bf16 %v5752_v46  ;;  %v312_v2 = vmul.f32 %v5697_v51, %v6566_v54 }
 0x10d   :  { %4600 = vtanh.f32 %v1974_v3  ;;  %v2372_v17 = vmul.f32 1.442695, %v8320_v42  ;;  %v313_v5 = vmul.f32 %v5691_v47, %v6566_v54  ;;  %v8323_v23 = vunpack.c.l.bf16 %v5770_v12 }
 0x10e   :  { %8321 = vst [vmem:[#allocation122_spill] sm:$0xff] %v6637_v56  ;;  %4602 = vtanh.f32 %v1975_v19  ;;  %v2374_v61 = vmul.f32 1.442695, %v8322_v60  ;;  %v907_v3 = vunpack.c.l.bf16 %v843_v53  ;;  %v8324_v27 = vunpack.c.h.bf16 %v5770_v12 }
 0x10f   :  { %v4593_v4 = vpop.eup %4592  ;;  %4604 = vtanh.f32 %v1977_v45  ;;  %v2378_v22 = vmul.f32 1.442695, %v8323_v23  ;;  %v314_v20 = vmul.f32 %v5693_v48, %v6566_v54  ;;  %v6654_v42 = vmul.f32 %v6243_v0, %v6566_v54 }
 0x110   :  { %v4595_v41 = vpop.eup %4594  ;;  %v1650_v10 = vmul.f32 %v4593_v4, %v6626_v25  ;;  %4606 = vtanh.f32 %v1978_v31  ;;  %v2380_v46 = vmul.f32 1.442695, %v8324_v27  ;;  %v1029_v23 = vmul.f32 1.442695, %v911_v9 }
 0x111   :  { %v4597_v19 = vpop.eup %4596  ;;  %8325 = vst [vmem:[#allocation123_spill] sm:$0xff] %v6654_v42  ;;  %v1652_v45 = vmul.f32 %v4595_v41, %v6632_v16  ;;  %4608 = vpow2.f32 %v2372_v17  ;;  %v908_v11 = vunpack.c.h.bf16 %v843_v53  ;;  %v6659_v12 = vadd.f32 %v5681_v38, %v309_v55 }
 0x112   :  { %v4599_v60 = vpop.eup %4598  ;;  %v1664_v4 = vmul.f32 %v4597_v19, %v6626_v25  ;;  %4610 = vpow2.f32 %v2374_v61  ;;  %v6663_v0 = vadd.f32 %v5683_v39, %v310_v49  ;;  %v6666_v54 = vadd.f32 %v5715_v62, %v311_v8  ;;  %v4381_v8 = vld [vmem:[%s8072_s3 + $0x60] sm:$0xff] }
 0x113   :  { %v4601_v31 = vpop.eup %4600  ;;  %v1653_v27 = vpack.c.bf16 %v1650_v10, %v1652_v45  ;;  %v1666_v18 = vmul.f32 %v4599_v60, %v6632_v16  ;;  %4612 = vpow2.f32 %v2378_v22  ;;  %v1021_v17 = vmul.f32 1.442695, %v907_v3  ;;  %4072 = vmatpush.bf16.msra.mxu1 %v4381_v8  ;;  %4481 = vmatpush.bf16.msrb.mxu3 %v4381_v8  ;;  %v4379_v8 = vld [vmem:[%s8072_s3 + $0x50] sm:$0xff] }
 0x114   :  { %v4603_v59 = vpop.eup %4602  ;;  %4614 = vpow2.f32 %v2380_v46  ;;  %v6669_v9 = vadd.f32 %v5719_v1, %v312_v2  ;;  %v6672_v19 = vadd.f32 %v5710_v58, %v313_v5  ;;  %v6675_v22 = vadd.f32 %v5717_v63, %v314_v20  ;;  %v6683_v2 = vld [vmem:[%s8072_s3 + $0xa0] sm:$0xff] }
 0x115   :  { %v4605_v53 = vpop.eup %4604  ;;  %v1667_v61 = vpack.c.bf16 %v1664_v4, %v1666_v18  ;;  %v2110_v55 = vpack.c.bf16 %v4603_v59, %v4601_v31  ;;  %v3092_v41 = vunpack.c.l.bf16 %v1653_v27  ;;  %v1023_v49 = vmul.f32 1.442695, %v908_v11  ;;  %4146 = vmatpush.bf16.msra.mxu2 %v6683_v2  ;;  %v8326_v11 = vld [vmem:[#allocation34_spill] sm:$0xff]  ;;  %v8327_v4 = vld [vmem:[#allocation37_spill] sm:$0xff] }
 0x116   :  { %v4607_v10 = vpop.eup %4606  ;;  %v3093_v45 = vunpack.c.h.bf16 %v1653_v27  ;;  %4616 = vpow2.f32 %v1029_v23  ;;  %v1105_v31 = vpack.c.bf16 %v8327_v4, %v8326_v11  ;;  %v4380_v23 = vld [vmem:[%s8072_s3 + $0x58] sm:$0xff] }
 0x117   :  { %v4609_v59 = vpop.eup %4608  ;;  %v2112_v18 = vpack.c.bf16 %v4607_v10, %v4605_v53  ;;  %v3095_v3 = vunpack.c.l.bf16 %v1667_v61  ;;  %v3170_v5 = vunpack.c.l.bf16 %v2110_v55  ;;  %4618 = vpow2.f32 %v1021_v17  ;;  %v6694_v17 = vld [vmem:[%s8072_s3 + $0x98] sm:$0xff]  ;;  %4073 = vmatpush.bf16.msra.mxu1 %v4380_v23  ;;  %4482 = vmatpush.bf16.msrb.mxu3 %v4380_v23 }
 0x118   :  { %v4611_v46 = vpop.eup %4610  ;;  %v3096_v20 = vunpack.c.h.bf16 %v1667_v61  ;;  %v3171_v60 = vunpack.c.h.bf16 %v2110_v55  ;;  %v752_v61 = vpack.c.bf16 %v6675_v22, %v6672_v19  ;;  %4620 = vpow2.f32 %v1023_v49  ;;  %v8328_v10 = vld [vmem:[#allocation53_spill] sm:$0xff] }
 0x119   :  { %v4613_v27 = vpop.eup %4612  ;;  %v2448_v13 = vpack.c.bf16 %v4611_v46, %v4609_v59  ;;  %v3173_v37 = vunpack.c.l.bf16 %v2112_v18  ;;  %v3174_v14 = vunpack.c.h.bf16 %v2112_v18  ;;  %v3248_v42 = vmul.f32 %v3170_v5, %v3092_v41  ;;  %v8329_v59 = vld [vmem:[#allocation54_spill] sm:$0xff]  ;;  %4147 = vmatpush.bf16.msra.mxu2 %v6694_v17 }
 0x11a   :  { %v4615_v53 = vpop.eup %4614  ;;  %v3249_v55 = vmul.f32 %v3171_v60, %v3093_v45  ;;  %v1107_v18 = vpack.c.bf16 %v8329_v59, %v8328_v10  ;;  %v1157_v57 = vunpack.c.l.bf16 %v1105_v31  ;;  %v1158_v43 = vunpack.c.h.bf16 %v1105_v31 }
 0x11b   :  { %v2450_v41 = vpack.c.bf16 %v4615_v53, %v4613_v27  ;;  %v2520_v5 = vunpack.c.l.bf16 %v2448_v13  ;;  %v2521_v46 = vunpack.c.h.bf16 %v2448_v13  ;;  %v3251_v11 = vmul.f32 %v3173_v37, %v3095_v3  ;;  %v6709_v37 = vld [vmem:[%s8072_s3 + $0x90] sm:$0xff]  ;;  %4074 = vmatpush.bf16.msra.mxu1 %v4379_v8  ;;  %4483 = vmatpush.bf16.msrb.mxu3 %v4379_v8 }
 0x11c   :  { %v3252_v4 = vmul.f32 %v3174_v14, %v3096_v20  ;;  %v3306_v15 = vpack.c.bf16 %v3249_v55, %v3248_v42  ;;  %v6703_v30 = vpop.eup %4616  ;;  %v1160_v20 = vunpack.c.l.bf16 %v1107_v18  ;;  %v1161_v53 = vunpack.c.h.bf16 %v1107_v18 }
 0x11d   :  { %8330 = vst [vmem:[#allocation34_spill] sm:$0xff] %v6703_v30  ;;  %v2523_v19 = vunpack.c.l.bf16 %v2450_v41  ;;  %v2524_v22 = vunpack.c.h.bf16 %v2450_v41  ;;  %v2598_v49 = vadd.f32 1.0, %v2520_v5  ;;  %v2599_v45 = vadd.f32 1.0, %v2521_v46  ;;  %v6711_v14 = vpop.eup %4618  ;;  %v6715_v30 = vpop.permute.xlu1 %131  ;;  %4148 = vmatpush.bf16.msra.mxu2 %v6709_v37 }
 0x11e   :  { %8331 = vst [vmem:[#allocation37_spill] sm:$0xff] %v6711_v14  ;;  %v3308_v13 = vpack.c.bf16 %v3252_v4, %v3251_v11  ;;  %v3378_v42 = vunpack.c.l.bf16 %v3306_v15  ;;  %v3379_v3 = vunpack.c.h.bf16 %v3306_v15  ;;  %v6713_v55 = vpop.eup %4620  ;;  %v1235_v59 = vadd.f32 1.0, %v1157_v57  ;;  %v4378_v57 = vld [vmem:[%s8072_s3 + $0x48] sm:$0xff] }
 0x11f   :  { %v2601_v60 = vadd.f32 1.0, %v2523_v19  ;;  %v2602_v31 = vadd.f32 1.0, %v2524_v22  ;;  %v2656_v27 = vpack.c.bf16 %v2599_v45, %v2598_v49  ;;  %8332 = vst [vmem:[#allocation53_spill] sm:$0xff] %v6713_v55  ;;  %v1236_v41 = vadd.f32 1.0, %v1158_v43  ;;  %v6732_v43 = vld [vmem:[%s8072_s3 + $0x88] sm:$0xff]  ;;  %4075 = vmatpush.bf16.msra.mxu1 %v4378_v57  ;;  %4484 = vmatpush.bf16.msrb.mxu3 %v4378_v57 }
 0x120   :  { %v3381_v10 = vunpack.c.l.bf16 %v3308_v13  ;;  %4622 = vtanh.f32 %v3378_v42  ;;  %v6720_v15 = vpack.c.bf16 %v6663_v0, %v6659_v12  ;;  %v751_v18 = vpack.c.bf16 %v6669_v9, %v6666_v54 }
 0x121   :  { %v2658_v5 = vpack.c.bf16 %v2602_v31, %v2601_v60  ;;  %v2948_v46 = vunpack.c.h.bf16 %v2656_v27  ;;  %v2949_v23 = vunpack.c.l.bf16 %v2656_v27  ;;  %4624 = vtanh.f32 %v3379_v3  ;;  %4149 = vmatpush.bf16.msra.mxu2 %v6732_v43  ;;  %v6746_v3 = vpop.permute.xlu0 %126  ;;  %v4377_v60 = vld [vmem:[%s8072_s3 + $0x40] sm:$0xff] }
 0x122   :  { %8333 = vst [vmem:[#allocation54_spill] sm:$0xff] %v6720_v15  ;;  %v6724_v11 = vxor.u32 2147516416, %v752_v61  ;;  %4626 = vtanh.f32 %v3381_v10  ;;  %v3382_v12 = vunpack.c.h.bf16 %v3308_v13  ;;  %v343_v54 = vmul.f32 %v5664_v28, %v6715_v30 }
 0x123   :  { %4628 = vrcp.f32 %v2948_v46  ;;  %v2962_v4 = vunpack.c.h.bf16 %v2658_v5  ;;  %v2963_v8 = vunpack.c.l.bf16 %v2658_v5  ;;  %v344_v9 = vmul.f32 %v5666_v29, %v6715_v30  ;;  %4076 = vmatpush.bf16.msra.mxu1 %v4377_v60  ;;  %4485 = vmatpush.bf16.msrb.mxu3 %v4377_v60 }
 0x124   :  { %8334 = vst [vmem:[#allocation124_spill] sm:$0xff] %v6724_v11  ;;  %4630 = vrcp.f32 %v2949_v23  ;;  %v1238_v61 = vadd.f32 1.0, %v1160_v20  ;;  %v1239_v19 = vadd.f32 1.0, %v1161_v53  ;;  %v6740_v22 = vpack.c.bf16 %v1236_v41, %v1235_v59  ;;  %v6754_v20 = vld [vmem:[%s8072_s3 + $0x80] sm:$0xff] }
 0x125   :  { %4632 = vrcp.f32 %v2962_v4  ;;  %v6744_v42 = vrot.slane %v751_v18, 4  ;;  %8336 = vst [vmem:[#allocation126_spill] sm:$0xff] %v6754_v20  ;;  %v345_v10 = vmul.f32 %v5671_v32, %v6715_v30  ;;  %v346_v5 = vmul.f32 %v5673_v33, %v6715_v30  ;;  %4150 = vmatpush.bf16.msra.mxu2 %v6754_v20 }
 0x126   :  { %v4623_v49 = vpop.eup %4622  ;;  %4634 = vrcp.f32 %v2963_v8  ;;  %v599_v46 = vadd.f32 %v5675_v34, %v343_v54  ;;  %v600_v23 = vadd.f32 %v5677_v35, %v344_v9  ;;  %v334_v57 = vmul.f32 %v5664_v28, %v6746_v3 }
 0x127   :  { %8335 = vst [vmem:[#allocation125_spill] sm:$0xff] %v6744_v42  ;;  %v4625_v31 = vpop.eup %4624  ;;  %4636 = vtanh.f32 %v3382_v12  ;;  %v335_v4 = vmul.f32 %v5666_v29, %v6746_v3  ;;  %v6771_v8 = vpack.c.bf16 %v1239_v19, %v1238_v61  ;;  %v1367_v12 = vunpack.c.h.bf16 %v6740_v22 }
 0x128   :  { %v4627_v59 = vpop.eup %4626  ;;  %v6760_v41 = vpack.c.bf16 %v4625_v31, %v4623_v49  ;;  %v347_v54 = vmul.f32 %v5695_v50, %v6715_v30  ;;  %v348_v9 = vmul.f32 %v5697_v51, %v6715_v30  ;;  %v349_v61 = vmul.f32 %v5691_v47, %v6715_v30 }
 0x129   :  { %v4629_v18 = vpop.eup %4628  ;;  %v350_v19 = vmul.f32 %v5693_v48, %v6715_v30  ;;  %v602_v11 = vadd.f32 %v5683_v39, %v346_v5  ;;  %v769_v45 = vpack.c.bf16 %v600_v23, %v599_v46  ;;  %v590_v14 = vadd.f32 %v5675_v34, %v334_v57  ;;  %v8341_v5 = vld [vmem:[#allocation21_spill] sm:$0xff] }
 0x12a   :  { %8337 = vst [vmem:[#allocation127_spill] sm:$0xff] %v6760_v41  ;;  %v4631_v49 = vpop.eup %4630  ;;  %v2951_v31 = vmul.f32 %v4629_v18, %v6626_v25  ;;  %v601_v18 = vadd.f32 %v5681_v38, %v345_v10  ;;  %v3664_v56 = vunpack.c.l.bf16 %v6760_v41  ;;  %v591_v15 = vadd.f32 %v5677_v35, %v335_v4 }
 0x12b   :  { %v4633_v0 = vpop.eup %4632  ;;  %v2953_v53 = vmul.f32 %v4631_v49, %v6632_v16  ;;  %v6797_v10 = vadd.f32 %v5715_v62, %v347_v54  ;;  %v8342_v46 = vrot.slane %v8341_v5, 4  ;;  %4638 = vrcp.f32 %v1367_v12 }
 0x12c   :  { %v4635_v27 = vpop.eup %4634  ;;  %v2965_v13 = vmul.f32 %v4633_v0, %v6626_v25  ;;  %v6800_v0 = vadd.f32 %v5719_v1, %v348_v9  ;;  %v606_v54 = vadd.f32 %v5717_v63, %v350_v19  ;;  %v6823_v9 = vpop.permute.xlu1 %146  ;;  %v764_v26 = vpack.c.bf16 %v591_v15, %v590_v14 }
 0x12d   :  { %v4637_v60 = vpop.eup %4636  ;;  %v6789_v55 = vpack.c.bf16 %v2951_v31, %v2953_v53  ;;  %v2967_v49 = vmul.f32 %v4635_v27, %v6632_v16  ;;  %v6806_v53 = vsel %vm1835_vm0, %v8342_v46, %v8340_v52  ;;  %v605_v31 = vadd.f32 %v5710_v58, %v349_v61 }
 0x12e   :  { %v6794_v42 = vpack.c.bf16 %v4637_v60, %v4627_v59  ;;  %v6814_v59 = vld [vmem:[%s8070_s1 + $0x8] ss:$0 sm:$0xff]  ;;  %v6826_v46 = vpack.c.bf16 %v602_v11, %v601_v18  ;;  %v336_v12 = vmul.f32 %v5671_v32, %v6746_v3  ;;  %v340_v61 = vmul.f32 %v5691_v47, %v6746_v3 }
 0x12f   :  { %8338 = vst [vmem:[#allocation128_spill] sm:$0xff] %v6789_v55  ;;  %v6808_v23 = vpack.c.bf16 %v2965_v13, %v2967_v49  ;;  %v3586_v27 = vunpack.c.l.bf16 %v6789_v55  ;;  %v6818_v57 = vmul.f32 %v6814_v59, %v6715_v30  ;;  %v851_v13 = vxor.u32 2147516416, %v769_v45 }
 0x130   :  { %8339 = vst [vmem:[#allocation129_spill] sm:$0xff] %v6794_v42  ;;  %v3667_v4 = vunpack.c.l.bf16 %v6794_v42  ;;  %v771_v30 = vpack.c.bf16 %v6800_v0, %v6797_v10  ;;  %v341_v45 = vmul.f32 %v5693_v48, %v6746_v3  ;;  %v371_v14 = vmul.f32 %v5666_v29, %v6823_v9 }
 0x131   :  { %8343 = vst [vmem:[#allocation130_spill] sm:$0xff] %v6808_v23  ;;  %v3589_v60 = vunpack.c.l.bf16 %v6808_v23  ;;  %v3742_v49 = vmul.f32 %v3664_v56, %v3586_v27  ;;  %v370_v56 = vmul.f32 %v5664_v28, %v6823_v9  ;;  %v772_v15 = vpack.c.bf16 %v606_v54, %v605_v31  ;;  %v6846_v0 = vpop.eup %4638 }
 0x132   :  { %8344 = vst [vmem:[#allocation131_spill] sm:$0xff] %v6818_v57  ;;  %v337_v57 = vmul.f32 %v5673_v33, %v6746_v3  ;;  %v919_v11 = vunpack.c.l.bf16 %v851_v13  ;;  %v338_v18 = vmul.f32 %v5695_v50, %v6746_v3  ;;  %v339_v10 = vmul.f32 %v5697_v51, %v6746_v3 }
 0x133   :  { %8345 = vst [vmem:[#allocation132_spill] sm:$0xff] %v6826_v46  ;;  %v3745_v19 = vmul.f32 %v3667_v4, %v3589_v60  ;;  %v849_v4 = vxor.u32 2147516416, %v764_v26  ;;  %v376_v60 = vmul.f32 %v5691_v47, %v6823_v9  ;;  %v377_v44 = vmul.f32 %v5693_v48, %v6823_v9 }
 0x134   :  { %v920_v40 = vunpack.c.h.bf16 %v851_v13  ;;  %v592_v31 = vadd.f32 %v5681_v38, %v336_v12  ;;  %v596_v54 = vadd.f32 %v5710_v58, %v340_v61  ;;  %v597_v6 = vadd.f32 %v5717_v63, %v341_v45 }
 0x135   :  { %v3790_v27 = vpack.c.bf16 %v3745_v19, %v3742_v49  ;;  %v593_v42 = vadd.f32 %v5683_v39, %v337_v57  ;;  %v372_v49 = vmul.f32 %v5671_v32, %v6823_v9  ;;  %v626_v26 = vadd.f32 %v5675_v34, %v370_v56  ;;  %v5545_v57 = vld [vmem:[%s8072_s3 + $0xb8] sm:$0xff] }
 0x136   :  { %v627_v19 = vadd.f32 %v5677_v35, %v371_v14  ;;  %v594_v41 = vadd.f32 %v5715_v62, %v338_v18  ;;  %v373_v13 = vmul.f32 %v5673_v33, %v6823_v9  ;;  %v374_v12 = vmul.f32 %v5695_v50, %v6823_v9 }
 0x137   :  { %4053 = vmatmul.bf16.vlgmr.msra.gmra.mxu3 %v3790_v27  ;;  %v375_v61 = vmul.f32 %v5697_v51, %v6823_v9  ;;  %v595_v45 = vadd.f32 %v5719_v1, %v339_v10  ;;  %v916_v56 = vunpack.c.l.bf16 %v849_v4  ;;  %v632_v14 = vadd.f32 %v5710_v58, %v376_v60 }
 0x138   :  { %4486 = vmatpush.bf16.msra.mxu3 %v5545_v57  ;;  %v633_v18 = vadd.f32 %v5717_v63, %v377_v44  ;;  %v6873_v27 = vxor.u32 2147516416, %v772_v15  ;;  %v767_v23 = vpack.c.bf16 %v597_v6, %v596_v54  ;;  %v917_v55 = vunpack.c.h.bf16 %v849_v4  ;;  %v5546_v44 = vld [vmem:[%s8072_s3 + $0xb0] sm:$0xff] }
 0x139   :  { %v784_v7 = vpack.c.bf16 %v627_v19, %v626_v26  ;;  %v1045_v21 = vmul.f32 1.442695, %v919_v11  ;;  %v1047_v24 = vmul.f32 1.442695, %v920_v40  ;;  %v628_v36 = vadd.f32 %v5681_v38, %v372_v49 }
 0x13a   :  { %8346 = vst [vmem:[#allocation133_spill] sm:$0xff] %v6873_v27  ;;  %v787_v20 = vpack.c.bf16 %v633_v18, %v632_v14  ;;  %v629_v52 = vadd.f32 %v5683_v39, %v373_v13  ;;  %v630_v57 = vadd.f32 %v5715_v62, %v374_v12  ;;  %v631_v10 = vadd.f32 %v5719_v1, %v375_v61  ;;  %v142_v13 = vpop.permute.xlu0 %141 }
 0x13b   :  { %v857_v5 = vxor.u32 2147516416, %v784_v7  ;;  %v6883_v15 = vpack.c.bf16 %v593_v42, %v592_v31  ;;  %v766_v40 = vpack.c.bf16 %v595_v45, %v594_v41  ;;  %v1039_v11 = vmul.f32 1.442695, %v916_v56 }
 0x13c   :  { %4487 = vmatpush.bf16.msra.mxu3 %v5546_v44  ;;  %v6885_v4 = vrot.slane %v771_v30, 4  ;;  %v1041_v54 = vmul.f32 1.442695, %v917_v55  ;;  %v6888_v49 = vxor.u32 2147516416, %v767_v23  ;;  %4640 = vpow2.f32 %v1045_v21  ;;  %v8348_v30 = vld [vmem:[#allocation86_spill] sm:$0xff] }
 0x13d   :  { %v6893_v26 = vmul.f32 %v6814_v59, %v6746_v3  ;;  %v2160_v19 = vxor.u32 2147516416, %v787_v20  ;;  %4642 = vpow2.f32 %v1047_v24  ;;  %v785_v42 = vpack.c.bf16 %v629_v52, %v628_v36 }
 0x13e   :  { %8347 = vst [vmem:[#allocation134_spill] sm:$0xff] %v6885_v4  ;;  %v786_v31 = vpack.c.bf16 %v631_v10, %v630_v57  ;;  %v928_v41 = vunpack.c.l.bf16 %v857_v5  ;;  %4644 = vpow2.f32 %v1039_v11  ;;  %v6897_v23 = vrot.slane %v766_v40, 4 }
 0x13f   :  { %v929_v21 = vunpack.c.h.bf16 %v857_v5  ;;  %4646 = vpow2.f32 %v1041_v54  ;;  %v378_v24 = vmul.f32 %v6814_v59, %v6823_v9  ;;  %v2231_v36 = vunpack.c.l.bf16 %v2160_v19 }
 0x140   :  { %4488 = vmatpush.bf16.msra.mxu3 %v8348_v30  ;;  %v361_v52 = vmul.f32 %v5664_v28, %v142_v13  ;;  %v362_v20 = vmul.f32 %v5666_v29, %v142_v13  ;;  %v363_v61 = vmul.f32 %v5671_v32, %v142_v13  ;;  %v858_v45 = vxor.u32 2147516416, %v785_v42 }
 0x141   :  { %v1063_v56 = vmul.f32 1.442695, %v928_v41  ;;  %v1821_v14 = vrot.slane %v785_v42, 4  ;;  %v6906_v18 = vrot.slane %v786_v31, 4  ;;  %v1065_v57 = vmul.f32 1.442695, %v929_v21 }
 0x142   :  { %v6909_v5 = vpop.eup %4640  ;;  %v2232_v10 = vunpack.c.h.bf16 %v2160_v19  ;;  %v364_v9 = vmul.f32 %v5673_v33, %v142_v13  ;;  %v365_v44 = vmul.f32 %v5695_v50, %v142_v13  ;;  %v366_v29 = vmul.f32 %v5697_v51, %v142_v13 }
 0x143   :  { %8349 = vst [vmem:[#allocation86_spill] sm:$0xff] %v6906_v18  ;;  %v6913_v28 = vpop.eup %4642  ;;  %v367_v32 = vmul.f32 %v5691_v47, %v142_v13  ;;  %v368_v40 = vmul.f32 %v5693_v48, %v142_v13  ;;  %v8352_v11 = vunpack.c.l.bf16 %v6740_v22  ;;  %v2366_v54 = vmul.f32 1.442695, %v2231_v36  ;;  %v6930_v47 = vld [vmem:[%s8071_s2 + $0x8] ss:$0 sm:$0xff] }
 0x144   :  { %4489 = vmatpush.bf16.msra.mxu3 %v6683_v2  ;;  %8350 = vst [vmem:[#allocation135_spill] sm:$0xff] %v6909_v5  ;;  %v6920_v2 = vpop.eup %4644  ;;  %v369_v19 = vmul.f32 %v6814_v59, %v142_v13  ;;  %v617_v33 = vadd.f32 %v5675_v34, %v361_v52  ;;  %v618_v50 = vadd.f32 %v5677_v35, %v362_v20  ;;  %v1381_v22 = vunpack.c.h.bf16 %v6771_v8 }
 0x145   :  { %8351 = vst [vmem:[#allocation136_spill] sm:$0xff] %v6913_v28  ;;  %4648 = vrcp.f32 %v8352_v11  ;;  %v6925_v42 = vpop.eup %4646  ;;  %v6933_v48 = vadd.f32 %v6930_v47, %v378_v24  ;;  %v6937_v51 = vsel %vm1835_vm0, %v1821_v14, %v6906_v18  ;;  %v2368_v34 = vmul.f32 1.442695, %v2232_v10  ;;  %v8357_v24 = vld [vmem:[#allocation45_spill] sm:$0xff] }
 0x146   :  { %4650 = vpow2.f32 %v1063_v56  ;;  %8354 = vst [vmem:[#allocation138_spill] sm:$0xff] %v6937_v51  ;;  %v619_v35 = vadd.f32 %v5681_v38, %v363_v61  ;;  %v620_v59 = vadd.f32 %v5683_v39, %v364_v9  ;;  %v6944_v31 = vadd.f32 %v5715_v62, %v365_v44 }
 0x147   :  { %8353 = vst [vmem:[#allocation137_spill] sm:$0xff] %v6933_v48  ;;  %4652 = vpow2.f32 %v1065_v57  ;;  %v6947_v41 = vadd.f32 %v5719_v1, %v366_v29  ;;  %v6950_v13 = vadd.f32 %v5710_v58, %v367_v32  ;;  %v6953_v30 = vadd.f32 %v5717_v63, %v368_v40  ;;  %v8358_v58 = vld [vmem:[#allocation43_spill] sm:$0xff]  ;;  %v8360_v40 = vld [vmem:[#allocation25_spill] sm:$0xff] }
 0x148   :  { %4490 = vmatpush.bf16.msra.mxu3 %v6694_v17  ;;  %v6955_v21 = vunpack.c.l.bf16 %v858_v45  ;;  %4654 = vpow2.f32 %v2366_v54  ;;  %v6958_v17 = vadd.f32 %v6930_v47, %v369_v19  ;;  %v779_v38 = vpack.c.bf16 %v618_v50, %v617_v33  ;;  %v8362_v19 = vld [vmem:[#allocation23_spill] sm:$0xff] }
 0x149   :  { %v1370_v1 = vmul.f32 %v6846_v0, %v6626_v25  ;;  %4656 = vrcp.f32 %v1381_v22  ;;  %v8359_v36 = vrot.slane %v8358_v58, 4  ;;  %v1382_v61 = vunpack.c.l.bf16 %v6771_v8  ;;  %v8364_v22 = vld [vmem:[#allocation40_spill] sm:$0xff] }
 0x14a   :  { %8355 = vst [vmem:[#allocation139_spill] sm:$0xff] %v6955_v21  ;;  %4658 = vpow2.f32 %v2368_v34  ;;  %v6973_v56 = vpack.c.bf16 %v620_v59, %v619_v35  ;;  %v1914_v57 = vunpack.c.l.bf16 %v6806_v53  ;;  %v6984_v9 = vxor.u32 2147516416, %v779_v38  ;;  %v8365_v35 = vld [vmem:[#allocation21_spill] sm:$0xff] }
 0x14b   :  { %8356 = vst [vmem:[#allocation140_spill] sm:$0xff] %v6958_v17  ;;  %v4649_v39 = vpop.eup %4648  ;;  %v1837_v63 = vsel %vm1835_vm0, %v8359_v36, %v8357_v24  ;;  %v1915_v8 = vunpack.c.h.bf16 %v6806_v53  ;;  %v8361_v11 = vunpack.c.l.bf16 %v8360_v40  ;;  %v463_v33 = vadd.f32 %v6930_v47, %v8362_v19  ;;  %v8367_v36 = vld [vmem:[#allocation44_spill] sm:$0xff] }
 0x14c   :  { %4491 = vmatpush.bf16.msra.mxu3 %v6709_v37  ;;  %v1372_v20 = vmul.f32 %v4649_v39, %v6632_v16  ;;  %v6971_v45 = vpop.eup %4650  ;;  %v1917_v44 = vunpack.c.l.bf16 %v1837_v63  ;;  %v1918_v32 = vunpack.c.h.bf16 %v1837_v63  ;;  %4660 = vrcp.f32 %v1382_v61 }
 0x14d   :  { %v6980_v37 = vpop.eup %4652  ;;  %v2252_v54 = vmul.f32 1.442695, %v8361_v11  ;;  %v472_v34 = vadd.f32 %v6930_v47, %v8364_v22  ;;  %v820_v53 = vxor.u32 2147516416, %v8365_v35  ;;  %v822_v59 = vxor.u32 2147516416, %v8358_v58  ;;  %v8371_v58 = vld [vmem:[#allocation27_spill] sm:$0xff] }
 0x14e   :  { %v6987_v29 = vpack.c.bf16 %v1370_v1, %v1372_v20  ;;  %v6994_v50 = vpop.eup %4654  ;;  %4662 = vtanh.f32 %v1914_v57  ;;  %v8366_v39 = vunpack.c.h.bf16 %v8360_v40  ;;  %v8368_v63 = vunpack.c.l.bf16 %v8367_v36  ;;  %v8372_v40 = vld [vmem:[#allocation126_spill] sm:$0xff] }
 0x14f   :  { %8363 = vst [vmem:[#allocation45_spill] sm:$0xff] %v6994_v50  ;;  %v4657_v38 = vpop.eup %4656  ;;  %v693_v11 = vpack.c.bf16 %v463_v33, %v463_v33  ;;  %4664 = vtanh.f32 %v1915_v8  ;;  %v8370_v61 = vunpack.c.h.bf16 %v8367_v36  ;;  %v698_v22 = vpack.c.bf16 %v472_v34, %v472_v34  ;;  %v8374_v34 = vld [vmem:[#allocation30_spill] sm:$0xff] }
 0x150   :  { %4492 = vmatpush.bf16.msra.mxu3 %v6732_v43  ;;  %v2254_v1 = vmul.f32 1.442695, %v8366_v39  ;;  %v2258_v20 = vmul.f32 1.442695, %v8368_v63  ;;  %v7004_v43 = vpop.eup %4658  ;;  %v873_v10 = vunpack.c.l.bf16 %v820_v53  ;;  %4666 = vtanh.f32 %v1917_v44 }
 0x151   :  { %8369 = vst [vmem:[#allocation43_spill] sm:$0xff] %v7004_v43  ;;  %v2260_v19 = vmul.f32 1.442695, %v8370_v61  ;;  %v876_v35 = vunpack.c.l.bf16 %v822_v59  ;;  %v1916_v52 = vunpack.c.l.bf16 %v8371_v58  ;;  %v1919_v57 = vunpack.c.l.bf16 %v8357_v24  ;;  %v8373_v61 = vld [vmem:[#allocation29_spill] sm:$0xff] }
 0x152   :  { %v1384_v39 = vmul.f32 %v4657_v38, %v6626_v25  ;;  %4668 = vtanh.f32 %v1918_v32  ;;  %v3032_v33 = vunpack.c.l.bf16 %v6987_v29  ;;  %v2123_v63 = vxor.u32 2147516416, %v693_v11  ;;  %v4661_v44 = vpop.eup %4660  ;;  %v8376_v11 = vld [vmem:[#allocation49_spill] sm:$0xff] }
 0x153   :  { %4670 = vpow2.f32 %v2252_v54  ;;  %v953_v8 = vmul.f32 1.442695, %v873_v10  ;;  %v2125_v36 = vxor.u32 2147516416, %v698_v22  ;;  %v1109_v53 = vpack.c.bf16 %v8374_v34, %v8373_v61  ;;  %v8375_v10 = vld [vmem:[#allocation47_spill] sm:$0xff] }
 0x154   :  { %4493 = vmatpush.bf16.msra.mxu3 %v8372_v40  ;;  %4672 = vpow2.f32 %v2254_v1  ;;  %v3033_v59 = vunpack.c.h.bf16 %v6987_v29  ;;  %v959_v58 = vmul.f32 1.442695, %v876_v35  ;;  %v2176_v24 = vunpack.c.l.bf16 %v2123_v63  ;;  %v4663_v62 = vpop.eup %4662 }
 0x155   :  { %v1386_v40 = vmul.f32 %v4661_v44, %v6632_v16  ;;  %4674 = vpow2.f32 %v2258_v20  ;;  %v2179_v32 = vunpack.c.l.bf16 %v2125_v36  ;;  %v1163_v38 = vunpack.c.l.bf16 %v1109_v53  ;;  %v4665_v7 = vpop.eup %4664 }
 0x156   :  { %4676 = vpow2.f32 %v2260_v19  ;;  %v2256_v54 = vmul.f32 1.442695, %v2176_v24  ;;  %v1111_v22 = vpack.c.bf16 %v8376_v11, %v8375_v10  ;;  %v1164_v60 = vunpack.c.h.bf16 %v1109_v53  ;;  %v4667_v61 = vpop.eup %4666 }
 0x157   :  { %v1387_v34 = vpack.c.bf16 %v1384_v39, %v1386_v40  ;;  %v2070_v1 = vpack.c.bf16 %v4665_v7, %v4663_v62  ;;  %4678 = vpow2.f32 %v953_v8  ;;  %v7019_v29 = vmul.f32 1.442695, %v2179_v32 }
 0x158   :  { %v4669_v35 = vpop.eup %4668  ;;  %4680 = vpow2.f32 %v959_v58  ;;  %v1166_v63 = vunpack.c.l.bf16 %v1111_v22  ;;  %v1167_v44 = vunpack.c.h.bf16 %v1111_v22  ;;  %v1241_v20 = vadd.f32 1.0, %v1163_v38 }
 0x159   :  { %v4671_v36 = vpop.eup %4670  ;;  %v2072_v6 = vpack.c.bf16 %v4669_v35, %v4667_v61  ;;  %v3035_v3 = vunpack.c.l.bf16 %v1387_v34  ;;  %v3036_v19 = vunpack.c.h.bf16 %v1387_v34  ;;  %v3110_v24 = vunpack.c.l.bf16 %v2070_v1 }
 0x15a   :  { %v4673_v12 = vpop.eup %4672  ;;  %v3111_v55 = vunpack.c.h.bf16 %v2070_v1  ;;  %4682 = vtanh.f32 %v1916_v52  ;;  %v1242_v53 = vadd.f32 1.0, %v1164_v60  ;;  %v1244_v10 = vadd.f32 1.0, %v1166_v63 }
 0x15b   :  { %v4675_v39 = vpop.eup %4674  ;;  %v2408_v7 = vpack.c.bf16 %v4673_v12, %v4671_v36  ;;  %v3113_v62 = vunpack.c.l.bf16 %v2072_v6  ;;  %v3114_v8 = vunpack.c.h.bf16 %v2072_v6  ;;  %v3188_v40 = vmul.f32 %v3110_v24, %v3032_v33 }
 0x15c   :  { %v4677_v32 = vpop.eup %4676  ;;  %v3189_v58 = vmul.f32 %v3111_v55, %v3033_v59  ;;  %4684 = vtanh.f32 %v1919_v57  ;;  %v1245_v11 = vadd.f32 1.0, %v1167_v44  ;;  %v7021_v38 = vpack.c.bf16 %v1242_v53, %v1241_v20 }
 0x15d   :  { %v4679_v22 = vpop.eup %4678  ;;  %v2410_v61 = vpack.c.bf16 %v4677_v32, %v4675_v39  ;;  %v2460_v34 = vunpack.c.l.bf16 %v2408_v7  ;;  %v2461_v35 = vunpack.c.h.bf16 %v2408_v7  ;;  %v3191_v14 = vmul.f32 %v3113_v62, %v3035_v3 }
 0x15e   :  { %v4681_v1 = vpop.eup %4680  ;;  %v3192_v52 = vmul.f32 %v3114_v8, %v3036_v19  ;;  %v3266_v60 = vpack.c.bf16 %v3189_v58, %v3188_v40  ;;  %v1106_v63 = vpack.c.bf16 %v4679_v22, %v4679_v22  ;;  %4686 = vpow2.f32 %v2256_v54 }
 0x15f   :  { %v2463_v12 = vunpack.c.l.bf16 %v2410_v61  ;;  %v2464_v36 = vunpack.c.h.bf16 %v2410_v61  ;;  %v2538_v6 = vadd.f32 1.0, %v2460_v34  ;;  %v2539_v33 = vadd.f32 1.0, %v2461_v35 }
 0x160   :  { %v4683_v24 = vpop.eup %4682  ;;  %v3268_v55 = vpack.c.bf16 %v3192_v52, %v3191_v14  ;;  %v3318_v57 = vunpack.c.l.bf16 %v3266_v60  ;;  %v3319_v59 = vunpack.c.h.bf16 %v3266_v60  ;;  %v1108_v44 = vpack.c.bf16 %v4681_v1, %v4681_v1 }
 0x161   :  { %v2541_v20 = vadd.f32 1.0, %v2463_v12  ;;  %v2542_v53 = vadd.f32 1.0, %v2464_v36  ;;  %v2616_v39 = vpack.c.bf16 %v2539_v33, %v2538_v6  ;;  %v1159_v32 = vunpack.c.l.bf16 %v1106_v63 }
 0x162   :  { %v4685_v7 = vpop.eup %4684  ;;  %v3321_v3 = vunpack.c.l.bf16 %v3268_v55  ;;  %v3322_v62 = vunpack.c.h.bf16 %v3268_v55  ;;  %4688 = vtanh.f32 %v3318_v57  ;;  %v1162_v19 = vunpack.c.l.bf16 %v1108_v44 }
 0x163   :  { %v2618_v8 = vpack.c.bf16 %v2542_v53, %v2541_v20  ;;  %v2668_v54 = vunpack.c.h.bf16 %v2616_v39  ;;  %v2669_v40 = vunpack.c.l.bf16 %v2616_v39  ;;  %4690 = vtanh.f32 %v3319_v59 }
 0x164   :  { %v4687_v58 = vpop.eup %4686  ;;  %4692 = vtanh.f32 %v3321_v3  ;;  %v1237_v22 = vadd.f32 1.0, %v1159_v32  ;;  %v1240_v14 = vadd.f32 1.0, %v1162_v19  ;;  %v2071_v61 = vpack.c.bf16 %v4683_v24, %v4683_v24 }
 0x165   :  { %4694 = vrcp.f32 %v2668_v54  ;;  %v2682_v34 = vunpack.c.h.bf16 %v2618_v8  ;;  %v2683_v35 = vunpack.c.l.bf16 %v2618_v8  ;;  %v2073_v1 = vpack.c.bf16 %v4685_v7, %v4685_v7  ;;  %v8377_v8 = vld [vmem:[#allocation22_spill] sm:$0xff]  ;;  %v8378_v54 = vld [vmem:[#allocation20_spill] sm:$0xff] }
 0x166   :  { %4696 = vrcp.f32 %v2669_v40  ;;  %v1314_v52 = vpack.c.bf16 %v1237_v22, %v1237_v22  ;;  %v1316_v60 = vpack.c.bf16 %v1240_v14, %v1240_v14  ;;  %v2409_v63 = vpack.c.bf16 %v4687_v58, %v4687_v58 }
 0x167   :  { %4698 = vrcp.f32 %v2682_v34  ;;  %v7023_v12 = vunpack.c.l.bf16 %v2071_v61  ;;  %v7025_v36 = vunpack.c.l.bf16 %v2073_v1  ;;  %v7027_v6 = vpack.c.bf16 %v1245_v11, %v1244_v10  ;;  %v8380_v1 = vld [vmem:[#allocation39_spill] sm:$0xff] }
 0x168   :  { %v4689_v33 = vpop.eup %4688  ;;  %4700 = vrcp.f32 %v2683_v35  ;;  %v1374_v55 = vunpack.c.h.bf16 %v1314_v52  ;;  %v1375_v57 = vunpack.c.l.bf16 %v1314_v52  ;;  %v1388_v24 = vunpack.c.h.bf16 %v1316_v60  ;;  %v8381_v52 = vld [vmem:[#allocation35_spill] sm:$0xff] }
 0x169   :  { %v4691_v59 = vpop.eup %4690  ;;  %4702 = vtanh.f32 %v3322_v62  ;;  %v1389_v44 = vunpack.c.l.bf16 %v1316_v60  ;;  %v2462_v20 = vunpack.c.l.bf16 %v2409_v63  ;;  %v1395_v53 = vunpack.c.h.bf16 %v7021_v38 }
 0x16a   :  { %v4693_v39 = vpop.eup %4692  ;;  %v3474_v32 = vpack.c.bf16 %v4691_v59, %v4689_v33  ;;  %4704 = vrcp.f32 %v1374_v55  ;;  %v1396_v7 = vunpack.c.l.bf16 %v7021_v38  ;;  %v1409_v3 = vunpack.c.h.bf16 %v7027_v6 }
 0x16b   :  { %v4695_v10 = vpop.eup %4694  ;;  %4706 = vrcp.f32 %v1375_v57  ;;  %v2540_v11 = vadd.f32 1.0, %v2462_v20  ;;  %v8379_v40 = vrot.slane %v8378_v54, 4  ;;  %v8382_v60 = vrot.slane %v8381_v52, 4 }
 0x16c   :  { %v4697_v58 = vpop.eup %4696  ;;  %v2671_v22 = vmul.f32 %v4695_v10, %v6626_v25  ;;  %v3604_v14 = vunpack.c.l.bf16 %v3474_v32  ;;  %v3605_v61 = vunpack.c.h.bf16 %v3474_v32  ;;  %4708 = vrcp.f32 %v1388_v24 }
 0x16d   :  { %v7037_v62 = vsel %vm1835_vm0, %v8379_v40, %v8377_v8  ;;  %v4699_v38 = vpop.eup %4698  ;;  %v2673_v34 = vmul.f32 %v4697_v58, %v6632_v16  ;;  %4710 = vrcp.f32 %v1389_v44  ;;  %v2617_v35 = vpack.c.bf16 %v2540_v11, %v2540_v11 }
 0x16e   :  { %v7045_v63 = vsel %vm1835_vm0, %v8382_v60, %v8380_v1  ;;  %v4701_v33 = vpop.eup %4700  ;;  %v2685_v55 = vmul.f32 %v4699_v38, %v6626_v25  ;;  %4712 = vpow2.f32 %v7019_v29  ;;  %v1920_v57 = vunpack.c.l.bf16 %v7037_v62 }
 0x16f   :  { %v1921_v24 = vunpack.c.h.bf16 %v7037_v62  ;;  %v4703_v59 = vpop.eup %4702  ;;  %v2674_v20 = vpack.c.bf16 %v2671_v22, %v2673_v34  ;;  %v2687_v44 = vmul.f32 %v4701_v33, %v6632_v16  ;;  %v2675_v32 = vunpack.c.h.bf16 %v2617_v35 }
 0x170   :  { %v2676_v10 = vunpack.c.l.bf16 %v2617_v35  ;;  %v4705_v11 = vpop.eup %4704  ;;  %v3476_v40 = vpack.c.bf16 %v4703_v59, %v4693_v39  ;;  %4714 = vrcp.f32 %v1395_v53  ;;  %v1923_v58 = vunpack.c.l.bf16 %v7045_v63 }
 0x171   :  { %v1924_v60 = vunpack.c.h.bf16 %v7045_v63  ;;  %v4707_v38 = vpop.eup %4706  ;;  %v2688_v0 = vpack.c.bf16 %v2685_v55, %v2687_v44  ;;  %v3526_v29 = vunpack.c.l.bf16 %v2674_v20  ;;  %v3527_v19 = vunpack.c.h.bf16 %v2674_v20 }
 0x172   :  { %v1377_v18 = vmul.f32 %v4705_v11, %v6626_v25  ;;  %v4709_v62 = vpop.eup %4708  ;;  %v3607_v17 = vunpack.c.l.bf16 %v3476_v40  ;;  %v3608_v22 = vunpack.c.h.bf16 %v3476_v40  ;;  %v1379_v34 = vmul.f32 %v4707_v38, %v6632_v16 }
 0x173   :  { %4716 = vrcp.f32 %v2675_v32  ;;  %v4711_v35 = vpop.eup %4710  ;;  %v3529_v33 = vunpack.c.l.bf16 %v2688_v0  ;;  %v3682_v39 = vmul.f32 %v3604_v14, %v3526_v29  ;;  %v3530_v53 = vunpack.c.h.bf16 %v2688_v0  ;;  %v8383_v32 = vld [vmem:[#allocation19_spill] sm:$0xff] }
 0x174   :  { %v3683_v59 = vmul.f32 %v3605_v61, %v3527_v19  ;;  %v4713_v21 = vpop.eup %4712  ;;  %v1380_v48 = vpack.c.bf16 %v1377_v18, %v1379_v34  ;;  %v1391_v63 = vmul.f32 %v4709_v62, %v6626_v25  ;;  %v1393_v55 = vmul.f32 %v4711_v35, %v6632_v16 }
 0x175   :  { %4718 = vrcp.f32 %v2676_v10  ;;  %v3685_v20 = vmul.f32 %v3607_v17, %v3529_v33  ;;  %v3686_v44 = vmul.f32 %v3608_v22, %v3530_v53  ;;  %v2411_v11 = vpack.c.bf16 %v4713_v21, %v4713_v21 }
 0x176   :  { %4720 = vrcp.f32 %v1396_v7  ;;  %v4715_v40 = vpop.eup %4714  ;;  %v1394_v43 = vpack.c.bf16 %v1391_v63, %v1393_v55  ;;  %v3034_v38 = vunpack.c.l.bf16 %v1380_v48  ;;  %v8384_v50 = vunpack.c.l.bf16 %v8383_v32  ;;  %v8390_v63 = vld [vmem:[#allocation17_spill] sm:$0xff]  ;;  %v8391_v55 = vld [vmem:[#allocation18_spill] sm:$0xff] }
 0x177   :  { %4722 = vrcp.f32 %v1409_v3  ;;  %v3760_v0 = vpack.c.bf16 %v3685_v20, %v3682_v39  ;;  %v3761_v19 = vpack.c.bf16 %v3686_v44, %v3683_v59  ;;  %v2465_v61 = vunpack.c.l.bf16 %v2411_v11  ;;  %v8387_v3 = vld [vmem:[#allocation36_spill] sm:$0xff] }
 0x178   :  { %v2264_v14 = vmul.f32 1.442695, %v8384_v50  ;;  %v1398_v18 = vmul.f32 %v4715_v40, %v6626_v25  ;;  %v3037_v62 = vunpack.c.l.bf16 %v1394_v43  ;;  %v3190_v10 = vmul.f32 %v7023_v12, %v3034_v38 }
 0x179   :  { %v4717_v29 = vpop.eup %4716  ;;  %v8385_v17 = vunpack.c.l.bf16 %v7027_v6  ;;  %v8386_v21 = vunpack.c.h.bf16 %v8383_v32  ;;  %4003 = vmatmul.bf16.vlgmr.msra.gmra.mxu0 %v3760_v0  ;;  %4077 = vmatmul.bf16.vlgmr.msra.gmra.mxu1 %v3761_v19  ;;  %v2543_v48 = vadd.f32 1.0, %v2465_v61  ;;  %v8388_v22 = vunpack.c.l.bf16 %v8387_v3 }
 0x17a   :  { %v2678_v50 = vmul.f32 %v4717_v29, %v6626_v25  ;;  %v3193_v43 = vmul.f32 %v7025_v36, %v3037_v62  ;;  %v3267_v33 = vpack.c.bf16 %v3190_v10, %v3190_v10  ;;  %v8389_v12 = vunpack.c.h.bf16 %v8387_v3  ;;  %v8392_v29 = vld [vmem:[#allocation88_spill] sm:$0xff] }
 0x17b   :  { %4724 = vrcp.f32 %v8385_v17  ;;  %v2266_v7 = vmul.f32 1.442695, %v8386_v21  ;;  %v2270_v34 = vmul.f32 1.442695, %v8388_v22  ;;  %v4719_v35 = vpop.eup %4718  ;;  %v2619_v53 = vpack.c.bf16 %v2543_v48, %v2543_v48 }
 0x17c   :  { %4726 = vtanh.f32 %v1920_v57  ;;  %v2272_v6 = vmul.f32 1.442695, %v8389_v12  ;;  %v4721_v39 = vpop.eup %4720  ;;  %v2680_v59 = vmul.f32 %v4719_v35, %v6632_v16  ;;  %v1149_v20 = vpack.c.bf16 %v8391_v55, %v8390_v63 }
 0x17d   :  { %4728 = vtanh.f32 %v1921_v24  ;;  %v4723_v57 = vpop.eup %4722  ;;  %v3269_v44 = vpack.c.bf16 %v3193_v43, %v3193_v43  ;;  %v3320_v11 = vunpack.c.l.bf16 %v3267_v33  ;;  %v1400_v40 = vmul.f32 %v4721_v39, %v6632_v16 }
 0x17e   :  { %4730 = vtanh.f32 %v1923_v58  ;;  %v2681_v36 = vpack.c.bf16 %v2678_v50, %v2680_v59  ;;  %v2689_v38 = vunpack.c.h.bf16 %v2619_v53  ;;  %v2690_v24 = vunpack.c.l.bf16 %v2619_v53  ;;  %v8393_v58 = vld [vmem:[#allocation90_spill] sm:$0xff] }
 0x17f   :  { %4732 = vtanh.f32 %v1924_v60  ;;  %v1412_v32 = vmul.f32 %v4723_v57, %v6626_v25  ;;  %v3323_v19 = vunpack.c.l.bf16 %v3269_v44  ;;  %v1401_v61 = vpack.c.bf16 %v1398_v18, %v1400_v40 }
 0x180   :  { %4734 = vtanh.f32 %v3320_v11  ;;  %v1151_v62 = vpack.c.bf16 %v8393_v58, %v8392_v29  ;;  %v3528_v17 = vunpack.c.l.bf16 %v2681_v36  ;;  %v1223_v48 = vunpack.c.l.bf16 %v1149_v20 }
 0x181   :  { %v4725_v0 = vpop.eup %4724  ;;  %4736 = vrcp.f32 %v2689_v38  ;;  %v3038_v60 = vunpack.c.l.bf16 %v1401_v61  ;;  %v3039_v50 = vunpack.c.h.bf16 %v1401_v61  ;;  %v1224_v22 = vunpack.c.h.bf16 %v1149_v20 }
 0x182   :  { %v4727_v10 = vpop.eup %4726  ;;  %v1414_v21 = vmul.f32 %v4725_v0, %v6632_v16  ;;  %4738 = vrcp.f32 %v2690_v24  ;;  %v1226_v12 = vunpack.c.l.bf16 %v1151_v62  ;;  %v1227_v39 = vunpack.c.h.bf16 %v1151_v62 }
 0x183   :  { %v4729_v3 = vpop.eup %4728  ;;  %4740 = vtanh.f32 %v3323_v19  ;;  %v1301_v53 = vadd.f32 1.0, %v1223_v48  ;;  %v1302_v59 = vadd.f32 1.0, %v1224_v22 }
 0x184   :  { %v4731_v35 = vpop.eup %4730  ;;  %v1415_v43 = vpack.c.bf16 %v1412_v32, %v1414_v21  ;;  %v2074_v33 = vpack.c.bf16 %v4729_v3, %v4727_v10  ;;  %4742 = vpow2.f32 %v2264_v14  ;;  %v1304_v36 = vadd.f32 1.0, %v1226_v12 }
 0x185   :  { %v4733_v18 = vpop.eup %4732  ;;  %4744 = vpow2.f32 %v2266_v7  ;;  %v1305_v29 = vadd.f32 1.0, %v1227_v39  ;;  %v1357_v22 = vpack.c.bf16 %v1302_v59, %v1301_v53 }
 0x186   :  { %v2076_v63 = vpack.c.bf16 %v4733_v18, %v4731_v35  ;;  %v3041_v55 = vunpack.c.l.bf16 %v1415_v43  ;;  %v3042_v57 = vunpack.c.h.bf16 %v1415_v43  ;;  %v4735_v44 = vpop.eup %4734  ;;  %4746 = vpow2.f32 %v2270_v34  ;;  %v8394_v18 = vld [vmem:[#allocation10_spill] sm:$0xff] }
 0x187   :  { %v3116_v11 = vunpack.c.l.bf16 %v2074_v33  ;;  %v3117_v40 = vunpack.c.h.bf16 %v2074_v33  ;;  %v4737_v20 = vpop.eup %4736  ;;  %v3475_v38 = vpack.c.bf16 %v4735_v44, %v4735_v44  ;;  %4748 = vpow2.f32 %v2272_v6 }
 0x188   :  { %v3119_v24 = vunpack.c.l.bf16 %v2076_v63  ;;  %v3120_v32 = vunpack.c.h.bf16 %v2076_v63  ;;  %v4739_v0 = vpop.eup %4738  ;;  %v2692_v14 = vmul.f32 %v4737_v20, %v6626_v25  ;;  %v7082_v35 = vpack.c.bf16 %v1305_v29, %v1304_v36 }
 0x189   :  { %v3194_v19 = vmul.f32 %v3116_v11, %v3038_v60  ;;  %v3195_v61 = vmul.f32 %v3117_v40, %v3039_v50  ;;  %v4741_v58 = vpop.eup %4740  ;;  %v2694_v7 = vmul.f32 %v4739_v0, %v6632_v16  ;;  %v3606_v62 = vunpack.c.l.bf16 %v3475_v38  ;;  %v8395_v60 = vld [vmem:[#allocation8_spill] sm:$0xff] }
 0x18a   :  { %v3197_v10 = vmul.f32 %v3119_v24, %v3041_v55  ;;  %v3198_v34 = vmul.f32 %v3120_v32, %v3042_v57  ;;  %v4743_v21 = vpop.eup %4742  ;;  %v3477_v48 = vpack.c.bf16 %v4741_v58, %v4741_v58  ;;  %v8396_v50 = vrot.slane %v8395_v60, 4 }
 0x18b   :  { %v3270_v3 = vpack.c.bf16 %v3195_v61, %v3194_v19  ;;  %v4745_v6 = vpop.eup %4744  ;;  %v2695_v43 = vpack.c.bf16 %v2692_v14, %v2694_v7  ;;  %v3684_v33 = vmul.f32 %v3606_v62, %v3528_v17  ;;  %v1675_v36 = vunpack.c.h.bf16 %v1357_v22 }
 0x18c   :  { %v3272_v12 = vpack.c.bf16 %v3198_v34, %v3197_v10  ;;  %v7088_v39 = vsel %vm1835_vm0, %v8396_v50, %v8394_v18  ;;  %v4747_v63 = vpop.eup %4746  ;;  %v3609_v44 = vunpack.c.l.bf16 %v3477_v48  ;;  %v2412_v55 = vpack.c.bf16 %v4745_v6, %v4743_v21  ;;  %v8397_v10 = vld [vmem:[#allocation83_spill] sm:$0xff] }
 0x18d   :  { %v3324_v57 = vunpack.c.l.bf16 %v3270_v3  ;;  %v3325_v11 = vunpack.c.h.bf16 %v3270_v3  ;;  %v4749_v40 = vpop.eup %4748  ;;  %v3531_v20 = vunpack.c.l.bf16 %v2695_v43  ;;  %v1676_v0 = vunpack.c.l.bf16 %v1357_v22  ;;  %v8398_v34 = vld [vmem:[#allocation79_spill] sm:$0xff] }
 0x18e   :  { %v3327_v53 = vunpack.c.l.bf16 %v3272_v12  ;;  %v3328_v59 = vunpack.c.h.bf16 %v3272_v12  ;;  %v2414_v38 = vpack.c.bf16 %v4749_v40, %v4747_v63  ;;  %v2466_v24 = vunpack.c.l.bf16 %v2412_v55 }
 0x18f   :  { %v2467_v17 = vunpack.c.h.bf16 %v2412_v55  ;;  %4750 = vtanh.f32 %v3324_v57  ;;  %v3687_v32 = vmul.f32 %v3609_v44, %v3531_v20  ;;  %v1689_v14 = vunpack.c.h.bf16 %v7082_v35 }
 0x190   :  { %4752 = vtanh.f32 %v3325_v11  ;;  %v2469_v19 = vunpack.c.l.bf16 %v2414_v38  ;;  %v2470_v61 = vunpack.c.h.bf16 %v2414_v38  ;;  %v2544_v29 = vadd.f32 1.0, %v2466_v24  ;;  %v8400_v11 = vld [vmem:[#allocation9_spill] sm:$0xff] }
 0x191   :  { %v2545_v58 = vadd.f32 1.0, %v2467_v17  ;;  %v3762_v7 = vpack.c.bf16 %v3687_v32, %v3684_v33  ;;  %4754 = vtanh.f32 %v3327_v53  ;;  %v1690_v62 = vunpack.c.l.bf16 %v7082_v35  ;;  %v8403_v17 = vld [vmem:[#allocation80_spill] sm:$0xff] }
 0x192   :  { %v8399_v21 = vrot.slane %v8398_v34, 4  ;;  %v2547_v3 = vadd.f32 1.0, %v2469_v19  ;;  %v2548_v6 = vadd.f32 1.0, %v2470_v61  ;;  %4756 = vtanh.f32 %v3328_v59  ;;  %v8406_v61 = vld [vmem:[#allocation16_spill] sm:$0xff] }
 0x193   :  { %v2620_v43 = vpack.c.bf16 %v2545_v58, %v2544_v29  ;;  %4151 = vmatmul.bf16.vlgmr.msra.gmra.mxu2 %v3762_v7  ;;  %4758 = vrcp.f32 %v1675_v36  ;;  %v1980_v22 = vunpack.c.l.bf16 %v7088_v39  ;;  %v1981_v12 = vunpack.c.h.bf16 %v7088_v39 }
 0x194   :  { %v1859_v48 = vsel %vm1835_vm0, %v8399_v21, %v8397_v10  ;;  %v2622_v63 = vpack.c.bf16 %v2548_v6, %v2547_v3  ;;  %4760 = vrcp.f32 %v1676_v0  ;;  %v8401_v40 = vunpack.c.l.bf16 %v8400_v11  ;;  %v8407_v21 = vld [vmem:[#allocation38_spill] sm:$0xff] }
 0x195   :  { %v1983_v50 = vunpack.c.l.bf16 %v1859_v48  ;;  %v4751_v33 = vpop.eup %4750  ;;  %v2696_v44 = vunpack.c.h.bf16 %v2620_v43  ;;  %v2697_v35 = vunpack.c.l.bf16 %v2620_v43  ;;  %4762 = vrcp.f32 %v1689_v14 }
 0x196   :  { %v4753_v55 = vpop.eup %4752  ;;  %v1984_v57 = vunpack.c.h.bf16 %v1859_v48  ;;  %v2384_v20 = vmul.f32 1.442695, %v8401_v40  ;;  %v8402_v53 = vunpack.c.h.bf16 %v8400_v11  ;;  %v2710_v36 = vunpack.c.h.bf16 %v2622_v63 }
 0x197   :  { %4764 = vrcp.f32 %v2696_v44  ;;  %v2711_v38 = vunpack.c.l.bf16 %v2622_v63  ;;  %v7102_v24 = vpack.c.bf16 %v4753_v55, %v4751_v33  ;;  %v4755_v39 = vpop.eup %4754  ;;  %v8404_v32 = vunpack.c.l.bf16 %v8403_v17 }
 0x198   :  { %v2386_v59 = vmul.f32 1.442695, %v8402_v53  ;;  %4766 = vrcp.f32 %v2697_v35  ;;  %v8405_v0 = vunpack.c.h.bf16 %v8403_v17  ;;  %v481_v29 = vadd.f32 %v6930_v47, %v8406_v61  ;;  %v4757_v58 = vpop.eup %4756 }
 0x199   :  { %v2390_v19 = vmul.f32 1.442695, %v8404_v32  ;;  %4768 = vrcp.f32 %v2710_v36  ;;  %v3610_v7 = vunpack.c.l.bf16 %v7102_v24  ;;  %v490_v48 = vadd.f32 %v6930_v47, %v8407_v21  ;;  %v4759_v6 = vpop.eup %4758 }
 0x19a   :  { %v2392_v14 = vmul.f32 1.442695, %v8405_v0  ;;  %v824_v3 = vxor.u32 2147516416, %v8378_v54  ;;  %4770 = vrcp.f32 %v2711_v38  ;;  %v7114_v43 = vpack.c.bf16 %v4757_v58, %v4755_v39  ;;  %v4761_v44 = vpop.eup %4760 }
 0x19b   :  { %v703_v33 = vpack.c.bf16 %v481_v29, %v481_v29  ;;  %v826_v63 = vxor.u32 2147516416, %v8381_v52  ;;  %v1678_v35 = vmul.f32 %v4759_v6, %v6626_v25  ;;  %4772 = vrcp.f32 %v1690_v62  ;;  %v4763_v40 = vpop.eup %4762 }
 0x19c   :  { %v708_v55 = vpack.c.bf16 %v490_v48, %v490_v48  ;;  %v879_v11 = vunpack.c.l.bf16 %v824_v3  ;;  %v3613_v53 = vunpack.c.l.bf16 %v7114_v43  ;;  %v1680_v47 = vmul.f32 %v4761_v44, %v6632_v16 }
 0x19d   :  { %4774 = vtanh.f32 %v1980_v22  ;;  %v882_v54 = vunpack.c.l.bf16 %v826_v63  ;;  %v4765_v36 = vpop.eup %4764  ;;  %v1692_v38 = vmul.f32 %v4763_v40, %v6626_v25  ;;  %v1922_v52 = vunpack.c.l.bf16 %v8377_v8 }
 0x19e   :  { %4776 = vtanh.f32 %v1981_v12  ;;  %v965_v39 = vmul.f32 1.442695, %v879_v11  ;;  %v4767_v17 = vpop.eup %4766  ;;  %v2699_v32 = vmul.f32 %v4765_v36, %v6626_v25  ;;  %v1681_v62 = vpack.c.bf16 %v1678_v35, %v1680_v47 }
 0x19f   :  { %4778 = vtanh.f32 %v1983_v50  ;;  %v971_v0 = vmul.f32 1.442695, %v882_v54  ;;  %v4769_v61 = vpop.eup %4768  ;;  %v2701_v29 = vmul.f32 %v4767_v17, %v6632_v16  ;;  %v7125_v58 = vxor.u32 2147516416, %v703_v33 }
 0x1a0   :  { %4780 = vtanh.f32 %v1984_v57  ;;  %v4771_v21 = vpop.eup %4770  ;;  %v2713_v12 = vmul.f32 %v4769_v61, %v6626_v25  ;;  %v3098_v48 = vunpack.c.l.bf16 %v1681_v62  ;;  %v3099_v8 = vunpack.c.h.bf16 %v1681_v62 }
 0x1a1   :  { %4782 = vpow2.f32 %v2384_v20  ;;  %v4773_v3 = vpop.eup %4772  ;;  %v2702_v6 = vpack.c.bf16 %v2699_v32, %v2701_v29  ;;  %v2715_v63 = vmul.f32 %v4771_v21, %v6632_v16  ;;  %v7129_v50 = vxor.u32 2147516416, %v708_v55 }
 0x1a2   :  { %4784 = vpow2.f32 %v2386_v59  ;;  %v1694_v57 = vmul.f32 %v4773_v3, %v6632_v16  ;;  %v3611_v33 = vunpack.c.h.bf16 %v7102_v24  ;;  %v2182_v35 = vunpack.c.l.bf16 %v7125_v58 }
 0x1a3   :  { %v4775_v44 = vpop.eup %4774  ;;  %4786 = vpow2.f32 %v2390_v19  ;;  %v2716_v40 = vpack.c.bf16 %v2713_v12, %v2715_v63  ;;  %v3532_v20 = vunpack.c.l.bf16 %v2702_v6  ;;  %v3533_v47 = vunpack.c.h.bf16 %v2702_v6 }
 0x1a4   :  { %v4777_v11 = vpop.eup %4776  ;;  %4788 = vpow2.f32 %v2392_v14  ;;  %v1695_v36 = vpack.c.bf16 %v1692_v38, %v1694_v57  ;;  %v3614_v6 = vunpack.c.h.bf16 %v7114_v43 }
 0x1a5   :  { %v4779_v54 = vpop.eup %4778  ;;  %v2114_v17 = vpack.c.bf16 %v4777_v11, %v4775_v44  ;;  %4790 = vpow2.f32 %v965_v39  ;;  %v3535_v32 = vunpack.c.l.bf16 %v2716_v40  ;;  %v3688_v62 = vmul.f32 %v3610_v7, %v3532_v20 }
 0x1a6   :  { %v4781_v55 = vpop.eup %4780  ;;  %v3536_v61 = vunpack.c.h.bf16 %v2716_v40  ;;  %v3689_v19 = vmul.f32 %v3611_v33, %v3533_v47  ;;  %v3101_v21 = vunpack.c.l.bf16 %v1695_v36  ;;  %v3102_v3 = vunpack.c.h.bf16 %v1695_v36 }
 0x1a7   :  { %v4783_v29 = vpop.eup %4782  ;;  %v2116_v24 = vpack.c.bf16 %v4781_v55, %v4779_v54  ;;  %v3176_v22 = vunpack.c.l.bf16 %v2114_v17  ;;  %v3691_v63 = vmul.f32 %v3613_v53, %v3535_v32  ;;  %v3177_v14 = vunpack.c.h.bf16 %v2114_v17 }
 0x1a8   :  { %v4785_v12 = vpop.eup %4784  ;;  %4792 = vpow2.f32 %v971_v0  ;;  %v3692_v33 = vmul.f32 %v3614_v6, %v3536_v61 }
 0x1a9   :  { %v4787_v38 = vpop.eup %4786  ;;  %v2452_v39 = vpack.c.bf16 %v4785_v12, %v4783_v29  ;;  %v3179_v44 = vunpack.c.l.bf16 %v2116_v24  ;;  %v3180_v57 = vunpack.c.h.bf16 %v2116_v24  ;;  %v3254_v11 = vmul.f32 %v3176_v22, %v3098_v48 }
 0x1aa   :  { %v4789_v59 = vpop.eup %4788  ;;  %v3763_v7 = vpack.c.bf16 %v3691_v63, %v3688_v62  ;;  %v3255_v40 = vmul.f32 %v3177_v14, %v3099_v8  ;;  %4794 = vtanh.f32 %v1922_v52  ;;  %v3764_v43 = vpack.c.bf16 %v3692_v33, %v3689_v19 }
 0x1ab   :  { %v4791_v20 = vpop.eup %4790  ;;  %v2454_v47 = vpack.c.bf16 %v4789_v59, %v4787_v38  ;;  %v2526_v54 = vunpack.c.l.bf16 %v2452_v39  ;;  %v2527_v36 = vunpack.c.h.bf16 %v2452_v39  ;;  %v3257_v55 = vmul.f32 %v3179_v44, %v3101_v21 }
 0x1ac   :  { %4008 = vmatmul.bf16.gmra.mxu0 %v3763_v7  ;;  %v3258_v53 = vmul.f32 %v3180_v57, %v3102_v3  ;;  %v3310_v17 = vpack.c.bf16 %v3255_v40, %v3254_v11  ;;  %v1110_v0 = vpack.c.bf16 %v4791_v20, %v4791_v20  ;;  %4082 = vmatmul.bf16.gmra.mxu1 %v3764_v43  ;;  %v2268_v20 = vmul.f32 1.442695, %v2182_v35  ;;  %v8409_v43 = vld [vmem:[#allocation72_spill] sm:$0xff]  ;;  %v8413_v35 = vld [vmem:[#allocation63_spill] sm:$0xff] }
 0x1ad   :  { %v2529_v32 = vunpack.c.l.bf16 %v2454_v47  ;;  %v2530_v29 = vunpack.c.h.bf16 %v2454_v47  ;;  %v2604_v12 = vadd.f32 1.0, %v2526_v54  ;;  %v2605_v24 = vadd.f32 1.0, %v2527_v36 }
 0x1ae   :  { %v4793_v22 = vpop.eup %4792  ;;  %v3312_v48 = vpack.c.bf16 %v3258_v53, %v3257_v55  ;;  %v3384_v62 = vunpack.c.l.bf16 %v3310_v17  ;;  %v3385_v8 = vunpack.c.h.bf16 %v3310_v17  ;;  %v1165_v52 = vunpack.c.l.bf16 %v1110_v0  ;;  %v8410_v0 = vld [vmem:[#allocation73_spill] sm:$0xff] }
 0x1af   :  { %v2607_v61 = vadd.f32 1.0, %v2529_v32  ;;  %v2608_v59 = vadd.f32 1.0, %v2530_v29  ;;  %v2660_v63 = vpack.c.bf16 %v2605_v24, %v2604_v12  ;;  %v1112_v14 = vpack.c.bf16 %v4793_v22, %v4793_v22  ;;  %v8411_v24 = vld [vmem:[#allocation65_spill] sm:$0xff]  ;;  %v8412_v22 = vld [vmem:[#allocation66_spill] sm:$0xff] }
 0x1b0   :  { %v4795_v21 = vpop.eup %4794  ;;  %v3387_v6 = vunpack.c.l.bf16 %v3312_v48  ;;  %v3388_v3 = vunpack.c.h.bf16 %v3312_v48  ;;  %4796 = vtanh.f32 %v3384_v62  ;;  %v1243_v19 = vadd.f32 1.0, %v1165_v52  ;;  %v8414_v48 = vld [vmem:[#allocation58_spill] sm:$0xff] }
 0x1b1   :  { %v2662_v38 = vpack.c.bf16 %v2608_v59, %v2607_v61  ;;  %v2976_v39 = vunpack.c.h.bf16 %v2660_v63  ;;  %v2977_v44 = vunpack.c.l.bf16 %v2660_v63  ;;  %4798 = vtanh.f32 %v3385_v8  ;;  %v8416_v59 = vld [vmem:[#allocation57_spill] sm:$0xff]  ;;  %v8417_v63 = vld [vmem:[#allocation55_spill] sm:$0xff] }
 0x1b2   :  { %4800 = vtanh.f32 %v3387_v6  ;;  %v1168_v57 = vunpack.c.l.bf16 %v1112_v14  ;;  %v1318_v11 = vpack.c.bf16 %v1243_v19, %v1243_v19  ;;  %v2075_v7 = vpack.c.bf16 %v4795_v21, %v4795_v21 }
 0x1b3   :  { %4802 = vrcp.f32 %v2976_v39  ;;  %v2990_v40 = vunpack.c.h.bf16 %v2662_v38  ;;  %v2991_v33 = vunpack.c.l.bf16 %v2662_v38  ;;  %v8408_v55 = vunpack.c.l.bf16 %v7129_v50 }
 0x1b4   :  { %4804 = vrcp.f32 %v2977_v44  ;;  %v1246_v47 = vadd.f32 1.0, %v1168_v57  ;;  %v1402_v54 = vunpack.c.h.bf16 %v1318_v11  ;;  %v1403_v36 = vunpack.c.l.bf16 %v1318_v11 }
 0x1b5   :  { %4806 = vrcp.f32 %v2990_v40  ;;  %v2274_v53 = vmul.f32 1.442695, %v8408_v55  ;;  %v7140_v17 = vunpack.c.l.bf16 %v2075_v7  ;;  %v1113_v32 = vpack.c.bf16 %v8410_v0, %v8409_v43 }
 0x1b6   :  { %v4797_v29 = vpop.eup %4796  ;;  %4808 = vrcp.f32 %v2991_v33  ;;  %v1320_v12 = vpack.c.bf16 %v1246_v47, %v1246_v47  ;;  %v1115_v58 = vpack.c.bf16 %v8412_v22, %v8411_v24  ;;  %v8415_v62 = vrot.slane %v8414_v48, 4 }
 0x1b7   :  { %v4799_v52 = vpop.eup %4798  ;;  %4810 = vtanh.f32 %v3388_v3  ;;  %v1169_v50 = vunpack.c.l.bf16 %v1113_v32  ;;  %v1170_v61 = vunpack.c.h.bf16 %v1113_v32  ;;  %v8418_v14 = vrot.slane %v8417_v63, 4 }
 0x1b8   :  { %v7150_v8 = vsel %vm1835_vm0, %v8415_v62, %v8413_v35  ;;  %v4801_v6 = vpop.eup %4800  ;;  %v7158_v19 = vpack.c.bf16 %v4799_v52, %v4797_v29  ;;  %4812 = vrcp.f32 %v1402_v54  ;;  %v1416_v38 = vunpack.c.h.bf16 %v1320_v12 }
 0x1b9   :  { %v7156_v21 = vsel %vm1835_vm0, %v8418_v14, %v8416_v59  ;;  %v1417_v39 = vunpack.c.l.bf16 %v1320_v12  ;;  %v4803_v44 = vpop.eup %4802  ;;  %4814 = vrcp.f32 %v1403_v36  ;;  %v1172_v57 = vunpack.c.l.bf16 %v1115_v58 }
 0x1ba   :  { %v1173_v11 = vunpack.c.h.bf16 %v1115_v58  ;;  %v1247_v7 = vadd.f32 1.0, %v1169_v50  ;;  %v4805_v3 = vpop.eup %4804  ;;  %v2979_v40 = vmul.f32 %v4803_v44, %v6626_v25  ;;  %v3670_v33 = vunpack.c.l.bf16 %v7158_v19 }
 0x1bb   :  { %4816 = vrcp.f32 %v1416_v38  ;;  %v1248_v47 = vadd.f32 1.0, %v1170_v61  ;;  %v4807_v55 = vpop.eup %4806  ;;  %v2981_v43 = vmul.f32 %v4805_v3, %v6632_v16  ;;  %v1250_v0 = vadd.f32 1.0, %v1172_v57 }
 0x1bc   :  { %4818 = vrcp.f32 %v1417_v39  ;;  %v1251_v54 = vadd.f32 1.0, %v1173_v11  ;;  %v4809_v32 = vpop.eup %4808  ;;  %v2993_v29 = vmul.f32 %v4807_v55, %v6626_v25  ;;  %v8419_v36 = vunpack.c.l.bf16 %v8380_v1 }
 0x1bd   :  { %v1321_v12 = vpack.c.bf16 %v1248_v47, %v1247_v7  ;;  %v1926_v24 = vunpack.c.l.bf16 %v7150_v8  ;;  %v4811_v22 = vpop.eup %4810  ;;  %v7167_v58 = vpack.c.bf16 %v2979_v40, %v2981_v43  ;;  %v2995_v62 = vmul.f32 %v4809_v32, %v6632_v16 }
 0x1be   :  { %4820 = vtanh.f32 %v8419_v36  ;;  %v1323_v52 = vpack.c.bf16 %v1251_v54, %v1250_v0  ;;  %v4813_v50 = vpop.eup %4812  ;;  %v7170_v61 = vpack.c.bf16 %v4811_v22, %v4801_v6  ;;  %v1927_v32 = vunpack.c.h.bf16 %v7150_v8 }
 0x1bf   :  { %4822 = vpow2.f32 %v2268_v20  ;;  %v1423_v14 = vunpack.c.h.bf16 %v1321_v12  ;;  %v1424_v38 = vunpack.c.l.bf16 %v1321_v12  ;;  %v4815_v39 = vpop.eup %4814  ;;  %v7172_v44 = vpack.c.bf16 %v2993_v29, %v2995_v62 }
 0x1c0   :  { %4824 = vpow2.f32 %v2274_v53  ;;  %v3592_v1 = vunpack.c.l.bf16 %v7167_v58  ;;  %v1405_v57 = vmul.f32 %v4813_v50, %v6626_v25  ;;  %v1437_v11 = vunpack.c.h.bf16 %v1323_v52 }
 0x1c1   :  { %v4817_v7 = vpop.eup %4816  ;;  %v3673_v3 = vunpack.c.l.bf16 %v7170_v61  ;;  %v1407_v20 = vmul.f32 %v4815_v39, %v6632_v16  ;;  %4826 = vrcp.f32 %v1423_v14  ;;  %v1438_v40 = vunpack.c.l.bf16 %v1323_v52 }
 0x1c2   :  { %v4819_v6 = vpop.eup %4818  ;;  %v3595_v53 = vunpack.c.l.bf16 %v7172_v44  ;;  %v3748_v47 = vmul.f32 %v3670_v33, %v3592_v1  ;;  %v1419_v55 = vmul.f32 %v4817_v7, %v6626_v25  ;;  %4828 = vrcp.f32 %v1424_v38 }
 0x1c3   :  { %v1408_v0 = vpack.c.bf16 %v1405_v57, %v1407_v20  ;;  %v1421_v54 = vmul.f32 %v4819_v6, %v6632_v16  ;;  %4830 = vrcp.f32 %v1437_v11  ;;  %v1929_v22 = vunpack.c.l.bf16 %v7156_v21  ;;  %v8420_v6 = vld [vmem:[#allocation61_spill] sm:$0xff] }
 0x1c4   :  { %v4821_v43 = vpop.eup %4820  ;;  %v3751_v36 = vmul.f32 %v3673_v3, %v3595_v53  ;;  %4832 = vrcp.f32 %v1438_v40  ;;  %v1930_v14 = vunpack.c.h.bf16 %v7156_v21  ;;  %v8421_v53 = vunpack.c.l.bf16 %v8420_v6 }
 0x1c5   :  { %v4823_v29 = vpop.eup %4822  ;;  %v2077_v12 = vpack.c.bf16 %v4821_v43, %v4821_v43  ;;  %v1422_v52 = vpack.c.bf16 %v1419_v55, %v1421_v54  ;;  %v3040_v33 = vunpack.c.l.bf16 %v1408_v0  ;;  %4834 = vtanh.f32 %v1926_v24 }
 0x1c6   :  { %v4825_v62 = vpop.eup %4824  ;;  %v2413_v50 = vpack.c.bf16 %v4823_v29, %v4823_v29  ;;  %v3793_v38 = vpack.c.bf16 %v3751_v36, %v3748_v47  ;;  %4836 = vtanh.f32 %v1927_v32  ;;  %v2276_v55 = vmul.f32 1.442695, %v8421_v53 }
 0x1c7   :  { %v2415_v39 = vpack.c.bf16 %v4825_v62, %v4825_v62  ;;  %v3121_v1 = vunpack.c.l.bf16 %v2077_v12  ;;  %v4827_v57 = vpop.eup %4826  ;;  %v3043_v7 = vunpack.c.l.bf16 %v1422_v52  ;;  %v3196_v8 = vmul.f32 %v7140_v17, %v3040_v33 }
 0x1c8   :  { %v2468_v11 = vunpack.c.l.bf16 %v2413_v50  ;;  %v4829_v3 = vpop.eup %4828  ;;  %4058 = vmatmul.bf16.gmra.mxu3 %v3793_v38  ;;  %v1426_v40 = vmul.f32 %v4827_v57, %v6626_v25  ;;  %4838 = vtanh.f32 %v1929_v22  ;;  %v8422_v32 = vunpack.c.h.bf16 %v8420_v6 }
 0x1c9   :  { %v2471_v20 = vunpack.c.l.bf16 %v2415_v39  ;;  %v4831_v21 = vpop.eup %4830  ;;  %v3199_v43 = vmul.f32 %v3121_v1, %v3043_v7  ;;  %v3271_v0 = vpack.c.bf16 %v3196_v8, %v3196_v8  ;;  %v1428_v24 = vmul.f32 %v4829_v3, %v6632_v16  ;;  %v8423_v39 = vld [vmem:[#allocation56_spill] sm:$0xff] }
 0x1ca   :  { %v2546_v47 = vadd.f32 1.0, %v2468_v11  ;;  %v4833_v54 = vpop.eup %4832  ;;  %v1440_v17 = vmul.f32 %v4831_v21, %v6626_v25  ;;  %4840 = vtanh.f32 %v1930_v14  ;;  %v2278_v36 = vmul.f32 1.442695, %v8422_v32 }
 0x1cb   :  { %v2549_v29 = vadd.f32 1.0, %v2471_v20  ;;  %v3273_v62 = vpack.c.bf16 %v3199_v43, %v3199_v43  ;;  %v3326_v22 = vunpack.c.l.bf16 %v3271_v0  ;;  %v1429_v52 = vpack.c.bf16 %v1426_v40, %v1428_v24  ;;  %v4835_v50 = vpop.eup %4834  ;;  %v8426_v43 = vld [vmem:[#allocation112_spill] sm:$0xff]  ;;  %v8427_v0 = vld [vmem:[#allocation114_spill] sm:$0xff]  ;;  %v8428_v24 = vld [vmem:[#allocation101_spill] sm:$0xff] }
 0x1cc   :  { %v2621_v12 = vpack.c.bf16 %v2546_v47, %v2546_v47  ;;  %v1442_v38 = vmul.f32 %v4833_v54, %v6632_v16  ;;  %4842 = vpow2.f32 %v2276_v55  ;;  %v8424_v1 = vunpack.c.l.bf16 %v8423_v39  ;;  %v4837_v11 = vpop.eup %4836  ;;  %v8429_v54 = vld [vmem:[#allocation102_spill] sm:$0xff] }
 0x1cd   :  { %v2623_v33 = vpack.c.bf16 %v2549_v29, %v2549_v29  ;;  %v3329_v3 = vunpack.c.l.bf16 %v3273_v62  ;;  %4844 = vtanh.f32 %v3326_v22  ;;  %v2078_v21 = vpack.c.bf16 %v4837_v11, %v4835_v50  ;;  %v8430_v22 = vld [vmem:[#allocation103_spill] sm:$0xff] }
 0x1ce   :  { %v2282_v57 = vmul.f32 1.442695, %v8424_v1  ;;  %v2703_v7 = vunpack.c.h.bf16 %v2621_v12  ;;  %v2704_v8 = vunpack.c.l.bf16 %v2621_v12  ;;  %v4839_v14 = vpop.eup %4838  ;;  %v1443_v53 = vpack.c.bf16 %v1440_v17, %v1442_v38  ;;  %v8431_v1 = vld [vmem:[#allocation98_spill] sm:$0xff] }
 0x1cf   :  { %v2717_v20 = vunpack.c.h.bf16 %v2623_v33  ;;  %v2718_v6 = vunpack.c.l.bf16 %v2623_v33  ;;  %v8425_v40 = vunpack.c.h.bf16 %v8423_v39  ;;  %v1153_v55 = vpack.c.bf16 %v8427_v0, %v8426_v43 }
 0x1d0   :  { %4846 = vrcp.f32 %v2703_v7  ;;  %v1155_v29 = vpack.c.bf16 %v8429_v54, %v8428_v24  ;;  %v4841_v32 = vpop.eup %4840  ;;  %v3122_v12 = vunpack.c.l.bf16 %v2078_v21  ;;  %v3123_v62 = vunpack.c.h.bf16 %v2078_v21 }
 0x1d1   :  { %v2284_v47 = vmul.f32 1.442695, %v8425_v40  ;;  %4848 = vrcp.f32 %v2704_v8  ;;  %v8432_v51 = vrot.slane %v8431_v1, 4  ;;  %v2080_v50 = vpack.c.bf16 %v4841_v32, %v4839_v14 }
 0x1d2   :  { %4850 = vrcp.f32 %v2717_v20  ;;  %v1229_v33 = vunpack.c.l.bf16 %v1153_v55  ;;  %v1230_v38 = vunpack.c.h.bf16 %v1153_v55  ;;  %v4843_v39 = vpop.eup %4842  ;;  %v3044_v11 = vunpack.c.l.bf16 %v1429_v52 }
 0x1d3   :  { %v7205_v17 = vsel %vm1835_vm0, %v8432_v51, %v8430_v22  ;;  %4852 = vrcp.f32 %v2718_v6  ;;  %v3045_v7 = vunpack.c.h.bf16 %v1429_v52  ;;  %v3047_v40 = vunpack.c.l.bf16 %v1443_v53  ;;  %v4845_v43 = vpop.eup %4844 }
 0x1d4   :  { %4854 = vtanh.f32 %v3329_v3  ;;  %v3048_v8 = vunpack.c.h.bf16 %v1443_v53  ;;  %v3125_v0 = vunpack.c.l.bf16 %v2080_v50  ;;  %v3126_v21 = vunpack.c.h.bf16 %v2080_v50 }
 0x1d5   :  { %v3479_v24 = vpack.c.bf16 %v4845_v43, %v4845_v43  ;;  %4856 = vpow2.f32 %v2278_v36  ;;  %v3200_v54 = vmul.f32 %v3122_v12, %v3044_v11  ;;  %v3201_v1 = vmul.f32 %v3123_v62, %v3045_v7 }
 0x1d6   :  { %v4847_v51 = vpop.eup %4846  ;;  %4858 = vpow2.f32 %v2282_v57  ;;  %v3203_v20 = vmul.f32 %v3125_v0, %v3047_v40  ;;  %v3204_v14 = vmul.f32 %v3126_v21, %v3048_v8  ;;  %v1232_v32 = vunpack.c.l.bf16 %v1155_v29 }
 0x1d7   :  { %v4849_v55 = vpop.eup %4848  ;;  %v2706_v6 = vmul.f32 %v4847_v51, %v6626_v25  ;;  %v3612_v22 = vunpack.c.l.bf16 %v3479_v24  ;;  %4860 = vpow2.f32 %v2284_v47  ;;  %v3274_v52 = vpack.c.bf16 %v3201_v1, %v3200_v54 }
 0x1d8   :  { %v4851_v27 = vpop.eup %4850  ;;  %v2708_v3 = vmul.f32 %v4849_v55, %v6632_v16  ;;  %v3276_v53 = vpack.c.bf16 %v3204_v14, %v3203_v20  ;;  %v1233_v50 = vunpack.c.h.bf16 %v1155_v29  ;;  %v1307_v43 = vadd.f32 1.0, %v1229_v33 }
 0x1d9   :  { %v4853_v36 = vpop.eup %4852  ;;  %v2720_v12 = vmul.f32 %v4851_v27, %v6626_v25  ;;  %v3330_v62 = vunpack.c.l.bf16 %v3274_v52  ;;  %v3331_v57 = vunpack.c.h.bf16 %v3274_v52  ;;  %v1308_v11 = vadd.f32 1.0, %v1230_v38 }
 0x1da   :  { %v4855_v7 = vpop.eup %4854  ;;  %v2709_v40 = vpack.c.bf16 %v2706_v6, %v2708_v3  ;;  %v2722_v8 = vmul.f32 %v4853_v36, %v6632_v16  ;;  %v3333_v0 = vunpack.c.l.bf16 %v3276_v53  ;;  %v3334_v21 = vunpack.c.h.bf16 %v3276_v53 }
 0x1db   :  { %v4857_v47 = vpop.eup %4856  ;;  %v3481_v1 = vpack.c.bf16 %v4855_v7, %v4855_v7  ;;  %4862 = vtanh.f32 %v3330_v62  ;;  %v1310_v24 = vadd.f32 1.0, %v1232_v32  ;;  %v1311_v54 = vadd.f32 1.0, %v1233_v50 }
 0x1dc   :  { %v4859_v51 = vpop.eup %4858  ;;  %v2723_v29 = vpack.c.bf16 %v2720_v12, %v2722_v8  ;;  %v3534_v33 = vunpack.c.l.bf16 %v2709_v40  ;;  %v2416_v20 = vpack.c.bf16 %v4857_v47, %v4843_v39  ;;  %4864 = vtanh.f32 %v3331_v57 }
 0x1dd   :  { %v4861_v27 = vpop.eup %4860  ;;  %v3615_v14 = vunpack.c.l.bf16 %v3481_v1  ;;  %4866 = vtanh.f32 %v3333_v0  ;;  %v1361_v38 = vpack.c.bf16 %v1308_v11, %v1307_v43  ;;  %v1363_v55 = vpack.c.bf16 %v1311_v54, %v1310_v24  ;;  %v8434_v54 = vld [vmem:[#allocation92_spill] sm:$0xff] }
 0x1de   :  { %v3537_v6 = vunpack.c.l.bf16 %v2723_v29  ;;  %v3690_v52 = vmul.f32 %v3612_v22, %v3534_v33  ;;  %v2418_v3 = vpack.c.bf16 %v4861_v27, %v4859_v51  ;;  %v2472_v36 = vunpack.c.l.bf16 %v2416_v20 }
 0x1df   :  { %v2473_v53 = vunpack.c.h.bf16 %v2416_v20  ;;  %4868 = vtanh.f32 %v3334_v21  ;;  %v1703_v7 = vunpack.c.h.bf16 %v1361_v38  ;;  %v1704_v62 = vunpack.c.l.bf16 %v1361_v38  ;;  %v8433_v21 = vld [vmem:[#allocation95_spill] sm:$0xff] }
 0x1e0   :  { %v3693_v32 = vmul.f32 %v3615_v14, %v3537_v6  ;;  %v2475_v50 = vunpack.c.l.bf16 %v2418_v3  ;;  %v2476_v46 = vunpack.c.h.bf16 %v2418_v3  ;;  %v2550_v12 = vadd.f32 1.0, %v2472_v36 }
 0x1e1   :  { %v4863_v40 = vpop.eup %4862  ;;  %v2551_v39 = vadd.f32 1.0, %v2473_v53  ;;  %4870 = vrcp.f32 %v1703_v7  ;;  %v1717_v57 = vunpack.c.h.bf16 %v1363_v55  ;;  %v1718_v8 = vunpack.c.l.bf16 %v1363_v55 }
 0x1e2   :  { %v4865_v0 = vpop.eup %4864  ;;  %v3765_v43 = vpack.c.bf16 %v3693_v32, %v3690_v52  ;;  %v2553_v11 = vadd.f32 1.0, %v2475_v50  ;;  %v2554_v47 = vadd.f32 1.0, %v2476_v46  ;;  %4872 = vrcp.f32 %v1704_v62  ;;  %v8436_v62 = vld [vmem:[#allocation100_spill] sm:$0xff] }
 0x1e3   :  { %v4867_v22 = vpop.eup %4866  ;;  %v2624_v1 = vpack.c.bf16 %v2551_v39, %v2550_v12  ;;  %v7211_v24 = vpack.c.bf16 %v4865_v0, %v4863_v40  ;;  %4874 = vrcp.f32 %v1717_v57  ;;  %v8435_v51 = vrot.slane %v8434_v54, 4 }
 0x1e4   :  { %4156 = vmatmul.bf16.gmra.mxu2 %v3765_v43  ;;  %v2626_v33 = vpack.c.bf16 %v2554_v47, %v2553_v11  ;;  %4876 = vrcp.f32 %v1718_v8  ;;  %v1986_v20 = vunpack.c.l.bf16 %v7205_v17  ;;  %v1987_v27 = vunpack.c.h.bf16 %v7205_v17  ;;  %v8439_v17 = vld [vmem:[#allocation94_spill] sm:$0xff] }
 0x1e5   :  { %v1861_v29 = vsel %vm1835_vm0, %v8435_v51, %v8433_v21  ;;  %v4869_v14 = vpop.eup %4868  ;;  %v2724_v46 = vunpack.c.h.bf16 %v2624_v1  ;;  %v2725_v38 = vunpack.c.l.bf16 %v2624_v1  ;;  %v8437_v32 = vunpack.c.l.bf16 %v8436_v62  ;;  %v7236_v51 = vld [vmem:[%s8071_s2 + $0x8] ss:$0 sm:$0xff] }
 0x1e6   :  { %v1989_v6 = vunpack.c.l.bf16 %v1861_v29  ;;  %v2738_v52 = vunpack.c.h.bf16 %v2626_v33  ;;  %v2739_v3 = vunpack.c.l.bf16 %v2626_v33  ;;  %v7220_v36 = vpack.c.bf16 %v4869_v14, %v4867_v22  ;;  %v8443_v14 = vld [vmem:[#allocation52_spill] sm:$0xff] }
 0x1e7   :  { %v1990_v53 = vunpack.c.h.bf16 %v1861_v29  ;;  %v4871_v7 = vpop.eup %4870  ;;  %4878 = vrcp.f32 %v2724_v46  ;;  %v2396_v50 = vmul.f32 1.442695, %v8437_v32  ;;  %v8438_v12 = vunpack.c.h.bf16 %v8436_v62  ;;  %v8442_v29 = vld [vmem:[#allocation59_spill] sm:$0xff] }
 0x1e8   :  { %v8440_v39 = vunpack.c.l.bf16 %v8439_v17  ;;  %v4873_v8 = vpop.eup %4872  ;;  %4880 = vrcp.f32 %v2725_v38  ;;  %v1706_v43 = vmul.f32 %v4871_v7, %v6626_v25  ;;  %v8441_v11 = vunpack.c.h.bf16 %v8439_v17 }
 0x1e9   :  { %v2398_v40 = vmul.f32 1.442695, %v8438_v12  ;;  %v4875_v22 = vpop.eup %4874  ;;  %4882 = vrcp.f32 %v2738_v52  ;;  %v1708_v1 = vmul.f32 %v4873_v8, %v6632_v16  ;;  %v499_v33 = vadd.f32 %v7236_v51, %v8442_v29 }
 0x1ea   :  { %v2402_v57 = vmul.f32 1.442695, %v8440_v39  ;;  %v2404_v47 = vmul.f32 1.442695, %v8441_v11  ;;  %v508_v46 = vadd.f32 %v7236_v51, %v8443_v14  ;;  %v4877_v38 = vpop.eup %4876  ;;  %4884 = vrcp.f32 %v2739_v3 }
 0x1eb   :  { %v1720_v7 = vmul.f32 %v4875_v22, %v6626_v25  ;;  %v828_v62 = vxor.u32 2147516416, %v8414_v48  ;;  %v830_v52 = vxor.u32 2147516416, %v8417_v63  ;;  %v7245_v32 = vpack.c.bf16 %v1706_v43, %v1708_v1 }
 0x1ec   :  { %v1722_v12 = vmul.f32 %v4877_v38, %v6632_v16  ;;  %4886 = vtanh.f32 %v1986_v20  ;;  %v713_v17 = vpack.c.bf16 %v499_v33, %v499_v33  ;;  %v718_v39 = vpack.c.bf16 %v508_v46, %v508_v46 }
 0x1ed   :  { %4888 = vtanh.f32 %v1987_v27  ;;  %v885_v8 = vunpack.c.l.bf16 %v828_v62  ;;  %v888_v11 = vunpack.c.l.bf16 %v830_v52  ;;  %v4879_v29 = vpop.eup %4878  ;;  %v3104_v3 = vunpack.c.l.bf16 %v7245_v32 }
 0x1ee   :  { %v7248_v14 = vpack.c.bf16 %v1720_v7, %v1722_v12  ;;  %4890 = vtanh.f32 %v1989_v6  ;;  %v3105_v48 = vunpack.c.h.bf16 %v7245_v32  ;;  %v4881_v22 = vpop.eup %4880  ;;  %v2727_v63 = vmul.f32 %v4879_v29, %v6626_v25 }
 0x1ef   :  { %4892 = vtanh.f32 %v1990_v53  ;;  %v977_v43 = vmul.f32 1.442695, %v885_v8  ;;  %v983_v1 = vmul.f32 1.442695, %v888_v11  ;;  %v4883_v20 = vpop.eup %4882  ;;  %v2729_v27 = vmul.f32 %v4881_v22, %v6632_v16 }
 0x1f0   :  { %4894 = vpow2.f32 %v2396_v50  ;;  %v3107_v33 = vunpack.c.l.bf16 %v7248_v14  ;;  %v3108_v46 = vunpack.c.h.bf16 %v7248_v14  ;;  %v4885_v38 = vpop.eup %4884  ;;  %v2741_v6 = vmul.f32 %v4883_v20, %v6626_v25 }
 0x1f1   :  { %4896 = vpow2.f32 %v2398_v40  ;;  %v3617_v7 = vunpack.c.h.bf16 %v7211_v24  ;;  %v3620_v62 = vunpack.c.h.bf16 %v7220_v36  ;;  %v2730_v53 = vpack.c.bf16 %v2727_v63, %v2729_v27  ;;  %v8445_v27 = vld [vmem:[#allocation26_spill] sm:$0xff] }
 0x1f2   :  { %v4887_v52 = vpop.eup %4886  ;;  %v2743_v32 = vmul.f32 %v4885_v38, %v6632_v16  ;;  %4898 = vpow2.f32 %v2402_v57  ;;  %v1928_v12 = vunpack.c.l.bf16 %v8413_v35  ;;  %v7262_v11 = vxor.u32 2147516416, %v713_v17  ;;  %v8444_v35 = vld [vmem:[#allocation24_spill] sm:$0xff] }
 0x1f3   :  { %v4889_v50 = vpop.eup %4888  ;;  %4900 = vpow2.f32 %v2404_v47  ;;  %v7264_v29 = vxor.u32 2147516416, %v718_v39  ;;  %v3538_v22 = vunpack.c.l.bf16 %v2730_v53  ;;  %v3539_v0 = vunpack.c.h.bf16 %v2730_v53 }
 0x1f4   :  { %v4891_v40 = vpop.eup %4890  ;;  %v2744_v14 = vpack.c.bf16 %v2741_v6, %v2743_v32  ;;  %v2118_v20 = vpack.c.bf16 %v4889_v50, %v4887_v52  ;;  %4902 = vpow2.f32 %v977_v43  ;;  %v2188_v63 = vunpack.c.l.bf16 %v7262_v11 }
 0x1f5   :  { %v4893_v55 = vpop.eup %4892  ;;  %v7270_v47 = vpack.c.bf16 %v8445_v27, %v8444_v35  ;;  %v8446_v39 = vunpack.c.l.bf16 %v7211_v24  ;;  %v3695_v50 = vmul.f32 %v3617_v7, %v3539_v0  ;;  %4904 = vpow2.f32 %v983_v1 }
 0x1f6   :  { %v4895_v38 = vpop.eup %4894  ;;  %v3541_v17 = vunpack.c.l.bf16 %v2744_v14  ;;  %v2120_v21 = vpack.c.bf16 %v4893_v55, %v4891_v40  ;;  %v3182_v6 = vunpack.c.l.bf16 %v2118_v20  ;;  %v3183_v52 = vunpack.c.h.bf16 %v2118_v20 }
 0x1f7   :  { %v3694_v8 = vmul.f32 %v8446_v39, %v3538_v22  ;;  %v4897_v32 = vpop.eup %4896  ;;  %v3542_v53 = vunpack.c.h.bf16 %v2744_v14  ;;  %v8447_v11 = vunpack.c.l.bf16 %v7220_v36  ;;  %4906 = vtanh.f32 %v1928_v12 }
 0x1f8   :  { %v4899_v43 = vpop.eup %4898  ;;  %v2456_v54 = vpack.c.bf16 %v4897_v32, %v4895_v38  ;;  %v3185_v4 = vunpack.c.l.bf16 %v2120_v21  ;;  %v3186_v35 = vunpack.c.h.bf16 %v2120_v21  ;;  %v3260_v28 = vmul.f32 %v3182_v6, %v3104_v3 }
 0x1f9   :  { %v3697_v57 = vmul.f32 %v8447_v11, %v3541_v17  ;;  %v4901_v27 = vpop.eup %4900  ;;  %v3261_v5 = vmul.f32 %v3183_v52, %v3105_v48  ;;  %v3698_v10 = vmul.f32 %v3620_v62, %v3542_v53 }
 0x1fa   :  { %v2458_v55 = vpack.c.bf16 %v4901_v27, %v4899_v43  ;;  %v2532_v40 = vunpack.c.l.bf16 %v2456_v54  ;;  %v2533_v22 = vunpack.c.h.bf16 %v2456_v54  ;;  %v4903_v20 = vpop.eup %4902  ;;  %v3263_v14 = vmul.f32 %v3185_v4, %v3107_v33 }
 0x1fb   :  { %v3766_v24 = vpack.c.bf16 %v3697_v57, %v3694_v8  ;;  %v3264_v0 = vmul.f32 %v3186_v35, %v3108_v46  ;;  %v3314_v1 = vpack.c.bf16 %v3261_v5, %v3260_v28  ;;  %v3767_v7 = vpack.c.bf16 %v3698_v10, %v3695_v50  ;;  %v4905_v21 = vpop.eup %4904 }
 0x1fc   :  { %v2535_v36 = vunpack.c.l.bf16 %v2458_v55  ;;  %v2536_v17 = vunpack.c.h.bf16 %v2458_v55  ;;  %v2610_v38 = vadd.f32 1.0, %v2532_v40  ;;  %v2611_v39 = vadd.f32 1.0, %v2533_v22 }
 0x1fd   :  { %4013 = vmatmul.bf16.gmra.mxu0 %v3766_v24  ;;  %v3316_v32 = vpack.c.bf16 %v3264_v0, %v3263_v14  ;;  %v3390_v3 = vunpack.c.l.bf16 %v3314_v1  ;;  %v3391_v48 = vunpack.c.h.bf16 %v3314_v1  ;;  %4087 = vmatmul.bf16.gmra.mxu1 %v3767_v7  ;;  %v1114_v62 = vpack.c.bf16 %v4903_v20, %v4903_v20  ;;  %v4907_v6 = vpop.eup %4906  ;;  %v8449_v20 = vld [vmem:[#allocation82_spill] sm:$0xff]  ;;  %v8450_v14 = vld [vmem:[#allocation87_spill] sm:$0xff] }
 0x1fe   :  { %v2613_v12 = vadd.f32 1.0, %v2535_v36  ;;  %v2614_v8 = vadd.f32 1.0, %v2536_v17  ;;  %v2664_v57 = vpack.c.bf16 %v2611_v39, %v2610_v38  ;;  %v1116_v54 = vpack.c.bf16 %v4905_v21, %v4905_v21 }
 0x1ff   :  { %v3393_v4 = vunpack.c.l.bf16 %v3316_v32  ;;  %v3394_v33 = vunpack.c.h.bf16 %v3316_v32  ;;  %4908 = vtanh.f32 %v3390_v3  ;;  %v1171_v5 = vunpack.c.l.bf16 %v1114_v62 }
 0x200   :  { %v2666_v28 = vpack.c.bf16 %v2614_v8, %v2613_v12  ;;  %v3004_v10 = vunpack.c.h.bf16 %v2664_v57  ;;  %v3005_v46 = vunpack.c.l.bf16 %v2664_v57  ;;  %4910 = vtanh.f32 %v3391_v48 }
 0x201   :  { %4912 = vtanh.f32 %v3393_v4  ;;  %v1174_v52 = vunpack.c.l.bf16 %v1116_v54  ;;  %v1249_v53 = vadd.f32 1.0, %v1171_v5  ;;  %v2079_v50 = vpack.c.bf16 %v4907_v6, %v4907_v6 }
 0x202   :  { %4914 = vrcp.f32 %v3004_v10  ;;  %v3018_v43 = vunpack.c.h.bf16 %v2666_v28  ;;  %v3019_v11 = vunpack.c.l.bf16 %v2666_v28  ;;  %v2280_v35 = vmul.f32 1.442695, %v2188_v63 }
 0x203   :  { %4916 = vrcp.f32 %v3005_v46  ;;  %v1252_v27 = vadd.f32 1.0, %v1174_v52  ;;  %v1322_v24 = vpack.c.bf16 %v1249_v53, %v1249_v53  ;;  %v8448_v55 = vunpack.c.l.bf16 %v7264_v29  ;;  %v8451_v46 = vld [vmem:[#allocation74_spill] sm:$0xff]  ;;  %v8452_v52 = vld [vmem:[#allocation71_spill] sm:$0xff] }
 0x204   :  { %4918 = vrcp.f32 %v3018_v43  ;;  %v7278_v22 = vunpack.c.l.bf16 %v2079_v50  ;;  %v1117_v0 = vpack.c.bf16 %v8450_v14, %v8449_v20  ;;  %v1178_v1 = vunpack.c.l.bf16 %v7270_v47  ;;  %v8456_v20 = vld [vmem:[#allocation14_spill] sm:$0xff] }
 0x205   :  { %v2286_v40 = vmul.f32 1.442695, %v8448_v55  ;;  %v4909_v7 = vpop.eup %4908  ;;  %4920 = vrcp.f32 %v3019_v11  ;;  %v1324_v36 = vpack.c.bf16 %v1252_v27, %v1252_v27  ;;  %v1430_v17 = vunpack.c.h.bf16 %v1322_v24  ;;  %v8455_v55 = vld [vmem:[#allocation15_spill] sm:$0xff] }
 0x206   :  { %v1431_v38 = vunpack.c.l.bf16 %v1322_v24  ;;  %v4911_v63 = vpop.eup %4910  ;;  %4922 = vtanh.f32 %v3394_v33  ;;  %v1175_v39 = vunpack.c.l.bf16 %v1117_v0  ;;  %v1176_v21 = vunpack.c.h.bf16 %v1117_v0 }
 0x207   :  { %v1179_v29 = vunpack.c.h.bf16 %v7270_v47  ;;  %v4913_v32 = vpop.eup %4912  ;;  %v7284_v3 = vpack.c.bf16 %v4911_v63, %v4909_v7  ;;  %4924 = vrcp.f32 %v1430_v17  ;;  %v1444_v48 = vunpack.c.h.bf16 %v1324_v36 }
 0x208   :  { %v1445_v62 = vunpack.c.l.bf16 %v1324_v36  ;;  %v4915_v12 = vpop.eup %4914  ;;  %4926 = vrcp.f32 %v1431_v38  ;;  %v1253_v8 = vadd.f32 1.0, %v1175_v39  ;;  %v1254_v57 = vadd.f32 1.0, %v1176_v21 }
 0x209   :  { %v1256_v54 = vadd.f32 1.0, %v1178_v1  ;;  %v4917_v6 = vpop.eup %4916  ;;  %v3007_v4 = vmul.f32 %v4915_v12, %v6626_v25  ;;  %v3676_v33 = vunpack.c.l.bf16 %v7284_v3  ;;  %4928 = vrcp.f32 %v1444_v48 }
 0x20a   :  { %v1257_v5 = vadd.f32 1.0, %v1179_v29  ;;  %v4919_v28 = vpop.eup %4918  ;;  %v3009_v47 = vmul.f32 %v4917_v6, %v6632_v16  ;;  %4930 = vrcp.f32 %v1445_v62  ;;  %v1325_v10 = vpack.c.bf16 %v1254_v57, %v1253_v8 }
 0x20b   :  { %v8453_v53 = vrot.slane %v8452_v52, 4  ;;  %v4921_v43 = vpop.eup %4920  ;;  %v3021_v11 = vmul.f32 %v4919_v28, %v6626_v25  ;;  %v8454_v27 = vunpack.c.l.bf16 %v8416_v59  ;;  %v8457_v14 = vrot.slane %v8456_v20, 4 }
 0x20c   :  { %v1327_v24 = vpack.c.bf16 %v1257_v5, %v1256_v54  ;;  %v4923_v1 = vpop.eup %4922  ;;  %v7302_v7 = vpack.c.bf16 %v3007_v4, %v3009_v47  ;;  %v3023_v36 = vmul.f32 %v4921_v43, %v6632_v16  ;;  %v1451_v17 = vunpack.c.h.bf16 %v1325_v10 }
 0x20d   :  { %v1842_v50 = vsel %vm1835_vm0, %v8453_v53, %v8451_v46  ;;  %4932 = vtanh.f32 %v8454_v27  ;;  %v7300_v0 = vsel %vm1835_vm0, %v8457_v14, %v8455_v55  ;;  %v4925_v38 = vpop.eup %4924  ;;  %v7305_v63 = vpack.c.bf16 %v4923_v1, %v4913_v32 }
 0x20e   :  { %4934 = vpow2.f32 %v2280_v35  ;;  %v1452_v59 = vunpack.c.l.bf16 %v1325_v10  ;;  %v1465_v39 = vunpack.c.h.bf16 %v1327_v24  ;;  %v4927_v21 = vpop.eup %4926  ;;  %v7307_v29 = vpack.c.bf16 %v3021_v11, %v3023_v36 }
 0x20f   :  { %4936 = vpow2.f32 %v2286_v40  ;;  %v3598_v48 = vunpack.c.l.bf16 %v7302_v7  ;;  %v1433_v62 = vmul.f32 %v4925_v38, %v6626_v25  ;;  %v4929_v12 = vpop.eup %4928  ;;  %v3679_v8 = vunpack.c.l.bf16 %v7305_v63 }
 0x210   :  { %4938 = vrcp.f32 %v1451_v17  ;;  %v1435_v35 = vmul.f32 %v4927_v21, %v6632_v16  ;;  %v1466_v57 = vunpack.c.l.bf16 %v1327_v24  ;;  %v4931_v32 = vpop.eup %4930  ;;  %v3601_v40 = vunpack.c.l.bf16 %v7307_v29 }
 0x211   :  { %4940 = vrcp.f32 %v1452_v59  ;;  %v3754_v54 = vmul.f32 %v3676_v33, %v3598_v48  ;;  %v1447_v6 = vmul.f32 %v4929_v12, %v6626_v25  ;;  %v1449_v28 = vmul.f32 %v4931_v32, %v6632_v16  ;;  %v8458_v32 = vld [vmem:[#allocation77_spill] sm:$0xff] }
 0x212   :  { %4942 = vrcp.f32 %v1465_v39  ;;  %v1436_v5 = vpack.c.bf16 %v1433_v62, %v1435_v35  ;;  %v1932_v47 = vunpack.c.l.bf16 %v1842_v50  ;;  %v3757_v53 = vmul.f32 %v3679_v8, %v3601_v40 }
 0x213   :  { %v4933_v4 = vpop.eup %4932  ;;  %4944 = vrcp.f32 %v1466_v57  ;;  %v1933_v11 = vunpack.c.h.bf16 %v1842_v50  ;;  %v1935_v27 = vunpack.c.l.bf16 %v7300_v0  ;;  %v1450_v14 = vpack.c.bf16 %v1447_v6, %v1449_v28 }
 0x214   :  { %v4935_v10 = vpop.eup %4934  ;;  %v2081_v43 = vpack.c.bf16 %v4933_v4, %v4933_v4  ;;  %v3046_v36 = vunpack.c.l.bf16 %v1436_v5  ;;  %v1936_v33 = vunpack.c.h.bf16 %v7300_v0  ;;  %v3796_v38 = vpack.c.bf16 %v3757_v53, %v3754_v54 }
 0x215   :  { %v4937_v24 = vpop.eup %4936  ;;  %v2417_v1 = vpack.c.bf16 %v4935_v10, %v4935_v10  ;;  %4946 = vtanh.f32 %v1932_v47  ;;  %v3049_v62 = vunpack.c.l.bf16 %v1450_v14  ;;  %v8459_v0 = vunpack.c.l.bf16 %v8458_v32 }
 0x216   :  { %v4939_v17 = vpop.eup %4938  ;;  %v2419_v59 = vpack.c.bf16 %v4937_v24, %v4937_v24  ;;  %v3127_v39 = vunpack.c.l.bf16 %v2081_v43  ;;  %v3202_v12 = vmul.f32 %v7278_v22, %v3046_v36  ;;  %4063 = vmatmul.bf16.gmra.mxu3 %v3796_v38  ;;  %4948 = vtanh.f32 %v1933_v11 }
 0x217   :  { %v4941_v21 = vpop.eup %4940  ;;  %v2474_v48 = vunpack.c.l.bf16 %v2417_v1  ;;  %v1454_v50 = vmul.f32 %v4939_v17, %v6626_v25  ;;  %v2288_v40 = vmul.f32 1.442695, %v8459_v0  ;;  %4950 = vtanh.f32 %v1935_v27  ;;  %v8461_v27 = vld [vmem:[#allocation13_spill] sm:$0xff] }
 0x218   :  { %v4943_v8 = vpop.eup %4942  ;;  %v2477_v35 = vunpack.c.l.bf16 %v2419_v59  ;;  %v1456_v57 = vmul.f32 %v4941_v21, %v6632_v16  ;;  %v3205_v4 = vmul.f32 %v3127_v39, %v3049_v62  ;;  %v3275_v5 = vpack.c.bf16 %v3202_v12, %v3202_v12 }
 0x219   :  { %v4945_v54 = vpop.eup %4944  ;;  %v2552_v6 = vadd.f32 1.0, %v2474_v48  ;;  %v1468_v28 = vmul.f32 %v4943_v8, %v6626_v25  ;;  %4952 = vtanh.f32 %v1936_v33  ;;  %v8460_v36 = vunpack.c.h.bf16 %v8458_v32 }
 0x21a   :  { %v2555_v47 = vadd.f32 1.0, %v2477_v35  ;;  %v1457_v10 = vpack.c.bf16 %v1454_v50, %v1456_v57  ;;  %v1470_v22 = vmul.f32 %v4945_v54, %v6632_v16  ;;  %v3277_v43 = vpack.c.bf16 %v3205_v4, %v3205_v4 }
 0x21b   :  { %v2625_v53 = vpack.c.bf16 %v2552_v6, %v2552_v6  ;;  %v3332_v24 = vunpack.c.l.bf16 %v3275_v5  ;;  %v4947_v14 = vpop.eup %4946  ;;  %4954 = vpow2.f32 %v2288_v40  ;;  %v2290_v17 = vmul.f32 1.442695, %v8460_v36 }
 0x21c   :  { %v2627_v11 = vpack.c.bf16 %v2555_v47, %v2555_v47  ;;  %v1471_v1 = vpack.c.bf16 %v1468_v28, %v1470_v22  ;;  %v3335_v39 = vunpack.c.l.bf16 %v3277_v43  ;;  %v4949_v21 = vpop.eup %4948  ;;  %v8462_v12 = vunpack.c.l.bf16 %v8461_v27  ;;  %v8464_v28 = vld [vmem:[#allocation128_spill] sm:$0xff]  ;;  %v8465_v43 = vld [vmem:[#allocation130_spill] sm:$0xff] }
 0x21d   :  { %v2731_v38 = vunpack.c.h.bf16 %v2625_v53  ;;  %v2732_v59 = vunpack.c.l.bf16 %v2625_v53  ;;  %4956 = vtanh.f32 %v3332_v24  ;;  %v2082_v33 = vpack.c.bf16 %v4949_v21, %v4947_v14  ;;  %v4951_v0 = vpop.eup %4950  ;;  %v8466_v14 = vld [vmem:[#allocation127_spill] sm:$0xff] }
 0x21e   :  { %v2745_v48 = vunpack.c.h.bf16 %v2627_v11  ;;  %v2746_v62 = vunpack.c.l.bf16 %v2627_v11  ;;  %4958 = vpow2.f32 %v2290_v17  ;;  %v2294_v50 = vmul.f32 1.442695, %v8462_v12 }
 0x21f   :  { %4960 = vrcp.f32 %v2731_v38  ;;  %v8463_v8 = vunpack.c.h.bf16 %v8461_v27  ;;  %v3053_v57 = vunpack.c.l.bf16 %v1471_v1  ;;  %v3050_v32 = vunpack.c.l.bf16 %v1457_v10  ;;  %v4953_v6 = vpop.eup %4952 }
 0x220   :  { %4962 = vrcp.f32 %v2732_v59  ;;  %v3051_v40 = vunpack.c.h.bf16 %v1457_v10  ;;  %v3054_v54 = vunpack.c.h.bf16 %v1471_v1  ;;  %v3128_v4 = vunpack.c.l.bf16 %v2082_v33  ;;  %v8467_v59 = vld [vmem:[#allocation129_spill] sm:$0xff] }
 0x221   :  { %v2296_v35 = vmul.f32 1.442695, %v8463_v8  ;;  %4964 = vrcp.f32 %v2745_v48  ;;  %v3129_v5 = vunpack.c.h.bf16 %v2082_v33  ;;  %v3587_v47 = vunpack.c.h.bf16 %v8464_v28  ;;  %v4955_v22 = vpop.eup %4954 }
 0x222   :  { %4966 = vrcp.f32 %v2746_v62  ;;  %v2084_v53 = vpack.c.bf16 %v4953_v6, %v4951_v0  ;;  %v3590_v24 = vunpack.c.h.bf16 %v8465_v43  ;;  %v3665_v11 = vunpack.c.h.bf16 %v8466_v14 }
 0x223   :  { %v4957_v36 = vpop.eup %4956  ;;  %4968 = vtanh.f32 %v3335_v39  ;;  %v3206_v17 = vmul.f32 %v3128_v4, %v3050_v32  ;;  %v3207_v38 = vmul.f32 %v3129_v5, %v3051_v40  ;;  %v3668_v10 = vunpack.c.h.bf16 %v8467_v59 }
 0x224   :  { %v4959_v1 = vpop.eup %4958  ;;  %v3483_v21 = vpack.c.bf16 %v4957_v36, %v4957_v36  ;;  %4970 = vpow2.f32 %v2294_v50  ;;  %v3131_v48 = vunpack.c.l.bf16 %v2084_v53  ;;  %v3132_v27 = vunpack.c.h.bf16 %v2084_v53 }
 0x225   :  { %v4961_v12 = vpop.eup %4960  ;;  %4972 = vpow2.f32 %v2296_v35  ;;  %v2420_v33 = vpack.c.bf16 %v4959_v1, %v4955_v22  ;;  %v3278_v62 = vpack.c.bf16 %v3207_v38, %v3206_v17  ;;  %v3743_v8 = vmul.f32 %v3665_v11, %v3587_v47 }
 0x226   :  { %v4963_v0 = vpop.eup %4962  ;;  %v2734_v6 = vmul.f32 %v4961_v12, %v6626_v25  ;;  %v3618_v28 = vunpack.c.l.bf16 %v3483_v21  ;;  %v3209_v43 = vmul.f32 %v3131_v48, %v3053_v57  ;;  %v3210_v39 = vmul.f32 %v3132_v27, %v3054_v54 }
 0x227   :  { %v4965_v32 = vpop.eup %4964  ;;  %v2736_v40 = vmul.f32 %v4963_v0, %v6632_v16  ;;  %v2478_v4 = vunpack.c.l.bf16 %v2420_v33  ;;  %v2479_v5 = vunpack.c.h.bf16 %v2420_v33  ;;  %v3336_v14 = vunpack.c.l.bf16 %v3278_v62 }
 0x228   :  { %v4967_v50 = vpop.eup %4966  ;;  %v2748_v53 = vmul.f32 %v4965_v32, %v6626_v25  ;;  %v3280_v36 = vpack.c.bf16 %v3210_v39, %v3209_v43  ;;  %v3337_v35 = vunpack.c.h.bf16 %v3278_v62  ;;  %v3746_v22 = vmul.f32 %v3668_v10, %v3590_v24 }
 0x229   :  { %v4969_v17 = vpop.eup %4968  ;;  %v2737_v47 = vpack.c.bf16 %v2734_v6, %v2736_v40  ;;  %v2750_v11 = vmul.f32 %v4967_v50, %v6632_v16  ;;  %v2556_v38 = vadd.f32 1.0, %v2478_v4  ;;  %v2557_v59 = vadd.f32 1.0, %v2479_v5  ;;  %v8468_v4 = vld [vmem:[#allocation70_spill] sm:$0xff]  ;;  %v8469_v50 = vld [vmem:[#allocation11_spill] sm:$0xff] }
 0x22a   :  { %v4971_v57 = vpop.eup %4970  ;;  %v3485_v54 = vpack.c.bf16 %v4969_v17, %v4969_v17  ;;  %v3339_v1 = vunpack.c.l.bf16 %v3280_v36  ;;  %v3340_v21 = vunpack.c.h.bf16 %v3280_v36  ;;  %4974 = vtanh.f32 %v3336_v14 }
 0x22b   :  { %v4973_v48 = vpop.eup %4972  ;;  %v2751_v27 = vpack.c.bf16 %v2748_v53, %v2750_v11  ;;  %v3540_v12 = vunpack.c.l.bf16 %v2737_v47  ;;  %v2628_v33 = vpack.c.bf16 %v2557_v59, %v2556_v38  ;;  %4976 = vtanh.f32 %v3337_v35 }
 0x22c   :  { %v3621_v0 = vunpack.c.l.bf16 %v3485_v54  ;;  %v2422_v43 = vpack.c.bf16 %v4973_v48, %v4971_v57  ;;  %4978 = vtanh.f32 %v3339_v1  ;;  %v3791_v24 = vpack.c.bf16 %v3746_v22, %v3743_v8 }
 0x22d   :  { %v3543_v10 = vunpack.c.l.bf16 %v2751_v27  ;;  %v3696_v62 = vmul.f32 %v3618_v28, %v3540_v12  ;;  %v2752_v6 = vunpack.c.h.bf16 %v2628_v33  ;;  %v2753_v39 = vunpack.c.l.bf16 %v2628_v33 }
 0x22e   :  { %v2481_v32 = vunpack.c.l.bf16 %v2422_v43  ;;  %v2482_v40 = vunpack.c.h.bf16 %v2422_v43  ;;  %4980 = vtanh.f32 %v3340_v21  ;;  %4127 = vmatmul.bf16.vlgmr.msrb.gmra.mxu3 %v3791_v24  ;;  %v517_v5 = vadd.f32 %v7236_v51, %v8468_v4 }
 0x22f   :  { %v3699_v14 = vmul.f32 %v3621_v0, %v3543_v10  ;;  %4982 = vrcp.f32 %v2752_v6  ;;  %v526_v53 = vadd.f32 %v7236_v51, %v8469_v50  ;;  %v832_v36 = vxor.u32 2147516416, %v8452_v52 }
 0x230   :  { %v4975_v35 = vpop.eup %4974  ;;  %v2559_v8 = vadd.f32 1.0, %v2481_v32  ;;  %v2560_v22 = vadd.f32 1.0, %v2482_v40  ;;  %4984 = vrcp.f32 %v2753_v39  ;;  %v723_v28 = vpack.c.bf16 %v517_v5, %v517_v5  ;;  %v8470_v5 = vld [vmem:[#allocation41_spill] sm:$0xff] }
 0x231   :  { %v4977_v17 = vpop.eup %4976  ;;  %v3768_v47 = vpack.c.bf16 %v3699_v14, %v3696_v62  ;;  %v728_v11 = vpack.c.bf16 %v526_v53, %v526_v53  ;;  %v834_v38 = vxor.u32 2147516416, %v8456_v20  ;;  %v891_v59 = vunpack.c.l.bf16 %v832_v36  ;;  %v8471_v14 = vld [vmem:[#allocation42_spill] sm:$0xff] }
 0x232   :  { %v4979_v57 = vpop.eup %4978  ;;  %v2630_v1 = vpack.c.bf16 %v2560_v22, %v2559_v8  ;;  %v3486_v21 = vpack.c.bf16 %v4977_v17, %v4975_v35  ;;  %v1934_v48 = vunpack.c.l.bf16 %v8451_v46  ;;  %v2135_v12 = vxor.u32 2147516416, %v723_v28 }
 0x233   :  { %4161 = vmatmul.bf16.gmra.mxu2 %v3768_v47  ;;  %v894_v52 = vunpack.c.l.bf16 %v834_v38  ;;  %v989_v27 = vmul.f32 1.442695, %v891_v59  ;;  %v2137_v33 = vxor.u32 2147516416, %v728_v11  ;;  %v1937_v62 = vunpack.c.l.bf16 %v8455_v55  ;;  %v8472_v47 = vld [vmem:[#allocation33_spill] sm:$0xff]  ;;  %v8473_v11 = vld [vmem:[#allocation31_spill] sm:$0xff] }
 0x234   :  { %v4981_v0 = vpop.eup %4980  ;;  %v2766_v43 = vunpack.c.h.bf16 %v2630_v1  ;;  %v2767_v24 = vunpack.c.l.bf16 %v2630_v1  ;;  %v3622_v10 = vunpack.c.l.bf16 %v3486_v21  ;;  %v2194_v32 = vunpack.c.l.bf16 %v2135_v12 }
 0x235   :  { %v4983_v20 = vpop.eup %4982  ;;  %v7348_v6 = vpack.c.bf16 %v4981_v0, %v4979_v57  ;;  %4986 = vpow2.f32 %v989_v27  ;;  %v995_v39 = vmul.f32 1.442695, %v894_v52  ;;  %v2197_v4 = vunpack.c.l.bf16 %v2137_v33 }
 0x236   :  { %v4985_v40 = vpop.eup %4984  ;;  %v2755_v46 = vmul.f32 %v4983_v20, %v6626_v25  ;;  %4988 = vrcp.f32 %v2766_v43  ;;  %v1121_v50 = vpack.c.bf16 %v8471_v14, %v8470_v5  ;;  %v3623_v55 = vunpack.c.h.bf16 %v3486_v21 }
 0x237   :  { %v2757_v53 = vmul.f32 %v4985_v40, %v6632_v16  ;;  %4990 = vrcp.f32 %v2767_v24  ;;  %v3625_v36 = vunpack.c.l.bf16 %v7348_v6  ;;  %v2292_v35 = vmul.f32 1.442695, %v2194_v32  ;;  %v8475_v24 = vld [vmem:[#allocation32_spill] sm:$0xff] }
 0x238   :  { %4992 = vpow2.f32 %v995_v39  ;;  %v2298_v8 = vmul.f32 1.442695, %v2197_v4  ;;  %v1181_v22 = vunpack.c.l.bf16 %v1121_v50  ;;  %v1182_v17 = vunpack.c.h.bf16 %v1121_v50 }
 0x239   :  { %v2758_v28 = vpack.c.bf16 %v2755_v46, %v2757_v53  ;;  %4994 = vtanh.f32 %v1934_v48  ;;  %v8474_v38 = vrot.slane %v8473_v11, 4  ;;  %v3626_v57 = vunpack.c.h.bf16 %v7348_v6 }
 0x23a   :  { %4996 = vtanh.f32 %v1937_v62  ;;  %v1259_v1 = vadd.f32 1.0, %v1181_v22  ;;  %v1260_v12 = vadd.f32 1.0, %v1182_v17  ;;  %v8476_v20 = vunpack.c.l.bf16 %v8475_v24 }
 0x23b   :  { %v7359_v59 = vsel %vm1835_vm0, %v8474_v38, %v8472_v47  ;;  %v4987_v21 = vpop.eup %4986  ;;  %v3544_v27 = vunpack.c.l.bf16 %v2758_v28  ;;  %4998 = vpow2.f32 %v2292_v35  ;;  %v3545_v0 = vunpack.c.h.bf16 %v2758_v28  ;;  %v8478_v35 = vld [vmem:[#allocation111_spill] sm:$0xff] }
 0x23c   :  { %v1938_v52 = vunpack.c.l.bf16 %v7359_v59  ;;  %v4989_v48 = vpop.eup %4988  ;;  %v1118_v43 = vpack.c.bf16 %v4987_v21, %v4987_v21  ;;  %5000 = vpow2.f32 %v2298_v8  ;;  %v7366_v39 = vmul.f32 1.442695, %v8476_v20  ;;  %v8479_v8 = vld [vmem:[#allocation107_spill] sm:$0xff] }
 0x23d   :  { %v4991_v32 = vpop.eup %4990  ;;  %v2769_v62 = vmul.f32 %v4989_v48, %v6626_v25  ;;  %v3700_v6 = vmul.f32 %v3622_v10, %v3544_v27  ;;  %v1329_v40 = vpack.c.bf16 %v1260_v12, %v1259_v1  ;;  %v8477_v46 = vunpack.c.h.bf16 %v8475_v24 }
 0x23e   :  { %v4993_v5 = vpop.eup %4992  ;;  %v2771_v14 = vmul.f32 %v4991_v32, %v6632_v16  ;;  %v3701_v50 = vmul.f32 %v3623_v55, %v3545_v0  ;;  %v1177_v53 = vunpack.c.l.bf16 %v1118_v43  ;;  %v8480_v22 = vrot.slane %v8479_v8, 4 }
 0x23f   :  { %v7371_v4 = vmul.f32 1.442695, %v8477_v46  ;;  %v4995_v17 = vpop.eup %4994  ;;  %v1120_v38 = vpack.c.bf16 %v4993_v5, %v4993_v5  ;;  %v1479_v21 = vunpack.c.h.bf16 %v1329_v40  ;;  %v1480_v10 = vunpack.c.l.bf16 %v1329_v40 }
 0x240   :  { %v7378_v28 = vsel %vm1835_vm0, %v8480_v22, %v8478_v35  ;;  %5002 = vtanh.f32 %v1938_v52  ;;  %v4997_v1 = vpop.eup %4996  ;;  %v2772_v27 = vpack.c.bf16 %v2769_v62, %v2771_v14  ;;  %v1255_v12 = vadd.f32 1.0, %v1177_v53  ;;  %v8481_v62 = vld [vmem:[#allocation28_spill] sm:$0xff] }
 0x241   :  { %v2083_v48 = vpack.c.bf16 %v4995_v17, %v4995_v17  ;;  %v1941_v24 = vunpack.c.l.bf16 %v7378_v28  ;;  %v4999_v20 = vpop.eup %4998  ;;  %v1180_v55 = vunpack.c.l.bf16 %v1120_v38  ;;  %v2085_v0 = vpack.c.bf16 %v4997_v1, %v4997_v1 }
 0x242   :  { %5004 = vrcp.f32 %v1479_v21  ;;  %v5001_v32 = vpop.eup %5000  ;;  %v3547_v46 = vunpack.c.l.bf16 %v2772_v27  ;;  %v3548_v22 = vunpack.c.h.bf16 %v2772_v27  ;;  %v1326_v54 = vpack.c.bf16 %v1255_v12, %v1255_v12 }
 0x243   :  { %v2421_v5 = vpack.c.bf16 %v4999_v20, %v4999_v20  ;;  %v1258_v33 = vadd.f32 1.0, %v1180_v55  ;;  %v2423_v40 = vpack.c.bf16 %v5001_v32, %v5001_v32  ;;  %v7382_v52 = vunpack.c.l.bf16 %v2083_v48  ;;  %v8482_v20 = vld [vmem:[#allocation109_spill] sm:$0xff] }
 0x244   :  { %v7386_v14 = vadd.f32 %v7236_v51, %v8481_v62  ;;  %v3703_v53 = vmul.f32 %v3625_v36, %v3547_v46  ;;  %v3704_v17 = vmul.f32 %v3626_v57, %v3548_v22  ;;  %v1458_v38 = vunpack.c.h.bf16 %v1326_v54  ;;  %v8484_v46 = vld [vmem:[#allocation120_spill] sm:$0xff] }
 0x245   :  { %v1459_v1 = vunpack.c.l.bf16 %v1326_v54  ;;  %v1328_v18 = vpack.c.bf16 %v1258_v33, %v1258_v33  ;;  %v2480_v43 = vunpack.c.l.bf16 %v2421_v5  ;;  %v2483_v34 = vunpack.c.l.bf16 %v2423_v40  ;;  %v8483_v33 = vld [vmem:[#allocation118_spill] sm:$0xff] }
 0x246   :  { %v5003_v21 = vpop.eup %5002  ;;  %5006 = vrcp.f32 %v1480_v10  ;;  %v3769_v27 = vpack.c.bf16 %v3703_v53, %v3700_v6  ;;  %v3770_v12 = vpack.c.bf16 %v3704_v17, %v3701_v50  ;;  %v7390_v48 = vadd.f32 %v7236_v51, %v8482_v20 }
 0x247   :  { %5008 = vrcp.f32 %v1458_v38  ;;  %v1472_v32 = vunpack.c.h.bf16 %v1328_v18  ;;  %v1473_v62 = vunpack.c.l.bf16 %v1328_v18  ;;  %v2558_v36 = vadd.f32 1.0, %v2480_v43 }
 0x248   :  { %v5005_v55 = vpop.eup %5004  ;;  %5010 = vrcp.f32 %v1459_v1  ;;  %4018 = vmatmul.bf16.gmra.mxu0 %v3769_v27  ;;  %4092 = vmatmul.bf16.gmra.mxu1 %v3770_v12  ;;  %v2561_v54 = vadd.f32 1.0, %v2483_v34  ;;  %v7392_v57 = vunpack.c.l.bf16 %v2085_v0  ;;  %v1123_v10 = vpack.c.bf16 %v8484_v46, %v8483_v33 }
 0x249   :  { %v8485_v6 = vunpack.c.h.bf16 %v7359_v59  ;;  %v2629_v50 = vpack.c.bf16 %v2558_v36, %v2558_v36  ;;  %v1482_v51 = vmul.f32 %v5005_v55, %v6626_v25  ;;  %v733_v22 = vpack.c.bf16 %v7386_v14, %v7386_v14 }
 0x24a   :  { %v2631_v18 = vpack.c.bf16 %v2561_v54, %v2561_v54  ;;  %v1184_v43 = vunpack.c.l.bf16 %v1123_v10  ;;  %v1185_v5 = vunpack.c.h.bf16 %v1123_v10  ;;  %v738_v53 = vpack.c.bf16 %v7390_v48, %v7390_v48 }
 0x24b   :  { %5012 = vtanh.f32 %v8485_v6  ;;  %v2759_v0 = vunpack.c.h.bf16 %v2629_v50  ;;  %v2760_v40 = vunpack.c.l.bf16 %v2629_v50  ;;  %v8493_v48 = vpack.c.bf16 %v6953_v30, %v6950_v13 }
 0x24c   :  { %5014 = vrcp.f32 %v1472_v32  ;;  %v5007_v34 = vpop.eup %5006  ;;  %v2773_v17 = vunpack.c.h.bf16 %v2631_v18  ;;  %v2774_v38 = vunpack.c.l.bf16 %v2631_v18  ;;  %v1262_v1 = vadd.f32 1.0, %v1184_v43  ;;  %v8486_v32 = vld [vmem:[#allocation110_spill] sm:$0xff] }
 0x24d   :  { %5016 = vrcp.f32 %v1473_v62  ;;  %v5009_v59 = vpop.eup %5008  ;;  %v1263_v27 = vadd.f32 1.0, %v1185_v5  ;;  %v1484_v55 = vmul.f32 %v5007_v34, %v6632_v16  ;;  %v8487_v62 = vunpack.c.l.bf16 %v8486_v32 }
 0x24e   :  { %5018 = vtanh.f32 %v1941_v24  ;;  %v5011_v12 = vpop.eup %5010  ;;  %v1461_v20 = vmul.f32 %v5009_v59, %v6626_v25  ;;  %v8488_v46 = vunpack.c.h.bf16 %v8486_v32  ;;  %v3593_v43 = vunpack.c.h.bf16 %v7167_v58 }
 0x24f   :  { %5020 = vrcp.f32 %v2759_v0  ;;  %v2306_v36 = vmul.f32 1.442695, %v8487_v62  ;;  %v1463_v24 = vmul.f32 %v5011_v12, %v6632_v16  ;;  %v1331_v33 = vpack.c.bf16 %v1263_v27, %v1262_v1 }
 0x250   :  { %5022 = vrcp.f32 %v2760_v40  ;;  %v2308_v10 = vmul.f32 1.442695, %v8488_v46  ;;  %v1485_v50 = vpack.c.bf16 %v1482_v51, %v1484_v55  ;;  %v8489_v1 = vunpack.c.h.bf16 %v7378_v28 }
 0x251   :  { %v5013_v54 = vpop.eup %5012  ;;  %5024 = vrcp.f32 %v2773_v17  ;;  %v1464_v0 = vpack.c.bf16 %v1461_v20, %v1463_v24  ;;  %v1493_v59 = vunpack.c.h.bf16 %v1331_v33  ;;  %v1494_v40 = vunpack.c.l.bf16 %v1331_v33 }
 0x252   :  { %v5015_v6 = vpop.eup %5014  ;;  %v2086_v18 = vpack.c.bf16 %v5013_v54, %v5003_v21  ;;  %5026 = vrcp.f32 %v2774_v38  ;;  %v3056_v27 = vunpack.c.l.bf16 %v1485_v50  ;;  %v3057_v51 = vunpack.c.h.bf16 %v1485_v50 }
 0x253   :  { %v5017_v5 = vpop.eup %5016  ;;  %v1475_v34 = vmul.f32 %v5015_v6, %v6626_v25  ;;  %5028 = vtanh.f32 %v8489_v1  ;;  %v3052_v32 = vunpack.c.l.bf16 %v1464_v0  ;;  %v3671_v55 = vunpack.c.h.bf16 %v7158_v19 }
 0x254   :  { %v5019_v62 = vpop.eup %5018  ;;  %v1477_v12 = vmul.f32 %v5017_v5, %v6632_v16  ;;  %5030 = vrcp.f32 %v1493_v59  ;;  %v3134_v21 = vunpack.c.l.bf16 %v2086_v18  ;;  %v3135_v20 = vunpack.c.h.bf16 %v2086_v18 }
 0x255   :  { %v5021_v17 = vpop.eup %5020  ;;  %5032 = vrcp.f32 %v1494_v40  ;;  %v3208_v24 = vmul.f32 %v7382_v52, %v3052_v32  ;;  %v836_v19 = vxor.u32 2147516416, %v8473_v11 }
 0x256   :  { %v1478_v58 = vpack.c.bf16 %v1475_v34, %v1477_v12  ;;  %v5023_v38 = vpop.eup %5022  ;;  %v2762_v54 = vmul.f32 %v5021_v17, %v6626_v25  ;;  %5034 = vpow2.f32 %v7366_v39  ;;  %v3212_v28 = vmul.f32 %v3134_v21, %v3056_v27 }
 0x257   :  { %v5025_v33 = vpop.eup %5024  ;;  %v2764_v46 = vmul.f32 %v5023_v38, %v6632_v16  ;;  %5036 = vpow2.f32 %v7371_v4  ;;  %v3213_v50 = vmul.f32 %v3135_v20, %v3057_v51  ;;  %v3279_v0 = vpack.c.bf16 %v3208_v24, %v3208_v24 }
 0x258   :  { %v3055_v6 = vunpack.c.l.bf16 %v1478_v58  ;;  %v5027_v5 = vpop.eup %5026  ;;  %v2776_v18 = vmul.f32 %v5025_v33, %v6626_v25  ;;  %5038 = vpow2.f32 %v2306_v36  ;;  %v3749_v4 = vmul.f32 %v3671_v55, %v3593_v43 }
 0x259   :  { %v5029_v34 = vpop.eup %5028  ;;  %v2765_v59 = vpack.c.bf16 %v2762_v54, %v2764_v46  ;;  %v2778_v52 = vmul.f32 %v5027_v5, %v6632_v16  ;;  %5040 = vpow2.f32 %v2308_v10  ;;  %v3338_v40 = vunpack.c.l.bf16 %v3279_v0 }
 0x25a   :  { %v3211_v39 = vmul.f32 %v7392_v57, %v3055_v6  ;;  %v5031_v12 = vpop.eup %5030  ;;  %v2088_v1 = vpack.c.bf16 %v5029_v34, %v5019_v62  ;;  %v3282_v27 = vpack.c.bf16 %v3213_v50, %v3212_v28  ;;  %v838_v36 = vxor.u32 2147516416, %v8479_v8 }
 0x25b   :  { %v5033_v32 = vpop.eup %5032  ;;  %v2779_v51 = vpack.c.bf16 %v2776_v18, %v2778_v52  ;;  %v1496_v17 = vmul.f32 %v5031_v12, %v6626_v25  ;;  %5042 = vtanh.f32 %v3338_v40  ;;  %v3546_v58 = vunpack.c.l.bf16 %v2765_v59 }
 0x25c   :  { %v3281_v21 = vpack.c.bf16 %v3211_v39, %v3211_v39  ;;  %v5035_v11 = vpop.eup %5034  ;;  %v1498_v20 = vmul.f32 %v5033_v32, %v6632_v16  ;;  %v3137_v38 = vunpack.c.l.bf16 %v2088_v1  ;;  %v3138_v24 = vunpack.c.h.bf16 %v2088_v1 }
 0x25d   :  { %v5037_v57 = vpop.eup %5036  ;;  %v3549_v54 = vunpack.c.l.bf16 %v2779_v51  ;;  %v3342_v62 = vunpack.c.l.bf16 %v3282_v27  ;;  %v3343_v33 = vunpack.c.h.bf16 %v3282_v27  ;;  %v3674_v46 = vunpack.c.h.bf16 %v7170_v61 }
 0x25e   :  { %v3341_v10 = vunpack.c.l.bf16 %v3281_v21  ;;  %v5039_v28 = vpop.eup %5038  ;;  %v1499_v43 = vpack.c.bf16 %v1496_v17, %v1498_v20  ;;  %v2424_v55 = vpack.c.bf16 %v5037_v57, %v5035_v11  ;;  %v3596_v8 = vunpack.c.h.bf16 %v7172_v44 }
 0x25f   :  { %v5041_v6 = vpop.eup %5040  ;;  %v897_v50 = vunpack.c.l.bf16 %v836_v19  ;;  %v900_v5 = vunpack.c.l.bf16 %v838_v36 }
 0x260   :  { %5044 = vtanh.f32 %v3341_v10  ;;  %v2426_v18 = vpack.c.bf16 %v5041_v6, %v5039_v28  ;;  %v2484_v0 = vunpack.c.l.bf16 %v2424_v55  ;;  %v2485_v34 = vunpack.c.h.bf16 %v2424_v55 }
 0x261   :  { %v3059_v59 = vunpack.c.l.bf16 %v1499_v43  ;;  %v3060_v52 = vunpack.c.h.bf16 %v1499_v43  ;;  %5046 = vtanh.f32 %v3342_v62  ;;  %v3752_v39 = vmul.f32 %v3674_v46, %v3596_v8  ;;  %v5043_v40 = vpop.eup %5042 }
 0x262   :  { %v1001_v12 = vmul.f32 1.442695, %v897_v50  ;;  %v2487_v1 = vunpack.c.l.bf16 %v2426_v18  ;;  %v2488_v32 = vunpack.c.h.bf16 %v2426_v18  ;;  %v2562_v27 = vadd.f32 1.0, %v2484_v0 }
 0x263   :  { %v2563_v51 = vadd.f32 1.0, %v2485_v34  ;;  %v3487_v61 = vpack.c.bf16 %v5043_v40, %v5043_v40  ;;  %v3215_v21 = vmul.f32 %v3137_v38, %v3059_v59  ;;  %v3216_v17 = vmul.f32 %v3138_v24, %v3060_v52 }
 0x264   :  { %5048 = vtanh.f32 %v3343_v33  ;;  %v2565_v44 = vadd.f32 1.0, %v2487_v1  ;;  %v2566_v19 = vadd.f32 1.0, %v2488_v32  ;;  %v3794_v11 = vpack.c.bf16 %v3752_v39, %v3749_v4  ;;  %v8491_v39 = vld [vmem:[#allocation60_spill] sm:$0xff] }
 0x265   :  { %v2632_v36 = vpack.c.bf16 %v2563_v51, %v2562_v27  ;;  %v3624_v57 = vunpack.c.l.bf16 %v3487_v61  ;;  %v3284_v10 = vpack.c.bf16 %v3216_v17, %v3215_v21  ;;  %5050 = vpow2.f32 %v1001_v12  ;;  %v8492_v12 = vld [vmem:[#allocation62_spill] sm:$0xff] }
 0x266   :  { %v5045_v20 = vpop.eup %5044  ;;  %v1007_v62 = vmul.f32 1.442695, %v900_v5  ;;  %v2634_v43 = vpack.c.bf16 %v2566_v19, %v2565_v44  ;;  %4132 = vmatmul.bf16.gmra.mxu3 %v3794_v11  ;;  %v1819_v8 = vrot.slane %v6973_v56, 4  ;;  %v2139_v5 = vxor.u32 2147516416, %v733_v22  ;;  %v8494_v11 = vld [vmem:[#allocation108_spill] sm:$0xff] }
 0x267   :  { %v3489_v28 = vpack.c.bf16 %v5045_v20, %v5045_v20  ;;  %v2780_v55 = vunpack.c.h.bf16 %v2632_v36  ;;  %v2781_v46 = vunpack.c.l.bf16 %v2632_v36  ;;  %v5047_v6 = vpop.eup %5046  ;;  %v3702_v38 = vmul.f32 %v3624_v57, %v3546_v58  ;;  %v8495_v20 = vld [vmem:[#allocation104_spill] sm:$0xff] }
 0x268   :  { %v3345_v24 = vunpack.c.l.bf16 %v3284_v10  ;;  %5052 = vpow2.f32 %v1007_v62  ;;  %v2794_v50 = vunpack.c.h.bf16 %v2634_v43  ;;  %v2795_v4 = vunpack.c.l.bf16 %v2634_v43 }
 0x269   :  { %v3627_v33 = vunpack.c.l.bf16 %v3489_v28  ;;  %5054 = vrcp.f32 %v2780_v55  ;;  %v3346_v0 = vunpack.c.h.bf16 %v3284_v10  ;;  %v2141_v34 = vxor.u32 2147516416, %v738_v53 }
 0x26a   :  { %v5049_v18 = vpop.eup %5048  ;;  %5056 = vrcp.f32 %v2781_v46  ;;  %v8490_v58 = vpack.c.bf16 %v6947_v41, %v6944_v31  ;;  %v1127_v40 = vpack.c.bf16 %v8492_v12, %v8491_v39  ;;  %v1940_v32 = vunpack.c.l.bf16 %v8472_v47 }
 0x26b   :  { %v3705_v52 = vmul.f32 %v3627_v33, %v3549_v54  ;;  %5058 = vrcp.f32 %v2794_v50  ;;  %v5051_v1 = vpop.eup %5050  ;;  %v2200_v14 = vunpack.c.l.bf16 %v2139_v5  ;;  %v2203_v22 = vunpack.c.l.bf16 %v2141_v34 }
 0x26c   :  { %v7440_v59 = vrot.slane %v8490_v58, 4  ;;  %5060 = vrcp.f32 %v2795_v4  ;;  %v7448_v53 = vxor.u32 2147516416, %v8493_v48  ;;  %v1943_v31 = vunpack.c.l.bf16 %v8478_v35  ;;  %v8497_v58 = vld [vmem:[#allocation51_spill] sm:$0xff] }
 0x26d   :  { %v3771_v27 = vpack.c.bf16 %v3705_v52, %v3702_v38  ;;  %5062 = vtanh.f32 %v3345_v24  ;;  %v1122_v54 = vpack.c.bf16 %v5051_v1, %v5051_v1  ;;  %v2304_v51 = vmul.f32 1.442695, %v2200_v14  ;;  %v8498_v52 = vld [vmem:[#allocation48_spill] sm:$0xff]  ;;  %v8500_v14 = vld [vmem:[#allocation115_spill] sm:$0xff] }
 0x26e   :  { %v5053_v41 = vpop.eup %5052  ;;  %5064 = vtanh.f32 %v3346_v0  ;;  %v2310_v61 = vmul.f32 1.442695, %v2203_v22  ;;  %v3490_v17 = vpack.c.bf16 %v5049_v18, %v5047_v6  ;;  %v1190_v44 = vunpack.c.l.bf16 %v1127_v40  ;;  %v8501_v22 = vld [vmem:[#allocation116_spill] sm:$0xff] }
 0x26f   :  { %v5055_v21 = vpop.eup %5054  ;;  %4166 = vmatmul.bf16.gmra.mxu2 %v3771_v27  ;;  %v1124_v47 = vpack.c.bf16 %v5053_v41, %v5053_v41  ;;  %v1191_v19 = vunpack.c.h.bf16 %v1127_v40  ;;  %v1183_v30 = vunpack.c.l.bf16 %v1122_v54  ;;  %5066 = vtanh.f32 %v1940_v32 }
 0x270   :  { %v5057_v36 = vpop.eup %5056  ;;  %v2783_v13 = vmul.f32 %v5055_v21, %v6626_v25  ;;  %v8496_v57 = vrot.slane %v8495_v20, 4  ;;  %5068 = vpow2.f32 %v2304_v51  ;;  %v1268_v43 = vadd.f32 1.0, %v1190_v44 }
 0x271   :  { %v5059_v10 = vpop.eup %5058  ;;  %v2785_v62 = vmul.f32 %v5057_v36, %v6632_v16  ;;  %v1186_v28 = vunpack.c.l.bf16 %v1124_v47  ;;  %v1261_v6 = vadd.f32 1.0, %v1183_v30  ;;  %5070 = vpow2.f32 %v2310_v61 }
 0x272   :  { %v7456_v35 = vsel %vm1835_vm0, %v8496_v57, %v8494_v11  ;;  %v5061_v55 = vpop.eup %5060  ;;  %v2797_v46 = vmul.f32 %v5059_v10, %v6626_v25  ;;  %v1269_v38 = vadd.f32 1.0, %v1191_v19  ;;  %v3628_v4 = vunpack.c.l.bf16 %v3490_v17 }
 0x273   :  { %v5063_v24 = vpop.eup %5062  ;;  %v2786_v33 = vpack.c.bf16 %v2783_v13, %v2785_v62  ;;  %v2799_v50 = vmul.f32 %v5061_v55, %v6632_v16  ;;  %v1264_v18 = vadd.f32 1.0, %v1186_v28  ;;  %v3629_v5 = vunpack.c.h.bf16 %v3490_v17 }
 0x274   :  { %v5065_v0 = vpop.eup %5064  ;;  %v1330_v34 = vpack.c.bf16 %v1261_v6, %v1261_v6  ;;  %5072 = vtanh.f32 %v1943_v31  ;;  %v8499_v39 = vrot.slane %v8498_v52, 4  ;;  %v1125_v48 = vpack.c.bf16 %v8501_v22, %v8500_v14 }
 0x275   :  { %v2800_v40 = vpack.c.bf16 %v2797_v46, %v2799_v50  ;;  %v3492_v1 = vpack.c.bf16 %v5065_v0, %v5063_v24  ;;  %v3550_v32 = vunpack.c.l.bf16 %v2786_v33  ;;  %v5067_v27 = vpop.eup %5066  ;;  %v1332_v41 = vpack.c.bf16 %v1264_v18, %v1264_v18 }
 0x276   :  { %v7465_v12 = vsel %vm1835_vm0, %v8499_v39, %v8497_v58  ;;  %v1486_v54 = vunpack.c.h.bf16 %v1330_v34  ;;  %v1487_v51 = vunpack.c.l.bf16 %v1330_v34  ;;  %v1335_v61 = vpack.c.bf16 %v1269_v38, %v1268_v43  ;;  %v5069_v21 = vpop.eup %5068 }
 0x277   :  { %v3553_v17 = vunpack.c.l.bf16 %v2800_v40  ;;  %v3631_v31 = vunpack.c.l.bf16 %v3492_v1  ;;  %v3706_v47 = vmul.f32 %v3628_v4, %v3550_v32  ;;  %v3551_v44 = vunpack.c.h.bf16 %v2786_v33  ;;  %v5071_v19 = vpop.eup %5070 }
 0x278   :  { %v3554_v36 = vunpack.c.h.bf16 %v2800_v40  ;;  %v3632_v13 = vunpack.c.h.bf16 %v3492_v1  ;;  %5074 = vrcp.f32 %v1486_v54  ;;  %v1500_v30 = vunpack.c.h.bf16 %v1332_v41 }
 0x279   :  { %v3709_v57 = vmul.f32 %v3631_v31, %v3553_v17  ;;  %v3707_v10 = vmul.f32 %v3629_v5, %v3551_v44  ;;  %5076 = vrcp.f32 %v1487_v51  ;;  %v1501_v62 = vunpack.c.l.bf16 %v1332_v41 }
 0x27a   :  { %v5073_v28 = vpop.eup %5072  ;;  %v3710_v55 = vmul.f32 %v3632_v13, %v3554_v36  ;;  %5078 = vrcp.f32 %v1500_v30  ;;  %v2425_v46 = vpack.c.bf16 %v5069_v21, %v5069_v21  ;;  %v2427_v6 = vpack.c.bf16 %v5071_v19, %v5071_v19 }
 0x27b   :  { %v3772_v43 = vpack.c.bf16 %v3709_v57, %v3706_v47  ;;  %5080 = vrcp.f32 %v1501_v62  ;;  %v2087_v38 = vpack.c.bf16 %v5067_v27, %v5067_v27  ;;  %v1944_v24 = vunpack.c.l.bf16 %v7456_v35 }
 0x27c   :  { %v3773_v33 = vpack.c.bf16 %v3710_v55, %v3707_v10  ;;  %v2486_v50 = vunpack.c.l.bf16 %v2425_v46  ;;  %v2489_v4 = vunpack.c.l.bf16 %v2427_v6  ;;  %v1187_v18 = vunpack.c.l.bf16 %v1125_v48 }
 0x27d   :  { %4023 = vmatmul.bf16.gmra.mxu0 %v3772_v43  ;;  %v2089_v0 = vpack.c.bf16 %v5073_v28, %v5073_v28  ;;  %v1188_v34 = vunpack.c.h.bf16 %v1125_v48  ;;  %v1521_v5 = vunpack.c.h.bf16 %v1335_v61  ;;  %v1522_v39 = vunpack.c.l.bf16 %v1335_v61 }
 0x27e   :  { %v5075_v40 = vpop.eup %5074  ;;  %4097 = vmatmul.bf16.gmra.mxu1 %v3773_v33  ;;  %v2564_v1 = vadd.f32 1.0, %v2486_v50  ;;  %v2567_v32 = vadd.f32 1.0, %v2489_v4  ;;  %v1265_v14 = vadd.f32 1.0, %v1187_v18  ;;  %v1945_v22 = vunpack.c.h.bf16 %v7456_v35  ;;  %v8502_v33 = vld [vmem:[#allocation105_spill] sm:$0xff] }
 0x27f   :  { %v5077_v41 = vpop.eup %5076  ;;  %v1489_v27 = vmul.f32 %v5075_v40, %v6626_v25  ;;  %v3136_v54 = vunpack.c.l.bf16 %v2087_v38  ;;  %v1266_v51 = vadd.f32 1.0, %v1188_v34  ;;  %5082 = vrcp.f32 %v1521_v5 }
 0x280   :  { %v5079_v21 = vpop.eup %5078  ;;  %v1491_v17 = vmul.f32 %v5077_v41, %v6632_v16  ;;  %v2633_v31 = vpack.c.bf16 %v2564_v1, %v2564_v1  ;;  %v2635_v48 = vpack.c.bf16 %v2567_v32, %v2567_v32  ;;  %5084 = vrcp.f32 %v1522_v39 }
 0x281   :  { %v5081_v61 = vpop.eup %5080  ;;  %v1503_v47 = vmul.f32 %v5079_v21, %v6626_v25  ;;  %v3139_v44 = vunpack.c.l.bf16 %v2089_v0  ;;  %v1333_v19 = vpack.c.bf16 %v1266_v51, %v1265_v14  ;;  %v1947_v36 = vunpack.c.l.bf16 %v7465_v12  ;;  %v8506_v14 = vld [vmem:[#allocation50_spill] sm:$0xff] }
 0x282   :  { %v1492_v35 = vpack.c.bf16 %v1489_v27, %v1491_v17  ;;  %v1505_v13 = vmul.f32 %v5081_v61, %v6632_v16  ;;  %v2787_v30 = vunpack.c.h.bf16 %v2633_v31  ;;  %v2788_v57 = vunpack.c.l.bf16 %v2633_v31  ;;  %v8509_v61 = vld [vmem:[#allocation106_spill] sm:$0xff] }
 0x283   :  { %v2801_v10 = vunpack.c.h.bf16 %v2635_v48  ;;  %v2802_v62 = vunpack.c.l.bf16 %v2635_v48  ;;  %v1948_v28 = vunpack.c.h.bf16 %v7465_v12  ;;  %5086 = vtanh.f32 %v1944_v24  ;;  %v7484_v12 = vld [vmem:[%s8071_s2 + $0x8] ss:$0 sm:$0xff]  ;;  %v8505_v24 = vld [vmem:[#allocation46_spill] sm:$0xff] }
 0x284   :  { %v1506_v55 = vpack.c.bf16 %v1503_v47, %v1505_v13  ;;  %5088 = vrcp.f32 %v2787_v30  ;;  %v3058_v46 = vunpack.c.l.bf16 %v1492_v35  ;;  %v1507_v6 = vunpack.c.h.bf16 %v1333_v19 }
 0x285   :  { %v5083_v43 = vpop.eup %5082  ;;  %5090 = vrcp.f32 %v2788_v57  ;;  %v1508_v38 = vunpack.c.l.bf16 %v1333_v19  ;;  %v8503_v50 = vunpack.c.l.bf16 %v8502_v33  ;;  %v8504_v18 = vunpack.c.h.bf16 %v8502_v33 }
 0x286   :  { %v5085_v34 = vpop.eup %5084  ;;  %5092 = vrcp.f32 %v2801_v10  ;;  %v3061_v5 = vunpack.c.l.bf16 %v1506_v55  ;;  %v3214_v39 = vmul.f32 %v3136_v54, %v3058_v46  ;;  %v562_v40 = vadd.f32 %v7484_v12, %v8505_v24 }
 0x287   :  { %v2312_v4 = vmul.f32 1.442695, %v8503_v50  ;;  %v2314_v0 = vmul.f32 1.442695, %v8504_v18  ;;  %5094 = vrcp.f32 %v2802_v62  ;;  %v1524_v1 = vmul.f32 %v5083_v43, %v6626_v25 }
 0x288   :  { %v1526_v32 = vmul.f32 %v5085_v34, %v6632_v16  ;;  %v8507_v41 = vunpack.c.l.bf16 %v8506_v14  ;;  %v3217_v51 = vmul.f32 %v3139_v44, %v3061_v5  ;;  %v3283_v21 = vpack.c.bf16 %v3214_v39, %v3214_v39 }
 0x289   :  { %5096 = vrcp.f32 %v1507_v6  ;;  %v840_v54 = vxor.u32 2147516416, %v8495_v20  ;;  %v5087_v17 = vpop.eup %5086  ;;  %v8508_v31 = vunpack.c.h.bf16 %v8506_v14  ;;  %v553_v47 = vadd.f32 %v7484_v12, %v8509_v61 }
 0x28a   :  { %v2318_v27 = vmul.f32 1.442695, %v8507_v41  ;;  %5098 = vrcp.f32 %v1508_v38  ;;  %v842_v19 = vxor.u32 2147516416, %v8498_v52  ;;  %v5089_v35 = vpop.eup %5088  ;;  %v3285_v13 = vpack.c.bf16 %v3217_v51, %v3217_v51 }
 0x28b   :  { %v2320_v48 = vmul.f32 1.442695, %v8508_v31  ;;  %v3344_v30 = vunpack.c.l.bf16 %v3283_v21  ;;  %5100 = vtanh.f32 %v1945_v22  ;;  %v748_v57 = vpack.c.bf16 %v562_v40, %v562_v40  ;;  %v5091_v44 = vpop.eup %5090 }
 0x28c   :  { %v2790_v10 = vmul.f32 %v5089_v35, %v6626_v25  ;;  %5102 = vtanh.f32 %v1947_v36  ;;  %v903_v20 = vunpack.c.l.bf16 %v840_v54  ;;  %v906_v62 = vunpack.c.l.bf16 %v842_v19  ;;  %v5093_v55 = vpop.eup %5092 }
 0x28d   :  { %v2792_v46 = vmul.f32 %v5091_v44, %v6632_v16  ;;  %v3347_v6 = vunpack.c.l.bf16 %v3285_v13  ;;  %5104 = vtanh.f32 %v3344_v30  ;;  %v1527_v43 = vpack.c.bf16 %v1524_v1, %v1526_v32  ;;  %v5095_v38 = vpop.eup %5094 }
 0x28e   :  { %v2804_v52 = vmul.f32 %v5093_v55, %v6626_v25  ;;  %5106 = vtanh.f32 %v1948_v28  ;;  %v743_v33 = vpack.c.bf16 %v553_v47, %v553_v47  ;;  %v1949_v22 = vunpack.c.l.bf16 %v8497_v58 }
 0x28f   :  { %v5097_v50 = vpop.eup %5096  ;;  %v2793_v18 = vpack.c.bf16 %v2790_v10, %v2792_v46  ;;  %v2806_v34 = vmul.f32 %v5095_v38, %v6632_v16  ;;  %5108 = vtanh.f32 %v3347_v6  ;;  %v7503_v36 = vxor.u32 2147516416, %v748_v57 }
 0x290   :  { %v5099_v5 = vpop.eup %5098  ;;  %v1510_v39 = vmul.f32 %v5097_v50, %v6626_v25  ;;  %5110 = vpow2.f32 %v2312_v4  ;;  %v1013_v24 = vmul.f32 1.442695, %v903_v20  ;;  %v1019_v40 = vmul.f32 1.442695, %v906_v62 }
 0x291   :  { %v5101_v1 = vpop.eup %5100  ;;  %v2807_v32 = vpack.c.bf16 %v2804_v52, %v2806_v34  ;;  %v1512_v28 = vmul.f32 %v5099_v5, %v6632_v16  ;;  %5112 = vpow2.f32 %v2314_v0  ;;  %v3065_v14 = vunpack.c.l.bf16 %v1527_v43 }
 0x292   :  { %v5103_v41 = vpop.eup %5102  ;;  %v2090_v51 = vpack.c.bf16 %v5101_v1, %v5087_v17  ;;  %5114 = vpow2.f32 %v2318_v27  ;;  %v3066_v21 = vunpack.c.h.bf16 %v1527_v43  ;;  %v1946_v54 = vunpack.c.l.bf16 %v8494_v11 }
 0x293   :  { %v5105_v31 = vpop.eup %5104  ;;  %v3552_v61 = vunpack.c.l.bf16 %v2793_v18  ;;  %v3555_v47 = vunpack.c.l.bf16 %v2807_v32  ;;  %v1513_v19 = vpack.c.bf16 %v1510_v39, %v1512_v28  ;;  %5116 = vpow2.f32 %v2320_v48 }
 0x294   :  { %v5107_v4 = vpop.eup %5106  ;;  %v3491_v35 = vpack.c.bf16 %v5105_v31, %v5105_v31  ;;  %v3140_v13 = vunpack.c.l.bf16 %v2090_v51  ;;  %v3141_v30 = vunpack.c.h.bf16 %v2090_v51  ;;  %5118 = vpow2.f32 %v1013_v24 }
 0x295   :  { %v5109_v57 = vpop.eup %5108  ;;  %v2092_v44 = vpack.c.bf16 %v5107_v4, %v5103_v41  ;;  %v3062_v0 = vunpack.c.l.bf16 %v1513_v19  ;;  %v3063_v10 = vunpack.c.h.bf16 %v1513_v19  ;;  %5120 = vpow2.f32 %v1019_v40 }
 0x296   :  { %v5111_v17 = vpop.eup %5110  ;;  %v3493_v27 = vpack.c.bf16 %v5109_v57, %v5109_v57  ;;  %v3630_v20 = vunpack.c.l.bf16 %v3491_v35  ;;  %5122 = vtanh.f32 %v1946_v54  ;;  %v7508_v11 = vxor.u32 2147516416, %v743_v33 }
 0x297   :  { %v5113_v62 = vpop.eup %5112  ;;  %v3143_v55 = vunpack.c.l.bf16 %v2092_v44  ;;  %v3144_v46 = vunpack.c.h.bf16 %v2092_v44  ;;  %v3218_v48 = vmul.f32 %v3140_v13, %v3062_v0  ;;  %v3219_v6 = vmul.f32 %v3141_v30, %v3063_v10 }
 0x298   :  { %v5115_v43 = vpop.eup %5114  ;;  %v3633_v38 = vunpack.c.l.bf16 %v3493_v27  ;;  %v3708_v52 = vmul.f32 %v3630_v20, %v3552_v61  ;;  %v2428_v50 = vpack.c.bf16 %v5113_v62, %v5111_v17  ;;  %v3599_v18 = vunpack.c.h.bf16 %v7302_v7 }
 0x299   :  { %v5117_v34 = vpop.eup %5116  ;;  %v3221_v5 = vmul.f32 %v3143_v55, %v3065_v14  ;;  %v3222_v39 = vmul.f32 %v3144_v46, %v3066_v21  ;;  %v3286_v24 = vpack.c.bf16 %v3219_v6, %v3218_v48  ;;  %v3602_v40 = vunpack.c.h.bf16 %v7307_v29 }
 0x29a   :  { %v5119_v1 = vpop.eup %5118  ;;  %v3711_v33 = vmul.f32 %v3633_v38, %v3555_v47  ;;  %v2430_v32 = vpack.c.bf16 %v5117_v34, %v5115_v43  ;;  %v2490_v28 = vunpack.c.l.bf16 %v2428_v50  ;;  %v2491_v41 = vunpack.c.h.bf16 %v2428_v50 }
 0x29b   :  { %v5121_v51 = vpop.eup %5120  ;;  %v3288_v54 = vpack.c.bf16 %v3222_v39, %v3221_v5  ;;  %v3348_v31 = vunpack.c.l.bf16 %v3286_v24  ;;  %v3349_v19 = vunpack.c.h.bf16 %v3286_v24  ;;  %v3677_v61 = vunpack.c.h.bf16 %v7284_v3 }
 0x29c   :  { %v7513_v4 = vpop.eup %5122  ;;  %v3774_v7 = vpack.c.bf16 %v3711_v33, %v3708_v52  ;;  %v2493_v35 = vunpack.c.l.bf16 %v2430_v32  ;;  %v2494_v14 = vunpack.c.h.bf16 %v2430_v32  ;;  %v2568_v21 = vadd.f32 1.0, %v2490_v28 }
 0x29d   :  { %v2569_v13 = vadd.f32 1.0, %v2491_v41  ;;  %v3351_v30 = vunpack.c.l.bf16 %v3288_v54  ;;  %v3352_v29 = vunpack.c.h.bf16 %v3288_v54  ;;  %5124 = vtanh.f32 %v3348_v31 }
 0x29e   :  { %4171 = vmatmul.bf16.gmra.mxu2 %v3774_v7  ;;  %v2571_v47 = vadd.f32 1.0, %v2493_v35  ;;  %v2572_v57 = vadd.f32 1.0, %v2494_v14  ;;  %5126 = vtanh.f32 %v3349_v19  ;;  %v3680_v44 = vunpack.c.h.bf16 %v7305_v63 }
 0x29f   :  { %v2636_v0 = vpack.c.bf16 %v2569_v13, %v2568_v21  ;;  %5128 = vtanh.f32 %v3351_v30  ;;  %v3755_v10 = vmul.f32 %v3677_v61, %v3599_v18  ;;  %v1126_v3 = vpack.c.bf16 %v5119_v1, %v5119_v1  ;;  %v8512_v21 = vld [vmem:[#allocation113_spill] sm:$0xff] }
 0x2a0   :  { %v2638_v17 = vpack.c.bf16 %v2572_v57, %v2571_v47  ;;  %5130 = vtanh.f32 %v3352_v29  ;;  %v3758_v27 = vmul.f32 %v3680_v44, %v3602_v40  ;;  %v1128_v20 = vpack.c.bf16 %v5121_v51, %v5121_v51 }
 0x2a1   :  { %v2808_v62 = vunpack.c.h.bf16 %v2636_v0  ;;  %v2809_v55 = vunpack.c.l.bf16 %v2636_v0  ;;  %v1189_v46 = vunpack.c.l.bf16 %v1126_v3  ;;  %5132 = vtanh.f32 %v1949_v22 }
 0x2a2   :  { %v2822_v48 = vunpack.c.h.bf16 %v2638_v17  ;;  %v2823_v6 = vunpack.c.l.bf16 %v2638_v17  ;;  %v3797_v43 = vpack.c.bf16 %v3758_v27, %v3755_v10  ;;  %v1192_v38 = vunpack.c.l.bf16 %v1128_v20  ;;  %v8513_v27 = vld [vmem:[#allocation125_spill] sm:$0xff]  ;;  %v8514_v20 = vld [vmem:[#allocation54_spill] sm:$0xff] }
 0x2a3   :  { %v5125_v52 = vpop.eup %5124  ;;  %v925_v63 = vunpack.c.l.bf16 %v6984_v9  ;;  %5134 = vrcp.f32 %v2808_v62  ;;  %v1267_v50 = vadd.f32 1.0, %v1189_v46  ;;  %v2209_v18 = vunpack.c.l.bf16 %v7503_v36  ;;  %v8516_v46 = vld [vmem:[#allocation119_spill] sm:$0xff] }
 0x2a4   :  { %v5127_v34 = vpop.eup %5126  ;;  %v926_v5 = vunpack.c.h.bf16 %v6984_v9  ;;  %5136 = vrcp.f32 %v2809_v55  ;;  %4137 = vmatmul.bf16.gmra.mxu3 %v3797_v43  ;;  %v1270_v39 = vadd.f32 1.0, %v1192_v38  ;;  %v2206_v58 = vunpack.c.l.bf16 %v7508_v11 }
 0x2a5   :  { %v5129_v22 = vpop.eup %5128  ;;  %v8510_v24 = vxor.u32 2147516416, %v6973_v56  ;;  %5138 = vrcp.f32 %v2822_v48  ;;  %v3494_v1 = vpack.c.bf16 %v5127_v34, %v5125_v52  ;;  %v1334_v33 = vpack.c.bf16 %v1267_v50, %v1267_v50  ;;  %v8511_v56 = vld [vmem:[#allocation123_spill] sm:$0xff]  ;;  %v8517_v48 = vld [vmem:[#allocation117_spill] sm:$0xff] }
 0x2a6   :  { %v5131_v32 = vpop.eup %5130  ;;  %v7528_v36 = vpack.c.bf16 %v6980_v37, %v6971_v45  ;;  %v7534_v28 = vsel %vm1835_vm0, %v1819_v8, %v7440_v59  ;;  %5140 = vrcp.f32 %v2823_v6  ;;  %v1336_v11 = vpack.c.bf16 %v1270_v39, %v1270_v39 }
 0x2a7   :  { %v7524_v40 = vunpack.c.l.bf16 %v8510_v24  ;;  %v5133_v41 = vpop.eup %5132  ;;  %v3496_v51 = vpack.c.bf16 %v5131_v32, %v5129_v22  ;;  %v1514_v54 = vunpack.c.h.bf16 %v1334_v33  ;;  %v2091_v31 = vpack.c.bf16 %v7513_v4, %v7513_v4 }
 0x2a8   :  { %v2322_v19 = vmul.f32 1.442695, %v2209_v18  ;;  %v1515_v61 = vunpack.c.l.bf16 %v1334_v33  ;;  %v1528_v7 = vunpack.c.h.bf16 %v1336_v11  ;;  %v1529_v35 = vunpack.c.l.bf16 %v1336_v11 }
 0x2a9   :  { %v2316_v45 = vmul.f32 1.442695, %v2206_v58  ;;  %v5135_v37 = vpop.eup %5134  ;;  %v3634_v14 = vunpack.c.l.bf16 %v3494_v1  ;;  %5142 = vrcp.f32 %v1514_v54  ;;  %v7540_v8 = vadd.f32 %v7484_v12, %v8511_v56  ;;  %v8520_v56 = vld [vmem:[#allocation53_spill] sm:$0xff] }
 0x2aa   :  { %v7544_v13 = vadd.f32 %v7484_v12, %v8512_v21  ;;  %v5137_v30 = vpop.eup %5136  ;;  %v2811_v29 = vmul.f32 %v5135_v37, %v6626_v25  ;;  %v3635_v4 = vunpack.c.h.bf16 %v3494_v1  ;;  %5144 = vrcp.f32 %v1515_v61  ;;  %v8519_v37 = vld [vmem:[#allocation37_spill] sm:$0xff] }
 0x2ab   :  { %v2093_v47 = vpack.c.bf16 %v5133_v41, %v5133_v41  ;;  %v5139_v57 = vpop.eup %5138  ;;  %v2813_v44 = vmul.f32 %v5137_v30, %v6632_v16  ;;  %v3637_v0 = vunpack.c.l.bf16 %v3496_v51  ;;  %v3638_v10 = vunpack.c.h.bf16 %v3496_v51  ;;  %v8521_v30 = vld [vmem:[#allocation121_spill] sm:$0xff] }
 0x2ac   :  { %5146 = vrcp.f32 %v1528_v7  ;;  %v5141_v3 = vpop.eup %5140  ;;  %v2825_v17 = vmul.f32 %v5139_v57, %v6626_v25  ;;  %v8515_v62 = vrot.slane %v8514_v20, 4  ;;  %v8518_v6 = vrot.slane %v8517_v48, 4 }
 0x2ad   :  { %5148 = vrcp.f32 %v1529_v35  ;;  %v2814_v38 = vpack.c.bf16 %v2811_v29, %v2813_v44  ;;  %v2827_v52 = vmul.f32 %v5141_v3, %v6632_v16  ;;  %v3142_v18 = vunpack.c.l.bf16 %v2091_v31  ;;  %v8522_v29 = vld [vmem:[#allocation34_spill] sm:$0xff] }
 0x2ae   :  { %v1848_v55 = vsel %vm1835_vm0, %v8515_v62, %v8513_v27  ;;  %v7557_v43 = vsel %vm1835_vm0, %v8518_v6, %v8516_v46  ;;  %5150 = vpow2.f32 %v2316_v45  ;;  %v3145_v11 = vunpack.c.l.bf16 %v2093_v47 }
 0x2af   :  { %v1950_v50 = vunpack.c.l.bf16 %v1848_v55  ;;  %5152 = vpow2.f32 %v2322_v19  ;;  %v1951_v34 = vunpack.c.h.bf16 %v1848_v55  ;;  %v1953_v39 = vunpack.c.l.bf16 %v7557_v43  ;;  %v5143_v58 = vpop.eup %5142 }
 0x2b0   :  { %v2828_v22 = vpack.c.bf16 %v2825_v17, %v2827_v52  ;;  %v3556_v24 = vunpack.c.l.bf16 %v2814_v38  ;;  %v3557_v1 = vunpack.c.h.bf16 %v2814_v38  ;;  %v5145_v33 = vpop.eup %5144  ;;  %v1517_v32 = vmul.f32 %v5143_v58, %v6626_v25 }
 0x2b1   :  { %5154 = vtanh.f32 %v1950_v50  ;;  %v1954_v41 = vunpack.c.h.bf16 %v7557_v43  ;;  %v1519_v35 = vmul.f32 %v5145_v33, %v6632_v16  ;;  %v1129_v21 = vpack.c.bf16 %v8520_v56, %v8519_v37 }
 0x2b2   :  { %5156 = vtanh.f32 %v1951_v34  ;;  %v5147_v51 = vpop.eup %5146  ;;  %v3559_v54 = vunpack.c.l.bf16 %v2828_v22  ;;  %v3712_v61 = vmul.f32 %v3634_v14, %v3556_v24  ;;  %v3560_v19 = vunpack.c.h.bf16 %v2828_v22 }
 0x2b3   :  { %v3713_v31 = vmul.f32 %v3635_v4, %v3557_v1  ;;  %v5149_v7 = vpop.eup %5148  ;;  %v1531_v45 = vmul.f32 %v5147_v51, %v6626_v25  ;;  %v1131_v57 = vpack.c.bf16 %v8522_v29, %v8521_v30  ;;  %5158 = vtanh.f32 %v1953_v39  ;;  %v8523_v30 = vld [vmem:[#allocation6_spill] sm:$0xff] }
 0x2b4   :  { %v5151_v47 = vpop.eup %5150  ;;  %v3715_v44 = vmul.f32 %v3637_v0, %v3559_v54  ;;  %v3716_v3 = vmul.f32 %v3638_v10, %v3560_v19  ;;  %v1533_v17 = vmul.f32 %v5149_v7, %v6632_v16  ;;  %v1520_v62 = vpack.c.bf16 %v1517_v32, %v1519_v35 }
 0x2b5   :  { %v5153_v14 = vpop.eup %5152  ;;  %v2429_v4 = vpack.c.bf16 %v5151_v47, %v5151_v47  ;;  %v1193_v55 = vunpack.c.l.bf16 %v1129_v21  ;;  %v1194_v6 = vunpack.c.h.bf16 %v1129_v21  ;;  %v1196_v1 = vunpack.c.l.bf16 %v1131_v57 }
 0x2b6   :  { %v3775_v38 = vpack.c.bf16 %v3715_v44, %v3712_v61  ;;  %v3776_v52 = vpack.c.bf16 %v3716_v3, %v3713_v31  ;;  %v1534_v50 = vpack.c.bf16 %v1531_v45, %v1533_v17  ;;  %v2431_v34 = vpack.c.bf16 %v5153_v14, %v5153_v14 }
 0x2b7   :  { %v5155_v43 = vpop.eup %5154  ;;  %v2492_v22 = vunpack.c.l.bf16 %v2429_v4  ;;  %v3064_v24 = vunpack.c.l.bf16 %v1520_v62  ;;  %v1197_v33 = vunpack.c.h.bf16 %v1131_v57  ;;  %v1271_v39 = vadd.f32 1.0, %v1193_v55 }
 0x2b8   :  { %v5157_v58 = vpop.eup %5156  ;;  %4028 = vmatmul.bf16.gmra.mxu0 %v3775_v38  ;;  %4102 = vmatmul.bf16.gmra.mxu1 %v3776_v52  ;;  %v2495_v0 = vunpack.c.l.bf16 %v2431_v34  ;;  %v3067_v10 = vunpack.c.l.bf16 %v1534_v50  ;;  %v1272_v51 = vadd.f32 1.0, %v1194_v6  ;;  %v1274_v19 = vadd.f32 1.0, %v1196_v1  ;;  %v8525_v6 = vld [vmem:[#allocation124_spill] sm:$0xff] }
 0x2b9   :  { %v2570_v32 = vadd.f32 1.0, %v2492_v22  ;;  %v3220_v54 = vmul.f32 %v3142_v18, %v3064_v24  ;;  %v1275_v7 = vadd.f32 1.0, %v1197_v33  ;;  %v5159_v35 = vpop.eup %5158  ;;  %5160 = vtanh.f32 %v1954_v41  ;;  %v8524_v18 = vld [vmem:[#allocation12_spill] sm:$0xff] }
 0x2ba   :  { %v2573_v61 = vadd.f32 1.0, %v2495_v0  ;;  %v3223_v31 = vmul.f32 %v3145_v11, %v3067_v10  ;;  %v1337_v45 = vpack.c.bf16 %v1272_v51, %v1271_v39  ;;  %v7572_v37 = vmul.f32 1.442695, %v925_v63 }
 0x2bb   :  { %v2637_v56 = vpack.c.bf16 %v2570_v32, %v2570_v32  ;;  %v3287_v21 = vpack.c.bf16 %v3220_v54, %v3220_v54  ;;  %v1146_v29 = vpack.c.bf16 %v8523_v30, %v8523_v30  ;;  %v1148_v3 = vpack.c.bf16 %v8524_v18, %v8524_v18 }
 0x2bc   :  { %v2639_v57 = vpack.c.bf16 %v2573_v61, %v2573_v61  ;;  %v3289_v47 = vpack.c.bf16 %v3223_v31, %v3223_v31  ;;  %v1535_v44 = vunpack.c.h.bf16 %v1337_v45  ;;  %v753_v11 = vpack.c.bf16 %v7540_v8, %v7540_v8 }
 0x2bd   :  { %v2815_v17 = vunpack.c.h.bf16 %v2637_v56  ;;  %v2816_v14 = vunpack.c.l.bf16 %v2637_v56  ;;  %v758_v63 = vpack.c.bf16 %v7544_v13, %v7544_v13  ;;  %v1339_v4 = vpack.c.bf16 %v1275_v7, %v1274_v19 }
 0x2be   :  { %v2829_v41 = vunpack.c.h.bf16 %v2639_v57  ;;  %v2830_v62 = vunpack.c.l.bf16 %v2639_v57  ;;  %5162 = vrcp.f32 %v1535_v44  ;;  %v3350_v55 = vunpack.c.l.bf16 %v3287_v21 }
 0x2bf   :  { %5164 = vrcp.f32 %v2815_v17  ;;  %v8526_v38 = vunpack.c.l.bf16 %v8525_v6  ;;  %v844_v50 = vxor.u32 2147516416, %v8514_v20  ;;  %v5161_v34 = vpop.eup %5160  ;;  %v3353_v22 = vunpack.c.l.bf16 %v3289_v47  ;;  %v8528_v20 = vld [vmem:[#allocation122_spill] sm:$0xff] }
 0x2c0   :  { %5166 = vrcp.f32 %v2816_v14  ;;  %v7585_v24 = vpack.c.bf16 %v5157_v58, %v5155_v43  ;;  %v846_v8 = vxor.u32 2147516416, %v8517_v48  ;;  %v1536_v13 = vunpack.c.l.bf16 %v1337_v45 }
 0x2c1   :  { %v2324_v52 = vmul.f32 1.442695, %v8526_v38  ;;  %5168 = vrcp.f32 %v2829_v41  ;;  %v7588_v1 = vpack.c.bf16 %v5161_v34, %v5159_v35  ;;  %v8527_v33 = vunpack.c.h.bf16 %v8525_v6 }
 0x2c2   :  { %5170 = vrcp.f32 %v2830_v62  ;;  %v1549_v10 = vunpack.c.h.bf16 %v1339_v4  ;;  %v1550_v39 = vunpack.c.l.bf16 %v1339_v4  ;;  %v2147_v51 = vxor.u32 2147516416, %v753_v11 }
 0x2c3   :  { %v2326_v0 = vmul.f32 1.442695, %v8527_v33  ;;  %5172 = vtanh.f32 %v3350_v55  ;;  %v8529_v32 = vunpack.c.l.bf16 %v8528_v20  ;;  %v8530_v43 = vunpack.c.h.bf16 %v8528_v20 }
 0x2c4   :  { %v909_v19 = vunpack.c.l.bf16 %v844_v50  ;;  %v5163_v48 = vpop.eup %5162  ;;  %5174 = vtanh.f32 %v3353_v22  ;;  %v3146_v7 = vunpack.c.l.bf16 %v7585_v24  ;;  %v3147_v35 = vunpack.c.h.bf16 %v7585_v24 }
 0x2c5   :  { %v2330_v54 = vmul.f32 1.442695, %v8529_v32  ;;  %v2332_v58 = vmul.f32 1.442695, %v8530_v43  ;;  %v912_v61 = vunpack.c.l.bf16 %v846_v8  ;;  %v5165_v31 = vpop.eup %5164  ;;  %5176 = vrcp.f32 %v1536_v13 }
 0x2c6   :  { %v3149_v45 = vunpack.c.l.bf16 %v7588_v1  ;;  %v1952_v56 = vunpack.c.l.bf16 %v8513_v27  ;;  %v1955_v21 = vunpack.c.l.bf16 %v8516_v46  ;;  %v5167_v30 = vpop.eup %5166  ;;  %v2818_v57 = vmul.f32 %v5165_v31, %v6626_v25 }
 0x2c7   :  { %5178 = vrcp.f32 %v1549_v10  ;;  %v2149_v47 = vxor.u32 2147516416, %v758_v63  ;;  %v2212_v44 = vunpack.c.l.bf16 %v2147_v51  ;;  %v5169_v18 = vpop.eup %5168  ;;  %v2820_v17 = vmul.f32 %v5167_v30, %v6632_v16 }
 0x2c8   :  { %5180 = vrcp.f32 %v1550_v39  ;;  %v1025_v14 = vmul.f32 1.442695, %v909_v19  ;;  %v1219_v11 = vunpack.c.l.bf16 %v1146_v29  ;;  %v5171_v41 = vpop.eup %5170  ;;  %v2832_v62 = vmul.f32 %v5169_v18, %v6626_v25 }
 0x2c9   :  { %v1538_v4 = vmul.f32 %v5163_v48, %v6626_v25  ;;  %5182 = vpow2.f32 %v2324_v52  ;;  %v1031_v27 = vmul.f32 1.442695, %v912_v61  ;;  %v5173_v46 = vpop.eup %5172  ;;  %v2821_v55 = vpack.c.bf16 %v2818_v57, %v2820_v17 }
 0x2ca   :  { %v2834_v6 = vmul.f32 %v5171_v41, %v6632_v16  ;;  %5184 = vpow2.f32 %v2326_v0  ;;  %v1222_v63 = vunpack.c.l.bf16 %v1148_v3  ;;  %v5175_v38 = vpop.eup %5174  ;;  %v3495_v50 = vpack.c.bf16 %v5173_v46, %v5173_v46 }
 0x2cb   :  { %5186 = vpow2.f32 %v2330_v54  ;;  %v2215_v34 = vunpack.c.l.bf16 %v2149_v47  ;;  %v2328_v22 = vmul.f32 1.442695, %v2212_v44  ;;  %v5177_v8 = vpop.eup %5176  ;;  %v3497_v13 = vpack.c.bf16 %v5175_v38, %v5175_v38 }
 0x2cc   :  { %v2835_v29 = vpack.c.bf16 %v2832_v62, %v2834_v6  ;;  %5188 = vpow2.f32 %v2332_v58  ;;  %v1297_v33 = vadd.f32 1.0, %v1219_v11  ;;  %v3558_v39 = vunpack.c.l.bf16 %v2821_v55 }
 0x2cd   :  { %v5179_v10 = vpop.eup %5178  ;;  %v3636_v52 = vunpack.c.l.bf16 %v3495_v50  ;;  %v1540_v51 = vmul.f32 %v5177_v8, %v6632_v16  ;;  %5190 = vpow2.f32 %v1025_v14  ;;  %v3639_v0 = vunpack.c.l.bf16 %v3497_v13 }
 0x2ce   :  { %v5181_v20 = vpop.eup %5180  ;;  %v3561_v32 = vunpack.c.l.bf16 %v2835_v29  ;;  %v1552_v3 = vmul.f32 %v5179_v10, %v6626_v25  ;;  %5192 = vpow2.f32 %v1031_v27  ;;  %v3150_v31 = vunpack.c.h.bf16 %v7588_v1 }
 0x2cf   :  { %v5183_v54 = vpop.eup %5182  ;;  %v3714_v43 = vmul.f32 %v3636_v52, %v3558_v39  ;;  %v1541_v19 = vpack.c.bf16 %v1538_v4, %v1540_v51  ;;  %v1554_v48 = vmul.f32 %v5181_v20, %v6632_v16  ;;  %5194 = vtanh.f32 %v1952_v56 }
 0x2d0   :  { %v5185_v58 = vpop.eup %5184  ;;  %v3717_v61 = vmul.f32 %v3639_v0, %v3561_v32  ;;  %5196 = vtanh.f32 %v1955_v21  ;;  %v1300_v30 = vadd.f32 1.0, %v1222_v63  ;;  %v7610_v41 = vmul.f32 1.442695, %v2215_v34 }
 0x2d1   :  { %v5187_v57 = vpop.eup %5186  ;;  %v1555_v47 = vpack.c.bf16 %v1552_v3, %v1554_v48  ;;  %v2432_v44 = vpack.c.bf16 %v5185_v58, %v5183_v54  ;;  %v3068_v18 = vunpack.c.l.bf16 %v1541_v19  ;;  %v3069_v17 = vunpack.c.h.bf16 %v1541_v19 }
 0x2d2   :  { %v5189_v14 = vpop.eup %5188  ;;  %v3777_v11 = vpack.c.bf16 %v3717_v61, %v3714_v43  ;;  %5198 = vpow2.f32 %v2328_v22  ;;  %v7612_v62 = vpack.c.bf16 %v1297_v33, %v1297_v33  ;;  %v7620_v43 = vpack.c.bf16 %v1300_v30, %v1300_v30 }
 0x2d3   :  { %v5191_v4 = vpop.eup %5190  ;;  %v2434_v56 = vpack.c.bf16 %v5189_v14, %v5187_v57  ;;  %v2496_v27 = vunpack.c.l.bf16 %v2432_v44  ;;  %v2497_v46 = vunpack.c.h.bf16 %v2432_v44  ;;  %v3071_v55 = vunpack.c.l.bf16 %v1555_v47 }
 0x2d4   :  { %v5193_v6 = vpop.eup %5192  ;;  %4176 = vmatmul.bf16.gmra.mxu2 %v3777_v11  ;;  %v3072_v21 = vunpack.c.h.bf16 %v1555_v47  ;;  %v3224_v63 = vmul.f32 %v3146_v7, %v3068_v18  ;;  %v3225_v38 = vmul.f32 %v3147_v35, %v3069_v17  ;;  %v1130_v50 = vpack.c.bf16 %v5191_v4, %v5191_v4 }
 0x2d5   :  { %v5195_v22 = vpop.eup %5194  ;;  %v2499_v34 = vunpack.c.l.bf16 %v2434_v56  ;;  %v2500_v8 = vunpack.c.h.bf16 %v2434_v56  ;;  %v2574_v29 = vadd.f32 1.0, %v2496_v27  ;;  %v2575_v13 = vadd.f32 1.0, %v2497_v46 }
 0x2d6   :  { %v5197_v33 = vpop.eup %5196  ;;  %v3227_v10 = vmul.f32 %v3149_v45, %v3071_v55  ;;  %v3228_v39 = vmul.f32 %v3150_v31, %v3072_v21  ;;  %v3290_v52 = vpack.c.bf16 %v3225_v38, %v3224_v63  ;;  %v1132_v51 = vpack.c.bf16 %v5193_v6, %v5193_v6  ;;  %v8531_v45 = vld [vmem:[#allocation3_spill] sm:$0xff] }
 0x2d7   :  { %v2577_v20 = vadd.f32 1.0, %v2499_v34  ;;  %v2578_v32 = vadd.f32 1.0, %v2500_v8  ;;  %v2640_v0 = vpack.c.bf16 %v2575_v13, %v2574_v29  ;;  %v1195_v7 = vunpack.c.l.bf16 %v1130_v50  ;;  %v8532_v8 = vld [vmem:[#allocation2_spill] sm:$0xff] }
 0x2d8   :  { %v5199_v3 = vpop.eup %5198  ;;  %v3292_v24 = vpack.c.bf16 %v3228_v39, %v3227_v10  ;;  %v3354_v35 = vunpack.c.l.bf16 %v3290_v52  ;;  %v1198_v54 = vunpack.c.l.bf16 %v1132_v51  ;;  %v3355_v57 = vunpack.c.h.bf16 %v3290_v52 }
 0x2d9   :  { %v2642_v19 = vpack.c.bf16 %v2578_v32, %v2577_v20  ;;  %v2836_v48 = vunpack.c.h.bf16 %v2640_v0  ;;  %v2837_v58 = vunpack.c.l.bf16 %v2640_v0  ;;  %v1273_v61 = vadd.f32 1.0, %v1195_v7  ;;  %v8533_v20 = vld [vmem:[#allocation4_spill] sm:$0xff] }
 0x2da   :  { %5200 = vtanh.f32 %v3354_v35  ;;  %v1276_v1 = vadd.f32 1.0, %v1198_v54  ;;  %v2236_v31 = vunpack.c.l.bf16 %v8531_v45  ;;  %v3357_v17 = vunpack.c.l.bf16 %v3292_v24  ;;  %v8535_v35 = vld [vmem:[#allocation67_spill] sm:$0xff] }
 0x2db   :  { %5202 = vrcp.f32 %v2836_v48  ;;  %v2850_v47 = vunpack.c.h.bf16 %v2642_v19  ;;  %v2851_v44 = vunpack.c.l.bf16 %v2642_v19  ;;  %v1338_v18 = vpack.c.bf16 %v1273_v61, %v1273_v61  ;;  %v8537_v61 = vld [vmem:[#allocation5_spill] sm:$0xff] }
 0x2dc   :  { %5204 = vrcp.f32 %v2837_v58  ;;  %v1340_v14 = vpack.c.bf16 %v1276_v1, %v1276_v1  ;;  %v1654_v11 = vunpack.c.h.bf16 %v7612_v62  ;;  %v3358_v30 = vunpack.c.h.bf16 %v3292_v24  ;;  %v8534_v24 = vld [vmem:[#allocation69_spill] sm:$0xff] }
 0x2dd   :  { %5206 = vrcp.f32 %v2850_v47  ;;  %v2095_v4 = vpack.c.bf16 %v5195_v22, %v5195_v22  ;;  %v2433_v56 = vpack.c.bf16 %v5199_v3, %v5199_v3  ;;  %v1542_v27 = vunpack.c.h.bf16 %v1338_v18 }
 0x2de   :  { %5208 = vrcp.f32 %v2851_v44  ;;  %v2097_v46 = vpack.c.bf16 %v5197_v33, %v5197_v33  ;;  %v1655_v55 = vunpack.c.l.bf16 %v7612_v62  ;;  %v1543_v6 = vunpack.c.l.bf16 %v1338_v18 }
 0x2df   :  { %5210 = vtanh.f32 %v3355_v57  ;;  %v2498_v21 = vunpack.c.l.bf16 %v2433_v56  ;;  %v1668_v63 = vunpack.c.h.bf16 %v7620_v43  ;;  %v1556_v50 = vunpack.c.h.bf16 %v1340_v14 }
 0x2e0   :  { %v5201_v38 = vpop.eup %5200  ;;  %5212 = vtanh.f32 %v3357_v17  ;;  %v1669_v34 = vunpack.c.l.bf16 %v7620_v43  ;;  %v1976_v29 = vunpack.c.l.bf16 %v8532_v8  ;;  %v1557_v22 = vunpack.c.l.bf16 %v1340_v14 }
 0x2e1   :  { %v5203_v13 = vpop.eup %5202  ;;  %5214 = vtanh.f32 %v3358_v30  ;;  %v2576_v10 = vadd.f32 1.0, %v2498_v21  ;;  %v7628_v39 = vunpack.c.l.bf16 %v2095_v4  ;;  %v7631_v51 = vunpack.c.l.bf16 %v2097_v46 }
 0x2e2   :  { %v5205_v33 = vpop.eup %5204  ;;  %v2839_v52 = vmul.f32 %v5203_v13, %v6626_v25  ;;  %5216 = vrcp.f32 %v1542_v27  ;;  %v1979_v32 = vunpack.c.l.bf16 %v8533_v20  ;;  %v8536_v54 = vrot.slane %v8535_v35, 4 }
 0x2e3   :  { %v5207_v0 = vpop.eup %5206  ;;  %v2841_v7 = vmul.f32 %v5205_v33, %v6632_v16  ;;  %5218 = vrcp.f32 %v1543_v6  ;;  %v2641_v3 = vpack.c.bf16 %v2576_v10, %v2576_v10  ;;  %v2239_v57 = vunpack.c.l.bf16 %v8537_v61  ;;  %v8538_v61 = vld [vmem:[#allocation75_spill] sm:$0xff] }
 0x2e4   :  { %v7639_v19 = vsel %vm1835_vm0, %v8536_v54, %v8534_v24  ;;  %v5209_v48 = vpop.eup %5208  ;;  %v2853_v58 = vmul.f32 %v5207_v0, %v6626_v25  ;;  %5220 = vrcp.f32 %v1556_v50  ;;  %v7643_v1 = vmul.f32 1.442695, %v2236_v31 }
 0x2e5   :  { %v5211_v45 = vpop.eup %5210  ;;  %v2842_v47 = vpack.c.bf16 %v2839_v52, %v2841_v7  ;;  %v2855_v44 = vmul.f32 %v5209_v48, %v6632_v16  ;;  %5222 = vrcp.f32 %v1557_v22  ;;  %v2843_v18 = vunpack.c.h.bf16 %v2641_v3 }
 0x2e6   :  { %v5213_v17 = vpop.eup %5212  ;;  %v3498_v14 = vpack.c.bf16 %v5211_v45, %v5201_v38  ;;  %5224 = vpow2.f32 %v7610_v41  ;;  %v2844_v30 = vunpack.c.l.bf16 %v2641_v3  ;;  %v1956_v4 = vunpack.c.l.bf16 %v7639_v19  ;;  %v8539_v45 = vld [vmem:[#allocation76_spill] sm:$0xff] }
 0x2e7   :  { %v5215_v56 = vpop.eup %5214  ;;  %v2856_v27 = vpack.c.bf16 %v2853_v58, %v2855_v44  ;;  %v3562_v46 = vunpack.c.l.bf16 %v2842_v47  ;;  %v3563_v6 = vunpack.c.h.bf16 %v2842_v47  ;;  %5226 = vrcp.f32 %v2843_v18 }
 0x2e8   :  { %v5217_v31 = vpop.eup %5216  ;;  %v3500_v21 = vpack.c.bf16 %v5215_v56, %v5213_v17  ;;  %v3640_v50 = vunpack.c.l.bf16 %v3498_v14  ;;  %v3641_v13 = vunpack.c.h.bf16 %v3498_v14  ;;  %5228 = vrcp.f32 %v2844_v30 }
 0x2e9   :  { %v5219_v10 = vpop.eup %5218  ;;  %v3565_v22 = vunpack.c.l.bf16 %v2856_v27  ;;  %v3566_v33 = vunpack.c.h.bf16 %v2856_v27  ;;  %v1545_v38 = vmul.f32 %v5217_v31, %v6626_v25  ;;  %5230 = vrcp.f32 %v1654_v11 }
 0x2ea   :  { %v5221_v41 = vpop.eup %5220  ;;  %v3643_v52 = vunpack.c.l.bf16 %v3500_v21  ;;  %v3718_v0 = vmul.f32 %v3640_v50, %v3562_v46  ;;  %v3644_v7 = vunpack.c.h.bf16 %v3500_v21  ;;  %v3719_v3 = vmul.f32 %v3641_v13, %v3563_v6 }
 0x2eb   :  { %v5223_v54 = vpop.eup %5222  ;;  %v1547_v48 = vmul.f32 %v5219_v10, %v6632_v16  ;;  %v1559_v58 = vmul.f32 %v5221_v41, %v6626_v25  ;;  %5232 = vrcp.f32 %v1655_v55  ;;  %v1133_v47 = vpack.c.bf16 %v8539_v45, %v8538_v61 }
 0x2ec   :  { %v5225_v44 = vpop.eup %5224  ;;  %v3721_v18 = vmul.f32 %v3643_v52, %v3565_v22  ;;  %v3722_v17 = vmul.f32 %v3644_v7, %v3566_v33  ;;  %v1561_v11 = vmul.f32 %v5223_v54, %v6632_v16  ;;  %5234 = vrcp.f32 %v1668_v63  ;;  %v8540_v52 = vld [vmem:[#allocation64_spill] sm:$0xff] }
 0x2ed   :  { %v5227_v14 = vpop.eup %5226  ;;  %v1548_v30 = vpack.c.bf16 %v1545_v38, %v1547_v48  ;;  %v2435_v56 = vpack.c.bf16 %v5225_v44, %v5225_v44  ;;  %5236 = vrcp.f32 %v1669_v34  ;;  %v2382_v27 = vmul.f32 1.442695, %v2239_v57 }
 0x2ee   :  { %v5229_v62 = vpop.eup %5228  ;;  %v3778_v55 = vpack.c.bf16 %v3721_v18, %v3718_v0  ;;  %v3779_v46 = vpack.c.bf16 %v3722_v17, %v3719_v3  ;;  %v1562_v6 = vpack.c.bf16 %v1559_v58, %v1561_v11  ;;  %v1199_v31 = vunpack.c.l.bf16 %v1133_v47 }
 0x2ef   :  { %v5231_v21 = vpop.eup %5230  ;;  %v2501_v50 = vunpack.c.l.bf16 %v2435_v56  ;;  %v2846_v13 = vmul.f32 %v5227_v14, %v6626_v25  ;;  %v3070_v10 = vunpack.c.l.bf16 %v1548_v30  ;;  %5238 = vtanh.f32 %v1976_v29 }
 0x2f0   :  { %4033 = vmatmul.bf16.gmra.mxu0 %v3778_v55  ;;  %4107 = vmatmul.bf16.gmra.mxu1 %v3779_v46  ;;  %v3073_v63 = vunpack.c.l.bf16 %v1562_v6  ;;  %v1657_v43 = vmul.f32 %v5231_v21, %v6626_v25  ;;  %5240 = vtanh.f32 %v1979_v32  ;;  %v1200_v34 = vunpack.c.h.bf16 %v1133_v47 }
 0x2f1   :  { %v5233_v57 = vpop.eup %5232  ;;  %v2579_v22 = vadd.f32 1.0, %v2501_v50  ;;  %v2848_v33 = vmul.f32 %v5229_v62, %v6632_v16  ;;  %v3226_v38 = vmul.f32 %v7628_v39, %v3070_v10  ;;  %5242 = vpow2.f32 %v7643_v1 }
 0x2f2   :  { %v5235_v41 = vpop.eup %5234  ;;  %v3229_v8 = vmul.f32 %v7631_v51, %v3073_v63  ;;  %v1659_v29 = vmul.f32 %v5233_v57, %v6632_v16  ;;  %5244 = vpow2.f32 %v2382_v27  ;;  %v7673_v0 = vadd.f32 %v7484_v12, %v8540_v52 }
 0x2f3   :  { %v5237_v20 = vpop.eup %5236  ;;  %v2643_v32 = vpack.c.bf16 %v2579_v22, %v2579_v22  ;;  %v3291_v7 = vpack.c.bf16 %v3226_v38, %v3226_v38  ;;  %v1671_v3 = vmul.f32 %v5235_v41, %v6626_v25  ;;  %v1277_v54 = vadd.f32 1.0, %v1199_v31 }
 0x2f4   :  { %v3293_v48 = vpack.c.bf16 %v3229_v8, %v3229_v8  ;;  %v1660_v39 = vpack.c.bf16 %v1657_v43, %v1659_v29  ;;  %v1673_v1 = vmul.f32 %v5237_v20, %v6632_v16  ;;  %v1278_v58 = vadd.f32 1.0, %v1200_v34 }
 0x2f5   :  { %v5239_v61 = vpop.eup %5238  ;;  %v2849_v51 = vpack.c.bf16 %v2846_v13, %v2848_v33  ;;  %v2857_v45 = vunpack.c.h.bf16 %v2643_v32  ;;  %v2858_v47 = vunpack.c.l.bf16 %v2643_v32  ;;  %v3356_v44 = vunpack.c.l.bf16 %v3291_v7 }
 0x2f6   :  { %v5241_v18 = vpop.eup %5240  ;;  %v3359_v17 = vunpack.c.l.bf16 %v3293_v48  ;;  %v1674_v12 = vpack.c.bf16 %v1671_v3, %v1673_v1  ;;  %v2111_v11 = vpack.c.bf16 %v5239_v61, %v5239_v61  ;;  %v3094_v14 = vunpack.c.l.bf16 %v1660_v39 }
 0x2f7   :  { %v5243_v30 = vpop.eup %5242  ;;  %5246 = vrcp.f32 %v2857_v45  ;;  %v2113_v56 = vpack.c.bf16 %v5241_v18, %v5241_v18  ;;  %v1135_v27 = vpack.c.bf16 %v6925_v42, %v6920_v2  ;;  %v1341_v62 = vpack.c.bf16 %v1278_v58, %v1277_v54 }
 0x2f8   :  { %v5245_v55 = vpop.eup %5244  ;;  %5248 = vrcp.f32 %v2858_v47  ;;  %v2449_v46 = vpack.c.bf16 %v5243_v30, %v5243_v30  ;;  %v3097_v6 = vunpack.c.l.bf16 %v1674_v12  ;;  %v3172_v31 = vunpack.c.l.bf16 %v2111_v11 }
 0x2f9   :  { %5250 = vtanh.f32 %v3356_v44  ;;  %v3564_v21 = vunpack.c.l.bf16 %v2849_v51  ;;  %v2451_v50 = vpack.c.bf16 %v5245_v55, %v5245_v55  ;;  %v3175_v13 = vunpack.c.l.bf16 %v2113_v56 }
 0x2fa   :  { %5252 = vtanh.f32 %v3359_v17  ;;  %v2522_v10 = vunpack.c.l.bf16 %v2449_v46  ;;  %v3250_v63 = vmul.f32 %v3172_v31, %v3094_v14  ;;  %v1202_v43 = vunpack.c.l.bf16 %v1135_v27 }
 0x2fb   :  { %v2525_v34 = vunpack.c.l.bf16 %v2451_v50  ;;  %v3253_v57 = vmul.f32 %v3175_v13, %v3097_v6  ;;  %v1203_v22 = vunpack.c.h.bf16 %v1135_v27  ;;  %v1563_v33 = vunpack.c.h.bf16 %v1341_v62 }
 0x2fc   :  { %v2600_v38 = vadd.f32 1.0, %v2522_v10  ;;  %v3307_v2 = vpack.c.bf16 %v3250_v63, %v3250_v63  ;;  %v1280_v42 = vadd.f32 1.0, %v1202_v43  ;;  %v1564_v41 = vunpack.c.l.bf16 %v1341_v62 }
 0x2fd   :  { %v5247_v8 = vpop.eup %5246  ;;  %v2603_v29 = vadd.f32 1.0, %v2525_v34  ;;  %v3309_v52 = vpack.c.bf16 %v3253_v57, %v3253_v57  ;;  %v1281_v20 = vadd.f32 1.0, %v1203_v22  ;;  %5254 = vrcp.f32 %v1563_v33 }
 0x2fe   :  { %v5249_v32 = vpop.eup %5248  ;;  %v2860_v7 = vmul.f32 %v5247_v8, %v6626_v25  ;;  %v2657_v3 = vpack.c.bf16 %v2600_v38, %v2600_v38  ;;  %v3380_v54 = vunpack.c.l.bf16 %v3307_v2  ;;  %5256 = vrcp.f32 %v1564_v41  ;;  %v8542_v2 = vld [vmem:[#allocation68_spill] sm:$0xff] }
 0x2ff   :  { %v5251_v48 = vpop.eup %5250  ;;  %v2862_v39 = vmul.f32 %v5249_v32, %v6632_v16  ;;  %v2659_v1 = vpack.c.bf16 %v2603_v29, %v2603_v29  ;;  %v1343_v58 = vpack.c.bf16 %v1281_v20, %v1280_v42  ;;  %5258 = vtanh.f32 %v1956_v4 }
 0x300   :  { %v5253_v61 = vpop.eup %5252  ;;  %v3499_v51 = vpack.c.bf16 %v5251_v48, %v5251_v48  ;;  %v2955_v45 = vunpack.c.h.bf16 %v2657_v3  ;;  %v2956_v47 = vunpack.c.l.bf16 %v2657_v3  ;;  %5260 = vtanh.f32 %v3380_v54 }
 0x301   :  { %v2863_v44 = vpack.c.bf16 %v2860_v7, %v2862_v39  ;;  %v3501_v18 = vpack.c.bf16 %v5253_v61, %v5253_v61  ;;  %v2969_v17 = vunpack.c.h.bf16 %v2659_v1  ;;  %v2970_v12 = vunpack.c.l.bf16 %v2659_v1 }
 0x302   :  { %v3642_v11 = vunpack.c.l.bf16 %v3499_v51  ;;  %5262 = vrcp.f32 %v2955_v45  ;;  %v3383_v14 = vunpack.c.l.bf16 %v3309_v52  ;;  %v1577_v30 = vunpack.c.h.bf16 %v1343_v58 }
 0x303   :  { %v5255_v56 = vpop.eup %5254  ;;  %v3567_v27 = vunpack.c.l.bf16 %v2863_v44  ;;  %v3645_v62 = vunpack.c.l.bf16 %v3501_v18  ;;  %5264 = vrcp.f32 %v2956_v47  ;;  %v8541_v4 = vrot.slane %v6883_v15, 4 }
 0x304   :  { %v5257_v46 = vpop.eup %5256  ;;  %v3720_v6 = vmul.f32 %v3642_v11, %v3564_v21  ;;  %5266 = vrcp.f32 %v2969_v17  ;;  %v1578_v31 = vunpack.c.l.bf16 %v1343_v58  ;;  %v1957_v50 = vunpack.c.h.bf16 %v7639_v19 }
 0x305   :  { %v1851_v55 = vsel %vm1835_vm0, %v8541_v4, %v6897_v23  ;;  %v5259_v13 = vpop.eup %5258  ;;  %v3723_v10 = vmul.f32 %v3645_v62, %v3567_v27  ;;  %5268 = vrcp.f32 %v2970_v12  ;;  %v1566_v63 = vmul.f32 %v5255_v56, %v6626_v25 }
 0x306   :  { %v1568_v43 = vmul.f32 %v5257_v46, %v6632_v16  ;;  %v5261_v34 = vpop.eup %5260  ;;  %5270 = vtanh.f32 %v3383_v14  ;;  %v1959_v57 = vunpack.c.l.bf16 %v1851_v55  ;;  %v1960_v22 = vunpack.c.h.bf16 %v1851_v55 }
 0x307   :  { %v763_v33 = vpack.c.bf16 %v7673_v0, %v7673_v0  ;;  %v3780_v38 = vpack.c.bf16 %v3723_v10, %v3720_v6  ;;  %v3515_v21 = vpack.c.bf16 %v5261_v34, %v5261_v34  ;;  %5272 = vrcp.f32 %v1577_v30 }
 0x308   :  { %v8543_v42 = vunpack.c.l.bf16 %v8542_v2  ;;  %v5263_v41 = vpop.eup %5262  ;;  %5274 = vrcp.f32 %v1578_v31  ;;  %v8544_v8 = vunpack.c.h.bf16 %v8542_v2  ;;  %v8545_v52 = vunpack.c.l.bf16 %v6888_v49 }
 0x309   :  { %v848_v32 = vxor.u32 2147516416, %v8535_v35  ;;  %v5265_v7 = vpop.eup %5264  ;;  %4181 = vmatmul.bf16.gmra.mxu2 %v3780_v38  ;;  %v2958_v3 = vmul.f32 %v5263_v41, %v6626_v25  ;;  %v7700_v54 = vpack.c.bf16 %v1566_v63, %v1568_v43  ;;  %5276 = vtanh.f32 %v1957_v50  ;;  %v7709_v35 = vld [vmem:[%s8071_s2 + $0x8] ss:$0 sm:$0xff] }
 0x30a   :  { %v2336_v19 = vmul.f32 1.442695, %v8543_v42  ;;  %v2338_v29 = vmul.f32 1.442695, %v8544_v8  ;;  %v2342_v20 = vmul.f32 1.442695, %v8545_v52  ;;  %v5267_v39 = vpop.eup %5266  ;;  %v2960_v1 = vmul.f32 %v5265_v7, %v6632_v16 }
 0x30b   :  { %v850_v48 = vxor.u32 2147516416, %v6883_v15  ;;  %5278 = vtanh.f32 %v1959_v57  ;;  %v8546_v58 = vunpack.c.h.bf16 %v6888_v49  ;;  %v7713_v51 = vadd.f32 %v7709_v35, %v6893_v26  ;;  %v5269_v45 = vpop.eup %5268 }
 0x30c   :  { %v2972_v47 = vmul.f32 %v5267_v39, %v6626_v25  ;;  %v3666_v15 = vunpack.c.l.bf16 %v3515_v21  ;;  %5280 = vtanh.f32 %v1960_v22  ;;  %v915_v44 = vunpack.c.l.bf16 %v848_v32  ;;  %v5271_v18 = vpop.eup %5270 }
 0x30d   :  { %v2344_v61 = vmul.f32 1.442695, %v8546_v58  ;;  %v2961_v17 = vpack.c.bf16 %v2958_v3, %v2960_v1  ;;  %v2974_v49 = vmul.f32 %v5269_v45, %v6632_v16  ;;  %5282 = vpow2.f32 %v2336_v19  ;;  %v5273_v11 = vpop.eup %5272 }
 0x30e   :  { %v918_v12 = vunpack.c.l.bf16 %v850_v48  ;;  %v3517_v14 = vpack.c.bf16 %v5271_v18, %v5271_v18  ;;  %5284 = vpow2.f32 %v2338_v29  ;;  %v3074_v30 = vunpack.c.l.bf16 %v7700_v54  ;;  %v5275_v26 = vpop.eup %5274 }
 0x30f   :  { %v1037_v56 = vmul.f32 1.442695, %v915_v44  ;;  %v2975_v27 = vpack.c.bf16 %v2972_v47, %v2974_v49  ;;  %v3588_v62 = vunpack.c.l.bf16 %v2961_v17  ;;  %v1580_v4 = vmul.f32 %v5273_v11, %v6626_v25  ;;  %v5277_v55 = vpop.eup %5276 }
 0x310   :  { %5286 = vpow2.f32 %v2342_v20  ;;  %v3669_v46 = vunpack.c.l.bf16 %v3517_v14  ;;  %v1582_v6 = vmul.f32 %v5275_v26, %v6632_v16  ;;  %v1043_v31 = vmul.f32 1.442695, %v918_v12 }
 0x311   :  { %5288 = vpow2.f32 %v2344_v61  ;;  %v5279_v50 = vpop.eup %5278  ;;  %v3591_v10 = vunpack.c.l.bf16 %v2975_v27  ;;  %v3744_v63 = vmul.f32 %v3666_v15, %v3588_v62  ;;  %v2098_v43 = vpack.c.bf16 %v5277_v55, %v5259_v13 }
 0x312   :  { %5290 = vpow2.f32 %v1037_v56  ;;  %v5281_v34 = vpop.eup %5280  ;;  %v1583_v57 = vpack.c.bf16 %v1580_v4, %v1582_v6  ;;  %v3075_v22 = vunpack.c.h.bf16 %v7700_v54  ;;  %v1958_v38 = vunpack.c.l.bf16 %v8534_v24 }
 0x313   :  { %5292 = vpow2.f32 %v1043_v31  ;;  %v5283_v21 = vpop.eup %5282  ;;  %v3747_v2 = vmul.f32 %v3669_v46, %v3591_v10  ;;  %v2100_v42 = vpack.c.bf16 %v5281_v34, %v5279_v50  ;;  %v768_v19 = vpack.c.bf16 %v7713_v51, %v7713_v51 }
 0x314   :  { %v1961_v41 = vunpack.c.l.bf16 %v6897_v23  ;;  %v5285_v8 = vpop.eup %5284  ;;  %v3077_v29 = vunpack.c.l.bf16 %v1583_v57  ;;  %v3078_v52 = vunpack.c.h.bf16 %v1583_v57  ;;  %v3152_v13 = vunpack.c.l.bf16 %v2098_v43 }
 0x315   :  { %v3153_v20 = vunpack.c.h.bf16 %v2098_v43  ;;  %v3792_v7 = vpack.c.bf16 %v3747_v2, %v3744_v63  ;;  %v2436_v3 = vpack.c.bf16 %v5285_v8, %v5283_v21  ;;  %v3155_v54 = vunpack.c.l.bf16 %v2100_v42 }
 0x316   :  { %v5287_v32 = vpop.eup %5286  ;;  %v7728_v24 = vxor.u32 2147516416, %v763_v33  ;;  %v3156_v39 = vunpack.c.h.bf16 %v2100_v42  ;;  %v3230_v1 = vmul.f32 %v3152_v13, %v3074_v30  ;;  %5294 = vtanh.f32 %v1958_v38 }
 0x317   :  { %v5289_v48 = vpop.eup %5288  ;;  %v3231_v58 = vmul.f32 %v3153_v20, %v3075_v22  ;;  %4201 = vmatmul.bf16.vlgmr.msra.gmra.mxu3 %v3792_v7  ;;  %v2502_v51 = vunpack.c.l.bf16 %v2436_v3  ;;  %v2503_v45 = vunpack.c.h.bf16 %v2436_v3  ;;  %v3233_v47 = vmul.f32 %v3155_v54, %v3077_v29 }
 0x318   :  { %v5291_v23 = vpop.eup %5290  ;;  %v2438_v61 = vpack.c.bf16 %v5289_v48, %v5287_v32  ;;  %v3234_v44 = vmul.f32 %v3156_v39, %v3078_v52  ;;  %5296 = vtanh.f32 %v1961_v41  ;;  %v2153_v31 = vxor.u32 2147516416, %v768_v19  ;;  %v8547_v52 = vld [vmem:[#allocation7_spill] sm:$0xff]  ;;  %v8548_v39 = vld [vmem:[#allocation78_spill] sm:$0xff] }
 0x319   :  { %v5293_v15 = vpop.eup %5292  ;;  %v3294_v18 = vpack.c.bf16 %v3231_v58, %v3230_v1  ;;  %v1134_v17 = vpack.c.bf16 %v5291_v23, %v5291_v23  ;;  %v2580_v33 = vadd.f32 1.0, %v2502_v51  ;;  %v2581_v12 = vadd.f32 1.0, %v2503_v45  ;;  %v8549_v51 = vld [vmem:[#allocation79_spill] sm:$0xff] }
 0x31a   :  { %v2505_v49 = vunpack.c.l.bf16 %v2438_v61  ;;  %v2506_v0 = vunpack.c.h.bf16 %v2438_v61  ;;  %v3296_v11 = vpack.c.bf16 %v3234_v44, %v3233_v47  ;;  %v1136_v56 = vpack.c.bf16 %v5293_v15, %v5293_v15 }
 0x31b   :  { %v3360_v14 = vunpack.c.l.bf16 %v3294_v18  ;;  %v3361_v30 = vunpack.c.h.bf16 %v3294_v18  ;;  %v2644_v62 = vpack.c.bf16 %v2581_v12, %v2580_v33  ;;  %v1201_v4 = vunpack.c.l.bf16 %v1134_v17  ;;  %v8550_v33 = vld [vmem:[#allocation10_spill] sm:$0xff] }
 0x31c   :  { %v2583_v26 = vadd.f32 1.0, %v2505_v49  ;;  %v2584_v27 = vadd.f32 1.0, %v2506_v0  ;;  %v5295_v55 = vpop.eup %5294  ;;  %v3363_v46 = vunpack.c.l.bf16 %v3296_v11  ;;  %v1204_v6 = vunpack.c.l.bf16 %v1136_v56 }
 0x31d   :  { %5298 = vtanh.f32 %v3360_v14  ;;  %v2864_v10 = vunpack.c.h.bf16 %v2644_v62  ;;  %v2865_v63 = vunpack.c.l.bf16 %v2644_v62  ;;  %v1279_v34 = vadd.f32 1.0, %v1201_v4 }
 0x31e   :  { %v2646_v50 = vpack.c.bf16 %v2584_v27, %v2583_v26  ;;  %5300 = vtanh.f32 %v3361_v30  ;;  %v7730_v43 = vpop.eup %5296  ;;  %v1282_v57 = vadd.f32 1.0, %v1204_v6  ;;  %v2218_v22 = vunpack.c.l.bf16 %v7728_v24 }
 0x31f   :  { %5302 = vtanh.f32 %v3363_v46  ;;  %v3364_v2 = vunpack.c.h.bf16 %v3296_v11  ;;  %v1342_v42 = vpack.c.bf16 %v1279_v34, %v1279_v34  ;;  %v2221_v8 = vunpack.c.l.bf16 %v2153_v31 }
 0x320   :  { %5304 = vrcp.f32 %v2864_v10  ;;  %v2878_v38 = vunpack.c.h.bf16 %v2646_v50  ;;  %v2879_v21 = vunpack.c.l.bf16 %v2646_v50  ;;  %v1344_v41 = vpack.c.bf16 %v1282_v57, %v1282_v57 }
 0x321   :  { %5306 = vrcp.f32 %v2865_v63  ;;  %v2099_v19 = vpack.c.bf16 %v5295_v55, %v5295_v55  ;;  %v2101_v29 = vpack.c.bf16 %v7730_v43, %v7730_v43  ;;  %v661_v13 = vadd.f32 %v7709_v35, %v8547_v52  ;;  %v8551_v63 = vld [vmem:[#allocation83_spill] sm:$0xff] }
 0x322   :  { %5308 = vrcp.f32 %v2878_v38  ;;  %v1570_v32 = vunpack.c.h.bf16 %v1342_v42  ;;  %v1571_v7 = vunpack.c.l.bf16 %v1342_v42  ;;  %v1584_v3 = vunpack.c.h.bf16 %v1344_v41 }
 0x323   :  { %v5299_v20 = vpop.eup %5298  ;;  %5310 = vrcp.f32 %v2879_v21  ;;  %v1585_v24 = vunpack.c.l.bf16 %v1344_v41  ;;  %v2340_v48 = vmul.f32 1.442695, %v2218_v22  ;;  %v7739_v1 = vadd.f32 %v7709_v35, %v8548_v39 }
 0x324   :  { %v5301_v54 = vpop.eup %5300  ;;  %5312 = vtanh.f32 %v3364_v2  ;;  %v864_v61 = vxor.u32 2147516416, %v8395_v60  ;;  %v866_v45 = vxor.u32 2147516416, %v8549_v51  ;;  %v2346_v15 = vmul.f32 1.442695, %v2221_v8 }
 0x325   :  { %v5303_v58 = vpop.eup %5302  ;;  %v3502_v23 = vpack.c.bf16 %v5301_v54, %v5299_v20  ;;  %5314 = vrcp.f32 %v1570_v32  ;;  %v7743_v44 = vunpack.c.l.bf16 %v2099_v19  ;;  %v803_v18 = vpack.c.bf16 %v661_v13, %v661_v13 }
 0x326   :  { %v5305_v47 = vpop.eup %5304  ;;  %5316 = vrcp.f32 %v1571_v7  ;;  %v808_v0 = vpack.c.bf16 %v7739_v1, %v7739_v1  ;;  %v1982_v12 = vunpack.c.l.bf16 %v8550_v33  ;;  %v939_v14 = vunpack.c.l.bf16 %v864_v61 }
 0x327   :  { %v5307_v17 = vpop.eup %5306  ;;  %v2867_v49 = vmul.f32 %v5305_v47, %v6626_v25  ;;  %5318 = vrcp.f32 %v1584_v3  ;;  %v942_v30 = vunpack.c.l.bf16 %v866_v45  ;;  %v3646_v27 = vunpack.c.l.bf16 %v3502_v23 }
 0x328   :  { %v5309_v11 = vpop.eup %5308  ;;  %v2869_v60 = vmul.f32 %v5307_v17, %v6632_v16  ;;  %5320 = vrcp.f32 %v1585_v24  ;;  %v3647_v62 = vunpack.c.h.bf16 %v3502_v23  ;;  %v1085_v6 = vmul.f32 1.442695, %v939_v14 }
 0x329   :  { %v5311_v56 = vpop.eup %5310  ;;  %v2881_v26 = vmul.f32 %v5309_v11, %v6626_v25  ;;  %5322 = vpow2.f32 %v2340_v48  ;;  %v1091_v10 = vmul.f32 1.442695, %v942_v30  ;;  %v1985_v34 = vunpack.c.l.bf16 %v8551_v63 }
 0x32a   :  { %v5313_v4 = vpop.eup %5312  ;;  %v2870_v55 = vpack.c.bf16 %v2867_v49, %v2869_v60  ;;  %v2883_v46 = vmul.f32 %v5311_v56, %v6632_v16  ;;  %5324 = vpow2.f32 %v2346_v15  ;;  %v2167_v57 = vxor.u32 2147516416, %v803_v18 }
 0x32b   :  { %v5315_v31 = vpop.eup %5314  ;;  %v3504_v50 = vpack.c.bf16 %v5313_v4, %v5303_v58  ;;  %5326 = vtanh.f32 %v1982_v12  ;;  %v3157_v30 = vunpack.c.l.bf16 %v2101_v29 }
 0x32c   :  { %v5317_v22 = vpop.eup %5316  ;;  %v2884_v38 = vpack.c.bf16 %v2881_v26, %v2883_v46  ;;  %v3568_v21 = vunpack.c.l.bf16 %v2870_v55  ;;  %v1573_v2 = vmul.f32 %v5315_v31, %v6626_v25  ;;  %5328 = vpow2.f32 %v1085_v6 }
 0x32d   :  { %v5319_v42 = vpop.eup %5318  ;;  %v3649_v41 = vunpack.c.l.bf16 %v3504_v50  ;;  %v3650_v8 = vunpack.c.h.bf16 %v3504_v50  ;;  %v1575_v19 = vmul.f32 %v5317_v22, %v6632_v16  ;;  %v3569_v32 = vunpack.c.h.bf16 %v2870_v55 }
 0x32e   :  { %v5321_v52 = vpop.eup %5320  ;;  %v3571_v13 = vunpack.c.l.bf16 %v2884_v38  ;;  %v3724_v20 = vmul.f32 %v3646_v27, %v3568_v21  ;;  %v3572_v7 = vunpack.c.h.bf16 %v2884_v38  ;;  %v1587_v24 = vmul.f32 %v5319_v42, %v6626_v25 }
 0x32f   :  { %v5323_v3 = vpop.eup %5322  ;;  %v1576_v54 = vpack.c.bf16 %v1573_v2, %v1575_v19  ;;  %v1589_v48 = vmul.f32 %v5321_v52, %v6632_v16  ;;  %5330 = vpow2.f32 %v1091_v10  ;;  %v3725_v23 = vmul.f32 %v3647_v62, %v3569_v32  ;;  %v8553_v32 = vld [vmem:[#allocation99_spill] sm:$0xff] }
 0x330   :  { %v5325_v39 = vpop.eup %5324  ;;  %v3727_v58 = vmul.f32 %v3649_v41, %v3571_v13  ;;  %v3728_v61 = vmul.f32 %v3650_v8, %v3572_v7  ;;  %v2437_v51 = vpack.c.bf16 %v5323_v3, %v5323_v3  ;;  %v2242_v18 = vunpack.c.l.bf16 %v2167_v57 }
 0x331   :  { %v1590_v45 = vpack.c.bf16 %v1587_v24, %v1589_v48  ;;  %v2439_v47 = vpack.c.bf16 %v5325_v39, %v5325_v39  ;;  %v3076_v15 = vunpack.c.l.bf16 %v1576_v54  ;;  %v5327_v17 = vpop.eup %5326  ;;  %5332 = vtanh.f32 %v1985_v34 }
 0x332   :  { %v3781_v49 = vpack.c.bf16 %v3727_v58, %v3724_v20  ;;  %v3782_v33 = vpack.c.bf16 %v3728_v61, %v3725_v23  ;;  %v2504_v12 = vunpack.c.l.bf16 %v2437_v51  ;;  %v5329_v11 = vpop.eup %5328  ;;  %5334 = vpow2.f32 %v7572_v37  ;;  %v8552_v20 = vld [vmem:[#allocation97_spill] sm:$0xff] }
 0x333   :  { %v2507_v60 = vunpack.c.l.bf16 %v2439_v47  ;;  %v3079_v14 = vunpack.c.l.bf16 %v1590_v45  ;;  %v3232_v56 = vmul.f32 %v7743_v44, %v3076_v15  ;;  %v1150_v27 = vpack.c.bf16 %v5329_v11, %v5329_v11 }
 0x334   :  { %4038 = vmatmul.bf16.gmra.mxu0 %v3781_v49  ;;  %4112 = vmatmul.bf16.gmra.mxu1 %v3782_v33  ;;  %v2582_v26 = vadd.f32 1.0, %v2504_v12  ;;  %v2388_v62 = vmul.f32 1.442695, %v2242_v18  ;;  %v2169_v31 = vxor.u32 2147516416, %v808_v0  ;;  %v2115_v63 = vpack.c.bf16 %v5327_v17, %v5327_v17  ;;  %v8554_v18 = vld [vmem:[#allocation93_spill] sm:$0xff] }
 0x335   :  { %v5331_v4 = vpop.eup %5330  ;;  %v2585_v55 = vadd.f32 1.0, %v2507_v60  ;;  %v3235_v46 = vmul.f32 %v3157_v30, %v3079_v14  ;;  %v3295_v6 = vpack.c.bf16 %v3232_v56, %v3232_v56  ;;  %v1225_v29 = vunpack.c.l.bf16 %v1150_v27 }
 0x336   :  { %v2645_v50 = vpack.c.bf16 %v2582_v26, %v2582_v26  ;;  %v1152_v43 = vpack.c.bf16 %v5331_v4, %v5331_v4  ;;  %5336 = vpow2.f32 %v2388_v62  ;;  %v2245_v41 = vunpack.c.l.bf16 %v2169_v31 }
 0x337   :  { %v2647_v44 = vpack.c.bf16 %v2585_v55, %v2585_v55  ;;  %v3297_v10 = vpack.c.bf16 %v3235_v46, %v3235_v46  ;;  %v3362_v37 = vunpack.c.l.bf16 %v3295_v6  ;;  %v5333_v34 = vpop.eup %5332  ;;  %v1303_v21 = vadd.f32 1.0, %v1225_v29  ;;  %v8557_v55 = vld [vmem:[#allocation81_spill] sm:$0xff] }
 0x338   :  { %v2871_v57 = vunpack.c.h.bf16 %v2645_v50  ;;  %v2872_v22 = vunpack.c.l.bf16 %v2645_v50  ;;  %v1228_v38 = vunpack.c.l.bf16 %v1152_v43  ;;  %v7765_v8 = vpop.eup %5334  ;;  %v2228_v52 = vunpack.c.l.bf16 %v7448_v53 }
 0x339   :  { %v2885_v2 = vunpack.c.h.bf16 %v2647_v44  ;;  %v2886_v42 = vunpack.c.l.bf16 %v2647_v44  ;;  %5338 = vtanh.f32 %v3362_v37  ;;  %v3365_v1 = vunpack.c.l.bf16 %v3297_v10 }
 0x33a   :  { %5340 = vrcp.f32 %v2871_v57  ;;  %v1306_v0 = vadd.f32 1.0, %v1228_v38  ;;  %v1358_v19 = vpack.c.bf16 %v1303_v21, %v1303_v21  ;;  %v2117_v13 = vpack.c.bf16 %v5333_v34, %v5333_v34 }
 0x33b   :  { %5342 = vrcp.f32 %v2872_v22  ;;  %v7770_v7 = vpack.c.bf16 %v8553_v32, %v8552_v20  ;;  %v7774_v39 = vmul.f32 1.442695, %v926_v5  ;;  %v7776_v23 = vunpack.c.l.bf16 %v2115_v63 }
 0x33c   :  { %v5337_v3 = vpop.eup %5336  ;;  %5344 = vrcp.f32 %v2885_v2  ;;  %v1360_v54 = vpack.c.bf16 %v1306_v0, %v1306_v0  ;;  %v1682_v24 = vunpack.c.h.bf16 %v1358_v19  ;;  %v1683_v48 = vunpack.c.l.bf16 %v1358_v19  ;;  %v8559_v0 = vld [vmem:[#allocation136_spill] sm:$0xff] }
 0x33d   :  { %5346 = vrcp.f32 %v2886_v42  ;;  %v2453_v58 = vpack.c.bf16 %v5337_v3, %v5337_v3  ;;  %v2394_v45 = vmul.f32 1.442695, %v2245_v41  ;;  %v8555_v17 = vunpack.c.l.bf16 %v8554_v18 }
 0x33e   :  { %5348 = vtanh.f32 %v3365_v1  ;;  %v1696_v61 = vunpack.c.h.bf16 %v1360_v54  ;;  %v1697_v51 = vunpack.c.l.bf16 %v1360_v54  ;;  %v8556_v33 = vunpack.c.h.bf16 %v8554_v18  ;;  %v8558_v1 = vld [vmem:[#allocation135_spill] sm:$0xff] }
 0x33f   :  { %v5339_v47 = vpop.eup %5338  ;;  %5350 = vrcp.f32 %v1682_v24  ;;  %v2528_v15 = vunpack.c.l.bf16 %v2453_v58  ;;  %v1286_v49 = vadd.f32 1.0, %v8555_v17  ;;  %v7782_v11 = vunpack.c.l.bf16 %v2117_v13 }
 0x340   :  { %v1287_v12 = vadd.f32 1.0, %v8556_v33  ;;  %v5341_v9 = vpop.eup %5340  ;;  %v3503_v5 = vpack.c.bf16 %v5339_v47, %v5339_v47  ;;  %5352 = vrcp.f32 %v1683_v48  ;;  %v2511_v60 = vunpack.c.l.bf16 %v7770_v7 }
 0x341   :  { %v5343_v14 = vpop.eup %5342  ;;  %v2874_v30 = vmul.f32 %v5341_v9, %v6626_v25  ;;  %5354 = vrcp.f32 %v1696_v61  ;;  %v2606_v56 = vadd.f32 1.0, %v2528_v15  ;;  %v2512_v4 = vunpack.c.h.bf16 %v7770_v7  ;;  %v8560_v9 = vld [vmem:[#allocation85_spill] sm:$0xff] }
 0x342   :  { %v1347_v26 = vpack.c.bf16 %v1287_v12, %v1286_v49  ;;  %v5345_v27 = vpop.eup %5344  ;;  %v2876_v62 = vmul.f32 %v5343_v14, %v6632_v16  ;;  %5356 = vrcp.f32 %v1697_v51  ;;  %v1967_v46 = vunpack.c.l.bf16 %v8557_v55 }
 0x343   :  { %v5347_v6 = vpop.eup %5346  ;;  %v2888_v31 = vmul.f32 %v5345_v27, %v6626_v25  ;;  %5358 = vpow2.f32 %v2394_v45  ;;  %v2661_v50 = vpack.c.bf16 %v2606_v56, %v2606_v56  ;;  %v3648_v37 = vunpack.c.l.bf16 %v3503_v5 }
 0x344   :  { %v1605_v43 = vunpack.c.h.bf16 %v1347_v26  ;;  %v5349_v29 = vpop.eup %5348  ;;  %v2877_v44 = vpack.c.bf16 %v2874_v30, %v2876_v62  ;;  %v2890_v10 = vmul.f32 %v5347_v6, %v6632_v16  ;;  %v2589_v63 = vadd.f32 1.0, %v2511_v60  ;;  %v8562_v6 = vld [vmem:[#allocation134_spill] sm:$0xff] }
 0x345   :  { %v5351_v34 = vpop.eup %5350  ;;  %v3505_v57 = vpack.c.bf16 %v5349_v29, %v5349_v29  ;;  %v2983_v22 = vunpack.c.h.bf16 %v2661_v50  ;;  %v2984_v38 = vunpack.c.l.bf16 %v2661_v50  ;;  %v1606_v21 = vunpack.c.l.bf16 %v1347_v26 }
 0x346   :  { %v5353_v2 = vpop.eup %5352  ;;  %v2891_v42 = vpack.c.bf16 %v2888_v31, %v2890_v10  ;;  %v1685_v41 = vmul.f32 %v5351_v34, %v6626_v25  ;;  %v1137_v19 = vpack.c.bf16 %v8559_v0, %v8558_v1  ;;  %5360 = vrcp.f32 %v1605_v43  ;;  %v8563_v31 = vld [vmem:[#allocation132_spill] sm:$0xff] }
 0x347   :  { %v5355_v13 = vpop.eup %5354  ;;  %v3570_v20 = vunpack.c.l.bf16 %v2877_v44  ;;  %v3651_v32 = vunpack.c.l.bf16 %v3505_v57  ;;  %v1687_v7 = vmul.f32 %v5353_v2, %v6632_v16  ;;  %5362 = vrcp.f32 %v2983_v22 }
 0x348   :  { %v5357_v3 = vpop.eup %5356  ;;  %v3573_v54 = vunpack.c.l.bf16 %v2891_v42  ;;  %v1699_v24 = vmul.f32 %v5355_v13, %v6626_v25  ;;  %5364 = vrcp.f32 %v2984_v38  ;;  %v2590_v48 = vadd.f32 1.0, %v2512_v4 }
 0x349   :  { %v5359_v58 = vpop.eup %5358  ;;  %v3726_v61 = vmul.f32 %v3648_v37, %v3570_v20  ;;  %v1688_v51 = vpack.c.bf16 %v1685_v41, %v1687_v7  ;;  %v1701_v45 = vmul.f32 %v5357_v3, %v6632_v16  ;;  %v1205_v47 = vunpack.c.l.bf16 %v1137_v19 }
 0x34a   :  { %v3729_v15 = vmul.f32 %v3651_v32, %v3573_v54  ;;  %v2455_v18 = vpack.c.bf16 %v5359_v58, %v5359_v58  ;;  %v1206_v17 = vunpack.c.h.bf16 %v1137_v19  ;;  %5366 = vrcp.f32 %v1606_v21 }
 0x34b   :  { %v1702_v49 = vpack.c.bf16 %v1699_v24, %v1701_v45  ;;  %v3100_v33 = vunpack.c.l.bf16 %v1688_v51  ;;  %v1283_v12 = vadd.f32 1.0, %v1205_v47  ;;  %v8561_v5 = vunpack.c.l.bf16 %v8560_v9 }
 0x34c   :  { %v5361_v60 = vpop.eup %5360  ;;  %v3783_v14 = vpack.c.bf16 %v3729_v15, %v3726_v61  ;;  %v2531_v30 = vunpack.c.l.bf16 %v2455_v18  ;;  %v1284_v56 = vadd.f32 1.0, %v1206_v17  ;;  %v7799_v26 = vpack.c.bf16 %v2590_v48, %v2589_v63  ;;  %v8566_v48 = vld [vmem:[#allocation133_spill] sm:$0xff] }
 0x34d   :  { %5368 = vtanh.f32 %v8561_v5  ;;  %v5363_v27 = vpop.eup %5362  ;;  %v3103_v62 = vunpack.c.l.bf16 %v1702_v49  ;;  %v3256_v4 = vmul.f32 %v7776_v23, %v3100_v33  ;;  %v8564_v50 = vrot.slane %v8563_v31, 4  ;;  %v8569_v5 = vld [vmem:[#allocation131_spill] sm:$0xff] }
 0x34e   :  { %v8565_v29 = vunpack.c.h.bf16 %v8560_v9  ;;  %v5365_v44 = vpop.eup %5364  ;;  %4186 = vmatmul.bf16.gmra.mxu2 %v3783_v14  ;;  %v2609_v10 = vadd.f32 1.0, %v2531_v30  ;;  %v2986_v37 = vmul.f32 %v5363_v27, %v6626_v25  ;;  %v1345_v34 = vpack.c.bf16 %v1284_v56, %v1283_v12  ;;  %v8570_v56 = vld [vmem:[#allocation84_spill] sm:$0xff] }
 0x34f   :  { %v1852_v43 = vsel %vm1835_vm0, %v8564_v50, %v8562_v6  ;;  %v2988_v57 = vmul.f32 %v5365_v44, %v6632_v16  ;;  %v3259_v22 = vmul.f32 %v7782_v11, %v3103_v62  ;;  %v3311_v23 = vpack.c.bf16 %v3256_v4, %v3256_v4 }
 0x350   :  { %5370 = vtanh.f32 %v8565_v29  ;;  %v1962_v63 = vunpack.c.l.bf16 %v1852_v43  ;;  %v1608_v38 = vmul.f32 %v5361_v60, %v6626_v25  ;;  %v5367_v21 = vpop.eup %5366  ;;  %v2663_v2 = vpack.c.bf16 %v2609_v10, %v2609_v10 }
 0x351   :  { %v1591_v42 = vunpack.c.h.bf16 %v1345_v34  ;;  %v1963_v41 = vunpack.c.h.bf16 %v1852_v43  ;;  %v2989_v0 = vpack.c.bf16 %v2986_v37, %v2988_v57  ;;  %v3313_v19 = vpack.c.bf16 %v3259_v22, %v3259_v22 }
 0x352   :  { %5372 = vtanh.f32 %v1962_v63  ;;  %v3386_v13 = vunpack.c.l.bf16 %v3311_v23  ;;  %v1610_v20 = vmul.f32 %v5367_v21, %v6632_v16  ;;  %v2997_v32 = vunpack.c.h.bf16 %v2663_v2 }
 0x353   :  { %v5369_v1 = vpop.eup %5368  ;;  %v2998_v7 = vunpack.c.l.bf16 %v2663_v2  ;;  %v1592_v3 = vunpack.c.l.bf16 %v1345_v34  ;;  %5374 = vrcp.f32 %v1591_v42  ;;  %v3389_v11 = vunpack.c.l.bf16 %v3313_v19 }
 0x354   :  { %5376 = vtanh.f32 %v3386_v13  ;;  %v1611_v24 = vpack.c.bf16 %v1608_v38, %v1610_v20  ;;  %v8567_v58 = vunpack.c.l.bf16 %v8566_v48  ;;  %v3594_v51 = vunpack.c.l.bf16 %v2989_v0 }
 0x355   :  { %5378 = vrcp.f32 %v2997_v32  ;;  %v8568_v47 = vunpack.c.h.bf16 %v8566_v48  ;;  %v2906_v18 = vunpack.c.h.bf16 %v7799_v26  ;;  %v607_v60 = vadd.f32 %v7709_v35, %v8569_v5 }
 0x356   :  { %v5371_v54 = vpop.eup %5370  ;;  %v2348_v61 = vmul.f32 1.442695, %v8567_v58  ;;  %5380 = vrcp.f32 %v2998_v7  ;;  %v3083_v17 = vunpack.c.l.bf16 %v1611_v24  ;;  %v3084_v49 = vunpack.c.h.bf16 %v1611_v24 }
 0x357   :  { %v2104_v45 = vpack.c.bf16 %v5371_v54, %v5369_v1  ;;  %v2350_v15 = vmul.f32 1.442695, %v8568_v47  ;;  %5382 = vtanh.f32 %v3389_v11  ;;  %v2907_v14 = vunpack.c.l.bf16 %v7799_v26  ;;  %v8572_v47 = vld [vmem:[#allocation89_spill] sm:$0xff] }
 0x358   :  { %v5373_v33 = vpop.eup %5372  ;;  %5384 = vrcp.f32 %v1592_v3  ;;  %v852_v30 = vxor.u32 2147516416, %v8563_v31  ;;  %v8571_v27 = vpack.c.bf16 %v8570_v56, %v8570_v56  ;;  %v773_v29 = vpack.c.bf16 %v607_v60, %v607_v60 }
 0x359   :  { %v3161_v12 = vunpack.c.l.bf16 %v2104_v45  ;;  %v3162_v9 = vunpack.c.h.bf16 %v2104_v45  ;;  %v5375_v4 = vpop.eup %5374  ;;  %5386 = vtanh.f32 %v1963_v41  ;;  %v1964_v37 = vunpack.c.l.bf16 %v8562_v6 }
 0x35a   :  { %v2157_v62 = vxor.u32 2147516416, %v8571_v27  ;;  %v5377_v44 = vpop.eup %5376  ;;  %5388 = vpow2.f32 %v2348_v61  ;;  %v921_v10 = vunpack.c.l.bf16 %v852_v30  ;;  %v2155_v31 = vxor.u32 2147516416, %v773_v29 }
 0x35b   :  { %v3239_v50 = vmul.f32 %v3161_v12, %v3083_v17  ;;  %v3240_v43 = vmul.f32 %v3162_v9, %v3084_v49  ;;  %v5379_v63 = vpop.eup %5378  ;;  %v3519_v57 = vpack.c.bf16 %v5377_v44, %v5377_v44  ;;  %5390 = vpow2.f32 %v2350_v15 }
 0x35c   :  { %v2227_v34 = vunpack.c.l.bf16 %v2157_v62  ;;  %v5381_v22 = vpop.eup %5380  ;;  %v3000_v23 = vmul.f32 %v5379_v63, %v6626_v25  ;;  %v1594_v38 = vmul.f32 %v5375_v4, %v6626_v25  ;;  %5392 = vrcp.f32 %v2906_v18 }
 0x35d   :  { %v3300_v26 = vpack.c.bf16 %v3240_v43, %v3239_v50  ;;  %v1049_v21 = vmul.f32 1.442695, %v921_v10  ;;  %v5383_v2 = vpop.eup %5382  ;;  %v3002_v42 = vmul.f32 %v5381_v22, %v6632_v16  ;;  %v3672_v41 = vunpack.c.l.bf16 %v3519_v57 }
 0x35e   :  { %5394 = vrcp.f32 %v2907_v14  ;;  %v5385_v6 = vpop.eup %5384  ;;  %v3521_v0 = vpack.c.bf16 %v5383_v2, %v5383_v2  ;;  %v2224_v13 = vunpack.c.l.bf16 %v2155_v31  ;;  %v2358_v3 = vmul.f32 1.442695, %v2227_v34 }
 0x35f   :  { %v3369_v1 = vunpack.c.l.bf16 %v3300_v26  ;;  %v3370_v19 = vunpack.c.h.bf16 %v3300_v26  ;;  %5396 = vpow2.f32 %v1049_v21  ;;  %v5387_v20 = vpop.eup %5386  ;;  %v3003_v32 = vpack.c.bf16 %v3000_v23, %v3002_v42 }
 0x360   :  { %v1596_v7 = vmul.f32 %v5385_v6, %v6632_v16  ;;  %v5389_v54 = vpop.eup %5388  ;;  %v3675_v11 = vunpack.c.l.bf16 %v3521_v0  ;;  %v3750_v24 = vmul.f32 %v3672_v41, %v3594_v51  ;;  %v2102_v48 = vpack.c.bf16 %v5387_v20, %v5373_v33 }
 0x361   :  { %5398 = vtanh.f32 %v3369_v1  ;;  %v5391_v58 = vpop.eup %5390  ;;  %v3597_v61 = vunpack.c.l.bf16 %v3003_v32  ;;  %v2352_v15 = vmul.f32 1.442695, %v2224_v13  ;;  %v2229_v13 = vunpack.c.h.bf16 %v7448_v53  ;;  %v8573_v32 = vld [vmem:[#allocation96_spill] sm:$0xff] }
 0x362   :  { %5400 = vtanh.f32 %v3370_v19  ;;  %v1597_v45 = vpack.c.bf16 %v1594_v38, %v1596_v7  ;;  %v5393_v18 = vpop.eup %5392  ;;  %v2440_v17 = vpack.c.bf16 %v5391_v58, %v5389_v54  ;;  %v3158_v49 = vunpack.c.l.bf16 %v2102_v48 }
 0x363   :  { %5402 = vpow2.f32 %v8572_v47  ;;  %v3159_v12 = vunpack.c.h.bf16 %v2102_v48  ;;  %v3753_v5 = vmul.f32 %v3675_v11, %v3597_v61  ;;  %v2909_v60 = vmul.f32 %v5393_v18, %v6626_v25 }
 0x364   :  { %5404 = vtanh.f32 %v1964_v37  ;;  %v5395_v9 = vpop.eup %5394  ;;  %v3080_v14 = vunpack.c.l.bf16 %v1597_v45  ;;  %v3081_v30 = vunpack.c.h.bf16 %v1597_v45  ;;  %v2508_v33 = vunpack.c.l.bf16 %v2440_v17 }
 0x365   :  { %v5397_v51 = vpop.eup %5396  ;;  %v2509_v56 = vunpack.c.h.bf16 %v2440_v17  ;;  %v2911_v27 = vmul.f32 %v5395_v9, %v6632_v16  ;;  %5406 = vtanh.f32 %v1967_v46  ;;  %v3795_v4 = vpack.c.bf16 %v3753_v5, %v3750_v24  ;;  %v8574_v9 = vld [vmem:[#allocation91_spill] sm:$0xff] }
 0x366   :  { %v3236_v50 = vmul.f32 %v3158_v49, %v3080_v14  ;;  %v3237_v43 = vmul.f32 %v3159_v12, %v3081_v30  ;;  %v1138_v29 = vpack.c.bf16 %v5397_v51, %v5397_v51  ;;  %v2586_v10 = vadd.f32 1.0, %v2508_v33 }
 0x367   :  { %v5399_v62 = vpop.eup %5398  ;;  %v2587_v37 = vadd.f32 1.0, %v2509_v56  ;;  %v2912_v34 = vpack.c.bf16 %v2909_v60, %v2911_v27  ;;  %5408 = vpow2.f32 %v2352_v15  ;;  %4206 = vmatmul.bf16.gmra.mxu3 %v3795_v4  ;;  %v688_v5 = vadd.f32 %v7709_v35, %v8574_v9  ;;  %v8575_v27 = vld [vmem:[#allocation98_spill] sm:$0xff] }
 0x368   :  { %v5401_v44 = vpop.eup %5400  ;;  %v3298_v57 = vpack.c.bf16 %v3237_v43, %v3236_v50  ;;  %v1207_v31 = vunpack.c.l.bf16 %v1138_v29  ;;  %5410 = vpow2.f32 %v2358_v3  ;;  %v8576_v50 = vld [vmem:[#allocation92_spill] sm:$0xff]  ;;  %v8577_v29 = vld [vmem:[#allocation103_spill] sm:$0xff] }
 0x369   :  { %v5403_v63 = vpop.eup %5402  ;;  %v3508_v26 = vpack.c.bf16 %v5401_v44, %v5399_v62  ;;  %5412 = vpow2.f32 %v7774_v39  ;;  %v2648_v55 = vpack.c.bf16 %v2587_v37, %v2586_v10  ;;  %v3577_v46 = vunpack.c.l.bf16 %v2912_v34  ;;  %v8578_v10 = vld [vmem:[#allocation95_spill] sm:$0xff] }
 0x36a   :  { %v7835_v22 = vpop.eup %5404  ;;  %v1140_v23 = vpack.c.bf16 %v5403_v63, %v5403_v63  ;;  %v3366_v38 = vunpack.c.l.bf16 %v3298_v57  ;;  %v3367_v21 = vunpack.c.h.bf16 %v3298_v57  ;;  %v1285_v19 = vadd.f32 1.0, %v1207_v31 }
 0x36b   :  { %v3655_v2 = vunpack.c.l.bf16 %v3508_v26  ;;  %v3656_v42 = vunpack.c.h.bf16 %v3508_v26  ;;  %v7838_v41 = vpop.eup %5406  ;;  %v2892_v1 = vunpack.c.h.bf16 %v2648_v55  ;;  %v2893_v6 = vunpack.c.l.bf16 %v2648_v55 }
 0x36c   :  { %v1210_v0 = vunpack.c.l.bf16 %v1140_v23  ;;  %5414 = vtanh.f32 %v3366_v38  ;;  %v3578_v20 = vunpack.c.h.bf16 %v2912_v34  ;;  %v7843_v39 = vadd.f32 %v7709_v35, %v8573_v32 }
 0x36d   :  { %v5409_v7 = vpop.eup %5408  ;;  %5416 = vrcp.f32 %v2892_v1  ;;  %v7845_v3 = vmul.f32 %v3655_v2, %v3577_v46  ;;  %v1346_v11 = vpack.c.bf16 %v1285_v19, %v1285_v19  ;;  %v2103_v58 = vpack.c.bf16 %v7835_v22, %v7835_v22 }
 0x36e   :  { %v1288_v54 = vadd.f32 1.0, %v1210_v0  ;;  %v5411_v24 = vpop.eup %5410  ;;  %5418 = vrcp.f32 %v2893_v6  ;;  %v7847_v48 = vmul.f32 %v3656_v42, %v3578_v20  ;;  %v2441_v61 = vpack.c.bf16 %v5409_v7, %v5409_v7 }
 0x36f   :  { %v7851_v45 = vpop.eup %5412  ;;  %5420 = vtanh.f32 %v3367_v21  ;;  %v1598_v15 = vunpack.c.h.bf16 %v1346_v11  ;;  %v1599_v18 = vunpack.c.l.bf16 %v1346_v11  ;;  %v2105_v17 = vpack.c.bf16 %v7838_v41, %v7838_v41 }
 0x370   :  { %v1348_v47 = vpack.c.bf16 %v1288_v54, %v1288_v54  ;;  %v2443_v49 = vpack.c.bf16 %v5411_v24, %v5411_v24  ;;  %v2510_v12 = vunpack.c.l.bf16 %v2441_v61  ;;  %v813_v30 = vpack.c.bf16 %v7843_v39, %v7843_v39 }
 0x371   :  { %5422 = vrcp.f32 %v1598_v15  ;;  %v868_v62 = vxor.u32 2147516416, %v8575_v27  ;;  %v870_v43 = vxor.u32 2147516416, %v8576_v50  ;;  %v1988_v44 = vunpack.c.l.bf16 %v8577_v29 }
 0x372   :  { %v1612_v60 = vunpack.c.h.bf16 %v1348_v47  ;;  %v1613_v14 = vunpack.c.l.bf16 %v1348_v47  ;;  %v5415_v51 = vpop.eup %5414  ;;  %5424 = vrcp.f32 %v1599_v18  ;;  %v2513_v33 = vunpack.c.l.bf16 %v2443_v49 }
 0x373   :  { %v2588_v56 = vadd.f32 1.0, %v2510_v12  ;;  %v5417_v4 = vpop.eup %5416  ;;  %v1991_v35 = vunpack.c.l.bf16 %v8578_v10  ;;  %v818_v55 = vpack.c.bf16 %v688_v5, %v688_v5  ;;  %v945_v46 = vunpack.c.l.bf16 %v868_v62 }
 0x374   :  { %5426 = vrcp.f32 %v1612_v60  ;;  %v5419_v37 = vpop.eup %5418  ;;  %v2895_v34 = vmul.f32 %v5417_v4, %v6626_v25  ;;  %v2591_v63 = vadd.f32 1.0, %v2513_v33  ;;  %v948_v23 = vunpack.c.l.bf16 %v870_v43 }
 0x375   :  { %5428 = vrcp.f32 %v1613_v14  ;;  %v2649_v57 = vpack.c.bf16 %v2588_v56, %v2588_v56  ;;  %v5421_v26 = vpop.eup %5420  ;;  %v2897_v31 = vmul.f32 %v5419_v37, %v6632_v16  ;;  %v1097_v0 = vmul.f32 1.442695, %v945_v46 }
 0x376   :  { %v3506_v38 = vpack.c.bf16 %v5421_v26, %v5415_v51  ;;  %v2651_v21 = vpack.c.bf16 %v2591_v63, %v2591_v63  ;;  %5430 = vtanh.f32 %v1988_v44  ;;  %v1103_v19 = vmul.f32 1.442695, %v948_v23 }
 0x377   :  { %v2899_v2 = vunpack.c.h.bf16 %v2649_v57  ;;  %v5423_v42 = vpop.eup %5422  ;;  %v2898_v1 = vpack.c.bf16 %v2895_v34, %v2897_v31  ;;  %v2900_v6 = vunpack.c.l.bf16 %v2649_v57  ;;  %5432 = vtanh.f32 %v1991_v35 }
 0x378   :  { %v5425_v20 = vpop.eup %5424  ;;  %v3652_v32 = vunpack.c.l.bf16 %v3506_v38  ;;  %v3653_v39 = vunpack.c.h.bf16 %v3506_v38  ;;  %v1601_v7 = vmul.f32 %v5423_v42, %v6626_v25  ;;  %v2913_v18 = vunpack.c.h.bf16 %v2651_v21 }
 0x379   :  { %v3574_v11 = vunpack.c.l.bf16 %v2898_v1  ;;  %v3575_v24 = vunpack.c.h.bf16 %v2898_v1  ;;  %v1603_v61 = vmul.f32 %v5425_v20, %v6632_v16  ;;  %5434 = vrcp.f32 %v2899_v2 }
 0x37a   :  { %v5427_v54 = vpop.eup %5426  ;;  %v2914_v49 = vunpack.c.l.bf16 %v2651_v21  ;;  %5436 = vpow2.f32 %v1097_v0  ;;  %v2360_v51 = vmul.f32 1.442695, %v2228_v52  ;;  %v2171_v33 = vxor.u32 2147516416, %v813_v30  ;;  %v7897_v21 = vld [vmem:[%s8073_s4] ss:$0 sm:$0xff] }
 0x37b   :  { %v5429_v47 = vpop.eup %5428  ;;  %v1615_v15 = vmul.f32 %v5427_v54, %v6626_v25  ;;  %v3730_v12 = vmul.f32 %v3652_v32, %v3574_v11  ;;  %v3731_v9 = vmul.f32 %v3653_v39, %v3575_v24  ;;  %v1604_v5 = vpack.c.bf16 %v1601_v7, %v1603_v61 }
 0x37c   :  { %v1617_v60 = vmul.f32 %v5429_v47, %v6632_v16  ;;  %v7869_v14 = vpop.eup %5430  ;;  %5438 = vrcp.f32 %v2900_v6  ;;  %v2173_v56 = vxor.u32 2147516416, %v818_v55  ;;  %v3160_v29 = vunpack.c.l.bf16 %v2103_v58 }
 0x37d   :  { %v3784_v27 = vpack.c.bf16 %v7845_v3, %v3730_v12  ;;  %v3785_v62 = vpack.c.bf16 %v7847_v48, %v3731_v9  ;;  %5440 = vrcp.f32 %v2913_v18  ;;  %v7875_v50 = vpop.eup %5432  ;;  %v3082_v43 = vunpack.c.l.bf16 %v1604_v5 }
 0x37e   :  { %v1618_v4 = vpack.c.bf16 %v1615_v15, %v1617_v60  ;;  %5442 = vpow2.f32 %v1103_v19  ;;  %v2248_v44 = vunpack.c.l.bf16 %v2171_v33  ;;  %v3163_v3 = vunpack.c.l.bf16 %v2105_v17 }
 0x37f   :  { %v5435_v10 = vpop.eup %5434  ;;  %4043 = vmatmul.bf16.gmra.mxu0 %v3784_v27  ;;  %4117 = vmatmul.bf16.gmra.mxu1 %v3785_v62  ;;  %5444 = vrcp.f32 %v2914_v49  ;;  %v2251_v48 = vunpack.c.l.bf16 %v2173_v56  ;;  %v7885_v35 = vpack.c.bf16 %v7851_v45, %v7765_v8  ;;  %v2362_v22 = vmul.f32 1.442695, %v2229_v13  ;;  %v4004_v45 = vpop.f32.mrf.mxu0 }
 0x380   :  { %v3085_v52 = vunpack.c.l.bf16 %v1618_v4  ;;  %v5437_v30 = vpop.eup %5436  ;;  %v3238_v58 = vmul.f32 %v3160_v29, %v3082_v43  ;;  %v2400_v37 = vmul.f32 1.442695, %v2248_v44  ;;  %5446 = vpow2.f32 %v2360_v51  ;;  %v4078_v49 = vpop.f32.mrf.mxu1 }
 0x381   :  { %v1154_v63 = vpack.c.bf16 %v5437_v30, %v5437_v30  ;;  %v2406_v57 = vmul.f32 1.442695, %v2251_v48  ;;  %v1968_v31 = vunpack.c.l.bf16 %v7534_v28  ;;  %v1969_v41 = vunpack.c.h.bf16 %v7534_v28 }
 0x382   :  { %v3241_v34 = vmul.f32 %v3163_v3, %v3085_v52  ;;  %v5439_v26 = vpop.eup %5438  ;;  %v3299_v17 = vpack.c.bf16 %v3238_v58, %v3238_v58  ;;  %5448 = vpow2.f32 %v2400_v37  ;;  %v1214_v8 = vunpack.c.l.bf16 %v7528_v36 }
 0x383   :  { %v5441_v55 = vpop.eup %5440  ;;  %v1231_v53 = vunpack.c.l.bf16 %v1154_v63  ;;  %5450 = vpow2.f32 %v2406_v57  ;;  %v1215_v23 = vunpack.c.h.bf16 %v7528_v36  ;;  %v1211_v38 = vunpack.c.l.bf16 %v7885_v35  ;;  %v8579_v63 = vld [vmem:[#allocation138_spill] sm:$0xff] }
 0x384   :  { %v3301_v46 = vpack.c.bf16 %v3241_v34, %v3241_v34  ;;  %v5443_v13 = vpop.eup %5442  ;;  %5452 = vpow2.f32 %v2362_v22  ;;  %v3368_v28 = vunpack.c.l.bf16 %v3299_v17  ;;  %v1212_v42 = vunpack.c.h.bf16 %v7885_v35 }
 0x385   :  { %v5445_v2 = vpop.eup %5444  ;;  %v1156_v6 = vpack.c.bf16 %v5443_v13, %v5443_v13  ;;  %v1309_v0 = vadd.f32 1.0, %v1231_v53  ;;  %v4005_v19 = vadd.f32 %v7897_v21, %v4004_v45  ;;  %v2902_v20 = vmul.f32 %v5435_v10, %v6626_v25 }
 0x386   :  { %v3371_v1 = vunpack.c.l.bf16 %v3301_v46  ;;  %v2904_v32 = vmul.f32 %v5439_v26, %v6632_v16  ;;  %5454 = vtanh.f32 %v3368_v28  ;;  %v5447_v39 = vpop.eup %5446  ;;  %v2119_v11 = vpack.c.bf16 %v7869_v14, %v7869_v14 }
 0x387   :  { %v1234_v7 = vunpack.c.l.bf16 %v1156_v6  ;;  %v1362_v54 = vpack.c.bf16 %v1309_v0, %v1309_v0  ;;  %v2916_v61 = vmul.f32 %v5441_v55, %v6626_v25  ;;  %v2918_v47 = vmul.f32 %v5445_v2, %v6632_v16 }
 0x388   :  { %5456 = vtanh.f32 %v3371_v1  ;;  %v5449_v24 = vpop.eup %5448  ;;  %v2121_v15 = vpack.c.bf16 %v7875_v50, %v7875_v50  ;;  %v7909_v33 = vadd.f32 %v4078_v49, %v4005_v19  ;;  %v2905_v56 = vpack.c.bf16 %v2902_v20, %v2904_v32  ;;  %v4152_v32 = vpop.f32.mrf.mxu2 }
 0x389   :  { %5458 = vtanh.f32 %v1968_v31  ;;  %v5451_v18 = vpop.eup %5450  ;;  %v1312_v12 = vadd.f32 1.0, %v1234_v7  ;;  %v1710_v9 = vunpack.c.h.bf16 %v1362_v54  ;;  %v1711_v5 = vunpack.c.l.bf16 %v1362_v54 }
 0x38a   :  { %v2457_v60 = vpack.c.bf16 %v5449_v24, %v5449_v24  ;;  %v5453_v51 = vpop.eup %5452  ;;  %v2459_v14 = vpack.c.bf16 %v5451_v18, %v5451_v18  ;;  %5460 = vtanh.f32 %v1969_v41  ;;  %v7911_v4 = vunpack.c.l.bf16 %v2119_v11  ;;  %v8582_v11 = vld [vmem:[#allocation45_spill] sm:$0xff]  ;;  %v8583_v24 = vld [vmem:[#allocation43_spill] sm:$0xff] }
 0x38b   :  { %v1364_v27 = vpack.c.bf16 %v1312_v12, %v1312_v12  ;;  %5462 = vrcp.f32 %v1710_v9  ;;  %v2919_v50 = vpack.c.bf16 %v2916_v61, %v2918_v47  ;;  %v7913_v44 = vunpack.c.l.bf16 %v2121_v15 }
 0x38c   :  { %v2534_v62 = vunpack.c.l.bf16 %v2457_v60  ;;  %v5455_v43 = vpop.eup %5454  ;;  %5464 = vrcp.f32 %v1711_v5  ;;  %v2537_v29 = vunpack.c.l.bf16 %v2459_v14  ;;  %v3576_v37 = vunpack.c.l.bf16 %v2905_v56 }
 0x38d   :  { %v3507_v52 = vpack.c.bf16 %v5455_v43, %v5455_v43  ;;  %v1724_v3 = vunpack.c.h.bf16 %v1364_v27  ;;  %v1725_v48 = vunpack.c.l.bf16 %v1364_v27  ;;  %v8580_v57 = vunpack.c.l.bf16 %v8579_v63 }
 0x38e   :  { %v5457_v10 = vpop.eup %5456  ;;  %v2612_v30 = vadd.f32 1.0, %v2534_v62  ;;  %v2615_v34 = vadd.f32 1.0, %v2537_v29  ;;  %v2444_v41 = vpack.c.bf16 %v5453_v51, %v5447_v39  ;;  %v3579_v55 = vunpack.c.l.bf16 %v2919_v50  ;;  %v4006_v39 = vpop.f32.mrf.mxu0 }
 0x38f   :  { %v7915_v22 = vpop.eup %5458  ;;  %v3509_v58 = vpack.c.bf16 %v5457_v10, %v5457_v10  ;;  %5466 = vtanh.f32 %v8580_v57  ;;  %v3654_v26 = vunpack.c.l.bf16 %v3507_v52  ;;  %v1289_v2 = vadd.f32 1.0, %v1211_v38 }
 0x390   :  { %5468 = vrcp.f32 %v1724_v3  ;;  %v2665_v31 = vpack.c.bf16 %v2612_v30, %v2612_v30  ;;  %v7919_v17 = vpop.eup %5460  ;;  %v2667_v46 = vpack.c.bf16 %v2615_v34, %v2615_v34  ;;  %v1290_v1 = vadd.f32 1.0, %v1212_v42 }
 0x391   :  { %v3657_v45 = vunpack.c.l.bf16 %v3509_v58  ;;  %5470 = vrcp.f32 %v1725_v48  ;;  %v5463_v53 = vpop.eup %5462  ;;  %v3732_v13 = vmul.f32 %v3654_v26, %v3576_v37  ;;  %v8581_v7 = vunpack.c.h.bf16 %v8579_v63  ;;  %v4154_v58 = vpop.f32.mrf.mxu2 }
 0x392   :  { %v3011_v28 = vunpack.c.h.bf16 %v2665_v31  ;;  %v5465_v6 = vpop.eup %5464  ;;  %v1713_v19 = vmul.f32 %v5463_v53, %v6626_v25  ;;  %v3012_v20 = vunpack.c.l.bf16 %v2665_v31  ;;  %v2446_v61 = vpack.c.bf16 %v8583_v24, %v8582_v11 }
 0x393   :  { %v3735_v0 = vmul.f32 %v3657_v45, %v3579_v55  ;;  %5472 = vtanh.f32 %v8581_v7  ;;  %v1715_v54 = vmul.f32 %v5465_v6, %v6632_v16  ;;  %v2514_v47 = vunpack.c.l.bf16 %v2444_v41 }
 0x394   :  { %v2515_v15 = vunpack.c.h.bf16 %v2444_v41  ;;  %v3025_v42 = vunpack.c.h.bf16 %v2667_v46  ;;  %v1292_v18 = vadd.f32 1.0, %v1214_v8  ;;  %v1293_v49 = vadd.f32 1.0, %v1215_v23  ;;  %v4080_v23 = vpop.f32.mrf.mxu1 }
 0x395   :  { %v7929_v35 = vpop.eup %5466  ;;  %v3786_v38 = vpack.c.bf16 %v3735_v0, %v3732_v13  ;;  %v1716_v9 = vpack.c.bf16 %v1713_v19, %v1715_v54  ;;  %5474 = vrcp.f32 %v3011_v28  ;;  %v4007_v5 = vadd.f32 %v7897_v21, %v4006_v39  ;;  %v8584_v13 = vld [vmem:[#allocation137_spill] sm:$0xff]  ;;  %v8585_v28 = vld [vmem:[#allocation139_spill] sm:$0xff] }
 0x396   :  { %v5469_v12 = vpop.eup %5468  ;;  %v1349_v60 = vpack.c.bf16 %v1290_v1, %v1289_v2  ;;  %5476 = vrcp.f32 %v3012_v20  ;;  %v3026_v14 = vunpack.c.l.bf16 %v2667_v46  ;;  %v1351_v27 = vpack.c.bf16 %v1293_v49, %v1292_v18 }
 0x397   :  { %v5471_v51 = vpop.eup %5470  ;;  %4191 = vmatmul.bf16.gmra.mxu2 %v3786_v38  ;;  %v1727_v56 = vmul.f32 %v5469_v12, %v6626_v25  ;;  %v3106_v43 = vunpack.c.l.bf16 %v1716_v9  ;;  %5478 = vrcp.f32 %v3025_v42  ;;  %v2517_v10 = vunpack.c.l.bf16 %v2446_v61 }
 0x398   :  { %v1729_v62 = vmul.f32 %v5471_v51, %v6632_v16  ;;  %v1619_v8 = vunpack.c.h.bf16 %v1349_v60  ;;  %v1620_v50 = vunpack.c.l.bf16 %v1349_v60  ;;  %v1633_v29 = vunpack.c.h.bf16 %v1351_v27 }
 0x399   :  { %v5473_v36 = vpop.eup %5472  ;;  %v2518_v52 = vunpack.c.h.bf16 %v2446_v61  ;;  %v3262_v48 = vmul.f32 %v7911_v4, %v3106_v43  ;;  %v4081_v30 = vadd.f32 %v4080_v23, %v4007_v5  ;;  %v1634_v37 = vunpack.c.l.bf16 %v1351_v27 }
 0x39a   :  { %v1730_v3 = vpack.c.bf16 %v1727_v56, %v1729_v62  ;;  %5480 = vrcp.f32 %v1619_v8  ;;  %v2592_v34 = vadd.f32 1.0, %v2514_v47  ;;  %v2593_v63 = vadd.f32 1.0, %v2515_v15 }
 0x39b   :  { %5482 = vrcp.f32 %v1620_v50  ;;  %v5475_v57 = vpop.eup %5474  ;;  %v3315_v31 = vpack.c.bf16 %v3262_v48, %v3262_v48  ;;  %v4155_v41 = vadd.f32 %v4154_v58, %v4081_v30  ;;  %v4153_v45 = vadd.f32 %v4152_v32, %v7909_v33  ;;  %v8586_v32 = vld [vmem:[#allocation140_spill] sm:$0xff] }
 0x39c   :  { %5484 = vrcp.f32 %v3026_v14  ;;  %v3109_v26 = vunpack.c.l.bf16 %v1730_v3  ;;  %v5477_v55 = vpop.eup %5476  ;;  %v2595_v46 = vadd.f32 1.0, %v2517_v10  ;;  %v2596_v53 = vadd.f32 1.0, %v2518_v52 }
 0x39d   :  { %5486 = vrcp.f32 %v1633_v29  ;;  %v788_v4 = vpack.c.bf16 %v8584_v13, %v8584_v13  ;;  %v1067_v2 = vmul.f32 1.442695, %v8585_v28  ;;  %v3392_v6 = vunpack.c.l.bf16 %v3315_v31  ;;  %v5479_v0 = vpop.eup %5478 }
 0x39e   :  { %v3265_v1 = vmul.f32 %v7913_v44, %v3109_v26  ;;  %v1061_v19 = vmul.f32 1.442695, %v7524_v40  ;;  %v4396_v20 = vpack.c.bf16 %v4155_v41, %v4153_v45  ;;  %5488 = vrcp.f32 %v1634_v37 }
 0x39f   :  { %v2652_v39 = vpack.c.bf16 %v2593_v63, %v2592_v34  ;;  %5490 = vtanh.f32 %v3392_v6  ;;  %v2106_v33 = vpack.c.bf16 %v7919_v17, %v7915_v22  ;;  %v8587_v11 = vpack.c.bf16 %v8586_v32, %v8586_v32 }
 0x3a0   :  { %v5481_v7 = vpop.eup %5480  ;;  %v3317_v54 = vpack.c.bf16 %v3265_v1, %v3265_v1  ;;  %4397 = vst [vmem:[%s8074_s5] sm:$0xff] %v4396_v20   ;;  %v2654_v44 = vpack.c.bf16 %v2596_v53, %v2595_v46  ;;  %v3014_v42 = vmul.f32 %v5475_v57, %v6626_v25  ;;  %v2108_v17 = vpack.c.bf16 %v5473_v36, %v7929_v35 }
 0x3a1   :  { %v7950_v24 = vxor.u32 2147516416, %v8587_v11  ;;  %v5483_v61 = vpop.eup %5482  ;;  %v1622_v40 = vmul.f32 %v5481_v7, %v6626_v25  ;;  %v2920_v47 = vunpack.c.h.bf16 %v2652_v39  ;;  %v2921_v15 = vunpack.c.l.bf16 %v2652_v39 }
 0x3a2   :  { %v5485_v38 = vpop.eup %5484  ;;  %v3395_v18 = vunpack.c.l.bf16 %v3317_v54  ;;  %v1624_v22 = vmul.f32 %v5483_v61, %v6632_v16  ;;  %v3016_v12 = vmul.f32 %v5477_v55, %v6632_v16  ;;  %v2934_v9 = vunpack.c.h.bf16 %v2654_v44 }
 0x3a3   :  { %v5487_v49 = vpop.eup %5486  ;;  %5492 = vrcp.f32 %v2920_v47  ;;  %v2935_v5 = vunpack.c.l.bf16 %v2654_v44  ;;  %v3028_v60 = vmul.f32 %v5479_v0, %v6626_v25  ;;  %v3030_v27 = vmul.f32 %v5485_v38, %v6632_v16 }
 0x3a4   :  { %5494 = vtanh.f32 %v3395_v18  ;;  %v1625_v51 = vpack.c.bf16 %v1622_v40, %v1624_v22  ;;  %v1636_v56 = vmul.f32 %v5487_v49, %v6626_v25  ;;  %v5489_v14 = vpop.eup %5488  ;;  %v3164_v62 = vunpack.c.l.bf16 %v2106_v33 }
 0x3a5   :  { %5496 = vrcp.f32 %v2921_v15  ;;  %v3165_v43 = vunpack.c.h.bf16 %v2106_v33  ;;  %v5491_v8 = vpop.eup %5490  ;;  %v1638_v35 = vmul.f32 %v5489_v14, %v6632_v16  ;;  %v3017_v23 = vpack.c.bf16 %v3014_v42, %v3016_v12 }
 0x3a6   :  { %5498 = vrcp.f32 %v2934_v9  ;;  %v3086_v50 = vunpack.c.l.bf16 %v1625_v51  ;;  %v3087_v36 = vunpack.c.h.bf16 %v1625_v51  ;;  %v3523_v29 = vpack.c.bf16 %v5491_v8, %v5491_v8 }
 0x3a7   :  { %5500 = vrcp.f32 %v2935_v5  ;;  %v2161_v10 = vxor.u32 2147516416, %v788_v4  ;;  %v1639_v52 = vpack.c.bf16 %v1636_v56, %v1638_v35  ;;  %v3031_v58 = vpack.c.bf16 %v3028_v60, %v3030_v27  ;;  %v7965_v4 = vpop.f32.mrf.mxu3  ;;  %v8588_v56 = vld [vmem:[#allocation86_spill] sm:$0xff] }
 0x3a8   :  { %v3242_v3 = vmul.f32 %v3164_v62, %v3086_v50  ;;  %v3243_v48 = vmul.f32 %v3165_v43, %v3087_v36  ;;  %5502 = vpow2.f32 %v1061_v19  ;;  %v3678_v37 = vunpack.c.l.bf16 %v3523_v29  ;;  %v4009_v62 = vpop.f32.mrf.mxu0  ;;  %v7973_v43 = vpop.f32.mrf.mxu1 }
 0x3a9   :  { %v5493_v30 = vpop.eup %5492  ;;  %v3167_v34 = vunpack.c.l.bf16 %v2108_v17  ;;  %5504 = vpow2.f32 %v1067_v2  ;;  %v3089_v57 = vunpack.c.l.bf16 %v1639_v52  ;;  %v3090_v26 = vunpack.c.h.bf16 %v1639_v52 }
 0x3aa   :  { %v5495_v63 = vpop.eup %5494  ;;  %v3168_v31 = vunpack.c.h.bf16 %v2108_v17  ;;  %v3302_v41 = vpack.c.bf16 %v3243_v48, %v3242_v3  ;;  %v3600_v46 = vunpack.c.l.bf16 %v3017_v23  ;;  %v2230_v53 = vunpack.c.l.bf16 %v7950_v24 }
 0x3ab   :  { %v5497_v55 = vpop.eup %5496  ;;  %v3525_v45 = vpack.c.bf16 %v5495_v63, %v5495_v63  ;;  %v3245_v28 = vmul.f32 %v3167_v34, %v3089_v57  ;;  %v2233_v0 = vunpack.c.l.bf16 %v2161_v10  ;;  %v3603_v20 = vunpack.c.l.bf16 %v3031_v58 }
 0x3ac   :  { %v5499_v13 = vpop.eup %5498  ;;  %v3246_v1 = vmul.f32 %v3168_v31, %v3090_v26  ;;  %v3372_v6 = vunpack.c.l.bf16 %v3302_v41  ;;  %v3756_v39 = vmul.f32 %v3678_v37, %v3600_v46  ;;  %v3373_v7 = vunpack.c.h.bf16 %v3302_v41 }
 0x3ad   :  { %v5501_v19 = vpop.eup %5500  ;;  %v3681_v2 = vunpack.c.l.bf16 %v3525_v45  ;;  %v2364_v24 = vmul.f32 1.442695, %v2230_v53  ;;  %v2923_v40 = vmul.f32 %v5493_v30, %v6626_v25  ;;  %v2925_v44 = vmul.f32 %v5497_v55, %v6632_v16 }
 0x3ae   :  { %v5503_v54 = vpop.eup %5502  ;;  %v3304_v33 = vpack.c.bf16 %v3246_v1, %v3245_v28  ;;  %5506 = vtanh.f32 %v3372_v6  ;;  %v2370_v22 = vmul.f32 1.442695, %v2233_v0  ;;  %v2937_v17 = vmul.f32 %v5499_v13, %v6626_v25 }
 0x3af   :  { %v5505_v32 = vpop.eup %5504  ;;  %v3759_v11 = vmul.f32 %v3681_v2, %v3603_v20  ;;  %5508 = vtanh.f32 %v3373_v7  ;;  %v1142_v61 = vpack.c.bf16 %v5503_v54, %v5503_v54  ;;  %v2939_v49 = vmul.f32 %v5501_v19, %v6632_v16  ;;  %v7975_v50 = vpop.f32.mrf.mxu3 }
 0x3b0   :  { %v3375_v47 = vunpack.c.l.bf16 %v3304_v33  ;;  %v3376_v15 = vunpack.c.h.bf16 %v3304_v33  ;;  %v1144_v42 = vpack.c.bf16 %v5505_v32, %v5505_v32  ;;  %v1970_v5 = vunpack.c.l.bf16 %v7440_v59  ;;  %v4157_v54 = vpop.f32.mrf.mxu2 }
 0x3b1   :  { %v3798_v38 = vpack.c.bf16 %v3759_v11, %v3756_v39  ;;  %v1213_v18 = vunpack.c.l.bf16 %v1142_v61  ;;  %v2926_v51 = vpack.c.bf16 %v2923_v40, %v2925_v44  ;;  %v1973_v14 = vunpack.c.l.bf16 %v8588_v56  ;;  %v4011_v61 = vpop.f32.mrf.mxu0 }
 0x3b2   :  { %5510 = vtanh.f32 %v3375_v47  ;;  %v1216_v12 = vunpack.c.l.bf16 %v1144_v42  ;;  %v2940_v36 = vpack.c.bf16 %v2937_v17, %v2939_v49  ;;  %v4010_v32 = vadd.f32 %v7897_v21, %v4009_v62 }
 0x3b3   :  { %4211 = vmatmul.bf16.gmra.mxu3 %v3798_v38  ;;  %5512 = vtanh.f32 %v3376_v15  ;;  %v1291_v9 = vadd.f32 1.0, %v1213_v18  ;;  %v3580_v3 = vunpack.c.l.bf16 %v2926_v51  ;;  %v3581_v37 = vunpack.c.h.bf16 %v2926_v51 }
 0x3b4   :  { %v5507_v60 = vpop.eup %5506  ;;  %5514 = vpow2.f32 %v2364_v24  ;;  %v1294_v8 = vadd.f32 1.0, %v1216_v12  ;;  %v3583_v31 = vunpack.c.l.bf16 %v2940_v36  ;;  %v3584_v41 = vunpack.c.h.bf16 %v2940_v36  ;;  %v4085_v24 = vpop.f32.mrf.mxu1 }
 0x3b5   :  { %v5509_v27 = vpop.eup %5508  ;;  %v1350_v35 = vpack.c.bf16 %v1291_v9, %v1291_v9  ;;  %5516 = vpow2.f32 %v2370_v22 }
 0x3b6   :  { %v3510_v23 = vpack.c.bf16 %v5509_v27, %v5507_v60  ;;  %v1352_v29 = vpack.c.bf16 %v1294_v8, %v1294_v8  ;;  %5518 = vtanh.f32 %v1970_v5  ;;  %v4012_v60 = vadd.f32 %v7897_v21, %v4011_v61 }
 0x3b7   :  { %v1626_v10 = vunpack.c.h.bf16 %v1350_v35  ;;  %v1627_v52 = vunpack.c.l.bf16 %v1350_v35  ;;  %5520 = vtanh.f32 %v1973_v14  ;;  %v7977_v7 = vpop.f32.mrf.mxu3 }
 0x3b8   :  { %v5511_v59 = vpop.eup %5510  ;;  %v3658_v48 = vunpack.c.l.bf16 %v3510_v23  ;;  %v3659_v30 = vunpack.c.h.bf16 %v3510_v23  ;;  %v1640_v34 = vunpack.c.h.bf16 %v1352_v29  ;;  %v1641_v63 = vunpack.c.l.bf16 %v1352_v29 }
 0x3b9   :  { %v5513_v58 = vpop.eup %5512  ;;  %5522 = vrcp.f32 %v1626_v10  ;;  %v4084_v29 = vadd.f32 %v7973_v43, %v4010_v32  ;;  %v4086_v10 = vadd.f32 %v4085_v24, %v4012_v60 }
 0x3ba   :  { %v5515_v57 = vpop.eup %5514  ;;  %v3512_v26 = vpack.c.bf16 %v5513_v58, %v5511_v59  ;;  %5524 = vrcp.f32 %v1627_v52  ;;  %v3736_v45 = vmul.f32 %v3658_v48, %v3580_v3  ;;  %v3737_v46 = vmul.f32 %v3659_v30, %v3581_v37  ;;  %v4159_v59 = vpop.f32.mrf.mxu2 }
 0x3bb   :  { %v5517_v55 = vpop.eup %5516  ;;  %5526 = vrcp.f32 %v1640_v34  ;;  %v2445_v53 = vpack.c.bf16 %v5515_v57, %v5515_v57  ;;  %v4014_v58 = vpop.f32.mrf.mxu0  ;;  %v4158_v34 = vadd.f32 %v4157_v54, %v4084_v29 }
 0x3bc   :  { %v3661_v13 = vunpack.c.l.bf16 %v3512_v26  ;;  %v3662_v28 = vunpack.c.h.bf16 %v3512_v26  ;;  %5528 = vrcp.f32 %v1641_v63  ;;  %v2447_v1 = vpack.c.bf16 %v5517_v55, %v5517_v55  ;;  %v5519_v6 = vpop.eup %5518  ;;  %v4088_v37 = vpop.f32.mrf.mxu1 }
 0x3bd   :  { %v2516_v0 = vunpack.c.l.bf16 %v2445_v53  ;;  %v5521_v19 = vpop.eup %5520  ;;  %v2107_v22 = vpack.c.bf16 %v5519_v6, %v5519_v6  ;;  %v4160_v63 = vadd.f32 %v4159_v59, %v4086_v10  ;;  %v4015_v54 = vadd.f32 %v7897_v21, %v4014_v58 }
 0x3be   :  { %v3739_v20 = vmul.f32 %v3661_v13, %v3583_v31  ;;  %v3740_v2 = vmul.f32 %v3662_v28, %v3584_v41  ;;  %v2519_v39 = vunpack.c.l.bf16 %v2447_v1  ;;  %v2109_v17 = vpack.c.bf16 %v5521_v19, %v5521_v19 }
 0x3bf   :  { %v5523_v33 = vpop.eup %5522  ;;  %v2594_v11 = vadd.f32 1.0, %v2516_v0  ;;  %v3166_v23 = vunpack.c.l.bf16 %v2107_v22  ;;  %v7986_v52 = vpop.f32.mrf.mxu3  ;;  %v4401_v31 = vpack.c.bf16 %v4160_v63, %v4158_v34 }
 0x3c0   :  { %v5525_v40 = vpop.eup %5524  ;;  %v3787_v44 = vpack.c.bf16 %v3739_v20, %v3736_v45  ;;  %v3788_v47 = vpack.c.bf16 %v3740_v2, %v3737_v46  ;;  %v1629_v15 = vmul.f32 %v5523_v33, %v6626_v25  ;;  %v2597_v38 = vadd.f32 1.0, %v2519_v39 }
 0x3c1   :  { %v5527_v42 = vpop.eup %5526  ;;  %v1631_v18 = vmul.f32 %v5525_v40, %v6632_v16  ;;  %v2653_v49 = vpack.c.bf16 %v2594_v11, %v2594_v11  ;;  %v3169_v48 = vunpack.c.l.bf16 %v2109_v17  ;;  %4458 = vst [vmem:[%s8074_s5 + $0x8] sm:$0xff] %v4401_v31  }
 0x3c2   :  { %v5529_v12 = vpop.eup %5528  ;;  %4048 = vmatmul.bf16.gmra.mxu0 %v3787_v44  ;;  %4122 = vmatmul.bf16.gmra.mxu1 %v3788_v47  ;;  %v1643_v9 = vmul.f32 %v5527_v42, %v6626_v25  ;;  %v2655_v5 = vpack.c.bf16 %v2597_v38, %v2597_v38  ;;  %v4162_v0 = vpop.f32.mrf.mxu2  ;;  %v4089_v44 = vadd.f32 %v4088_v37, %v4015_v54 }
 0x3c3   :  { %v1632_v51 = vpack.c.bf16 %v1629_v15, %v1631_v18  ;;  %v1645_v56 = vmul.f32 %v5529_v12, %v6632_v16  ;;  %v2927_v14 = vunpack.c.h.bf16 %v2653_v49  ;;  %v2928_v27 = vunpack.c.l.bf16 %v2653_v49  ;;  %v4016_v19 = vpop.f32.mrf.mxu0 }
 0x3c4   :  { %v2941_v62 = vunpack.c.h.bf16 %v2655_v5  ;;  %v2942_v8 = vunpack.c.l.bf16 %v2655_v5  ;;  %v4090_v20 = vpop.f32.mrf.mxu1  ;;  %v4017_v33 = vadd.f32 %v7897_v21, %v4016_v19 }
 0x3c5   :  { %v1646_v35 = vpack.c.bf16 %v1643_v9, %v1645_v56  ;;  %5530 = vrcp.f32 %v2927_v14  ;;  %v3088_v36 = vunpack.c.l.bf16 %v1632_v51 }
 0x3c6   :  { %5532 = vrcp.f32 %v2928_v27  ;;  %v4091_v47 = vadd.f32 %v4090_v20, %v4017_v33 }
 0x3c7   :  { %5534 = vrcp.f32 %v2941_v62  ;;  %v3091_v3 = vunpack.c.l.bf16 %v1646_v35  ;;  %v3244_v30 = vmul.f32 %v3166_v23, %v3088_v36  ;;  %v7993_v6 = vpop.f32.mrf.mxu3 }
 0x3c8   :  { %5536 = vrcp.f32 %v2942_v8 }
 0x3c9   :  { %v3247_v57 = vmul.f32 %v3169_v48, %v3091_v3  ;;  %v3303_v26 = vpack.c.bf16 %v3244_v30, %v3244_v30 }
 0x3ca   :  { %v4164_v22 = vpop.f32.mrf.mxu2 }
 0x3cb   :  { %v5531_v41 = vpop.eup %5530  ;;  %v3305_v55 = vpack.c.bf16 %v3247_v57, %v3247_v57  ;;  %v3374_v43 = vunpack.c.l.bf16 %v3303_v26  ;;  %v4165_v17 = vadd.f32 %v4164_v22, %v4091_v47 }
 0x3cc   :  { %v5533_v45 = vpop.eup %5532  ;;  %v2930_v28 = vmul.f32 %v5531_v41, %v6626_v25  ;;  %v4093_v49 = vpop.f32.mrf.mxu1 }
 0x3cd   :  { %v5535_v46 = vpop.eup %5534  ;;  %v3377_v53 = vunpack.c.l.bf16 %v3305_v55  ;;  %5538 = vtanh.f32 %v3374_v43  ;;  %v2932_v1 = vmul.f32 %v5533_v45, %v6632_v16 }
 0x3ce   :  { %v5537_v13 = vpop.eup %5536  ;;  %v2944_v2 = vmul.f32 %v5535_v46, %v6626_v25  ;;  %v4163_v25 = vadd.f32 %v4162_v0, %v4089_v44 }
 0x3cf   :  { %5540 = vtanh.f32 %v3377_v53  ;;  %v2946_v39 = vmul.f32 %v5537_v13, %v6632_v16  ;;  %v2933_v32 = vpack.c.bf16 %v2930_v28, %v2932_v1  ;;  %v7999_v18 = vpop.f32.mrf.mxu3  ;;  %v4019_v16 = vpop.f32.mrf.mxu0 }
 0x3d0   :  { %v4406_v60 = vpack.c.bf16 %v4165_v17, %v4163_v25  ;;  %v4020_v35 = vadd.f32 %v7897_v21, %v4019_v16 }
 0x3d1   :  { %v2947_v61 = vpack.c.bf16 %v2944_v2, %v2946_v39  ;;  %v3582_v38 = vunpack.c.l.bf16 %v2933_v32 }
 0x3d2   :  { %4459 = vst [vmem:[%s8074_s5 + $0x10] sm:$0xff] %v4406_v60   ;;  %v4167_v27 = vpop.f32.mrf.mxu2  ;;  %v4094_v23 = vadd.f32 %v4093_v49, %v4020_v35 }
 0x3d3   :  { %v5539_v11 = vpop.eup %5538  ;;  %v3585_v12 = vunpack.c.l.bf16 %v2947_v61 }
 0x3d4   :  { %v3511_v24 = vpack.c.bf16 %v5539_v11, %v5539_v11  ;;  %v4095_v8 = vpop.f32.mrf.mxu1  ;;  %v4168_v3 = vadd.f32 %v4167_v27, %v4094_v23 }
 0x3d5   :  { %v5541_v40 = vpop.eup %5540 }
 0x3d6   :  { %v3513_v15 = vpack.c.bf16 %v5541_v40, %v5541_v40  ;;  %v3660_v42 = vunpack.c.l.bf16 %v3511_v24 }
 0x3d7   :  { %v4128_v14 = vpop.f32.mrf.mxu3  ;;  %v4021_v62 = vpop.f32.mrf.mxu0 }
 0x3d8   :  { %v3663_v9 = vunpack.c.l.bf16 %v3513_v15  ;;  %v3738_v5 = vmul.f32 %v3660_v42, %v3582_v38  ;;  %v4022_v36 = vadd.f32 %v7897_v21, %v4021_v62 }
 0x3da   :  { %v3741_v51 = vmul.f32 %v3663_v9, %v3585_v12  ;;  %v4096_v29 = vadd.f32 %v4095_v8, %v4022_v36  ;;  %v4169_v59 = vpop.f32.mrf.mxu2  ;;  %v4055_v12 = vadd.f32 %v7897_v21, %v7965_v4  ;;  %v4057_v9 = vadd.f32 %v7897_v21, %v7975_v50 }
 0x3dc   :  { %v3789_v56 = vpack.c.bf16 %v3741_v51, %v3738_v5  ;;  %v4170_v48 = vadd.f32 %v4169_v59, %v4096_v29  ;;  %v4098_v58 = vpop.f32.mrf.mxu1  ;;  %v4129_v5 = vadd.f32 %v4128_v14, %v4055_v12 }
 0x3de   :  { %4196 = vmatmul.bf16.gmra.mxu2 %v3789_v56  ;;  %v4411_v37 = vpack.c.bf16 %v4170_v48, %v4168_v3 }
 0x3df   :  { %v4130_v10 = vpop.f32.mrf.mxu3  ;;  %v4024_v30 = vpop.f32.mrf.mxu0 }
 0x3e0   :  { %4460 = vst [vmem:[%s8074_s5 + $0x18] sm:$0xff] %v4411_v37   ;;  %v4025_v31 = vadd.f32 %v7897_v21, %v4024_v30  ;;  %v4131_v60 = vadd.f32 %v4130_v10, %v4057_v9  ;;  %v4060_v37 = vadd.f32 %v7897_v21, %v7977_v7 }
 0x3e2   :  { %v4172_v63 = vpop.f32.mrf.mxu2  ;;  %v4099_v55 = vadd.f32 %v4098_v58, %v4025_v31 }
 0x3e4   :  { %v4100_v26 = vpop.f32.mrf.mxu1  ;;  %v4173_v53 = vadd.f32 %v4172_v63, %v4099_v55  ;;  %v4062_v63 = vadd.f32 %v7897_v21, %v7986_v52 }
 0x3e7   :  { %v8009_v34 = vpop.f32.mrf.mxu3  ;;  %v4026_v57 = vpop.f32.mrf.mxu0 }
 0x3e8   :  { %v4027_v41 = vadd.f32 %v7897_v21, %v4026_v57  ;;  %v4134_v57 = vadd.f32 %v8009_v34, %v4060_v37 }
 0x3ea   :  { %v4101_v43 = vadd.f32 %v4100_v26, %v4027_v41  ;;  %v4174_v46 = vpop.f32.mrf.mxu2 }
 0x3ec   :  { %v4175_v13 = vadd.f32 %v4174_v46, %v4101_v43  ;;  %v4103_v1 = vpop.f32.mrf.mxu1 }
 0x3ee   :  { %v4416_v0 = vpack.c.bf16 %v4175_v13, %v4173_v53 }
 0x3ef   :  { %v4135_v45 = vpop.f32.mrf.mxu3  ;;  %v4029_v28 = vpop.f32.mrf.mxu0 }
 0x3f0   :  { %4461 = vst [vmem:[%s8074_s5 + $0x20] sm:$0xff] %v4416_v0   ;;  %v4030_v54 = vadd.f32 %v7897_v21, %v4029_v28  ;;  %v4136_v26 = vadd.f32 %v4135_v45, %v4062_v63 }
 0x3f2   :  { %v4177_v20 = vpop.f32.mrf.mxu2  ;;  %v4104_v32 = vadd.f32 %v4103_v1, %v4030_v54 }
 0x3f4   :  { %v4105_v39 = vpop.f32.mrf.mxu1  ;;  %v4178_v40 = vadd.f32 %v4177_v20, %v4104_v32 }
 0x3f7   :  { %v8016_v19 = vpop.f32.mrf.mxu3  ;;  %v4031_v2 = vpop.f32.mrf.mxu0 }
 0x3f8   :  { %v4032_v33 = vadd.f32 %v7897_v21, %v4031_v2 }
 0x3fa   :  { %v4106_v11 = vadd.f32 %v4105_v39, %v4032_v33  ;;  %v4179_v24 = vpop.f32.mrf.mxu2 }
 0x3fc   :  { %v4180_v44 = vadd.f32 %v4179_v24, %v4106_v11  ;;  %v4108_v15 = vpop.f32.mrf.mxu1 }
 0x3fe   :  { %v4421_v38 = vpack.c.bf16 %v4180_v44, %v4178_v40 }
 0x3ff   :  { %v8020_v61 = vpop.f32.mrf.mxu3  ;;  %v4034_v47 = vpop.f32.mrf.mxu0 }
 0x400   :  { %4462 = vst [vmem:[%s8074_s5 + $0x28] sm:$0xff] %v4421_v38   ;;  %v4035_v16 = vadd.f32 %v7897_v21, %v4034_v47  ;;  %v4065_v47 = vadd.f32 %v7897_v21, %v7993_v6 }
 0x402   :  { %v4182_v42 = vpop.f32.mrf.mxu2  ;;  %v4109_v51 = vadd.f32 %v4108_v15, %v4035_v16  ;;  %v4067_v15 = vadd.f32 %v7897_v21, %v7999_v18  ;;  %v4139_v38 = vadd.f32 %v8016_v19, %v4065_v47 }
 0x404   :  { %v4110_v17 = vpop.f32.mrf.mxu1  ;;  %v4183_v8 = vadd.f32 %v4182_v42, %v4109_v51  ;;  %v4141_v42 = vadd.f32 %v8020_v61, %v4067_v15 }
 0x407   :  { %v4202_v22 = vpop.f32.mrf.mxu3  ;;  %v4036_v25 = vpop.f32.mrf.mxu0 }
 0x408   :  { %v4037_v49 = vadd.f32 %v7897_v21, %v4036_v25  ;;  %v4203_v35 = vadd.f32 %v4202_v22, %v4129_v5 }
 0x40a   :  { %v4111_v56 = vadd.f32 %v4110_v17, %v4037_v49  ;;  %v4184_v27 = vpop.f32.mrf.mxu2 }
 0x40c   :  { %v4185_v36 = vadd.f32 %v4184_v27, %v4111_v56  ;;  %v4113_v59 = vpop.f32.mrf.mxu1 }
 0x40e   :  { %v4426_v3 = vpack.c.bf16 %v4185_v36, %v4183_v8 }
 0x40f   :  { %v4204_v62 = vpop.f32.mrf.mxu3  ;;  %v4039_v29 = vpop.f32.mrf.mxu0 }
 0x410   :  { %v4205_v23 = vadd.f32 %v4204_v62, %v4131_v60  ;;  %4463 = vst [vmem:[%s8074_s5 + $0x30] sm:$0xff] %v4426_v3   ;;  %v4040_v30 = vadd.f32 %v7897_v21, %v4039_v29 }
 0x412   :  { %v4446_v48 = vpack.c.bf16 %v4205_v23, %v4203_v35  ;;  %v4187_v4 = vpop.f32.mrf.mxu2  ;;  %v4114_v31 = vadd.f32 %v4113_v59, %v4040_v30 }
 0x414   :  { %4467 = vst [vmem:[%s8074_s5 + $0x50] sm:$0xff] %v4446_v48   ;;  %v4115_v10 = vpop.f32.mrf.mxu1  ;;  %v4188_v46 = vadd.f32 %v4187_v4, %v4114_v31 }
 0x417   :  { %v4207_v50 = vpop.f32.mrf.mxu3  ;;  %v4041_v14 = vpop.f32.mrf.mxu0 }
 0x418   :  { %v4042_v58 = vadd.f32 %v7897_v21, %v4041_v14  ;;  %v4208_v53 = vadd.f32 %v4207_v50, %v4134_v57 }
 0x41a   :  { %v4116_v41 = vadd.f32 %v4115_v10, %v4042_v58  ;;  %v4189_v55 = vpop.f32.mrf.mxu2 }
 0x41c   :  { %v4190_v13 = vadd.f32 %v4189_v55, %v4116_v41  ;;  %v4118_v2 = vpop.f32.mrf.mxu1 }
 0x41e   :  { %v4431_v0 = vpack.c.bf16 %v4190_v13, %v4188_v46 }
 0x41f   :  { %v4209_v43 = vpop.f32.mrf.mxu3  ;;  %v4044_v1 = vpop.f32.mrf.mxu0 }
 0x420   :  { %v4210_v28 = vadd.f32 %v4209_v43, %v4136_v26  ;;  %4464 = vst [vmem:[%s8074_s5 + $0x38] sm:$0xff] %v4431_v0   ;;  %v4045_v34 = vadd.f32 %v7897_v21, %v4044_v1 }
 0x422   :  { %v4451_v20 = vpack.c.bf16 %v4210_v28, %v4208_v53  ;;  %v4192_v7 = vpop.f32.mrf.mxu2  ;;  %v4119_v54 = vadd.f32 %v4118_v2, %v4045_v34 }
 0x424   :  { %4468 = vst [vmem:[%s8074_s5 + $0x58] sm:$0xff] %v4451_v20   ;;  %v4120_v39 = vpop.f32.mrf.mxu1  ;;  %v4193_v24 = vadd.f32 %v4192_v7, %v4119_v54 }
 0x427   :  { %v4046_v52 = vpop.f32.mrf.mxu0 }
 0x428   :  { %v4047_v45 = vadd.f32 %v7897_v21, %v4046_v52 }
 0x42a   :  { %v4121_v33 = vadd.f32 %v4120_v39, %v4047_v45  ;;  %v4194_v11 = vpop.f32.mrf.mxu2 }
 0x42c   :  { %v4195_v40 = vadd.f32 %v4194_v11, %v4121_v33 }
 0x42e   :  { %v4436_v44 = vpack.c.bf16 %v4195_v40, %v4193_v24 }
 0x430   :  { %4465 = vst [vmem:[%s8074_s5 + $0x40] sm:$0xff] %v4436_v44  }
 0x436   :  { %v4212_v32 = vpop.f32.mrf.mxu3 }
 0x437   :  { %v4213_v25 = vadd.f32 %v4212_v32, %v4139_v38 }
 0x43e   :  { %v4214_v22 = vpop.f32.mrf.mxu3 }
 0x43f   :  { %v4215_v17 = vadd.f32 %v4214_v22, %v4141_v42  ;;  %v4049_v6 = vpop.f32.mrf.mxu0  ;;  %v4123_v49 = vpop.f32.mrf.mxu1 }
 0x440   :  { %v4050_v9 = vadd.f32 %v7897_v21, %v4049_v6 }
 0x441   :  { %v4456_v16 = vpack.c.bf16 %v4215_v17, %v4213_v25 }
 0x442   :  { %v4124_v19 = vadd.f32 %v4123_v49, %v4050_v9 }
 0x443   :  { %4469 = vst [vmem:[%s8074_s5 + $0x60] sm:$0xff] %v4456_v16  }
 0x447   :  { %v4051_v18 = vpop.f32.mrf.mxu0  ;;  %v4125_v60 = vpop.f32.mrf.mxu1 }
 0x448   :  { %v4052_v5 = vadd.f32 %v7897_v21, %v4051_v18 }
 0x44a   :  { %v4126_v51 = vadd.f32 %v4125_v60, %v4052_v5 }
 0x461   :  { %v4197_v12 = vpop.f32.mrf.mxu2 }
 0x462   :  { %v4198_v56 = vadd.f32 %v4197_v12, %v4124_v19 }
 0x469   :  { %v4199_v61 = vpop.f32.mrf.mxu2 }
 0x46a   :  { %v4200_v27 = vadd.f32 %v4199_v61, %v4126_v51 }
 0x46c   :  { %v4441_v62 = vpack.c.bf16 %v4200_v27, %v4198_v56 }
 0x46e   :  { %4466 = vst [vmem:[%s8074_s5 + $0x48] sm:$0xff] %v4441_v62  }

</bundles_post_ra>
